<compile_context>
chip_gen: v6e
topology: v6e:2x2x1
jax: 0.10.0
libtpu: 0.0.40
codegen_flags: <defaults>
</compile_context>

<pallas_src>
import jax
import jax.numpy as jnp
from jax import lax
from jax.experimental import pallas as pl
from jax.experimental.pallas import tpu as pltpu

LANE = 128          # lane width; fc3 logits are padded to this for a lane-dense store
NUM_LOGITS = 10
OFF = 8             # sublane-aligned column offset of the image inside the padded scratch


# ----------------------------------------------------------------------------
# Fused kernel: conv1+pool+relu -> conv2+pool+relu -> flatten -> fc1 -> fc2 -> fc3
# One grid step = one B_TILE batch block.  All intermediates stay in VMEM/vregs.
# ----------------------------------------------------------------------------
def cnn_kernel(x_ref, w1_ref, b1_ref, w2_ref, b2_ref,
               w3_ref, b3_ref, w4_ref, b4_ref, w5_ref, b5_ref,
               o_ref, pad1_ref, pad2_ref):
    B, H, W, C0 = x_ref.shape
    C1 = w1_ref.shape[2]            # 64
    C2 = w2_ref.shape[1]            # 128
    H1, W1 = H // 2, W // 2
    H2, W2 = H1 // 2, W1 // 2

    def zero_border(pad_ref, Hc, Wc):
        # Only the strips that are ever read as zeros; interior is overwritten below.
        Bp, Hp, Wp, Cp = pad_ref.shape
        row0 = jnp.zeros((Bp, 1, Wp, Cp), jnp.float32)
        col0 = jnp.zeros((Bp, Hp, 1, Cp), jnp.float32)
        pad_ref[:, 0:1, :, :] = row0
        pad_ref[:, Hc + 1:Hc + 2, :, :] = row0
        pad_ref[:, :, OFF - 1:OFF, :] = col0
        pad_ref[:, :, OFF + Wc:OFF + Wc + 1, :] = col0

    def pool_bias_relu(y_flat, Hc, Wc, Cout, b_row):
        # (B*Hc*Wc, Cout) -> (B, Hc, Wc, Cout): layout-preserving (Wc % 8 == 0).
        y = y_flat.reshape(B, Hc, Wc, Cout)
        # H pool: splitting the untiled leading dim is layout-free; max over size-2 dim.
        y = y.reshape(B, Hc // 2, 2, Wc, Cout).max(axis=2)
        # W pool: sublane split (the only relayout in the pool path).
        y = y.reshape(B, Hc // 2, Wc // 2, 2, Cout).max(axis=3)
        # bias after pool (max(y+b) == max(y)+b), then ReLU.
        return jnp.maximum(y + b_row, 0.0)

    # ---------------- conv1: 3x3 pad 1, Cin=3 -> 9 accumulating K=3 dots ------------
    zero_border(pad1_ref, H, W)
    pad1_ref[:, 1:H + 1, OFF:OFF + W, :] = x_ref[...]
    xp1 = pad1_ref[...]
    acc1 = None
    for t in range(9):
        dy, dx = divmod(t, 3)
        c0 = OFF - 1 + dx
        patch = xp1[:, dy:dy + H, c0:c0 + W, :].reshape(B * H * W, C0)
        part = jnp.dot(patch, w1_ref[t], preferred_element_type=jnp.float32)
        acc1 = part if acc1 is None else acc1 + part
    a1 = pool_bias_relu(acc1, H, W, C1, b1_ref[...])            # (B, H1, W1, 64)

    # ---------------- conv2: 3x3 pad 1, Cin=64 -> one fat-K (576) im2col matmul -----
    zero_border(pad2_ref, H1, W1)
    pad2_ref[:, 1:H1 + 1, OFF:OFF + W1, :] = a1
    xp2 = pad2_ref[...]
    cols = []
    for dy in range(3):
        for dx in range(3):
            c0 = OFF - 1 + dx
            cols.append(xp2[:, dy:dy + H1, c0:c0 + W1, :].reshape(B * H1 * W1, C1))
    patches = jnp.concatenate(cols, axis=1)                     # (B*H1*W1, 576)
    y2 = jnp.dot(patches, w2_ref[...], preferred_element_type=jnp.float32)
    a2 = pool_bias_relu(y2, H1, W1, C2, b2_ref[...])            # (B, H2, W2, 128)

    # ---------------- MLP (fc1 columns pre-permuted to the NHWC flatten order) ------
    feat = a2.reshape(B, H2 * W2 * C2)
    h = jnp.maximum(jnp.dot(feat, w3_ref[...],
                            preferred_element_type=jnp.float32) + b3_ref[...], 0.0)
    h = jnp.maximum(jnp.dot(h, w4_ref[...],
                            preferred_element_type=jnp.float32) + b4_ref[...], 0.0)
    out = jnp.dot(h, w5_ref[...],
                  preferred_element_type=jnp.float32) + b5_ref[...]   # (B, 128) lane-dense
    o_ref[0] = out.astype(o_ref.dtype)


# ----------------------------------------------------------------------------
# Wrapper: one pallas_call gridded over batch blocks.
# ----------------------------------------------------------------------------
def mycnn_forward(x_nchw, prep, b_tile=2):
    N = x_nchw.shape[0]
    b_tile = min(b_tile, N)
    assert N % b_tile == 0, "batch must be divisible by b_tile"
    nblk = N // b_tile

    # NCHW -> NHWC once in the wrapper (tiny 3-channel input; kept here so the in-kernel
    # im2col stays channel-last).  TODO(synk): at nominal 128x128, feed NCHW directly and
    # restructure conv1 with W on lanes to avoid the 3->128 lane padding of this path.
    x = jnp.transpose(x_nchw, (0, 2, 3, 1))
    H, W, C0 = x.shape[1], x.shape[2], x.shape[3]
    C1 = prep["w1"].shape[2]
    C2 = prep["w2"].shape[1]
    H1, W1 = H // 2, W // 2
    H2, W2 = H1 // 2, W1 // 2
    F = H2 * W2 * C2

    out_padded = pl.pallas_call(
        cnn_kernel,
        out_shape=jax.ShapeDtypeStruct((nblk, b_tile, LANE), jnp.float32),
        grid=(nblk,),
        in_specs=[
            pl.BlockSpec((b_tile, H, W, C0), lambda n: (n, 0, 0, 0)),
            pl.BlockSpec((9, C0, C1), lambda n: (0, 0, 0)),
            pl.BlockSpec((1, C1), lambda n: (0, 0)),
            pl.BlockSpec((9 * C1, C2), lambda n: (0, 0)),
            pl.BlockSpec((1, C2), lambda n: (0, 0)),
            pl.BlockSpec((F, 64), lambda n: (0, 0)),
            pl.BlockSpec((1, 64), lambda n: (0, 0)),
            pl.BlockSpec((64, 48), lambda n: (0, 0)),
            pl.BlockSpec((1, 48), lambda n: (0, 0)),
            pl.BlockSpec((48, LANE), lambda n: (0, 0)),
            pl.BlockSpec((1, LANE), lambda n: (0, 0)),
        ],
        out_specs=pl.BlockSpec((1, b_tile, LANE), lambda n: (n, 0, 0)),
        scratch_shapes=[
            pltpu.VMEM((b_tile, H + 2, W + 2 * OFF, C0), jnp.float32),   # conv1 pad slab
            pltpu.VMEM((b_tile, H1 + 2, W1 + 2 * OFF, C1), jnp.float32), # conv2 pad slab
        ],
        compiler_params=pltpu.CompilerParams(
            dimension_semantics=("parallel",)),
    )(x, prep["w1"], prep["b1"], prep["w2"], prep["b2"],
      prep["w3"], prep["b3"], prep["w4"], prep["b4"], prep["w5"], prep["b5"])

    # lane-dense (B, 128) store in the kernel; slice the 10 real logits here.
    return out_padded.reshape(N, LANE)[:, :NUM_LOGITS]


# ----------------------------------------------------------------------------
# One-time parameter layout prep (outside the per-call forward).
# ----------------------------------------------------------------------------
def prepare_params(p, H, W):
    c1_in, c1_out = p["conv1_w"].shape[1], p["conv1_w"].shape[0]
    c2_in, c2_out = p["conv2_w"].shape[1], p["conv2_w"].shape[0]
    H2, W2 = H // 4, W // 4
    fc1_out = p["fc1_w"].shape[0]

    # conv1: OIHW -> (9, Cin, Cout) so the kernel slices per-tap (3,64) weights cleanly.
    w1 = jnp.transpose(p["conv1_w"], (2, 3, 1, 0)).reshape(9, c1_in, c1_out)
    # conv2: OIHW -> (9*Cin, Cout) im2col layout, row index = (dy*3+dx)*Cin + cin.
    w2 = jnp.transpose(p["conv2_w"], (2, 3, 1, 0)).reshape(9 * c2_in, c2_out)

    # fc1: PyTorch flatten order is NCHW (c*H2*W2 + h*W2 + w); kernel activation is
    # flattened NHWC (h*W2*C2 + w*C2 + c).  Permute columns once, transpose to (in, out).
    w3 = (p["fc1_w"].reshape(fc1_out, c2_out, H2, W2)
          .transpose(2, 3, 1, 0)
          .reshape(H2 * W2 * c2_out, fc1_out))
    w4 = p["fc2_w"].T
    # fc3: pad output columns 10 -> 128 with zeros for a lane-dense final store.
    w5 = jnp.pad(p["fc3_w"].T, ((0, 0), (0, LANE - NUM_LOGITS)))
    b5 = jnp.pad(p["fc3_b"], (0, LANE - NUM_LOGITS)).reshape(1, -1)

    return {
        "w1": w1, "b1": p["conv1_b"].reshape(1, -1),
        "w2": w2, "b2": p["conv2_b"].reshape(1, -1),
        "w3": w3, "b3": p["fc1_b"].reshape(1, -1),
        "w4": w4, "b4": p["fc2_b"].reshape(1, -1),
        "w5": w5, "b5": b5,
    }


# ----------------------------------------------------------------------------
# Pure-JAX reference (PyTorch layouts / semantics) for the correctness check.
# ----------------------------------------------------------------------------
def reference_forward(x_nchw, params):
    hp = lax.Precision.HIGHEST

    def conv_block(x, w_oihw, b):
        y = lax.conv_general_dilated(
            x, w_oihw, window_strides=(1, 1), padding=((1, 1), (1, 1)),
            dimension_numbers=("NCHW", "OIHW", "NCHW"), precision=hp)
        y = y + b.reshape(1, -1, 1, 1)
        y = lax.reduce_window(y, -jnp.inf, lax.max,
                              (1, 1, 2, 2), (1, 1, 2, 2), "VALID")
        return jnp.maximum(y, 0.0)

    x = conv_block(x_nchw, params["conv1_w"], params["conv1_b"])
    x = conv_block(x, params["conv2_w"], params["conv2_b"])
    x = x.reshape(x.shape[0], -1)                     # NCHW flatten (PyTorch order)
    x = jnp.maximum(jnp.dot(x, params["fc1_w"].T, precision=hp) + params["fc1_b"], 0.0)
    x = jnp.maximum(jnp.dot(x, params["fc2_w"].T, precision=hp) + params["fc2_b"], 0.0)
    return jnp.dot(x, params["fc3_w"].T, precision=hp) + params["fc3_b"]


def init_params(key, fc_in):
    ks = jax.random.split(key, 10)
    s = 0.05
    return {
        "conv1_w": jax.random.normal(ks[0], (64, 3, 3, 3), jnp.float32) * s,
        "conv1_b": jax.random.normal(ks[1], (64,), jnp.float32) * s,
        "conv2_w": jax.random.normal(ks[2], (128, 64, 3, 3), jnp.float32) * s,
        "conv2_b": jax.random.normal(ks[3], (128,), jnp.float32) * s,
        "fc1_w": jax.random.normal(ks[4], (64, fc_in), jnp.float32) * s,
        "fc1_b": jax.random.normal(ks[5], (64,), jnp.float32) * s,
        "fc2_w": jax.random.normal(ks[6], (48, 64), jnp.float32) * s,
        "fc2_b": jax.random.normal(ks[7], (48,), jnp.float32) * s,
        "fc3_w": jax.random.normal(ks[8], (10, 48), jnp.float32) * s,
        "fc3_b": jax.random.normal(ks[9], (10,), jnp.float32) * s,
    }


if __name__ == "__main__":
    key = jax.random.PRNGKey(0)
    k_x, k_p = jax.random.split(key)

    # Small test shapes: N=4 so B_TILE=2 gives batch folding AND 2 grid steps (megacore).
    N, C, H, W = 4, 3, 16, 16
    fc_in = 128 * (H // 4) * (W // 4)   # = 2048

    x = jax.random.normal(k_x, (N, C, H, W), jnp.float32)
    params = init_params(k_p, fc_in)            # PyTorch-layout parameters
    prep = prepare_params(params, H, W)         # one-time layout prep

    fwd = jax.jit(mycnn_forward)
    out = jax.block_until_ready(fwd(x, prep))
    ref = jax.block_until_ready(reference_forward(x, params))

    assert out.shape == (N, NUM_LOGITS), out.shape
    assert jnp.allclose(out, ref, rtol=1e-3, atol=1e-3), \
        f"max abs err {jnp.max(jnp.abs(out - ref))}"

    print("KERNEL_OK")
</pallas_src>

<mosaic_0001>
module attributes {stable_mosaic.version = 11 : i64} {
  func.func @cnn_kernel(%arg0: i32, %arg1: memref<2x16x16x3xf32, #tpu.memory_space<vmem>>, %arg2: memref<9x3x64xf32, #tpu.memory_space<vmem>>, %arg3: memref<1x64xf32, #tpu.memory_space<vmem>>, %arg4: memref<576x128xf32, #tpu.memory_space<vmem>>, %arg5: memref<1x128xf32, #tpu.memory_space<vmem>>, %arg6: memref<2048x64xf32, #tpu.memory_space<vmem>>, %arg7: memref<1x64xf32, #tpu.memory_space<vmem>>, %arg8: memref<64x48xf32, #tpu.memory_space<vmem>>, %arg9: memref<1x48xf32, #tpu.memory_space<vmem>>, %arg10: memref<48x128xf32, #tpu.memory_space<vmem>>, %arg11: memref<1x128xf32, #tpu.memory_space<vmem>>, %arg12: memref<1x2x128xf32, #tpu.memory_space<vmem>>, %arg13: memref<2x18x32x3xf32, #tpu.memory_space<vmem>>, %arg14: memref<2x10x24x64xf32, #tpu.memory_space<vmem>>) attributes {dimension_semantics = [#tpu.dimension_semantics<parallel>], iteration_bounds = array<i64: 2>, scalar_prefetch = 0 : i64, scratch_operands = 2 : i64, tpu.core_type = #tpu.core_type<tc>, window_params = [{transform_indices = @transform_0, window_bounds = array<i64: 2, 16, 16, 3>}, {pipeline_mode = #tpu.pipeline_mode<synchronous>, transform_indices = @transform_1, window_bounds = array<i64: 9, 3, 64>}, {pipeline_mode = #tpu.pipeline_mode<synchronous>, transform_indices = @transform_2, window_bounds = array<i64: 1, 64>}, {pipeline_mode = #tpu.pipeline_mode<synchronous>, transform_indices = @transform_3, window_bounds = array<i64: 576, 128>}, {pipeline_mode = #tpu.pipeline_mode<synchronous>, transform_indices = @transform_4, window_bounds = array<i64: 1, 128>}, {pipeline_mode = #tpu.pipeline_mode<synchronous>, transform_indices = @transform_5, window_bounds = array<i64: 2048, 64>}, {pipeline_mode = #tpu.pipeline_mode<synchronous>, transform_indices = @transform_6, window_bounds = array<i64: 1, 64>}, {pipeline_mode = #tpu.pipeline_mode<synchronous>, transform_indices = @transform_7, window_bounds = array<i64: 64, 48>}, {pipeline_mode = #tpu.pipeline_mode<synchronous>, transform_indices = @transform_8, window_bounds = array<i64: 1, 48>}, {pipeline_mode = #tpu.pipeline_mode<synchronous>, transform_indices = @transform_9, window_bounds = array<i64: 48, 128>}, {pipeline_mode = #tpu.pipeline_mode<synchronous>, transform_indices = @transform_10, window_bounds = array<i64: 1, 128>}, {transform_indices = @transform_11, window_bounds = array<i64: 1, 2, 128>}]} {
    %cst = arith.constant 0.000000e+00 : f32
    %0 = vector.broadcast %cst : f32 to vector<2x1x32x3xf32>
    %cst_0 = arith.constant 0.000000e+00 : f32
    %1 = vector.broadcast %cst_0 : f32 to vector<2x18x1x3xf32>
    %c0 = arith.constant 0 : index
    %c0_1 = arith.constant 0 : index
    %c0_2 = arith.constant 0 : index
    %c0_3 = arith.constant 0 : index
    %2 = vector.load %arg13[%c0, %c0_1, %c0_2, %c0_3] : memref<2x18x32x3xf32, #tpu.memory_space<vmem>>, vector<2x1x32x3xf32>
    tpu.vector_store %arg13[%c0, %c0_1, %c0_2, %c0_3], %0 {strides = array<i32>} : memref<2x18x32x3xf32, #tpu.memory_space<vmem>>, vector<2x1x32x3xf32>,
    %c0_4 = arith.constant 0 : index
    %c17 = arith.constant 17 : index
    %c0_5 = arith.constant 0 : index
    %c0_6 = arith.constant 0 : index
    %3 = vector.load %arg13[%c0_4, %c17, %c0_5, %c0_6] : memref<2x18x32x3xf32, #tpu.memory_space<vmem>>, vector<2x1x32x3xf32>
    tpu.vector_store %arg13[%c0_4, %c17, %c0_5, %c0_6], %0 {strides = array<i32>} : memref<2x18x32x3xf32, #tpu.memory_space<vmem>>, vector<2x1x32x3xf32>,
    %c0_7 = arith.constant 0 : index
    %c0_8 = arith.constant 0 : index
    %c7 = arith.constant 7 : index
    %c0_9 = arith.constant 0 : index
    %4 = vector.load %arg13[%c0_7, %c0_8, %c7, %c0_9] : memref<2x18x32x3xf32, #tpu.memory_space<vmem>>, vector<2x18x1x3xf32>
    tpu.vector_store %arg13[%c0_7, %c0_8, %c7, %c0_9], %1 {strides = array<i32>} : memref<2x18x32x3xf32, #tpu.memory_space<vmem>>, vector<2x18x1x3xf32>,
    %c0_10 = arith.constant 0 : index
    %c0_11 = arith.constant 0 : index
    %c24 = arith.constant 24 : index
    %c0_12 = arith.constant 0 : index
    %5 = vector.load %arg13[%c0_10, %c0_11, %c24, %c0_12] : memref<2x18x32x3xf32, #tpu.memory_space<vmem>>, vector<2x18x1x3xf32>
    tpu.vector_store %arg13[%c0_10, %c0_11, %c24, %c0_12], %1 {strides = array<i32>} : memref<2x18x32x3xf32, #tpu.memory_space<vmem>>, vector<2x18x1x3xf32>,
    %c0_13 = arith.constant 0 : index
    %c0_14 = arith.constant 0 : index
    %c0_15 = arith.constant 0 : index
    %c0_16 = arith.constant 0 : index
    %6 = vector.load %arg1[%c0_13, %c0_14, %c0_15, %c0_16] : memref<2x16x16x3xf32, #tpu.memory_space<vmem>>, vector<2x16x16x3xf32>
    %c0_17 = arith.constant 0 : index
    %c1 = arith.constant 1 : index
    %c8 = arith.constant 8 : index
    %c0_18 = arith.constant 0 : index
    %7 = vector.load %arg13[%c0_17, %c1, %c8, %c0_18] : memref<2x18x32x3xf32, #tpu.memory_space<vmem>>, vector<2x16x16x3xf32>
    tpu.vector_store %arg13[%c0_17, %c1, %c8, %c0_18], %6 {strides = array<i32>} : memref<2x18x32x3xf32, #tpu.memory_space<vmem>>, vector<2x16x16x3xf32>,
    %c0_19 = arith.constant 0 : index
    %c0_20 = arith.constant 0 : index
    %c0_21 = arith.constant 0 : index
    %c0_22 = arith.constant 0 : index
    %8 = vector.load %arg13[%c0_19, %c0_20, %c0_21, %c0_22] : memref<2x18x32x3xf32, #tpu.memory_space<vmem>>, vector<2x18x32x3xf32>
    %9 = vector.extract_strided_slice %8 {offsets = [0, 0, 7, 0], sizes = [2, 16, 16, 3], strides = [1, 1, 1, 1]} : vector<2x18x32x3xf32> to vector<2x16x16x3xf32>
    %10 = vector.shape_cast %9 : vector<2x16x16x3xf32> to vector<512x3xf32>
    %c0_23 = arith.constant 0 : index
    %c0_24 = arith.constant 0 : index
    %c0_25 = arith.constant 0 : index
    %11 = vector.load %arg2[%c0_23, %c0_24, %c0_25] : memref<9x3x64xf32, #tpu.memory_space<vmem>>, vector<1x3x64xf32>
    %12 = vector.shape_cast %11 : vector<1x3x64xf32> to vector<3x64xf32>
    %cst_26 = arith.constant dense<0.000000e+00> : vector<512x64xf32>
    %13 = tpu.matmul %10, %12, %cst_26 {dimension_numbers = #tpu.dot_dimension_numbers<[1], [0], [0], [1], [0, 0, 1, 1], [], []>} : vector<512x3xf32>, vector<3x64xf32>, vector<512x64xf32> -> vector<512x64xf32>
    %14 = vector.extract_strided_slice %8 {offsets = [0, 0, 8, 0], sizes = [2, 16, 16, 3], strides = [1, 1, 1, 1]} : vector<2x18x32x3xf32> to vector<2x16x16x3xf32>
    %15 = vector.shape_cast %14 : vector<2x16x16x3xf32> to vector<512x3xf32>
    %c1_27 = arith.constant 1 : index
    %c0_28 = arith.constant 0 : index
    %c0_29 = arith.constant 0 : index
    %16 = vector.load %arg2[%c1_27, %c0_28, %c0_29] : memref<9x3x64xf32, #tpu.memory_space<vmem>>, vector<1x3x64xf32>
    %17 = vector.shape_cast %16 : vector<1x3x64xf32> to vector<3x64xf32>
    %cst_30 = arith.constant dense<0.000000e+00> : vector<512x64xf32>
    %18 = tpu.matmul %15, %17, %cst_30 {dimension_numbers = #tpu.dot_dimension_numbers<[1], [0], [0], [1], [0, 0, 1, 1], [], []>} : vector<512x3xf32>, vector<3x64xf32>, vector<512x64xf32> -> vector<512x64xf32>
    %19 = arith.addf %13, %18 : vector<512x64xf32>
    %20 = vector.extract_strided_slice %8 {offsets = [0, 0, 9, 0], sizes = [2, 16, 16, 3], strides = [1, 1, 1, 1]} : vector<2x18x32x3xf32> to vector<2x16x16x3xf32>
    %21 = vector.shape_cast %20 : vector<2x16x16x3xf32> to vector<512x3xf32>
    %c2 = arith.constant 2 : index
    %c0_31 = arith.constant 0 : index
    %c0_32 = arith.constant 0 : index
    %22 = vector.load %arg2[%c2, %c0_31, %c0_32] : memref<9x3x64xf32, #tpu.memory_space<vmem>>, vector<1x3x64xf32>
    %23 = vector.shape_cast %22 : vector<1x3x64xf32> to vector<3x64xf32>
    %cst_33 = arith.constant dense<0.000000e+00> : vector<512x64xf32>
    %24 = tpu.matmul %21, %23, %cst_33 {dimension_numbers = #tpu.dot_dimension_numbers<[1], [0], [0], [1], [0, 0, 1, 1], [], []>} : vector<512x3xf32>, vector<3x64xf32>, vector<512x64xf32> -> vector<512x64xf32>
    %25 = arith.addf %19, %24 : vector<512x64xf32>
    %26 = vector.extract_strided_slice %8 {offsets = [0, 1, 7, 0], sizes = [2, 16, 16, 3], strides = [1, 1, 1, 1]} : vector<2x18x32x3xf32> to vector<2x16x16x3xf32>
    %27 = vector.shape_cast %26 : vector<2x16x16x3xf32> to vector<512x3xf32>
    %c3 = arith.constant 3 : index
    %c0_34 = arith.constant 0 : index
    %c0_35 = arith.constant 0 : index
    %28 = vector.load %arg2[%c3, %c0_34, %c0_35] : memref<9x3x64xf32, #tpu.memory_space<vmem>>, vector<1x3x64xf32>
    %29 = vector.shape_cast %28 : vector<1x3x64xf32> to vector<3x64xf32>
    %cst_36 = arith.constant dense<0.000000e+00> : vector<512x64xf32>
    %30 = tpu.matmul %27, %29, %cst_36 {dimension_numbers = #tpu.dot_dimension_numbers<[1], [0], [0], [1], [0, 0, 1, 1], [], []>} : vector<512x3xf32>, vector<3x64xf32>, vector<512x64xf32> -> vector<512x64xf32>
    %31 = arith.addf %25, %30 : vector<512x64xf32>
    %32 = vector.extract_strided_slice %8 {offsets = [0, 1, 8, 0], sizes = [2, 16, 16, 3], strides = [1, 1, 1, 1]} : vector<2x18x32x3xf32> to vector<2x16x16x3xf32>
    %33 = vector.shape_cast %32 : vector<2x16x16x3xf32> to vector<512x3xf32>
    %c4 = arith.constant 4 : index
    %c0_37 = arith.constant 0 : index
    %c0_38 = arith.constant 0 : index
    %34 = vector.load %arg2[%c4, %c0_37, %c0_38] : memref<9x3x64xf32, #tpu.memory_space<vmem>>, vector<1x3x64xf32>
    %35 = vector.shape_cast %34 : vector<1x3x64xf32> to vector<3x64xf32>
    %cst_39 = arith.constant dense<0.000000e+00> : vector<512x64xf32>
    %36 = tpu.matmul %33, %35, %cst_39 {dimension_numbers = #tpu.dot_dimension_numbers<[1], [0], [0], [1], [0, 0, 1, 1], [], []>} : vector<512x3xf32>, vector<3x64xf32>, vector<512x64xf32> -> vector<512x64xf32>
    %37 = arith.addf %31, %36 : vector<512x64xf32>
    %38 = vector.extract_strided_slice %8 {offsets = [0, 1, 9, 0], sizes = [2, 16, 16, 3], strides = [1, 1, 1, 1]} : vector<2x18x32x3xf32> to vector<2x16x16x3xf32>
    %39 = vector.shape_cast %38 : vector<2x16x16x3xf32> to vector<512x3xf32>
    %c5 = arith.constant 5 : index
    %c0_40 = arith.constant 0 : index
    %c0_41 = arith.constant 0 : index
    %40 = vector.load %arg2[%c5, %c0_40, %c0_41] : memref<9x3x64xf32, #tpu.memory_space<vmem>>, vector<1x3x64xf32>
    %41 = vector.shape_cast %40 : vector<1x3x64xf32> to vector<3x64xf32>
    %cst_42 = arith.constant dense<0.000000e+00> : vector<512x64xf32>
    %42 = tpu.matmul %39, %41, %cst_42 {dimension_numbers = #tpu.dot_dimension_numbers<[1], [0], [0], [1], [0, 0, 1, 1], [], []>} : vector<512x3xf32>, vector<3x64xf32>, vector<512x64xf32> -> vector<512x64xf32>
    %43 = arith.addf %37, %42 : vector<512x64xf32>
    %44 = vector.extract_strided_slice %8 {offsets = [0, 2, 7, 0], sizes = [2, 16, 16, 3], strides = [1, 1, 1, 1]} : vector<2x18x32x3xf32> to vector<2x16x16x3xf32>
    %45 = vector.shape_cast %44 : vector<2x16x16x3xf32> to vector<512x3xf32>
    %c6 = arith.constant 6 : index
    %c0_43 = arith.constant 0 : index
    %c0_44 = arith.constant 0 : index
    %46 = vector.load %arg2[%c6, %c0_43, %c0_44] : memref<9x3x64xf32, #tpu.memory_space<vmem>>, vector<1x3x64xf32>
    %47 = vector.shape_cast %46 : vector<1x3x64xf32> to vector<3x64xf32>
    %cst_45 = arith.constant dense<0.000000e+00> : vector<512x64xf32>
    %48 = tpu.matmul %45, %47, %cst_45 {dimension_numbers = #tpu.dot_dimension_numbers<[1], [0], [0], [1], [0, 0, 1, 1], [], []>} : vector<512x3xf32>, vector<3x64xf32>, vector<512x64xf32> -> vector<512x64xf32>
    %49 = arith.addf %43, %48 : vector<512x64xf32>
    %50 = vector.extract_strided_slice %8 {offsets = [0, 2, 8, 0], sizes = [2, 16, 16, 3], strides = [1, 1, 1, 1]} : vector<2x18x32x3xf32> to vector<2x16x16x3xf32>
    %51 = vector.shape_cast %50 : vector<2x16x16x3xf32> to vector<512x3xf32>
    %c7_46 = arith.constant 7 : index
    %c0_47 = arith.constant 0 : index
    %c0_48 = arith.constant 0 : index
    %52 = vector.load %arg2[%c7_46, %c0_47, %c0_48] : memref<9x3x64xf32, #tpu.memory_space<vmem>>, vector<1x3x64xf32>
    %53 = vector.shape_cast %52 : vector<1x3x64xf32> to vector<3x64xf32>
    %cst_49 = arith.constant dense<0.000000e+00> : vector<512x64xf32>
    %54 = tpu.matmul %51, %53, %cst_49 {dimension_numbers = #tpu.dot_dimension_numbers<[1], [0], [0], [1], [0, 0, 1, 1], [], []>} : vector<512x3xf32>, vector<3x64xf32>, vector<512x64xf32> -> vector<512x64xf32>
    %55 = arith.addf %49, %54 : vector<512x64xf32>
    %56 = vector.extract_strided_slice %8 {offsets = [0, 2, 9, 0], sizes = [2, 16, 16, 3], strides = [1, 1, 1, 1]} : vector<2x18x32x3xf32> to vector<2x16x16x3xf32>
    %57 = vector.shape_cast %56 : vector<2x16x16x3xf32> to vector<512x3xf32>
    %c8_50 = arith.constant 8 : index
    %c0_51 = arith.constant 0 : index
    %c0_52 = arith.constant 0 : index
    %58 = vector.load %arg2[%c8_50, %c0_51, %c0_52] : memref<9x3x64xf32, #tpu.memory_space<vmem>>, vector<1x3x64xf32>
    %59 = vector.shape_cast %58 : vector<1x3x64xf32> to vector<3x64xf32>
    %cst_53 = arith.constant dense<0.000000e+00> : vector<512x64xf32>
    %60 = tpu.matmul %57, %59, %cst_53 {dimension_numbers = #tpu.dot_dimension_numbers<[1], [0], [0], [1], [0, 0, 1, 1], [], []>} : vector<512x3xf32>, vector<3x64xf32>, vector<512x64xf32> -> vector<512x64xf32>
    %61 = arith.addf %55, %60 : vector<512x64xf32>
    %c0_54 = arith.constant 0 : index
    %c0_55 = arith.constant 0 : index
    %62 = vector.load %arg3[%c0_54, %c0_55] : memref<1x64xf32, #tpu.memory_space<vmem>>, vector<1x64xf32>
    %63 = vector.shape_cast %61 : vector<512x64xf32> to vector<2x16x16x64xf32>
    %64 = vector.shape_cast %63 : vector<2x16x16x64xf32> to vector<2x8x2x16x64xf32>
    %cst_56 = arith.constant dense<0xFF800000> : vector<2x8x16x64xf32>
    %65 = vector.multi_reduction <maximumf>, %64, %cst_56 [2] : vector<2x8x2x16x64xf32> to vector<2x8x16x64xf32>
    %66 = vector.shape_cast %65 : vector<2x8x16x64xf32> to vector<2x8x8x2x64xf32>
    %cst_57 = arith.constant dense<0xFF800000> : vector<2x8x8x64xf32>
    %67 = vector.multi_reduction <maximumf>, %66, %cst_57 [3] : vector<2x8x8x2x64xf32> to vector<2x8x8x64xf32>
    %68 = vector.shape_cast %62 : vector<1x64xf32> to vector<1x1x1x64xf32>
    %69 = vector.broadcast %68 : vector<1x1x1x64xf32> to vector<2x8x8x64xf32>
    %70 = arith.addf %67, %69 : vector<2x8x8x64xf32>
    %cst_58 = arith.constant 0.000000e+00 : f32
    %71 = vector.broadcast %cst_58 : f32 to vector<2x8x8x64xf32>
    %72 = arith.maximumf %70, %71 : vector<2x8x8x64xf32>
    %cst_59 = arith.constant 0.000000e+00 : f32
    %73 = vector.broadcast %cst_59 : f32 to vector<2x1x24x64xf32>
    %cst_60 = arith.constant 0.000000e+00 : f32
    %74 = vector.broadcast %cst_60 : f32 to vector<2x10x1x64xf32>
    %c0_61 = arith.constant 0 : index
    %c0_62 = arith.constant 0 : index
    %c0_63 = arith.constant 0 : index
    %c0_64 = arith.constant 0 : index
    %75 = vector.load %arg14[%c0_61, %c0_62, %c0_63, %c0_64] : memref<2x10x24x64xf32, #tpu.memory_space<vmem>>, vector<2x1x24x64xf32>
    tpu.vector_store %arg14[%c0_61, %c0_62, %c0_63, %c0_64], %73 {strides = array<i32>} : memref<2x10x24x64xf32, #tpu.memory_space<vmem>>, vector<2x1x24x64xf32>,
    %c0_65 = arith.constant 0 : index
    %c9 = arith.constant 9 : index
    %c0_66 = arith.constant 0 : index
    %c0_67 = arith.constant 0 : index
    %76 = vector.load %arg14[%c0_65, %c9, %c0_66, %c0_67] : memref<2x10x24x64xf32, #tpu.memory_space<vmem>>, vector<2x1x24x64xf32>
    tpu.vector_store %arg14[%c0_65, %c9, %c0_66, %c0_67], %73 {strides = array<i32>} : memref<2x10x24x64xf32, #tpu.memory_space<vmem>>, vector<2x1x24x64xf32>,
    %c0_68 = arith.constant 0 : index
    %c0_69 = arith.constant 0 : index
    %c7_70 = arith.constant 7 : index
    %c0_71 = arith.constant 0 : index
    %77 = vector.load %arg14[%c0_68, %c0_69, %c7_70, %c0_71] : memref<2x10x24x64xf32, #tpu.memory_space<vmem>>, vector<2x10x1x64xf32>
    tpu.vector_store %arg14[%c0_68, %c0_69, %c7_70, %c0_71], %74 {strides = array<i32>} : memref<2x10x24x64xf32, #tpu.memory_space<vmem>>, vector<2x10x1x64xf32>,
    %c0_72 = arith.constant 0 : index
    %c0_73 = arith.constant 0 : index
    %c16 = arith.constant 16 : index
    %c0_74 = arith.constant 0 : index
    %78 = vector.load %arg14[%c0_72, %c0_73, %c16, %c0_74] : memref<2x10x24x64xf32, #tpu.memory_space<vmem>>, vector<2x10x1x64xf32>
    tpu.vector_store %arg14[%c0_72, %c0_73, %c16, %c0_74], %74 {strides = array<i32>} : memref<2x10x24x64xf32, #tpu.memory_space<vmem>>, vector<2x10x1x64xf32>,
    %c0_75 = arith.constant 0 : index
    %c1_76 = arith.constant 1 : index
    %c8_77 = arith.constant 8 : index
    %c0_78 = arith.constant 0 : index
    %79 = vector.load %arg14[%c0_75, %c1_76, %c8_77, %c0_78] : memref<2x10x24x64xf32, #tpu.memory_space<vmem>>, vector<2x8x8x64xf32>
    tpu.vector_store %arg14[%c0_75, %c1_76, %c8_77, %c0_78], %72 {strides = array<i32>} : memref<2x10x24x64xf32, #tpu.memory_space<vmem>>, vector<2x8x8x64xf32>,
    %c0_79 = arith.constant 0 : index
    %c0_80 = arith.constant 0 : index
    %c0_81 = arith.constant 0 : index
    %c0_82 = arith.constant 0 : index
    %80 = vector.load %arg14[%c0_79, %c0_80, %c0_81, %c0_82] : memref<2x10x24x64xf32, #tpu.memory_space<vmem>>, vector<2x10x24x64xf32>
    %81 = vector.extract_strided_slice %80 {offsets = [0, 0, 7, 0], sizes = [2, 8, 8, 64], strides = [1, 1, 1, 1]} : vector<2x10x24x64xf32> to vector<2x8x8x64xf32>
    %82 = vector.shape_cast %81 : vector<2x8x8x64xf32> to vector<128x64xf32>
    %83 = vector.extract_strided_slice %80 {offsets = [0, 0, 8, 0], sizes = [2, 8, 8, 64], strides = [1, 1, 1, 1]} : vector<2x10x24x64xf32> to vector<2x8x8x64xf32>
    %84 = vector.shape_cast %83 : vector<2x8x8x64xf32> to vector<128x64xf32>
    %85 = vector.extract_strided_slice %80 {offsets = [0, 0, 9, 0], sizes = [2, 8, 8, 64], strides = [1, 1, 1, 1]} : vector<2x10x24x64xf32> to vector<2x8x8x64xf32>
    %86 = vector.shape_cast %85 : vector<2x8x8x64xf32> to vector<128x64xf32>
    %87 = vector.extract_strided_slice %80 {offsets = [0, 1, 7, 0], sizes = [2, 8, 8, 64], strides = [1, 1, 1, 1]} : vector<2x10x24x64xf32> to vector<2x8x8x64xf32>
    %88 = vector.shape_cast %87 : vector<2x8x8x64xf32> to vector<128x64xf32>
    %89 = vector.extract_strided_slice %80 {offsets = [0, 1, 8, 0], sizes = [2, 8, 8, 64], strides = [1, 1, 1, 1]} : vector<2x10x24x64xf32> to vector<2x8x8x64xf32>
    %90 = vector.shape_cast %89 : vector<2x8x8x64xf32> to vector<128x64xf32>
    %91 = vector.extract_strided_slice %80 {offsets = [0, 1, 9, 0], sizes = [2, 8, 8, 64], strides = [1, 1, 1, 1]} : vector<2x10x24x64xf32> to vector<2x8x8x64xf32>
    %92 = vector.shape_cast %91 : vector<2x8x8x64xf32> to vector<128x64xf32>
    %93 = vector.extract_strided_slice %80 {offsets = [0, 2, 7, 0], sizes = [2, 8, 8, 64], strides = [1, 1, 1, 1]} : vector<2x10x24x64xf32> to vector<2x8x8x64xf32>
    %94 = vector.shape_cast %93 : vector<2x8x8x64xf32> to vector<128x64xf32>
    %95 = vector.extract_strided_slice %80 {offsets = [0, 2, 8, 0], sizes = [2, 8, 8, 64], strides = [1, 1, 1, 1]} : vector<2x10x24x64xf32> to vector<2x8x8x64xf32>
    %96 = vector.shape_cast %95 : vector<2x8x8x64xf32> to vector<128x64xf32>
    %97 = vector.extract_strided_slice %80 {offsets = [0, 2, 9, 0], sizes = [2, 8, 8, 64], strides = [1, 1, 1, 1]} : vector<2x10x24x64xf32> to vector<2x8x8x64xf32>
    %98 = vector.shape_cast %97 : vector<2x8x8x64xf32> to vector<128x64xf32>
    %99 = tpu.concatenate %82, %84, %86, %88, %90, %92, %94, %96, %98 in 1 : vector<128x64xf32>, vector<128x64xf32>, vector<128x64xf32>, vector<128x64xf32>, vector<128x64xf32>, vector<128x64xf32>, vector<128x64xf32>, vector<128x64xf32>, vector<128x64xf32> -> vector<128x576xf32>
    %c0_83 = arith.constant 0 : index
    %c0_84 = arith.constant 0 : index
    %100 = vector.load %arg4[%c0_83, %c0_84] : memref<576x128xf32, #tpu.memory_space<vmem>>, vector<576x128xf32>
    %cst_85 = arith.constant dense<0.000000e+00> : vector<128x128xf32>
    %101 = tpu.matmul %99, %100, %cst_85 {dimension_numbers = #tpu.dot_dimension_numbers<[1], [0], [0], [1], [0, 0, 1, 1], [], []>} : vector<128x576xf32>, vector<576x128xf32>, vector<128x128xf32> -> vector<128x128xf32>
    %c0_86 = arith.constant 0 : index
    %c0_87 = arith.constant 0 : index
    %102 = vector.load %arg5[%c0_86, %c0_87] : memref<1x128xf32, #tpu.memory_space<vmem>>, vector<1x128xf32>
    %103 = vector.shape_cast %101 : vector<128x128xf32> to vector<2x8x8x128xf32>
    %104 = vector.shape_cast %103 : vector<2x8x8x128xf32> to vector<2x4x2x8x128xf32>
    %cst_88 = arith.constant dense<0xFF800000> : vector<2x4x8x128xf32>
    %105 = vector.multi_reduction <maximumf>, %104, %cst_88 [2] : vector<2x4x2x8x128xf32> to vector<2x4x8x128xf32>
    %106 = vector.shape_cast %105 : vector<2x4x8x128xf32> to vector<2x4x4x2x128xf32>
    %cst_89 = arith.constant dense<0xFF800000> : vector<2x4x4x128xf32>
    %107 = vector.multi_reduction <maximumf>, %106, %cst_89 [3] : vector<2x4x4x2x128xf32> to vector<2x4x4x128xf32>
    %108 = vector.shape_cast %102 : vector<1x128xf32> to vector<1x1x1x128xf32>
    %109 = vector.broadcast %108 : vector<1x1x1x128xf32> to vector<2x4x4x128xf32>
    %110 = arith.addf %107, %109 : vector<2x4x4x128xf32>
    %cst_90 = arith.constant 0.000000e+00 : f32
    %111 = vector.broadcast %cst_90 : f32 to vector<2x4x4x128xf32>
    %112 = arith.maximumf %110, %111 : vector<2x4x4x128xf32>
    %113 = vector.shape_cast %112 : vector<2x4x4x128xf32> to vector<2x2048xf32>
    %c0_91 = arith.constant 0 : index
    %c0_92 = arith.constant 0 : index
    %114 = vector.load %arg6[%c0_91, %c0_92] : memref<2048x64xf32, #tpu.memory_space<vmem>>, vector<2048x64xf32>
    %cst_93 = arith.constant dense<0.000000e+00> : vector<2x64xf32>
    %115 = tpu.matmul %113, %114, %cst_93 {dimension_numbers = #tpu.dot_dimension_numbers<[1], [0], [0], [1], [0, 0, 1, 1], [], []>} : vector<2x2048xf32>, vector<2048x64xf32>, vector<2x64xf32> -> vector<2x64xf32>
    %c0_94 = arith.constant 0 : index
    %c0_95 = arith.constant 0 : index
    %116 = vector.load %arg7[%c0_94, %c0_95] : memref<1x64xf32, #tpu.memory_space<vmem>>, vector<1x64xf32>
    %117 = vector.broadcast %116 : vector<1x64xf32> to vector<2x64xf32>
    %118 = arith.addf %115, %117 : vector<2x64xf32>
    %cst_96 = arith.constant 0.000000e+00 : f32
    %119 = vector.broadcast %cst_96 : f32 to vector<2x64xf32>
    %120 = arith.maximumf %118, %119 : vector<2x64xf32>
    %c0_97 = arith.constant 0 : index
    %c0_98 = arith.constant 0 : index
    %121 = vector.load %arg8[%c0_97, %c0_98] : memref<64x48xf32, #tpu.memory_space<vmem>>, vector<64x48xf32>
    %cst_99 = arith.constant dense<0.000000e+00> : vector<2x48xf32>
    %122 = tpu.matmul %120, %121, %cst_99 {dimension_numbers = #tpu.dot_dimension_numbers<[1], [0], [0], [1], [0, 0, 1, 1], [], []>} : vector<2x64xf32>, vector<64x48xf32>, vector<2x48xf32> -> vector<2x48xf32>
    %c0_100 = arith.constant 0 : index
    %c0_101 = arith.constant 0 : index
    %123 = vector.load %arg9[%c0_100, %c0_101] : memref<1x48xf32, #tpu.memory_space<vmem>>, vector<1x48xf32>
    %124 = vector.broadcast %123 : vector<1x48xf32> to vector<2x48xf32>
    %125 = arith.addf %122, %124 : vector<2x48xf32>
    %cst_102 = arith.constant 0.000000e+00 : f32
    %126 = vector.broadcast %cst_102 : f32 to vector<2x48xf32>
    %127 = arith.maximumf %125, %126 : vector<2x48xf32>
    %c0_103 = arith.constant 0 : index
    %c0_104 = arith.constant 0 : index
    %128 = vector.load %arg10[%c0_103, %c0_104] : memref<48x128xf32, #tpu.memory_space<vmem>>, vector<48x128xf32>
    %cst_105 = arith.constant dense<0.000000e+00> : vector<2x128xf32>
    %129 = tpu.matmul %127, %128, %cst_105 {dimension_numbers = #tpu.dot_dimension_numbers<[1], [0], [0], [1], [0, 0, 1, 1], [], []>} : vector<2x48xf32>, vector<48x128xf32>, vector<2x128xf32> -> vector<2x128xf32>
    %c0_106 = arith.constant 0 : index
    %c0_107 = arith.constant 0 : index
    %130 = vector.load %arg11[%c0_106, %c0_107] : memref<1x128xf32, #tpu.memory_space<vmem>>, vector<1x128xf32>
    %131 = vector.broadcast %130 : vector<1x128xf32> to vector<2x128xf32>
    %132 = arith.addf %129, %131 : vector<2x128xf32>
    %c0_108 = arith.constant 0 : index
    %c0_109 = arith.constant 0 : index
    %c0_110 = arith.constant 0 : index
    %133 = vector.load %arg12[%c0_108, %c0_109, %c0_110] : memref<1x2x128xf32, #tpu.memory_space<vmem>>, vector<1x2x128xf32>
    %134 = vector.shape_cast %133 : vector<1x2x128xf32> to vector<2x128xf32>
    %135 = vector.shape_cast %132 : vector<2x128xf32> to vector<1x2x128xf32>
    tpu.vector_store %arg12[%c0_108, %c0_109, %c0_110], %135 {strides = array<i32>} : memref<1x2x128xf32, #tpu.memory_space<vmem>>, vector<1x2x128xf32>,
    return
  }
  func.func @transform_0(%arg0: i32) -> (i32, i32, i32, i32) {
    %c0_i32 = arith.constant 0 : i32
    %c0_i32_0 = arith.constant 0 : i32
    %c0_i32_1 = arith.constant 0 : i32
    %c0_i32_2 = arith.constant 0 : i32
    return %arg0, %c0_i32, %c0_i32_0, %c0_i32_1 : i32, i32, i32, i32
  }
  func.func @transform_1(%arg0: i32) -> (i32, i32, i32) {
    %c0_i32 = arith.constant 0 : i32
    %c0_i32_0 = arith.constant 0 : i32
    %c0_i32_1 = arith.constant 0 : i32
    %c0_i32_2 = arith.constant 0 : i32
    return %c0_i32, %c0_i32_0, %c0_i32_1 : i32, i32, i32
  }
  func.func @transform_2(%arg0: i32) -> (i32, i32) {
    %c0_i32 = arith.constant 0 : i32
    %c0_i32_0 = arith.constant 0 : i32
    %c0_i32_1 = arith.constant 0 : i32
    return %c0_i32, %c0_i32_0 : i32, i32
  }
  func.func @transform_3(%arg0: i32) -> (i32, i32) {
    %c0_i32 = arith.constant 0 : i32
    %c0_i32_0 = arith.constant 0 : i32
    %c0_i32_1 = arith.constant 0 : i32
    return %c0_i32, %c0_i32_0 : i32, i32
  }
  func.func @transform_4(%arg0: i32) -> (i32, i32) {
    %c0_i32 = arith.constant 0 : i32
    %c0_i32_0 = arith.constant 0 : i32
    %c0_i32_1 = arith.constant 0 : i32
    return %c0_i32, %c0_i32_0 : i32, i32
  }
  func.func @transform_5(%arg0: i32) -> (i32, i32) {
    %c0_i32 = arith.constant 0 : i32
    %c0_i32_0 = arith.constant 0 : i32
    %c0_i32_1 = arith.constant 0 : i32
    return %c0_i32, %c0_i32_0 : i32, i32
  }
  func.func @transform_6(%arg0: i32) -> (i32, i32) {
    %c0_i32 = arith.constant 0 : i32
    %c0_i32_0 = arith.constant 0 : i32
    %c0_i32_1 = arith.constant 0 : i32
    return %c0_i32, %c0_i32_0 : i32, i32
  }
  func.func @transform_7(%arg0: i32) -> (i32, i32) {
    %c0_i32 = arith.constant 0 : i32
    %c0_i32_0 = arith.constant 0 : i32
    %c0_i32_1 = arith.constant 0 : i32
    return %c0_i32, %c0_i32_0 : i32, i32
  }
  func.func @transform_8(%arg0: i32) -> (i32, i32) {
    %c0_i32 = arith.constant 0 : i32
    %c0_i32_0 = arith.constant 0 : i32
    %c0_i32_1 = arith.constant 0 : i32
    return %c0_i32, %c0_i32_0 : i32, i32
  }
  func.func @transform_9(%arg0: i32) -> (i32, i32) {
    %c0_i32 = arith.constant 0 : i32
    %c0_i32_0 = arith.constant 0 : i32
    %c0_i32_1 = arith.constant 0 : i32
    return %c0_i32, %c0_i32_0 : i32, i32
  }
  func.func @transform_10(%arg0: i32) -> (i32, i32) {
    %c0_i32 = arith.constant 0 : i32
    %c0_i32_0 = arith.constant 0 : i32
    %c0_i32_1 = arith.constant 0 : i32
    return %c0_i32, %c0_i32_0 : i32, i32
  }
  func.func @transform_11(%arg0: i32) -> (i32, i32, i32) {
    %c0_i32 = arith.constant 0 : i32
    %c0_i32_0 = arith.constant 0 : i32
    %c0_i32_1 = arith.constant 0 : i32
    return %arg0, %c0_i32, %c0_i32_0 : i32, i32, i32
  }
}

</mosaic_0001>

<bundles_post_ra>
// kernel: mycnn_forward.1
= control target key start
LH: loop header
LB: loop body
LE: loop exit
PB: predicated region body
PF: predicated region fallthrough
CT: control target
= control target key end

     0   :  { %s20052_s0 = inlined_call_operand.vmem [shape: f32[4,16,16,3], index: 0, kind: input, shape index: {}]   ;;  %s20053_s1 = inlined_call_operand.vmem [shape: f32[9,3,64], index: 1, kind: input, shape index: {}]   ;;  %s20054_s2 = inlined_call_operand.vmem [shape: f32[1,64], index: 2, kind: input, shape index: {}]   ;;  %s20055_s3 = inlined_call_operand.vmem [shape: f32[576,128], index: 3, kind: input, shape index: {}]   ;;  %s20056_s4 = inlined_call_operand.vmem [shape: f32[1,128], index: 4, kind: input, shape index: {}]   ;;  %s20057_s5 = inlined_call_operand.vmem [shape: f32[2048,64], index: 5, kind: input, shape index: {}]   ;;  %s20058_s6 = inlined_call_operand.vmem [shape: f32[1,64], index: 6, kind: input, shape index: {}]   ;;  %s20059_s7 = inlined_call_operand.vmem [shape: f32[64,48], index: 7, kind: input, shape index: {}]   ;;  %s20060_s8 = inlined_call_operand.vmem [shape: f32[1,48], index: 8, kind: input, shape index: {}]   ;;  %s20061_s9 = inlined_call_operand.vmem [shape: f32[48,128], index: 9, kind: input, shape index: {}]   ;;  %s20062_s10 = inlined_call_operand.vmem [shape: f32[1,128], index: 10, kind: input, shape index: {}]   ;;  %s20063_s11 = inlined_call_operand.hbm [shape: f32[2,2,128], index: 11, kind: output, shape index: {}]  }
   0x1   :  { %20335 = sst [smem:[#allocation200_spill]] %s20052_s0 }
   0x2   :  { %20336 = sst [smem:[#allocation201_spill]] %s20053_s1 }
   0x3   :  { %16 = vsyncpa [#allocation5], 0 }
   0x4   :  { %18 = vsyncpa [#allocation5 + $0x1], 0  ;;  %s13776_s17 = smov 0   ;;  %s13778_s18 = smov 0  }
   0x5   :  { %s13780_s19 = smov 0   ;;  %s13782_s20 = smov 0  }
   0x6 LB: > { %s13797_s21 = sadd.s32 4294967295, %s13709_s20   ;;  %s10778_s22 = sadd.s32 4294967294, %s13709_s20   ;;  %s13709_s20 = sphi %s13782_s20, %s21222_s20   ;;  %s13705_s19 = sphi %s13780_s19, %s21221_s19   ;;  %s13701_s18 = sphi %s13778_s18, %s21220_s18   ;;  %s13697_s17 = sphi %s13776_s17, %s21219_s17  }
   0x7   : > { %s13801_s23 = sadd.s32 1, %s13709_s20   ;;  %s267_s24 = sadd.s32 1, %s13705_s19 }
   0x8   : > { %s264_s25 = ssub.s32 %s13709_s20, %s13801_s23  ;;  %p277_p0 = scmp.ne.s32.totalorder %s13705_s19, %s13701_s18 }
   0x9   : > { %p265_p1 = scmp.eq.s32.totalorder %s264_s25, 0  ;;  %p278_p2 = scmp.eq.s32.totalorder %s13797_s21, 1 }
   0xa   : > { %p283_p3 = scmp.ne.s32.totalorder %s13701_s18, %s13697_s17  ;;  %p284_p4 = scmp.eq.s32.totalorder %s10778_s22, 1 }
   0xb   : > { %s13812_s26 = scalar_select %p265_p1, %s13705_s19, %s267_s24  }
   0xc   : > { %p13814_p5 = por %p278_p2, %p277_p0  ;;  %p13818_p6 = por %p284_p4, %p283_p3 }
   0xd   : > { %p10781_p7 = scmp.ge.s32.totalorder %s13709_s20, 1  ;;  %p342_p8 = scmp.lt.s32.totalorder %s13709_s20, 3 }
   0xf   : > { %p343_p9 = pnand %p10781_p7, %p342_p8 }
  0x11   : > { %346 = sbr.rel (%p343_p9) target bundleno = 2390 (0x956), region = 64 }
  0x16   : > { %s20339_s1 = sld [smem:[#allocation201_spill]]  ;;  %vm1142_vm0 = vcmask 1042432   ;;  %vm390_vm1 = vcmask 23552   ;;  %vm408_vm2 = vcmask 16384   ;;  %v20064_v1 = vmov 0.0   ;;  %s10783_s16 = sshll.u32 %s13797_s21, 1 }
  0x17   : > { %392 = vst.msk [vmem:[#allocation2 + $0x8] sm:$0xff] %vm390_vm1, %v20064_v1  ;;  %391 = vst.msk [vmem:[#allocation2] sm:$0xff] %vm390_vm1, %v20064_v1  ;;  %p384_p10 = scmp.lt.s32.totalorder %s10783_s16, 3  ;;  %s20340_s0 = sld [smem:[#allocation200_spill]]  ;;  %vm850_vm3 = vcmask 1040384   ;;  %vm2079_vm4 = vcmask 1046528  }
  0x18   : > { %393 = vst.msk [vmem:[#allocation2 + $0x10] sm:$0xff] %vm390_vm1, %v20064_v1  ;;  %394 = vst.msk [vmem:[#allocation2 + $0x18] sm:$0xff] %vm390_vm1, %v20064_v1  ;;  %vm5651_vm5 = vcmask 523264   ;;  %vm6452_vm6 = vcmask 517120   ;;  %vm7794_vm7 = vcmask 1041409   ;;  %vm7797_vm8 = vcmask 1042434  }
  0x19   : > { %395 = vst.msk [vmem:[#allocation2 + $0x240] sm:$0xff] %vm390_vm1, %v20064_v1  ;;  %396 = vst.msk [vmem:[#allocation2 + $0x248] sm:$0xff] %vm390_vm1, %v20064_v1  ;;  %s21224_s16 = smov (!%p384_p10, %s10783_s16), 3  ;;  %vm7800_vm9 = vcmask 1043459   ;;  %vm7803_vm10 = vcmask 1044484   ;;  %vm7806_vm11 = vcmask 1045509  }
  0x1a   : > { %397 = vst.msk [vmem:[#allocation2 + $0x250] sm:$0xff] %vm390_vm1, %v20064_v1  ;;  %398 = vst.msk [vmem:[#allocation2 + $0x258] sm:$0xff] %vm390_vm1, %v20064_v1  ;;  %s11406_s22 = sshll.u32 %s21224_s16, 8  ;;  %vm7809_vm12 = vcmask 1046534   ;;  %vm7812_vm13 = vcmask 1047559   ;;  %vm7624_vm14 = vcmask 516096  }
  0x1b   : > { %400 = vst.msk [vmem:[#allocation2 + $0x220] sm:$0xff] %vm390_vm1, %v20064_v1  ;;  %401 = vst.msk [vmem:[#allocation2 + $0x228] sm:$0xff] %vm390_vm1, %v20064_v1  ;;  %s13713_s13 = smov 64   ;;  %vm9265_vm15 = vcmask 1041408   ;;  %s13715_s12 = smov [#allocation4]  }
  0x1c   : > { %v13827_v0 = vld [vmem:[%s20339_s1 + $0x4] sm:$0x7]  ;;  %402 = vst.msk [vmem:[#allocation2 + $0x230] sm:$0xff] %vm390_vm1, %v20064_v1  ;;  %403 = vst.msk [vmem:[#allocation2 + $0x238] sm:$0xff] %vm390_vm1, %v20064_v1  ;;  %v13866_v2 = vld [vmem:[%s20339_s1] sm:$0x7] }
  0x1d   : > { %12472 = vmatprep.subr.msk.mxu0 %vm1142_vm0, %v13827_v0  ;;  %404 = vst.msk [vmem:[#allocation2 + $0x460] sm:$0xff] %vm390_vm1, %v20064_v1  ;;  %405 = vst.msk [vmem:[#allocation2 + $0x468] sm:$0xff] %vm390_vm1, %v20064_v1  ;;  %v13871_v3 = vld [vmem:[%s20339_s1 + $0x8] sm:$0x7]  ;;  %12570 = vmatprep.subr.msk.mxu1 %vm1142_vm0, %v13866_v2  ;;  %s14029_s29 = scalar_lea.vmem %s20340_s0, %s11406_s22  ;;  %s11403_s0 = sshll.u32 %s13797_s21, 5 }
  0x1e   : > { %406 = vst.msk [vmem:[#allocation2 + $0x470] sm:$0xff] %vm390_vm1, %v20064_v1  ;;  %407 = vst.msk [vmem:[#allocation2 + $0x478] sm:$0xff] %vm390_vm1, %v20064_v1  ;;  %12473 = vmatpush3.msk.msra.mxu0 %vm1142_vm0, %v13827_v0  ;;  %12571 = vmatpush3.msk.msra.mxu1 %vm1142_vm0, %v13866_v2  ;;  %v611_v4 = vld [vmem:[#allocation2 + $0x8] sm:$0xff]  ;;  %v481_v6 = vld [vmem:[%s14029_s29] sm:$0xff]  ;;  %s20017_s25 = scalar_lea.hbm %s20063_s11, %s11403_s0  ;;  %s13653_s21 = sshll.u32 %s13715_s12, 4  ;;  %s13654_s21 = int_to_ptr.vmem [resolvable:$false] %s13653_s21 }
  0x1f   : > { %410 = vst.msk [vmem:[#allocation2 + $0x27] sm:$0x1] %vm408_vm2, %v20064_v1  ;;  %411 = vst.msk [vmem:[#allocation2 + $0x47] sm:$0x1] %vm408_vm2, %v20064_v1  ;;  %12668 = vmatprep.subr.msk.mxu0 %vm1142_vm0, %v13871_v3  ;;  %v14031_v5 = vld [vmem:[#allocation2 + $0x10] sm:$0xff]  ;;  %v852_v7 = vrot.slane %v611_v4, 7  ;;  %12474 = vmatprep.mubr.msk.f32.mxu0 %vm390_vm1, %v611_v4 }
  0x20   : > { %412 = vst.msk [vmem:[#allocation2 + $0x67] sm:$0x1] %vm408_vm2, %v20064_v1  ;;  %413 = vst.msk [vmem:[#allocation2 + $0x87] sm:$0x1] %vm408_vm2, %v20064_v1  ;;  %v2080_v8 = vrot.slane %v611_v4, 1  ;;  %v854_v9 = vrot.slane %v14031_v5, 7  ;;  %12475 = vmatmul.mubr.msk.f32.vlgmr.msra.gmra.mxu0 %vm390_vm1, %v14031_v5 }
  0x21   : > { %414 = vst.msk [vmem:[#allocation2 + $0xa7] sm:$0x1] %vm408_vm2, %v20064_v1  ;;  %415 = vst.msk [vmem:[#allocation2 + $0xc7] sm:$0x1] %vm408_vm2, %v20064_v1  ;;  %v20066_v10 = vrot.slane %v14031_v5, 1  ;;  %v482_v12 = vld [vmem:[%s14029_s29 + $0x8] sm:$0xff]  ;;  %12669 = vmatpush3.msk.msra.mxu0 %vm1142_vm0, %v13871_v3 }
  0x22   : > { %416 = vst.msk [vmem:[#allocation2 + $0xe7] sm:$0x1] %vm408_vm2, %v20064_v1  ;;  %417 = vst.msk [vmem:[#allocation2 + $0x107] sm:$0x1] %vm408_vm2, %v20064_v1  ;;  %v483_v14 = vld [vmem:[%s14029_s29 + $0x10] sm:$0xff]  ;;  %v484_v15 = vld [vmem:[%s14029_s29 + $0x18] sm:$0xff]  ;;  %v855_v16 = vsel %vm850_vm3, %v852_v7, %v854_v9 }
  0x23   : > { %418 = vst.msk [vmem:[#allocation2 + $0x127] sm:$0x1] %vm408_vm2, %v20064_v1  ;;  %419 = vst.msk [vmem:[#allocation2 + $0x147] sm:$0x1] %vm408_vm2, %v20064_v1  ;;  %v485_v17 = vld [vmem:[%s14029_s29 + $0x20] sm:$0xff]  ;;  %v486_v18 = vld [vmem:[%s14029_s29 + $0x28] sm:$0xff]  ;;  %v14059_v23 = vsel %vm2079_vm4, %v2080_v8, %v20066_v10 }
  0x24   : > { %420 = vst.msk [vmem:[#allocation2 + $0x167] sm:$0x1] %vm408_vm2, %v20064_v1  ;;  %421 = vst.msk [vmem:[#allocation2 + $0x187] sm:$0x1] %vm408_vm2, %v20064_v1  ;;  %v487_v21 = vld [vmem:[%s14029_s29 + $0x30] sm:$0xff]  ;;  %v488_v22 = vld [vmem:[%s14029_s29 + $0x38] sm:$0xff] }
  0x25   : > { %422 = vst.msk [vmem:[#allocation2 + $0x1a7] sm:$0x1] %vm408_vm2, %v20064_v1  ;;  %423 = vst.msk [vmem:[#allocation2 + $0x1c7] sm:$0x1] %vm408_vm2, %v20064_v1  ;;  %v489_v24 = vld [vmem:[%s14029_s29 + $0x40] sm:$0xff]  ;;  %v490_v25 = vld [vmem:[%s14029_s29 + $0x48] sm:$0xff] }
  0x26   : > { %424 = vst.msk [vmem:[#allocation2 + $0x1e7] sm:$0x1] %vm408_vm2, %v20064_v1  ;;  %425 = vst.msk [vmem:[#allocation2 + $0x207] sm:$0x1] %vm408_vm2, %v20064_v1  ;;  %v614_v20 = vld [vmem:[#allocation2 + $0x20] sm:$0xff]  ;;  %v491_v27 = vld [vmem:[%s14029_s29 + $0x50] sm:$0xff] }
  0x27   : > { %428 = vst.msk [vmem:[#allocation2 + $0x267] sm:$0x1] %vm408_vm2, %v20064_v1  ;;  %429 = vst.msk [vmem:[#allocation2 + $0x287] sm:$0x1] %vm408_vm2, %v20064_v1  ;;  %v618_v26 = vld [vmem:[#allocation2 + $0x40] sm:$0xff]  ;;  %v492_v28 = vld [vmem:[%s14029_s29 + $0x58] sm:$0xff] }
  0x28   : > { %430 = vst.msk [vmem:[#allocation2 + $0x2a7] sm:$0x1] %vm408_vm2, %v20064_v1  ;;  %431 = vst.msk [vmem:[#allocation2 + $0x2c7] sm:$0x1] %vm408_vm2, %v20064_v1  ;;  %v856_v29 = vrot.slane %v614_v20, 7  ;;  %v493_v30 = vld [vmem:[%s14029_s29 + $0x60] sm:$0xff] }
  0x29   : > { %432 = vst.msk [vmem:[#allocation2 + $0x2e7] sm:$0x1] %vm408_vm2, %v20064_v1  ;;  %433 = vst.msk [vmem:[#allocation2 + $0x307] sm:$0x1] %vm408_vm2, %v20064_v1  ;;  %v494_v31 = vld [vmem:[%s14029_s29 + $0x68] sm:$0xff]  ;;  %v622_v33 = vld [vmem:[#allocation2 + $0x60] sm:$0xff] }
  0x2a   : > { %434 = vst.msk [vmem:[#allocation2 + $0x327] sm:$0x1] %vm408_vm2, %v20064_v1  ;;  %435 = vst.msk [vmem:[#allocation2 + $0x347] sm:$0x1] %vm408_vm2, %v20064_v1  ;;  %v495_v34 = vld [vmem:[%s14029_s29 + $0x70] sm:$0xff]  ;;  %v861_v37 = vrot.slane %v618_v26, 7 }
  0x2b   : > { %436 = vst.msk [vmem:[#allocation2 + $0x367] sm:$0x1] %vm408_vm2, %v20064_v1  ;;  %437 = vst.msk [vmem:[#allocation2 + $0x387] sm:$0x1] %vm408_vm2, %v20064_v1  ;;  %v496_v38 = vld [vmem:[%s14029_s29 + $0x78] sm:$0xff]  ;;  %v497_v42 = vld [vmem:[%s14029_s29 + $0x80] sm:$0xff] }
  0x2c   : > { %438 = vst.msk [vmem:[#allocation2 + $0x3a7] sm:$0x1] %vm408_vm2, %v20064_v1  ;;  %439 = vst.msk [vmem:[#allocation2 + $0x3c7] sm:$0x1] %vm408_vm2, %v20064_v1  ;;  %v866_v48 = vrot.slane %v622_v33, 7  ;;  %v498_v49 = vld [vmem:[%s14029_s29 + $0x88] sm:$0xff] }
  0x2d   : > { %440 = vst.msk [vmem:[#allocation2 + $0x3e7] sm:$0x1] %vm408_vm2, %v20064_v1  ;;  %441 = vst.msk [vmem:[#allocation2 + $0x407] sm:$0x1] %vm408_vm2, %v20064_v1  ;;  %v626_v53 = vld [vmem:[#allocation2 + $0x80] sm:$0xff]  ;;  %v499_v55 = vld [vmem:[%s14029_s29 + $0x90] sm:$0xff] }
  0x2e   : > { %442 = vst.msk [vmem:[#allocation2 + $0x427] sm:$0x1] %vm408_vm2, %v20064_v1  ;;  %443 = vst.msk [vmem:[#allocation2 + $0x447] sm:$0x1] %vm408_vm2, %v20064_v1  ;;  %v500_v58 = vld [vmem:[%s14029_s29 + $0x98] sm:$0xff]  ;;  %v871_v61 = vrot.slane %v626_v53, 7 }
  0x2f   : > { %446 = vst.msk [vmem:[#allocation2 + $0x38] sm:$0x1] %vm408_vm2, %v20064_v1  ;;  %447 = vst.msk [vmem:[#allocation2 + $0x58] sm:$0x1] %vm408_vm2, %v20064_v1  ;;  %v630_v63 = vld [vmem:[#allocation2 + $0xa0] sm:$0xff]  ;;  %v502_v3 = vld [vmem:[%s14029_s29 + $0xa8] sm:$0xff] }
  0x30   : > { %448 = vst.msk [vmem:[#allocation2 + $0x78] sm:$0x1] %vm408_vm2, %v20064_v1  ;;  %449 = vst.msk [vmem:[#allocation2 + $0x98] sm:$0x1] %vm408_vm2, %v20064_v1  ;;  %v501_v2 = vld [vmem:[%s14029_s29 + $0xa0] sm:$0xff]  ;;  %v503_v4 = vld [vmem:[%s14029_s29 + $0xb0] sm:$0xff] }
  0x31   : > { %450 = vst.msk [vmem:[#allocation2 + $0xb8] sm:$0x1] %vm408_vm2, %v20064_v1  ;;  %451 = vst.msk [vmem:[#allocation2 + $0xd8] sm:$0x1] %vm408_vm2, %v20064_v1  ;;  %v634_v8 = vld [vmem:[#allocation2 + $0xc0] sm:$0xff]  ;;  %v504_v9 = vld [vmem:[%s14029_s29 + $0xb8] sm:$0xff] }
  0x32   : > { %452 = vst.msk [vmem:[#allocation2 + $0xf8] sm:$0x1] %vm408_vm2, %v20064_v1  ;;  %453 = vst.msk [vmem:[#allocation2 + $0x118] sm:$0x1] %vm408_vm2, %v20064_v1  ;;  %v509_v20 = vld [vmem:[%s14029_s29 + $0xe0] sm:$0xff]  ;;  %v514_v33 = vld [vmem:[%s14029_s29 + $0x108] sm:$0xff] }
  0x33   : > { %454 = vst.msk [vmem:[#allocation2 + $0x138] sm:$0x1] %vm408_vm2, %v20064_v1  ;;  %455 = vst.msk [vmem:[#allocation2 + $0x158] sm:$0x1] %vm408_vm2, %v20064_v1  ;;  %v518_v53 = vld [vmem:[%s14029_s29 + $0x128] sm:$0xff] }
  0x34   : > { %456 = vst.msk [vmem:[#allocation2 + $0x178] sm:$0x1] %vm408_vm2, %v20064_v1  ;;  %457 = vst.msk [vmem:[#allocation2 + $0x198] sm:$0x1] %vm408_vm2, %v20064_v1 }
  0x35   : > { %458 = vst.msk [vmem:[#allocation2 + $0x1b8] sm:$0x1] %vm408_vm2, %v20064_v1  ;;  %459 = vst.msk [vmem:[#allocation2 + $0x1d8] sm:$0x1] %vm408_vm2, %v20064_v1 }
  0x36   : > { %460 = vst.msk [vmem:[#allocation2 + $0x1f8] sm:$0x1] %vm408_vm2, %v20064_v1  ;;  %461 = vst.msk [vmem:[#allocation2 + $0x218] sm:$0x1] %vm408_vm2, %v20064_v1 }
  0x37   : > { %464 = vst.msk [vmem:[#allocation2 + $0x278] sm:$0x1] %vm408_vm2, %v20064_v1  ;;  %465 = vst.msk [vmem:[#allocation2 + $0x298] sm:$0x1] %vm408_vm2, %v20064_v1 }
  0x38   : > { %466 = vst.msk [vmem:[#allocation2 + $0x2b8] sm:$0x1] %vm408_vm2, %v20064_v1  ;;  %467 = vst.msk [vmem:[#allocation2 + $0x2d8] sm:$0x1] %vm408_vm2, %v20064_v1 }
  0x39   : > { %468 = vst.msk [vmem:[#allocation2 + $0x2f8] sm:$0x1] %vm408_vm2, %v20064_v1  ;;  %469 = vst.msk [vmem:[#allocation2 + $0x318] sm:$0x1] %vm408_vm2, %v20064_v1 }
  0x3a   : > { %470 = vst.msk [vmem:[#allocation2 + $0x338] sm:$0x1] %vm408_vm2, %v20064_v1  ;;  %471 = vst.msk [vmem:[#allocation2 + $0x358] sm:$0x1] %vm408_vm2, %v20064_v1 }
  0x3b   : > { %472 = vst.msk [vmem:[#allocation2 + $0x378] sm:$0x1] %vm408_vm2, %v20064_v1  ;;  %473 = vst.msk [vmem:[#allocation2 + $0x398] sm:$0x1] %vm408_vm2, %v20064_v1 }
  0x3c   : > { %474 = vst.msk [vmem:[#allocation2 + $0x3b8] sm:$0x1] %vm408_vm2, %v20064_v1  ;;  %475 = vst.msk [vmem:[#allocation2 + $0x3d8] sm:$0x1] %vm408_vm2, %v20064_v1 }
  0x3d   : > { %476 = vst.msk [vmem:[#allocation2 + $0x3f8] sm:$0x1] %vm408_vm2, %v20064_v1  ;;  %477 = vst.msk [vmem:[#allocation2 + $0x418] sm:$0x1] %vm408_vm2, %v20064_v1 }
  0x3e   : > { %478 = vst.msk [vmem:[#allocation2 + $0x438] sm:$0x1] %vm408_vm2, %v20064_v1  ;;  %479 = vst.msk [vmem:[#allocation2 + $0x458] sm:$0x1] %vm408_vm2, %v20064_v1 }
  0x3f   : > { %409 = vst.msk [vmem:[#allocation2 + $0x7] sm:$0x1] %vm408_vm2, %v20064_v1  ;;  %426 = vst.msk [vmem:[#allocation2 + $0x227] sm:$0x1] %vm408_vm2, %v20064_v1 }
  0x40   : > { %427 = vst.msk [vmem:[#allocation2 + $0x247] sm:$0x1] %vm408_vm2, %v20064_v1  ;;  %444 = vst.msk [vmem:[#allocation2 + $0x467] sm:$0x1] %vm408_vm2, %v20064_v1 }
  0x41   : > { %445 = vst.msk [vmem:[#allocation2 + $0x18] sm:$0x1] %vm408_vm2, %v20064_v1  ;;  %462 = vst.msk [vmem:[#allocation2 + $0x238] sm:$0x1] %vm408_vm2, %v20064_v1 }
  0x42   : > { %463 = vst.msk [vmem:[#allocation2 + $0x258] sm:$0x1] %vm408_vm2, %v20064_v1  ;;  %480 = vst.msk [vmem:[#allocation2 + $0x478] sm:$0x1] %vm408_vm2, %v20064_v1 }
  0x43   : > { %546 = vst.msk [vmem:[#allocation2 + $0x28] sm:$0xff] %vm390_vm1, %v481_v6  ;;  %547 = vst.msk [vmem:[#allocation2 + $0x30] sm:$0xff] %vm390_vm1, %v482_v12 }
  0x44   : > { %548 = vst.msk [vmem:[#allocation2 + $0x48] sm:$0xff] %vm390_vm1, %v483_v14  ;;  %549 = vst.msk [vmem:[#allocation2 + $0x50] sm:$0xff] %vm390_vm1, %v484_v15  ;;  %v505_v15 = vld [vmem:[%s14029_s29 + $0xc0] sm:$0xff] }
  0x45   : > { %550 = vst.msk [vmem:[#allocation2 + $0x68] sm:$0xff] %vm390_vm1, %v485_v17  ;;  %551 = vst.msk [vmem:[#allocation2 + $0x70] sm:$0xff] %vm390_vm1, %v486_v18  ;;  %v507_v18 = vld [vmem:[%s14029_s29 + $0xd0] sm:$0xff] }
  0x46   : > { %v610_v11 = vld [vmem:[#allocation2] sm:$0xff]  ;;  %552 = vst.msk [vmem:[#allocation2 + $0x88] sm:$0xff] %vm390_vm1, %v487_v21  ;;  %553 = vst.msk [vmem:[#allocation2 + $0x90] sm:$0xff] %vm390_vm1, %v488_v22 }
  0x47   : > { %v851_v13 = vrot.slane %v610_v11, 7  ;;  %554 = vst.msk [vmem:[#allocation2 + $0xa8] sm:$0xff] %vm390_vm1, %v489_v24  ;;  %555 = vst.msk [vmem:[#allocation2 + $0xb0] sm:$0xff] %vm390_vm1, %v490_v25  ;;  %v510_v24 = vld [vmem:[%s14029_s29 + $0xe8] sm:$0xff] }
  0x48   : > { %556 = vst.msk [vmem:[#allocation2 + $0xc8] sm:$0xff] %vm390_vm1, %v491_v27  ;;  %557 = vst.msk [vmem:[#allocation2 + $0xd0] sm:$0xff] %vm390_vm1, %v492_v28  ;;  %v881_v27 = vrot.slane %v634_v8, 7 }
  0x49   : > { %v853_v19 = vsel %vm850_vm3, %v851_v13, %v852_v7  ;;  %558 = vst.msk [vmem:[#allocation2 + $0xe8] sm:$0xff] %vm390_vm1, %v493_v30  ;;  %559 = vst.msk [vmem:[#allocation2 + $0xf0] sm:$0xff] %vm390_vm1, %v494_v31  ;;  %v876_v13 = vrot.slane %v630_v63, 7  ;;  %v638_v30 = vld [vmem:[#allocation2 + $0xe0] sm:$0xff] }
  0x4a   : > { %12572 = vmatprep.mubr.msk.f32.mxu1 %vm390_vm1, %v853_v19  ;;  %v14075_v32 = vld [vmem:[#allocation2 + $0x28] sm:$0xff]  ;;  %v14083_v36 = vld [vmem:[#allocation2 + $0x30] sm:$0xff]  ;;  %560 = vst.msk [vmem:[#allocation2 + $0x108] sm:$0xff] %vm390_vm1, %v495_v34  ;;  %561 = vst.msk [vmem:[#allocation2 + $0x110] sm:$0xff] %vm390_vm1, %v496_v38 }
  0x4b   : > { %12573 = vmatmul.mubr.msk.f32.vlgmr.msra.gmra.mxu1 %vm390_vm1, %v855_v16  ;;  %v857_v35 = vrot.slane %v14075_v32, 7  ;;  %12477 = vmatprep.mubr.msk.f32.mxu0 %vm390_vm1, %v14075_v32  ;;  %v859_v39 = vrot.slane %v14083_v36, 7  ;;  %v14090_v40 = vld [vmem:[#allocation2 + $0x48] sm:$0xff]  ;;  %v14092_v41 = vld [vmem:[#allocation2 + $0x50] sm:$0xff]  ;;  %562 = vst.msk [vmem:[#allocation2 + $0x128] sm:$0xff] %vm390_vm1, %v497_v42  ;;  %563 = vst.msk [vmem:[#allocation2 + $0x130] sm:$0xff] %vm390_vm1, %v498_v49 }
  0x4c   : > { %12478 = vmatmul.mubr.msk.f32.gmra.mxu0 %vm390_vm1, %v14083_v36  ;;  %v862_v44 = vrot.slane %v14090_v40, 7  ;;  %v14102_v45 = vld [vmem:[#allocation2 + $0x68] sm:$0xff]  ;;  %v864_v46 = vrot.slane %v14092_v41, 7  ;;  %v14105_v47 = vld [vmem:[#allocation2 + $0x70] sm:$0xff]  ;;  %564 = vst.msk [vmem:[#allocation2 + $0x148] sm:$0xff] %vm390_vm1, %v499_v55  ;;  %565 = vst.msk [vmem:[#allocation2 + $0x150] sm:$0xff] %vm390_vm1, %v500_v58 }
  0x4d   : > { %v14097_v43 = vsel %vm850_vm3, %v856_v29, %v857_v35  ;;  %12480 = vmatprep.mubr.msk.f32.mxu0 %vm390_vm1, %v14090_v40  ;;  %v14112_v50 = vsel %vm850_vm3, %v857_v35, %v859_v39  ;;  %v867_v51 = vrot.slane %v14102_v45, 7  ;;  %v14115_v52 = vld [vmem:[#allocation2 + $0x88] sm:$0xff]  ;;  %v869_v57 = vrot.slane %v14105_v47, 7  ;;  %v14139_v60 = vld [vmem:[#allocation2 + $0x90] sm:$0xff]  ;;  %566 = vst.msk [vmem:[#allocation2 + $0x168] sm:$0xff] %vm390_vm1, %v501_v2  ;;  %567 = vst.msk [vmem:[#allocation2 + $0x170] sm:$0xff] %vm390_vm1, %v502_v3 }
  0x4e   : > { %12575 = vmatprep.mubr.msk.f32.mxu1 %vm390_vm1, %v14097_v43  ;;  %v14121_v54 = vsel %vm850_vm3, %v861_v37, %v862_v44  ;;  %v14129_v56 = vsel %vm850_vm3, %v862_v44, %v864_v46  ;;  %v872_v62 = vrot.slane %v14115_v52, 7  ;;  %v14143_v0 = vld [vmem:[#allocation2 + $0xa8] sm:$0xff]  ;;  %v874_v7 = vrot.slane %v14139_v60, 7  ;;  %568 = vst.msk [vmem:[#allocation2 + $0x188] sm:$0xff] %vm390_vm1, %v503_v4  ;;  %v14167_v12 = vld [vmem:[#allocation2 + $0xb0] sm:$0xff]  ;;  %569 = vst.msk [vmem:[#allocation2 + $0x190] sm:$0xff] %vm390_vm1, %v504_v9 }
  0x4f   : > { %12576 = vmatmul.mubr.msk.f32.gmra.mxu1 %vm390_vm1, %v14112_v50  ;;  %20341 = vst [vmem:[#allocation7_spill] sm:$0xff] %v14121_v54  ;;  %20342 = vst [vmem:[#allocation8_spill] sm:$0xff] %v14129_v56  ;;  %v14137_v59 = vsel %vm850_vm3, %v866_v48, %v867_v51  ;;  %v14157_v6 = vsel %vm850_vm3, %v867_v51, %v869_v57  ;;  %v877_v14 = vrot.slane %v14143_v0, 7  ;;  %v506_v16 = vld [vmem:[%s14029_s29 + $0xc8] sm:$0xff]  ;;  %v508_v19 = vld [vmem:[%s14029_s29 + $0xd8] sm:$0xff]  ;;  %v879_v22 = vrot.slane %v14167_v12, 7 }
  0x50   : > { %12481 = vmatmul.mubr.msk.f32.gmra.mxu0 %vm390_vm1, %v14092_v41  ;;  %12578 = vmatprep.mubr.msk.f32.mxu1 %vm390_vm1, %v14121_v54  ;;  %20343 = vst [vmem:[#allocation9_spill] sm:$0xff] %v14137_v59  ;;  %20344 = vst [vmem:[#allocation10_spill] sm:$0xff] %v14157_v6  ;;  %v14165_v11 = vsel %vm850_vm3, %v871_v61, %v872_v62  ;;  %v14173_v17 = vld [vmem:[#allocation2 + $0xc8] sm:$0xff]  ;;  %v14189_v21 = vsel %vm850_vm3, %v872_v62, %v874_v7  ;;  %v14199_v26 = vld [vmem:[#allocation2 + $0xd0] sm:$0xff]  ;;  %v886_v44 = vrot.slane %v638_v30, 7 }
  0x51   : > { %12483 = vmatprep.mubr.msk.f32.mxu0 %vm390_vm1, %v14102_v45  ;;  %20345 = vst [vmem:[#allocation11_spill] sm:$0xff] %v14165_v11  ;;  %570 = vst.msk [vmem:[#allocation2 + $0x1a8] sm:$0xff] %vm390_vm1, %v505_v15  ;;  %v14197_v25 = vsel %vm850_vm3, %v876_v13, %v877_v14  ;;  %v882_v28 = vrot.slane %v14173_v17, 7  ;;  %v14203_v29 = vld [vmem:[#allocation2 + $0xe8] sm:$0xff]  ;;  %v513_v31 = vld [vmem:[%s14029_s29 + $0x100] sm:$0xff]  ;;  %v14215_v34 = vsel %vm850_vm3, %v877_v14, %v879_v22  ;;  %v884_v35 = vrot.slane %v14199_v26, 7 }
  0x52   : > { %571 = vst.msk [vmem:[#allocation2 + $0x1b0] sm:$0xff] %vm390_vm1, %v506_v16  ;;  %572 = vst.msk [vmem:[#allocation2 + $0x1c8] sm:$0xff] %vm390_vm1, %v507_v18  ;;  %v515_v37 = vld [vmem:[%s14029_s29 + $0x110] sm:$0xff]  ;;  %v516_v38 = vld [vmem:[%s14029_s29 + $0x118] sm:$0xff]  ;;  %v887_v46 = vrot.slane %v14203_v29, 7 }
  0x53   : > { %12579 = vmatmul.mubr.msk.f32.gmra.mxu1 %vm390_vm1, %v14129_v56  ;;  %573 = vst.msk [vmem:[#allocation2 + $0x1d0] sm:$0xff] %vm390_vm1, %v508_v19  ;;  %20346 = vst [vmem:[#allocation12_spill] sm:$0xff] %v14189_v21  ;;  %v14224_v39 = vsel %vm850_vm3, %v881_v27, %v882_v28  ;;  %v14226_v42 = vld [vmem:[#allocation2 + $0xf0] sm:$0xff]  ;;  %v14231_v48 = vld [vmem:[#allocation2 + $0x108] sm:$0xff]  ;;  %v14243_v55 = vsel %vm850_vm3, %v882_v28, %v884_v35 }
  0x54   : > { %12484 = vmatmul.mubr.msk.f32.gmra.mxu0 %vm390_vm1, %v14105_v47  ;;  %12581 = vmatprep.mubr.msk.f32.mxu1 %vm390_vm1, %v14137_v59  ;;  %574 = vst.msk [vmem:[#allocation2 + $0x1e8] sm:$0xff] %vm390_vm1, %v509_v20  ;;  %20347 = vst [vmem:[#allocation13_spill] sm:$0xff] %v14197_v25  ;;  %v642_v49 = vld [vmem:[#allocation2 + $0x100] sm:$0xff]  ;;  %v889_v57 = vrot.slane %v14226_v42, 7  ;;  %v519_v58 = vld [vmem:[%s14029_s29 + $0x130] sm:$0xff]  ;;  %v14252_v62 = vsel %vm850_vm3, %v886_v44, %v887_v46  ;;  %v892_v3 = vrot.slane %v14231_v48, 7 }
  0x55   : > { %12486 = vmatprep.mubr.msk.f32.mxu0 %vm390_vm1, %v14115_v52  ;;  %575 = vst.msk [vmem:[#allocation2 + $0x1f0] sm:$0xff] %vm390_vm1, %v510_v24  ;;  %578 = vst.msk [vmem:[#allocation2 + $0x268] sm:$0xff] %vm390_vm1, %v513_v31  ;;  %v517_v51 = vld [vmem:[%s14029_s29 + $0x120] sm:$0xff]  ;;  %v520_v61 = vld [vmem:[%s14029_s29 + $0x138] sm:$0xff]  ;;  %v891_v2 = vrot.slane %v642_v49, 7 }
  0x56   : > { %20348 = vst [vmem:[#allocation14_spill] sm:$0xff] %v14215_v34  ;;  %579 = vst.msk [vmem:[#allocation2 + $0x270] sm:$0xff] %vm390_vm1, %v514_v33  ;;  %v14254_v63 = vld [vmem:[#allocation2 + $0x110] sm:$0xff]  ;;  %v521_v4 = vld [vmem:[%s14029_s29 + $0x140] sm:$0xff]  ;;  %v14275_v15 = vsel %vm850_vm3, %v887_v46, %v889_v57 }
  0x57   : > { %12582 = vmatmul.mubr.msk.f32.gmra.mxu1 %vm390_vm1, %v14157_v6  ;;  %20349 = vst [vmem:[#allocation15_spill] sm:$0xff] %v14224_v39  ;;  %580 = vst.msk [vmem:[#allocation2 + $0x288] sm:$0xff] %vm390_vm1, %v515_v37  ;;  %v522_v7 = vld [vmem:[%s14029_s29 + $0x148] sm:$0xff]  ;;  %v646_v9 = vld [vmem:[#allocation2 + $0x120] sm:$0xff]  ;;  %v894_v16 = vrot.slane %v14254_v63, 7  ;;  %v14283_v19 = vsel %vm850_vm3, %v891_v2, %v892_v3 }
  0x58   : > { %12487 = vmatmul.mubr.msk.f32.gmra.mxu0 %vm390_vm1, %v14139_v60  ;;  %12584 = vmatprep.mubr.msk.f32.mxu1 %vm390_vm1, %v14165_v11  ;;  %581 = vst.msk [vmem:[#allocation2 + $0x290] sm:$0xff] %vm390_vm1, %v516_v38  ;;  %582 = vst.msk [vmem:[#allocation2 + $0x2a8] sm:$0xff] %vm390_vm1, %v517_v51  ;;  %v14261_v8 = vld [vmem:[#allocation2 + $0x128] sm:$0xff]  ;;  %v523_v13 = vld [vmem:[%s14029_s29 + $0x150] sm:$0xff]  ;;  %v896_v22 = vrot.slane %v646_v9, 7 }
  0x59   : > { %12489 = vmatprep.mubr.msk.f32.mxu0 %vm390_vm1, %v14143_v0  ;;  %20350 = vst [vmem:[#allocation16_spill] sm:$0xff] %v14243_v55  ;;  %583 = vst.msk [vmem:[#allocation2 + $0x2b0] sm:$0xff] %vm390_vm1, %v518_v53  ;;  %v524_v14 = vld [vmem:[%s14029_s29 + $0x158] sm:$0xff]  ;;  %v525_v18 = vld [vmem:[%s14029_s29 + $0x160] sm:$0xff]  ;;  %v897_v24 = vrot.slane %v14261_v8, 7  ;;  %v14306_v38 = vsel %vm850_vm3, %v892_v3, %v894_v16 }
  0x5a   : > { %20351 = vst [vmem:[#allocation17_spill] sm:$0xff] %v14252_v62  ;;  %584 = vst.msk [vmem:[#allocation2 + $0x2c8] sm:$0xff] %vm390_vm1, %v519_v58  ;;  %v14285_v20 = vld [vmem:[#allocation2 + $0x130] sm:$0xff]  ;;  %v526_v27 = vld [vmem:[%s14029_s29 + $0x168] sm:$0xff] }
  0x5b   : > { %12585 = vmatmul.mubr.msk.f32.gmra.mxu1 %vm390_vm1, %v14189_v21  ;;  %585 = vst.msk [vmem:[#allocation2 + $0x2d0] sm:$0xff] %vm390_vm1, %v520_v61  ;;  %586 = vst.msk [vmem:[#allocation2 + $0x2e8] sm:$0xff] %vm390_vm1, %v521_v4  ;;  %v527_v28 = vld [vmem:[%s14029_s29 + $0x170] sm:$0xff]  ;;  %v14291_v30 = vld [vmem:[#allocation2 + $0x148] sm:$0xff]  ;;  %v899_v44 = vrot.slane %v14285_v20, 7  ;;  %v14314_v46 = vsel %vm850_vm3, %v896_v22, %v897_v24 }
  0x5c   : > { %12490 = vmatmul.mubr.msk.f32.gmra.mxu0 %vm390_vm1, %v14167_v12  ;;  %12587 = vmatprep.mubr.msk.f32.mxu1 %vm390_vm1, %v14197_v25  ;;  %587 = vst.msk [vmem:[#allocation2 + $0x2f0] sm:$0xff] %vm390_vm1, %v522_v7  ;;  %588 = vst.msk [vmem:[#allocation2 + $0x308] sm:$0xff] %vm390_vm1, %v523_v13  ;;  %v650_v31 = vld [vmem:[#allocation2 + $0x140] sm:$0xff]  ;;  %v528_v33 = vld [vmem:[%s14029_s29 + $0x178] sm:$0xff]  ;;  %v902_v53 = vrot.slane %v14291_v30, 7 }
  0x5d   : > { %12492 = vmatprep.mubr.msk.f32.mxu0 %vm390_vm1, %v14173_v17  ;;  %20352 = vst [vmem:[#allocation18_spill] sm:$0xff] %v14275_v15  ;;  %589 = vst.msk [vmem:[#allocation2 + $0x310] sm:$0xff] %vm390_vm1, %v524_v14  ;;  %v529_v35 = vld [vmem:[%s14029_s29 + $0x180] sm:$0xff]  ;;  %v530_v37 = vld [vmem:[%s14029_s29 + $0x188] sm:$0xff]  ;;  %v901_v51 = vrot.slane %v650_v31, 7  ;;  %v14334_v7 = vsel %vm850_vm3, %v897_v24, %v899_v44 }
  0x5e   : > { %20353 = vst [vmem:[#allocation19_spill] sm:$0xff] %v14283_v19  ;;  %590 = vst.msk [vmem:[#allocation2 + $0x328] sm:$0xff] %vm390_vm1, %v525_v18  ;;  %v14316_v49 = vld [vmem:[#allocation2 + $0x150] sm:$0xff]  ;;  %v14320_v58 = vld [vmem:[#allocation2 + $0x168] sm:$0xff] }
  0x5f   : > { %12588 = vmatmul.mubr.msk.f32.gmra.mxu1 %vm390_vm1, %v14215_v34  ;;  %591 = vst.msk [vmem:[#allocation2 + $0x330] sm:$0xff] %vm390_vm1, %v526_v27  ;;  %592 = vst.msk [vmem:[#allocation2 + $0x348] sm:$0xff] %vm390_vm1, %v527_v28  ;;  %v531_v57 = vld [vmem:[%s14029_s29 + $0x190] sm:$0xff]  ;;  %v654_v61 = vld [vmem:[#allocation2 + $0x160] sm:$0xff]  ;;  %v904_v9 = vrot.slane %v14316_v49, 7  ;;  %v14343_v14 = vsel %vm850_vm3, %v901_v51, %v902_v53  ;;  %v907_v22 = vrot.slane %v14320_v58, 7 }
  0x60   : > { %12493 = vmatmul.mubr.msk.f32.gmra.mxu0 %vm390_vm1, %v14199_v26  ;;  %12590 = vmatprep.mubr.msk.f32.mxu1 %vm390_vm1, %v14224_v39  ;;  %593 = vst.msk [vmem:[#allocation2 + $0x350] sm:$0xff] %vm390_vm1, %v528_v33  ;;  %20354 = vst [vmem:[#allocation20_spill] sm:$0xff] %v14306_v38  ;;  %v532_v2 = vld [vmem:[%s14029_s29 + $0x198] sm:$0xff]  ;;  %v533_v3 = vld [vmem:[%s14029_s29 + $0x1a0] sm:$0xff]  ;;  %v906_v18 = vrot.slane %v654_v61, 7 }
  0x61   : > { %12495 = vmatprep.mubr.msk.f32.mxu0 %vm390_vm1, %v14203_v29  ;;  %594 = vst.msk [vmem:[#allocation2 + $0x368] sm:$0xff] %vm390_vm1, %v529_v35  ;;  %595 = vst.msk [vmem:[#allocation2 + $0x370] sm:$0xff] %vm390_vm1, %v530_v37  ;;  %v534_v4 = vld [vmem:[%s14029_s29 + $0x1a8] sm:$0xff]  ;;  %v535_v13 = vld [vmem:[%s14029_s29 + $0x1b0] sm:$0xff]  ;;  %v14363_v35 = vsel %vm850_vm3, %v902_v53, %v904_v9 }
  0x62   : > { %20355 = vst [vmem:[#allocation21_spill] sm:$0xff] %v14314_v46  ;;  %596 = vst.msk [vmem:[#allocation2 + $0x388] sm:$0xff] %vm390_vm1, %v531_v57  ;;  %v14345_v16 = vld [vmem:[#allocation2 + $0x170] sm:$0xff]  ;;  %v536_v24 = vld [vmem:[%s14029_s29 + $0x1b8] sm:$0xff]  ;;  %v14372_v57 = vsel %vm850_vm3, %v906_v18, %v907_v22 }
  0x63   : > { %12591 = vmatmul.mubr.msk.f32.gmra.mxu1 %vm390_vm1, %v14243_v55  ;;  %597 = vst.msk [vmem:[#allocation2 + $0x390] sm:$0xff] %vm390_vm1, %v532_v2  ;;  %20356 = vst [vmem:[#allocation22_spill] sm:$0xff] %v14334_v7  ;;  %v14350_v27 = vld [vmem:[#allocation2 + $0x188] sm:$0xff]  ;;  %v658_v28 = vld [vmem:[#allocation2 + $0x180] sm:$0xff]  ;;  %v909_v37 = vrot.slane %v14345_v16, 7 }
  0x64   : > { %12496 = vmatmul.mubr.msk.f32.gmra.mxu0 %vm390_vm1, %v14226_v42  ;;  %12593 = vmatprep.mubr.msk.f32.mxu1 %vm390_vm1, %v14252_v62  ;;  %598 = vst.msk [vmem:[#allocation2 + $0x3a8] sm:$0xff] %vm390_vm1, %v533_v3  ;;  %599 = vst.msk [vmem:[#allocation2 + $0x3b0] sm:$0xff] %vm390_vm1, %v534_v4  ;;  %v537_v31 = vld [vmem:[%s14029_s29 + $0x1c0] sm:$0xff]  ;;  %v538_v33 = vld [vmem:[%s14029_s29 + $0x1c8] sm:$0xff]  ;;  %v911_v2 = vrot.slane %v658_v28, 7  ;;  %v912_v3 = vrot.slane %v14350_v27, 7 }
  0x65   : > { %12498 = vmatprep.mubr.msk.f32.mxu0 %vm390_vm1, %v14231_v48  ;;  %20357 = vst [vmem:[#allocation23_spill] sm:$0xff] %v14343_v14  ;;  %600 = vst.msk [vmem:[#allocation2 + $0x3c8] sm:$0xff] %vm390_vm1, %v535_v13  ;;  %v539_v44 = vld [vmem:[%s14029_s29 + $0x1d0] sm:$0xff]  ;;  %v540_v51 = vld [vmem:[%s14029_s29 + $0x1d8] sm:$0xff] }
  0x66   : > { %601 = vst.msk [vmem:[#allocation2 + $0x3d0] sm:$0xff] %vm390_vm1, %v536_v24  ;;  %602 = vst.msk [vmem:[#allocation2 + $0x3e8] sm:$0xff] %vm390_vm1, %v537_v31  ;;  %v14374_v61 = vld [vmem:[#allocation2 + $0x190] sm:$0xff]  ;;  %v662_v53 = vld [vmem:[#allocation2 + $0x1a0] sm:$0xff]  ;;  %v14396_v24 = vsel %vm850_vm3, %v907_v22, %v909_v37 }
  0x67   : > { %12594 = vmatmul.mubr.msk.f32.gmra.mxu1 %vm390_vm1, %v14275_v15  ;;  %20358 = vst [vmem:[#allocation24_spill] sm:$0xff] %v14363_v35  ;;  %603 = vst.msk [vmem:[#allocation2 + $0x3f0] sm:$0xff] %vm390_vm1, %v538_v33  ;;  %v541_v4 = vld [vmem:[%s14029_s29 + $0x1e0] sm:$0xff]  ;;  %v14380_v9 = vld [vmem:[#allocation2 + $0x1a8] sm:$0xff]  ;;  %v914_v28 = vrot.slane %v14374_v61, 7  ;;  %v14407_v33 = vsel %vm850_vm3, %v911_v2, %v912_v3 }
  0x68   : > { %12499 = vmatmul.mubr.msk.f32.gmra.mxu0 %vm390_vm1, %v14254_v63  ;;  %12596 = vmatprep.mubr.msk.f32.mxu1 %vm390_vm1, %v14283_v19  ;;  %20359 = vst [vmem:[#allocation25_spill] sm:$0xff] %v14372_v57  ;;  %20360 = vst [vmem:[#allocation26_spill] sm:$0xff] %v14374_v61  ;;  %v542_v13 = vld [vmem:[%s14029_s29 + $0x1e8] sm:$0xff]  ;;  %v14402_v31 = vld [vmem:[%s20339_s1 + $0x10] sm:$0x7] }
  0x69   : > { %12501 = vmatprep.mubr.msk.f32.mxu0 %vm390_vm1, %v14261_v8  ;;  %604 = vst.msk [vmem:[#allocation2 + $0x408] sm:$0xff] %vm390_vm1, %v539_v44  ;;  %605 = vst.msk [vmem:[#allocation2 + $0x410] sm:$0xff] %vm390_vm1, %v540_v51  ;;  %v10983_v18 = vld [vmem:[%s20339_s1 + $0xc] sm:$0x7]  ;;  %v14409_v44 = vld [vmem:[#allocation2 + $0x1b0] sm:$0xff]  ;;  %v916_v51 = vrot.slane %v662_v53, 7  ;;  %12864 = vmatprep.subr.msk.mxu0 %vm1142_vm0, %v14402_v31  ;;  %v14424_v2 = vsel %vm850_vm3, %v912_v3, %v914_v28 }
  0x6a   : > { %20361 = vst [vmem:[#allocation27_spill] sm:$0xff] %v14380_v9  ;;  %606 = vst.msk [vmem:[#allocation2 + $0x428] sm:$0xff] %vm390_vm1, %v541_v4  ;;  %12766 = vmatprep.subr.msk.mxu1 %vm1142_vm0, %v10983_v18  ;;  %v917_v4 = vrot.slane %v14380_v9, 7  ;;  %v14413_v22 = vld [vmem:[#allocation2 + $0x1c8] sm:$0xff]  ;;  %v666_v37 = vld [vmem:[#allocation2 + $0x1c0] sm:$0xff]  ;;  %v919_v53 = vrot.slane %v14409_v44, 7 }
  0x6b   : > { %12597 = vmatmul.mubr.msk.f32.gmra.mxu1 %vm390_vm1, %v14306_v38  ;;  %607 = vst.msk [vmem:[#allocation2 + $0x430] sm:$0xff] %vm390_vm1, %v542_v13  ;;  %20362 = vst [vmem:[#allocation28_spill] sm:$0xff] %v14396_v24  ;;  %v921_v1 = vrot.slane %v666_v37, 7  ;;  %v922_v10 = vrot.slane %v14413_v22, 7  ;;  %v512_v37 = vld [vmem:[%s14029_s29 + $0xf8] sm:$0xff] }
  0x6c   : > { %12502 = vmatmul.mubr.msk.f32.gmra.mxu0 %vm390_vm1, %v14285_v20  ;;  %12599 = vmatprep.mubr.msk.f32.mxu1 %vm390_vm1, %v14314_v46  ;;  %20363 = vst [vmem:[#allocation29_spill] sm:$0xff] %v14407_v33  ;;  %20364 = vst [vmem:[#allocation30_spill] sm:$0xff] %v14409_v44  ;;  %v14430_v13 = vsel %vm850_vm3, %v916_v51, %v917_v4  ;;  %v14444_v3 = vsel %vm850_vm3, %v917_v4, %v919_v53  ;;  %v511_v51 = vld [vmem:[%s14029_s29 + $0xf0] sm:$0xff]  ;;  %v683_v4 = vld [vmem:[#allocation2 + $0x248] sm:$0xff] }
  0x6d   : > { %12504 = vmatprep.mubr.msk.f32.mxu0 %vm390_vm1, %v14291_v30  ;;  %12767 = vmatpush3.msk.msra.mxu1 %vm1142_vm0, %v10983_v18  ;;  %20365 = vst [vmem:[#allocation31_spill] sm:$0xff] %v14413_v22  ;;  %20366 = vst [vmem:[#allocation32_spill] sm:$0xff] %v14424_v2  ;;  %v14432_v18 = vld [vmem:[#allocation2 + $0x1d0] sm:$0xff]  ;;  %v682_v53 = vld [vmem:[#allocation2 + $0x240] sm:$0xff] }
  0x6e   : > { %20367 = vst [vmem:[#allocation33_spill] sm:$0xff] %v14430_v13  ;;  %20368 = vst [vmem:[#allocation34_spill] sm:$0xff] %v14432_v18  ;;  %v924_v28 = vrot.slane %v14432_v18, 7 }
  0x6f   : > { %12600 = vmatmul.mubr.msk.f32.gmra.mxu1 %vm390_vm1, %v14334_v7  ;;  %20369 = vst [vmem:[#allocation35_spill] sm:$0xff] %v14444_v3  ;;  %576 = vst.msk [vmem:[#allocation2 + $0x208] sm:$0xff] %vm390_vm1, %v511_v51 }
  0x70   : > { %12505 = vmatmul.mubr.msk.f32.gmra.mxu0 %vm390_vm1, %v14316_v49  ;;  %12602 = vmatprep.mubr.msk.f32.mxu1 %vm390_vm1, %v14343_v14  ;;  %577 = vst.msk [vmem:[#allocation2 + $0x210] sm:$0xff] %vm390_vm1, %v512_v37 }
  0x71   : > { %12507 = vmatprep.mubr.msk.f32.mxu0 %vm390_vm1, %v14320_v58 }
  0x73   : > { %12603 = vmatmul.mubr.msk.f32.gmra.mxu1 %vm390_vm1, %v14363_v35  ;;  %v931_v35 = vrot.slane %v682_v53, 7 }
  0x74   : > { %12508 = vmatmul.mubr.msk.f32.gmra.mxu0 %vm390_vm1, %v14345_v16  ;;  %12605 = vmatprep.mubr.msk.f32.mxu1 %vm390_vm1, %v14372_v57 }
  0x75   : > { %12510 = vmatprep.mubr.msk.f32.mxu0 %vm390_vm1, %v14350_v27 }
  0x77   : > { %12606 = vmatmul.mubr.msk.f32.gmra.mxu1 %vm390_vm1, %v14396_v24  ;;  %v14435_v24 = vld [vmem:[#allocation2 + $0x1e8] sm:$0xff] }
  0x78   : > { %12511 = vmatmul.mubr.msk.f32.gmra.mxu0 %vm390_vm1, %v14374_v61  ;;  %12608 = vmatprep.mubr.msk.f32.mxu1 %vm390_vm1, %v14407_v33  ;;  %v670_v33 = vld [vmem:[#allocation2 + $0x1e0] sm:$0xff] }
  0x79   : > { %12513 = vmatprep.mubr.msk.f32.mxu0 %vm390_vm1, %v14380_v9  ;;  %v14452_v9 = vsel %vm850_vm3, %v921_v1, %v922_v10  ;;  %v926_v57 = vrot.slane %v670_v33, 7  ;;  %v14468_v1 = vsel %vm850_vm3, %v922_v10, %v924_v28  ;;  %v2160_v33 = vrot.slane %v683_v4, 1  ;;  %v686_v61 = vld [vmem:[#allocation2 + $0x260] sm:$0xff] }
  0x7a   : > { %20370 = vst [vmem:[#allocation36_spill] sm:$0xff] %v14452_v9  ;;  %20373 = vst [vmem:[#allocation39_spill] sm:$0xff] %v14468_v1 }
  0x7b   : > { %12609 = vmatmul.mubr.msk.f32.gmra.mxu1 %vm390_vm1, %v14424_v2  ;;  %v14454_v2 = vld [vmem:[#allocation2 + $0x1f0] sm:$0xff] }
  0x7c   : > { %12514 = vmatmul.mubr.msk.f32.gmra.mxu0 %vm390_vm1, %v14409_v44  ;;  %12611 = vmatprep.mubr.msk.f32.mxu1 %vm390_vm1, %v14430_v13  ;;  %20371 = vst [vmem:[#allocation37_spill] sm:$0xff] %v14454_v2  ;;  %v927_v44 = vrot.slane %v14435_v24, 7  ;;  %v14461_v13 = vld [vmem:[#allocation2 + $0x250] sm:$0xff]  ;;  %v929_v51 = vrot.slane %v14454_v2, 7 }
  0x7d   : > { %12516 = vmatprep.mubr.msk.f32.mxu0 %vm390_vm1, %v14413_v22  ;;  %20372 = vst [vmem:[#allocation38_spill] sm:$0xff] %v14461_v13  ;;  %v20093_v37 = vrot.slane %v14461_v13, 1  ;;  %v932_v22 = vrot.slane %v683_v4, 7 }
  0x7e   : > { %v14486_v10 = vsel %vm850_vm3, %v927_v44, %v929_v51 }
  0x7f   : > { %12612 = vmatmul.mubr.msk.f32.gmra.mxu1 %vm390_vm1, %v14444_v3  ;;  %v14475_v3 = vsel %vm850_vm3, %v926_v57, %v927_v44  ;;  %20375 = vst [vmem:[#allocation41_spill] sm:$0xff] %v14486_v10  ;;  %v934_v57 = vrot.slane %v14461_v13, 7  ;;  %v14492_v28 = vsel %vm2079_vm4, %v2160_v33, %v20093_v37  ;;  %v933_v53 = vsel %vm850_vm3, %v931_v35, %v932_v22  ;;  %v690_v44 = vld [vmem:[#allocation2 + $0x280] sm:$0xff]  ;;  %v14513_v33 = vld [vmem:[#allocation2 + $0x290] sm:$0xff] }
  0x80   : > { %12517 = vmatmul.mubr.msk.f32.gmra.mxu0 %vm390_vm1, %v14432_v18  ;;  %12614 = vmatprep.mubr.msk.f32.mxu1 %vm390_vm1, %v14452_v9  ;;  %20374 = vst [vmem:[#allocation40_spill] sm:$0xff] %v14475_v3  ;;  %v14477_v18 = vld [vmem:[#allocation2 + $0x268] sm:$0xff]  ;;  %20376 = vst [vmem:[#allocation42_spill] sm:$0xff] %v14492_v28  ;;  %v14497_v9 = vld [vmem:[#allocation2 + $0x270] sm:$0xff]  ;;  %v941_v51 = vrot.slane %v690_v44, 7 }
  0x81   : > { %12519 = vmatprep.mubr.msk.f32.mxu0 %vm390_vm1, %v14435_v24  ;;  %20377 = vst [vmem:[#allocation43_spill] sm:$0xff] %v14497_v9  ;;  %v939_v35 = vrot.slane %v14497_v9, 7  ;;  %20380 = vst [vmem:[#allocation46_spill] sm:$0xff] %v14513_v33  ;;  %v14516_v28 = vld [vmem:[#allocation2 + $0x2a8] sm:$0xff] }
  0x82   : > { %20381 = vst [vmem:[#allocation47_spill] sm:$0xff] %v14516_v28 }
  0x83   : > { %12615 = vmatmul.mubr.msk.f32.gmra.mxu1 %vm390_vm1, %v14468_v1  ;;  %v937_v1 = vrot.slane %v14477_v18, 7 }
  0x84   : > { %12520 = vmatmul.mubr.msk.f32.gmra.mxu0 %vm390_vm1, %v14454_v2  ;;  %12617 = vmatprep.mubr.msk.f32.mxu1 %vm390_vm1, %v14475_v3  ;;  %v936_v2 = vrot.slane %v686_v61, 7  ;;  %v14499_v3 = vld [vmem:[#allocation2 + $0x288] sm:$0xff] }
  0x85   : > { %12522 = vmatprep.mubr.msk.f32.mxu0 %vm390_vm1, %v683_v4  ;;  %20378 = vst [vmem:[#allocation44_spill] sm:$0xff] %v14499_v3  ;;  %v935_v4 = vsel %vm850_vm3, %v932_v22, %v934_v57  ;;  %v942_v37 = vrot.slane %v14499_v3, 7  ;;  %v14524_v22 = vsel %vm850_vm3, %v937_v1, %v939_v35 }
  0x86   : > { %v14511_v61 = vsel %vm850_vm3, %v936_v2, %v937_v1  ;;  %20382 = vst [vmem:[#allocation48_spill] sm:$0xff] %v14524_v22  ;;  %v944_v2 = vrot.slane %v14513_v33, 7 }
  0x87   : > { %12618 = vmatmul.mubr.msk.f32.gmra.mxu1 %vm390_vm1, %v14486_v10  ;;  %20379 = vst [vmem:[#allocation45_spill] sm:$0xff] %v14511_v61  ;;  %v14530_v57 = vsel %vm850_vm3, %v941_v51, %v942_v37  ;;  %v14535_v10 = vld [vmem:[#allocation2 + $0x2c8] sm:$0xff]  ;;  %v14552_v51 = vld [vmem:[#allocation2 + $0x2d0] sm:$0xff] }
  0x88   : > { %12523 = vmatmul.mubr.msk.f32.gmra.mxu0 %vm390_vm1, %v14461_v13  ;;  %12620 = vmatprep.mubr.msk.f32.mxu1 %vm390_vm1, %v933_v53  ;;  %v694_v13 = vld [vmem:[#allocation2 + $0x2a0] sm:$0xff]  ;;  %20383 = vst [vmem:[#allocation49_spill] sm:$0xff] %v14530_v57  ;;  %v14532_v53 = vld [vmem:[#allocation2 + $0x2b0] sm:$0xff]  ;;  %20385 = vst [vmem:[#allocation51_spill] sm:$0xff] %v14535_v10  ;;  %v14544_v1 = vsel %vm850_vm3, %v942_v37, %v944_v2  ;;  %v954_v2 = vrot.slane %v14552_v51, 7 }
  0x89   : > { %12525 = vmatprep.mubr.msk.f32.mxu0 %vm390_vm1, %v14477_v18  ;;  %20384 = vst [vmem:[#allocation50_spill] sm:$0xff] %v14532_v53  ;;  %v946_v44 = vrot.slane %v694_v13, 7  ;;  %20386 = vst [vmem:[#allocation52_spill] sm:$0xff] %v14544_v1  ;;  %v949_v35 = vrot.slane %v14532_v53, 7 }
  0x8a   : > { %20388 = vst [vmem:[#allocation54_spill] sm:$0xff] %v14552_v51 }
  0x8b   : > { %12621 = vmatmul.mubr.msk.f32.gmra.mxu1 %vm390_vm1, %v935_v4  ;;  %v947_v4 = vrot.slane %v14516_v28, 7 }
  0x8c   : > { %12526 = vmatmul.mubr.msk.f32.gmra.mxu0 %vm390_vm1, %v14497_v9  ;;  %12623 = vmatprep.mubr.msk.f32.mxu1 %vm390_vm1, %v14511_v61  ;;  %v698_v9 = vld [vmem:[#allocation2 + $0x2c0] sm:$0xff]  ;;  %v952_v61 = vrot.slane %v14535_v10, 7 }
  0x8d   : > { %12528 = vmatprep.mubr.msk.f32.mxu0 %vm390_vm1, %v14499_v3  ;;  %v14550_v13 = vsel %vm850_vm3, %v946_v44, %v947_v4  ;;  %v702_v3 = vld [vmem:[#allocation2 + $0x2e0] sm:$0xff]  ;;  %v14564_v37 = vsel %vm850_vm3, %v947_v4, %v949_v35  ;;  %v14572_v44 = vld [vmem:[#allocation2 + $0x2f0] sm:$0xff] }
  0x8e   : > { %20387 = vst [vmem:[#allocation53_spill] sm:$0xff] %v14550_v13  ;;  %20390 = vst [vmem:[#allocation56_spill] sm:$0xff] %v14564_v37  ;;  %v959_v4 = vrot.slane %v14572_v44, 7  ;;  %v14592_v35 = vld [vmem:[#allocation2 + $0x310] sm:$0xff] }
  0x8f   : > { %12624 = vmatmul.mubr.msk.f32.gmra.mxu1 %vm390_vm1, %v14524_v22  ;;  %v951_v22 = vrot.slane %v698_v9, 7  ;;  %20392 = vst [vmem:[#allocation58_spill] sm:$0xff] %v14572_v44  ;;  %20396 = vst [vmem:[#allocation62_spill] sm:$0xff] %v14592_v35 }
  0x90   : > { %12529 = vmatmul.mubr.msk.f32.gmra.mxu0 %vm390_vm1, %v14513_v33  ;;  %12626 = vmatprep.mubr.msk.f32.mxu1 %vm390_vm1, %v14530_v57  ;;  %v14555_v33 = vld [vmem:[#allocation2 + $0x2e8] sm:$0xff] }
  0x91   : > { %12531 = vmatprep.mubr.msk.f32.mxu0 %vm390_vm1, %v14516_v28  ;;  %20389 = vst [vmem:[#allocation55_spill] sm:$0xff] %v14555_v33  ;;  %v14570_v9 = vsel %vm850_vm3, %v951_v22, %v952_v61  ;;  %v957_v57 = vrot.slane %v14555_v33, 7  ;;  %v706_v28 = vld [vmem:[#allocation2 + $0x300] sm:$0xff]  ;;  %v14584_v22 = vsel %vm850_vm3, %v952_v61, %v954_v2  ;;  %v14612_v2 = vld [vmem:[#allocation2 + $0x330] sm:$0xff] }
  0x92   : > { %20391 = vst [vmem:[#allocation57_spill] sm:$0xff] %v14570_v9  ;;  %20394 = vst [vmem:[#allocation60_spill] sm:$0xff] %v14584_v22 }
  0x93   : > { %12627 = vmatmul.mubr.msk.f32.gmra.mxu1 %vm390_vm1, %v14544_v1  ;;  %v956_v1 = vrot.slane %v702_v3, 7  ;;  %v14604_v61 = vsel %vm850_vm3, %v957_v57, %v959_v4  ;;  %20400 = vst [vmem:[#allocation66_spill] sm:$0xff] %v14612_v2  ;;  %v14632_v4 = vld [vmem:[#allocation2 + $0x350] sm:$0xff] }
  0x94   : > { %12532 = vmatmul.mubr.msk.f32.gmra.mxu0 %vm390_vm1, %v14532_v53  ;;  %12629 = vmatprep.mubr.msk.f32.mxu1 %vm390_vm1, %v14550_v13  ;;  %v14575_v53 = vld [vmem:[#allocation2 + $0x308] sm:$0xff]  ;;  %20398 = vst [vmem:[#allocation64_spill] sm:$0xff] %v14604_v61  ;;  %20404 = vst [vmem:[#allocation70_spill] sm:$0xff] %v14632_v4 }
  0x95   : > { %12534 = vmatprep.mubr.msk.f32.mxu0 %vm390_vm1, %v14535_v10  ;;  %20393 = vst [vmem:[#allocation59_spill] sm:$0xff] %v14575_v53  ;;  %v14590_v3 = vsel %vm850_vm3, %v956_v1, %v957_v57  ;;  %v962_v13 = vrot.slane %v14575_v53, 7  ;;  %v710_v10 = vld [vmem:[#allocation2 + $0x320] sm:$0xff]  ;;  %v964_v1 = vrot.slane %v14592_v35, 7 }
  0x96   : > { %20395 = vst [vmem:[#allocation61_spill] sm:$0xff] %v14590_v3 }
  0x97   : > { %12630 = vmatmul.mubr.msk.f32.gmra.mxu1 %vm390_vm1, %v14564_v37  ;;  %v961_v37 = vrot.slane %v706_v28, 7  ;;  %v14624_v57 = vsel %vm850_vm3, %v962_v13, %v964_v1  ;;  %v14652_v1 = vld [vmem:[#allocation2 + $0x370] sm:$0xff] }
  0x98   : > { %12535 = vmatmul.mubr.msk.f32.gmra.mxu0 %vm390_vm1, %v14552_v51  ;;  %12632 = vmatprep.mubr.msk.f32.mxu1 %vm390_vm1, %v14570_v9  ;;  %v14595_v51 = vld [vmem:[#allocation2 + $0x328] sm:$0xff]  ;;  %20402 = vst [vmem:[#allocation68_spill] sm:$0xff] %v14624_v57  ;;  %20408 = vst [vmem:[#allocation74_spill] sm:$0xff] %v14652_v1 }
  0x99   : > { %12537 = vmatprep.mubr.msk.f32.mxu0 %vm390_vm1, %v14555_v33  ;;  %20397 = vst [vmem:[#allocation63_spill] sm:$0xff] %v14595_v51  ;;  %v14610_v28 = vsel %vm850_vm3, %v961_v37, %v962_v13  ;;  %v967_v9 = vrot.slane %v14595_v51, 7  ;;  %v714_v33 = vld [vmem:[#allocation2 + $0x340] sm:$0xff]  ;;  %v969_v37 = vrot.slane %v14612_v2, 7 }
  0x9a   : > { %20399 = vst [vmem:[#allocation65_spill] sm:$0xff] %v14610_v28 }
  0x9b   : > { %12633 = vmatmul.mubr.msk.f32.gmra.mxu1 %vm390_vm1, %v14584_v22  ;;  %v966_v22 = vrot.slane %v710_v10, 7  ;;  %v14644_v13 = vsel %vm850_vm3, %v967_v9, %v969_v37  ;;  %v14672_v37 = vld [vmem:[#allocation2 + $0x390] sm:$0xff] }
  0x9c   : > { %12538 = vmatmul.mubr.msk.f32.gmra.mxu0 %vm390_vm1, %v14572_v44  ;;  %12635 = vmatprep.mubr.msk.f32.mxu1 %vm390_vm1, %v14590_v3  ;;  %v14615_v44 = vld [vmem:[#allocation2 + $0x348] sm:$0xff]  ;;  %20406 = vst [vmem:[#allocation72_spill] sm:$0xff] %v14644_v13  ;;  %20412 = vst [vmem:[#allocation78_spill] sm:$0xff] %v14672_v37 }
  0x9d   : > { %12540 = vmatprep.mubr.msk.f32.mxu0 %vm390_vm1, %v14575_v53  ;;  %20401 = vst [vmem:[#allocation67_spill] sm:$0xff] %v14615_v44  ;;  %v14630_v10 = vsel %vm850_vm3, %v966_v22, %v967_v9  ;;  %v972_v3 = vrot.slane %v14615_v44, 7  ;;  %v718_v53 = vld [vmem:[#allocation2 + $0x360] sm:$0xff]  ;;  %v974_v22 = vrot.slane %v14632_v4, 7 }
  0x9e   : > { %20403 = vst [vmem:[#allocation69_spill] sm:$0xff] %v14630_v10 }
  0x9f   : > { %12636 = vmatmul.mubr.msk.f32.gmra.mxu1 %vm390_vm1, %v14604_v61  ;;  %v971_v61 = vrot.slane %v714_v33, 7  ;;  %v14664_v9 = vsel %vm850_vm3, %v972_v3, %v974_v22  ;;  %v14692_v22 = vld [vmem:[#allocation2 + $0x3b0] sm:$0xff] }
  0xa0   : > { %12541 = vmatmul.mubr.msk.f32.gmra.mxu0 %vm390_vm1, %v14592_v35  ;;  %12638 = vmatprep.mubr.msk.f32.mxu1 %vm390_vm1, %v14610_v28  ;;  %v14635_v35 = vld [vmem:[#allocation2 + $0x368] sm:$0xff]  ;;  %20410 = vst [vmem:[#allocation76_spill] sm:$0xff] %v14664_v9  ;;  %20416 = vst [vmem:[#allocation82_spill] sm:$0xff] %v14692_v22 }
  0xa1   : > { %12543 = vmatprep.mubr.msk.f32.mxu0 %vm390_vm1, %v14595_v51  ;;  %20405 = vst [vmem:[#allocation71_spill] sm:$0xff] %v14635_v35  ;;  %v14650_v33 = vsel %vm850_vm3, %v971_v61, %v972_v3  ;;  %v977_v28 = vrot.slane %v14635_v35, 7  ;;  %v722_v51 = vld [vmem:[#allocation2 + $0x380] sm:$0xff]  ;;  %v979_v61 = vrot.slane %v14652_v1, 7 }
  0xa2   : > { %20407 = vst [vmem:[#allocation73_spill] sm:$0xff] %v14650_v33 }
  0xa3   : > { %12639 = vmatmul.mubr.msk.f32.gmra.mxu1 %vm390_vm1, %v14624_v57  ;;  %v976_v57 = vrot.slane %v718_v53, 7  ;;  %v14684_v3 = vsel %vm850_vm3, %v977_v28, %v979_v61  ;;  %v14712_v61 = vld [vmem:[#allocation2 + $0x3d0] sm:$0xff] }
  0xa4   : > { %12544 = vmatmul.mubr.msk.f32.gmra.mxu0 %vm390_vm1, %v14612_v2  ;;  %12641 = vmatprep.mubr.msk.f32.mxu1 %vm390_vm1, %v14630_v10  ;;  %v14655_v2 = vld [vmem:[#allocation2 + $0x388] sm:$0xff]  ;;  %20414 = vst [vmem:[#allocation80_spill] sm:$0xff] %v14684_v3  ;;  %20420 = vst [vmem:[#allocation86_spill] sm:$0xff] %v14712_v61 }
  0xa5   : > { %12546 = vmatprep.mubr.msk.f32.mxu0 %vm390_vm1, %v14615_v44  ;;  %20409 = vst [vmem:[#allocation75_spill] sm:$0xff] %v14655_v2  ;;  %v14670_v53 = vsel %vm850_vm3, %v976_v57, %v977_v28  ;;  %v982_v10 = vrot.slane %v14655_v2, 7  ;;  %v726_v44 = vld [vmem:[#allocation2 + $0x3a0] sm:$0xff]  ;;  %v984_v57 = vrot.slane %v14672_v37, 7 }
  0xa6   : > { %20411 = vst [vmem:[#allocation77_spill] sm:$0xff] %v14670_v53 }
  0xa7   : > { %12642 = vmatmul.mubr.msk.f32.gmra.mxu1 %vm390_vm1, %v14644_v13  ;;  %v981_v13 = vrot.slane %v722_v51, 7  ;;  %v14704_v28 = vsel %vm850_vm3, %v982_v10, %v984_v57  ;;  %v14732_v57 = vld [vmem:[#allocation2 + $0x3f0] sm:$0xff] }
  0xa8   : > { %12547 = vmatmul.mubr.msk.f32.gmra.mxu0 %vm390_vm1, %v14632_v4  ;;  %12644 = vmatprep.mubr.msk.f32.mxu1 %vm390_vm1, %v14650_v33  ;;  %v14675_v4 = vld [vmem:[#allocation2 + $0x3a8] sm:$0xff]  ;;  %20418 = vst [vmem:[#allocation84_spill] sm:$0xff] %v14704_v28  ;;  %20424 = vst [vmem:[#allocation90_spill] sm:$0xff] %v14732_v57 }
  0xa9   : > { %12549 = vmatprep.mubr.msk.f32.mxu0 %vm390_vm1, %v14635_v35  ;;  %20413 = vst [vmem:[#allocation79_spill] sm:$0xff] %v14675_v4  ;;  %v14690_v51 = vsel %vm850_vm3, %v981_v13, %v982_v10  ;;  %v987_v33 = vrot.slane %v14675_v4, 7  ;;  %v730_v35 = vld [vmem:[#allocation2 + $0x3c0] sm:$0xff]  ;;  %v989_v13 = vrot.slane %v14692_v22, 7 }
  0xaa   : > { %20415 = vst [vmem:[#allocation81_spill] sm:$0xff] %v14690_v51 }
  0xab   : > { %12645 = vmatmul.mubr.msk.f32.gmra.mxu1 %vm390_vm1, %v14664_v9  ;;  %v986_v9 = vrot.slane %v726_v44, 7  ;;  %v14724_v10 = vsel %vm850_vm3, %v987_v33, %v989_v13  ;;  %v14752_v13 = vld [vmem:[#allocation2 + $0x410] sm:$0xff] }
  0xac   : > { %12550 = vmatmul.mubr.msk.f32.gmra.mxu0 %vm390_vm1, %v14652_v1  ;;  %12647 = vmatprep.mubr.msk.f32.mxu1 %vm390_vm1, %v14670_v53  ;;  %v14695_v1 = vld [vmem:[#allocation2 + $0x3c8] sm:$0xff]  ;;  %20422 = vst [vmem:[#allocation88_spill] sm:$0xff] %v14724_v10 }
  0xad   : > { %12552 = vmatprep.mubr.msk.f32.mxu0 %vm390_vm1, %v14655_v2  ;;  %20417 = vst [vmem:[#allocation83_spill] sm:$0xff] %v14695_v1  ;;  %v14710_v44 = vsel %vm850_vm3, %v986_v9, %v987_v33  ;;  %v992_v53 = vrot.slane %v14695_v1, 7  ;;  %v734_v2 = vld [vmem:[#allocation2 + $0x3e0] sm:$0xff]  ;;  %v994_v9 = vrot.slane %v14712_v61, 7 }
  0xae   : > { %20419 = vst [vmem:[#allocation85_spill] sm:$0xff] %v14710_v44 }
  0xaf   : > { %12648 = vmatmul.mubr.msk.f32.gmra.mxu1 %vm390_vm1, %v14684_v3  ;;  %v991_v3 = vrot.slane %v730_v35, 7  ;;  %v14744_v33 = vsel %vm850_vm3, %v992_v53, %v994_v9 }
  0xb0   : > { %12553 = vmatmul.mubr.msk.f32.gmra.mxu0 %vm390_vm1, %v14672_v37  ;;  %12650 = vmatprep.mubr.msk.f32.mxu1 %vm390_vm1, %v14690_v51  ;;  %v14715_v37 = vld [vmem:[#allocation2 + $0x3e8] sm:$0xff]  ;;  %20425 = vst [vmem:[#allocation91_spill] sm:$0xff] %v14744_v33 }
  0xb1   : > { %12555 = vmatprep.mubr.msk.f32.mxu0 %vm390_vm1, %v14675_v4  ;;  %20421 = vst [vmem:[#allocation87_spill] sm:$0xff] %v14715_v37  ;;  %v14730_v35 = vsel %vm850_vm3, %v991_v3, %v992_v53  ;;  %v997_v51 = vrot.slane %v14715_v37, 7  ;;  %v742_v4 = vld [vmem:[#allocation2 + $0x420] sm:$0xff]  ;;  %v544_v53 = vld [vmem:[%s14029_s29 + $0x1f8] sm:$0xff] }
  0xb2   : > { %20423 = vst [vmem:[#allocation89_spill] sm:$0xff] %v14730_v35  ;;  %609 = vst.msk [vmem:[#allocation2 + $0x450] sm:$0xff] %vm390_vm1, %v544_v53  ;;  %v2085_v53 = vrot.slane %v14075_v32, 1  ;;  %v20432_v32 = vrot.slane %v14031_v5, 1  ;;  %v14827_v5 = vld [vmem:[%s20339_s1 + $0x18] sm:$0x7] }
  0xb3   : > { %12651 = vmatmul.mubr.msk.f32.gmra.mxu1 %vm390_vm1, %v14704_v28  ;;  %v996_v28 = vrot.slane %v734_v2, 7  ;;  %v999_v2 = vrot.slane %v14732_v57, 7 }
  0xb4   : > { %12556 = vmatmul.mubr.msk.f32.gmra.mxu0 %vm390_vm1, %v14692_v22  ;;  %12653 = vmatprep.mubr.msk.f32.mxu1 %vm390_vm1, %v14710_v44  ;;  %v14735_v22 = vld [vmem:[#allocation2 + $0x408] sm:$0xff]  ;;  %v738_v44 = vld [vmem:[#allocation2 + $0x400] sm:$0xff] }
  0xb5   : > { %12558 = vmatprep.mubr.msk.f32.mxu0 %vm390_vm1, %v14695_v1  ;;  %v14750_v3 = vsel %vm850_vm3, %v996_v28, %v997_v51  ;;  %v1002_v1 = vrot.slane %v14735_v22, 7  ;;  %v14767_v28 = vsel %vm850_vm3, %v997_v51, %v999_v2 }
  0xb6   : > { %20426 = vst [vmem:[#allocation92_spill] sm:$0xff] %v14750_v3  ;;  %20427 = vst [vmem:[#allocation93_spill] sm:$0xff] %v14767_v28 }
  0xb7   : > { %12654 = vmatmul.mubr.msk.f32.gmra.mxu1 %vm390_vm1, %v14724_v10  ;;  %v1001_v10 = vrot.slane %v738_v44, 7  ;;  %v1004_v44 = vrot.slane %v14752_v13, 7 }
  0xb8   : > { %12559 = vmatmul.mubr.msk.f32.gmra.mxu0 %vm390_vm1, %v14712_v61  ;;  %12656 = vmatprep.mubr.msk.f32.mxu1 %vm390_vm1, %v14730_v35  ;;  %v14755_v61 = vld [vmem:[#allocation2 + $0x428] sm:$0xff]  ;;  %v543_v35 = vld [vmem:[%s14029_s29 + $0x1f0] sm:$0xff]  ;;  %s380_s29 = sand.u32 1, %s13701_s18  }
  0xb9   : > { %12561 = vmatprep.mubr.msk.f32.mxu0 %vm390_vm1, %v14715_v37  ;;  %608 = vst.msk [vmem:[#allocation2 + $0x448] sm:$0xff] %vm390_vm1, %v543_v35  ;;  %v14774_v9 = vsel %vm850_vm3, %v1001_v10, %v1002_v1  ;;  %v14776_v35 = vld [vmem:[#allocation2 + $0x430] sm:$0xff]  ;;  %v613_v37 = vld [vmem:[#allocation2 + $0x18] sm:$0xff]  ;;  %v14786_v51 = vsel %vm850_vm3, %v1002_v1, %v1004_v44  ;;  %v2090_v44 = vrot.slane %v14090_v40, 1  ;;  %s10782_s30 = sshll.u32 %s380_s29, 1 }
  0xba   : > { %20428 = vst [vmem:[#allocation94_spill] sm:$0xff] %v14774_v9  ;;  %20429 = vst [vmem:[#allocation95_spill] sm:$0xff] %v14786_v51  ;;  %v1009_v10 = vrot.slane %v14776_v35, 7  ;;  %v2083_v2 = vrot.slane %v613_v37, 1  ;;  %s382_s15 = scalar_lea.vmem [#allocation4], %s10782_s30  ;;  %s13655_s30 = scalar_lea.vmem %s13654_s21, 64 }
  0xbb   : > { %12657 = vmatmul.mubr.msk.f32.gmra.mxu1 %vm390_vm1, %v14744_v33  ;;  %v1006_v33 = vrot.slane %v742_v4, 7  ;;  %s10719_s16 = sshll.u32 %s382_s15, 4  ;;  %s10720_s16 = int_to_ptr.vmem [resolvable:$true] %s10719_s16 }
  0xbc   : > { %12562 = vmatmul.mubr.msk.f32.gmra.mxu0 %vm390_vm1, %v14732_v57  ;;  %12659 = vmatprep.mubr.msk.f32.mxu1 %vm390_vm1, %v14750_v3  ;;  %v1007_v57 = vrot.slane %v14755_v61, 7  ;;  %v617_v3 = vld [vmem:[#allocation2 + $0x38] sm:$0xff]  ;;  %p13656_p0 = scmp.lt.s32.totalorder %s10720_s16, %s13654_s21 }
  0xbd   : > { %12564 = vmatprep.mubr.msk.f32.mxu0 %vm390_vm1, %v14735_v22  ;;  %v2088_v37 = vrot.slane %v617_v3, 1  ;;  %v2096_v3 = vrot.slane %v14105_v47, 1 }
  0xbe   : > { %v14792_v4 = vsel %vm850_vm3, %v1006_v33, %v1007_v57  ;;  %v14803_v1 = vsel %vm850_vm3, %v1007_v57, %v1009_v10  ;;  %v11115_v57 = vld [vmem:[%s20339_s1 + $0x14] sm:$0x7]  ;;  %v625_v10 = vld [vmem:[#allocation2 + $0x78] sm:$0xff] }
  0xbf   : > { %12660 = vmatmul.mubr.msk.f32.gmra.mxu1 %vm390_vm1, %v14767_v28  ;;  %20430 = vst [vmem:[#allocation96_spill] sm:$0xff] %v14792_v4  ;;  %v2086_v28 = vrot.slane %v14083_v36, 1  ;;  %20431 = vst [vmem:[#allocation97_spill] sm:$0xff] %v14803_v1  ;;  %v2084_v36 = vsel %vm2079_vm4, %v20432_v32, %v2083_v2  ;;  %12962 = vmatprep.subr.msk.mxu1 %vm1142_vm0, %v11115_v57  ;;  %v2098_v47 = vrot.slane %v625_v10, 1  ;;  %v633_v32 = vld [vmem:[#allocation2 + $0xb8] sm:$0xff] }
  0xc0   : > { %12565 = vmatmul.mubr.msk.f32.gmra.mxu0 %vm390_vm1, %v14752_v13  ;;  %12662 = vmatprep.mubr.msk.f32.mxu1 %vm390_vm1, %v14774_v9  ;;  %v621_v9 = vld [vmem:[#allocation2 + $0x58] sm:$0xff] }
  0xc1   : > { %12567 = vmatprep.mubr.msk.f32.mxu0 %vm390_vm1, %v14755_v61  ;;  %v14811_v33 = vsel %vm2079_vm4, %v2085_v53, %v2086_v28  ;;  %v2093_v40 = vrot.slane %v621_v9, 1  ;;  %v629_v9 = vld [vmem:[#allocation2 + $0x98] sm:$0xff]  ;;  %v2106_v53 = vrot.slane %v14167_v12, 1  ;;  %v2110_v12 = vrot.slane %v14173_v17, 1 }
  0xc2   : > { %v2103_v2 = vrot.slane %v629_v9, 1  ;;  %v641_v10 = vld [vmem:[#allocation2 + $0xf8] sm:$0xff] }
  0xc3   : > { %12663 = vmatmul.mubr.msk.f32.gmra.mxu1 %vm390_vm1, %v14786_v51  ;;  %v2091_v51 = vrot.slane %v14092_v41, 1  ;;  %v645_v9 = vld [vmem:[#allocation2 + $0x118] sm:$0xff] }
  0xc4   : > { %12568 = vmatmul.mubr.msk.f32.gmra.mxu0 %vm390_vm1, %v14776_v35  ;;  %12665 = vmatprep.mubr.msk.f32.mxu1 %vm390_vm1, %v14792_v4 }
  0xc5   : > { %12670 = vmatprep.mubr.msk.f32.mxu0 %vm390_vm1, %v14059_v23  ;;  %v14834_v23 = vsel %vm2079_vm4, %v2086_v28, %v2088_v37  ;;  %v14837_v41 = vsel %vm2079_vm4, %v2090_v44, %v2091_v51  ;;  %v2101_v28 = vrot.slane %v14139_v60, 1  ;;  %v2105_v60 = vrot.slane %v14143_v0, 1 }
  0xc6   : > { %20433 = vst [vmem:[#allocation98_spill] sm:$0xff] %v14837_v41  ;;  %v2108_v37 = vrot.slane %v633_v32, 1  ;;  %v2111_v44 = vrot.slane %v14199_v26, 1  ;;  %v2115_v26 = vrot.slane %v14203_v29, 1  ;;  %v649_v32 = vld [vmem:[#allocation2 + $0x138] sm:$0xff] }
  0xc7   : > { %12666 = vmatmul.mubr.msk.f32.gmra.mxu1 %vm390_vm1, %v14803_v1  ;;  %v14888_v0 = vsel %vm2079_vm4, %v2105_v60, %v2106_v53  ;;  %v2123_v60 = vrot.slane %v645_v9, 1 }
  0xc8   : > { %12671 = vmatmul.mubr.msk.f32.vlgmr.msra.gmra.mxu0 %vm390_vm1, %v2084_v36  ;;  %12768 = vmatprep.mubr.msk.f32.mxu1 %vm390_vm1, %v14097_v43  ;;  %v2095_v43 = vrot.slane %v14102_v45, 1  ;;  %v14852_v45 = vsel %vm2079_vm4, %v2091_v51, %v2093_v40  ;;  %v14869_v51 = vsel %vm2079_vm4, %v2096_v3, %v2098_v47  ;;  %v14885_v36 = vsel %vm2079_vm4, %v2101_v28, %v2103_v2 }
  0xc9   : > { %12865 = vmatpush3.msk.msra.mxu0 %vm1142_vm0, %v14402_v31  ;;  %12673 = vmatprep.mubr.msk.f32.mxu0 %vm390_vm1, %v14811_v33  ;;  %20434 = vst [vmem:[#allocation99_spill] sm:$0xff] %v14852_v45  ;;  %20436 = vst [vmem:[#allocation101_spill] sm:$0xff] %v14869_v51  ;;  %v14901_v40 = vsel %vm2079_vm4, %v2106_v53, %v2108_v37  ;;  %v14904_v17 = vsel %vm2079_vm4, %v2110_v12, %v2111_v44  ;;  %v2126_v53 = vrot.slane %v14285_v20, 1 }
  0xca   : > { %13060 = vmatprep.subr.msk.mxu0 %vm1142_vm0, %v14827_v5  ;;  %v14856_v31 = vsel %vm2079_vm4, %v2095_v43, %v2096_v3  ;;  %20438 = vst [vmem:[#allocation103_spill] sm:$0xff] %v14885_v36  ;;  %20439 = vst [vmem:[#allocation104_spill] sm:$0xff] %v14888_v0  ;;  %v2116_v3 = vrot.slane %v14226_v42, 1  ;;  %v2120_v42 = vrot.slane %v14231_v48, 1  ;;  %v2128_v12 = vrot.slane %v649_v32, 1 }
  0xcb   : > { %12769 = vmatmul.mubr.msk.f32.vlgmr.msra.gmra.mxu1 %vm390_vm1, %v14112_v50  ;;  %20435 = vst [vmem:[#allocation100_spill] sm:$0xff] %v14856_v31  ;;  %v2100_v50 = vrot.slane %v14115_v52, 1  ;;  %20440 = vst [vmem:[#allocation105_spill] sm:$0xff] %v14901_v40  ;;  %v2130_v20 = vrot.slane %v14291_v30, 1 }
  0xcc   : > { %12674 = vmatmul.mubr.msk.f32.gmra.mxu0 %vm390_vm1, %v14834_v23  ;;  %12771 = vmatprep.mubr.msk.f32.mxu1 %vm390_vm1, %v14121_v54  ;;  %20441 = vst [vmem:[#allocation106_spill] sm:$0xff] %v14904_v17  ;;  %v14920_v29 = vsel %vm2079_vm4, %v2115_v26, %v2116_v3  ;;  %v20503_v54 = vld [vmem:[#allocation58_spill] sm:$0xff] }
  0xcd   : > { %12676 = vmatprep.mubr.msk.f32.mxu0 %vm390_vm1, %v14837_v41  ;;  %12963 = vmatpush3.msk.msra.mxu1 %vm1142_vm0, %v11115_v57  ;;  %v14872_v52 = vsel %vm2079_vm4, %v2100_v50, %v2101_v28  ;;  %v637_v57 = vld [vmem:[#allocation2 + $0xd8] sm:$0xff]  ;;  %v2118_v50 = vrot.slane %v641_v10, 1  ;;  %20443 = vst [vmem:[#allocation108_spill] sm:$0xff] %v14920_v29  ;;  %v2121_v28 = vrot.slane %v14254_v63, 1  ;;  %v2125_v63 = vrot.slane %v14261_v8, 1 }
  0xce   : > { %20437 = vst [vmem:[#allocation102_spill] sm:$0xff] %v14872_v52  ;;  %v2113_v43 = vrot.slane %v637_v57, 1  ;;  %v653_v57 = vld [vmem:[#allocation2 + $0x158] sm:$0xff] }
  0xcf   : > { %12772 = vmatmul.mubr.msk.f32.gmra.mxu1 %vm390_vm1, %v14129_v56  ;;  %v14933_v2 = vsel %vm2079_vm4, %v2116_v3, %v2118_v50  ;;  %v14936_v48 = vsel %vm2079_vm4, %v2120_v42, %v2121_v28  ;;  %v14949_v37 = vsel %vm2079_vm4, %v2121_v28, %v2123_v60  ;;  %v14952_v8 = vsel %vm2079_vm4, %v2125_v63, %v2126_v53  ;;  %v657_v10 = vld [vmem:[#allocation2 + $0x178] sm:$0xff]  ;;  %v20453_v63 = vld [vmem:[#allocation24_spill] sm:$0xff] }
  0xd0   : > { %12677 = vmatmul.mubr.msk.f32.gmra.mxu0 %vm390_vm1, %v14852_v45  ;;  %12774 = vmatprep.mubr.msk.f32.mxu1 %vm390_vm1, %v14137_v59  ;;  %v14917_v47 = vsel %vm2079_vm4, %v2111_v44, %v2113_v43  ;;  %20444 = vst [vmem:[#allocation109_spill] sm:$0xff] %v14933_v2  ;;  %20445 = vst [vmem:[#allocation110_spill] sm:$0xff] %v14936_v48  ;;  %v2131_v44 = vrot.slane %v14316_v49, 1  ;;  %v14965_v43 = vsel %vm2079_vm4, %v2126_v53, %v2128_v12  ;;  %v20452_v28 = vld [vmem:[#allocation26_spill] sm:$0xff]  ;;  %v20454_v53 = vld [vmem:[#allocation25_spill] sm:$0xff] }
  0xd1   : > { %12679 = vmatprep.mubr.msk.f32.mxu0 %vm390_vm1, %v14856_v31  ;;  %20442 = vst [vmem:[#allocation107_spill] sm:$0xff] %v14917_v47  ;;  %20446 = vst [vmem:[#allocation111_spill] sm:$0xff] %v14949_v37  ;;  %v2133_v26 = vrot.slane %v653_v57, 1  ;;  %v2135_v49 = vrot.slane %v14320_v58, 1  ;;  %v2136_v3 = vrot.slane %v14345_v16, 1  ;;  %v2138_v42 = vrot.slane %v657_v10, 1 }
  0xd2   : > { %20447 = vst [vmem:[#allocation112_spill] sm:$0xff] %v14952_v8  ;;  %20448 = vst [vmem:[#allocation113_spill] sm:$0xff] %v14965_v43  ;;  %v14968_v30 = vsel %vm2079_vm4, %v2130_v20, %v2131_v44  ;;  %v2140_v16 = vrot.slane %v14350_v27, 1  ;;  %v2141_v9 = vrot.slane %v20452_v28, 1  ;;  %v661_v60 = vld [vmem:[#allocation2 + $0x198] sm:$0xff]  ;;  %v20457_v20 = vld [vmem:[#allocation27_spill] sm:$0xff] }
  0xd3   : > { %12775 = vmatmul.mubr.msk.f32.gmra.mxu1 %vm390_vm1, %v14157_v6  ;;  %20449 = vst [vmem:[#allocation114_spill] sm:$0xff] %v14968_v30  ;;  %v14981_v50 = vsel %vm2079_vm4, %v2131_v44, %v2133_v26  ;;  %v14984_v58 = vsel %vm2079_vm4, %v2135_v49, %v2136_v3  ;;  %v14997_v32 = vsel %vm2079_vm4, %v2136_v3, %v2138_v42  ;;  %v2143_v12 = vrot.slane %v661_v60, 1  ;;  %v20458_v57 = vld [vmem:[#allocation30_spill] sm:$0xff]  ;;  %v20459_v10 = vld [vmem:[#allocation28_spill] sm:$0xff]  ;;  %v20460_v28 = vld [vmem:[#allocation29_spill] sm:$0xff] }
  0xd4   : > { %12680 = vmatmul.mubr.msk.f32.gmra.mxu0 %vm390_vm1, %v14869_v51  ;;  %12777 = vmatprep.mubr.msk.f32.mxu1 %vm390_vm1, %v14165_v11  ;;  %20450 = vst [vmem:[#allocation115_spill] sm:$0xff] %v14981_v50  ;;  %20451 = vst [vmem:[#allocation116_spill] sm:$0xff] %v14984_v58  ;;  %v15000_v27 = vsel %vm2079_vm4, %v2140_v16, %v2141_v9  ;;  %v2145_v44 = vrot.slane %v20457_v20, 1  ;;  %v2146_v26 = vrot.slane %v20458_v57, 1  ;;  %v665_v49 = vld [vmem:[#allocation2 + $0x1b8] sm:$0xff]  ;;  %v20463_v60 = vld [vmem:[#allocation31_spill] sm:$0xff] }
  0xd5   : > { %12682 = vmatprep.mubr.msk.f32.mxu0 %vm390_vm1, %v14872_v52  ;;  %20455 = vst [vmem:[#allocation26_spill] sm:$0xff] %v14997_v32  ;;  %20456 = vst [vmem:[#allocation117_spill] sm:$0xff] %v15000_v27  ;;  %v15013_v3 = vsel %vm2079_vm4, %v2141_v9, %v2143_v12  ;;  %v2148_v42 = vrot.slane %v665_v49, 1  ;;  %v2150_v20 = vrot.slane %v20463_v60, 1  ;;  %v20464_v57 = vld [vmem:[#allocation34_spill] sm:$0xff]  ;;  %v2155_v49 = vrot.slane %v14435_v24, 1 }
  0xd6   : > { %20461 = vst [vmem:[#allocation27_spill] sm:$0xff] %v15013_v3  ;;  %v15016_v16 = vsel %vm2079_vm4, %v2145_v44, %v2146_v26  ;;  %v20469_v60 = vld [vmem:[#allocation37_spill] sm:$0xff]  ;;  %v20496_v59 = vld [vmem:[#allocation52_spill] sm:$0xff] }
  0xd7   : > { %12778 = vmatmul.mubr.msk.f32.gmra.mxu1 %vm390_vm1, %v14189_v21  ;;  %20462 = vst [vmem:[#allocation30_spill] sm:$0xff] %v15016_v16  ;;  %v15029_v9 = vsel %vm2079_vm4, %v2146_v26, %v2148_v42  ;;  %v20471_v26 = vld [vmem:[#allocation36_spill] sm:$0xff]  ;;  %v697_v21 = vld [vmem:[#allocation2 + $0x2b8] sm:$0xff] }
  0xd8   : > { %12683 = vmatmul.mubr.msk.f32.gmra.mxu0 %vm390_vm1, %v14885_v36  ;;  %12780 = vmatprep.mubr.msk.f32.mxu1 %vm390_vm1, %v14197_v25  ;;  %20467 = vst [vmem:[#allocation31_spill] sm:$0xff] %v15029_v9  ;;  %v701_v11 = vld [vmem:[#allocation2 + $0x2d8] sm:$0xff] }
  0xd9   : > { %12685 = vmatprep.mubr.msk.f32.mxu0 %vm390_vm1, %v14888_v0 }
  0xdb   : > { %12781 = vmatmul.mubr.msk.f32.gmra.mxu1 %vm390_vm1, %v14215_v34  ;;  %v20485_v34 = vld [vmem:[#allocation46_spill] sm:$0xff] }
  0xdc   : > { %12686 = vmatmul.mubr.msk.f32.gmra.mxu0 %vm390_vm1, %v14901_v40  ;;  %12783 = vmatprep.mubr.msk.f32.mxu1 %vm390_vm1, %v14224_v39  ;;  %v2171_v25 = vrot.slane %v20485_v34, 1 }
  0xdd   : > { %12688 = vmatprep.mubr.msk.f32.mxu0 %vm390_vm1, %v14904_v17 }
  0xdf   : > { %12784 = vmatmul.mubr.msk.f32.gmra.mxu1 %vm390_vm1, %v14243_v55  ;;  %v20484_v55 = vld [vmem:[#allocation44_spill] sm:$0xff] }
  0xe0   : > { %12689 = vmatmul.mubr.msk.f32.gmra.mxu0 %vm390_vm1, %v14917_v47  ;;  %12786 = vmatprep.mubr.msk.f32.mxu1 %vm390_vm1, %v14252_v62  ;;  %v20479_v62 = vld [vmem:[#allocation41_spill] sm:$0xff]  ;;  %v2170_v39 = vrot.slane %v20484_v55, 1 }
  0xe1   : > { %12691 = vmatprep.mubr.msk.f32.mxu0 %vm390_vm1, %v14920_v29 }
  0xe3   : > { %12787 = vmatmul.mubr.msk.f32.gmra.mxu1 %vm390_vm1, %v14275_v15  ;;  %v689_v15 = vld [vmem:[#allocation2 + $0x278] sm:$0xff] }
  0xe4   : > { %12692 = vmatmul.mubr.msk.f32.gmra.mxu0 %vm390_vm1, %v14933_v2  ;;  %12789 = vmatprep.mubr.msk.f32.mxu1 %vm390_vm1, %v14283_v19 }
  0xe5   : > { %12694 = vmatprep.mubr.msk.f32.mxu0 %vm390_vm1, %v14936_v48 }
  0xe7   : > { %12790 = vmatmul.mubr.msk.f32.gmra.mxu1 %vm390_vm1, %v14306_v38  ;;  %v20474_v38 = vld [vmem:[#allocation39_spill] sm:$0xff] }
  0xe8   : > { %12695 = vmatmul.mubr.msk.f32.gmra.mxu0 %vm390_vm1, %v14949_v37  ;;  %12792 = vmatprep.mubr.msk.f32.mxu1 %vm390_vm1, %v14314_v46  ;;  %v20470_v46 = vld [vmem:[#allocation35_spill] sm:$0xff] }
  0xe9   : > { %12697 = vmatprep.mubr.msk.f32.mxu0 %vm390_vm1, %v14952_v8 }
  0xeb   : > { %12793 = vmatmul.mubr.msk.f32.gmra.mxu1 %vm390_vm1, %v14334_v7  ;;  %v15036_v7 = vld [vmem:[#allocation2 + $0x208] sm:$0xff] }
  0xec   : > { %12698 = vmatmul.mubr.msk.f32.gmra.mxu0 %vm390_vm1, %v14965_v43  ;;  %12795 = vmatprep.mubr.msk.f32.mxu1 %vm390_vm1, %v14343_v14  ;;  %v674_v14 = vld [vmem:[#allocation2 + $0x200] sm:$0xff] }
  0xed   : > { %12700 = vmatprep.mubr.msk.f32.mxu0 %vm390_vm1, %v14968_v30  ;;  %v2828_v42 = vrot.slane %v674_v14, 7 }
  0xef   : > { %12796 = vmatmul.mubr.msk.f32.gmra.mxu1 %vm390_vm1, %v20453_v63  ;;  %v20465_v63 = vld [vmem:[#allocation32_spill] sm:$0xff] }
  0xf0   : > { %12701 = vmatmul.mubr.msk.f32.gmra.mxu0 %vm390_vm1, %v14981_v50  ;;  %12798 = vmatprep.mubr.msk.f32.mxu1 %vm390_vm1, %v20454_v53  ;;  %v669_v53 = vld [vmem:[#allocation2 + $0x1d8] sm:$0xff] }
  0xf1   : > { %12703 = vmatprep.mubr.msk.f32.mxu0 %vm390_vm1, %v14984_v58  ;;  %v2153_v12 = vrot.slane %v669_v53, 1 }
  0xf3   : > { %12799 = vmatmul.mubr.msk.f32.gmra.mxu1 %vm390_vm1, %v20459_v10  ;;  %v2151_v10 = vrot.slane %v20464_v57, 1  ;;  %v2156_v57 = vrot.slane %v20469_v60, 1  ;;  %v15050_v60 = vld [vmem:[#allocation2 + $0x210] sm:$0xff] }
  0xf4   : > { %12704 = vmatmul.mubr.msk.f32.gmra.mxu0 %vm390_vm1, %v14997_v32  ;;  %12801 = vmatprep.mubr.msk.f32.mxu1 %vm390_vm1, %v20460_v28  ;;  %v20466_v28 = vld [vmem:[#allocation33_spill] sm:$0xff] }
  0xf5   : > { %12706 = vmatprep.mubr.msk.f32.mxu0 %vm390_vm1, %v15000_v27  ;;  %v15032_v44 = vsel %vm2079_vm4, %v2150_v20, %v2151_v10  ;;  %v15047_v24 = vsel %vm2079_vm4, %v2151_v10, %v2153_v12  ;;  %v2829_v20 = vrot.slane %v15036_v7, 7 }
  0xf6   : > { %20468 = vst [vmem:[#allocation34_spill] sm:$0xff] %v15032_v44  ;;  %20472 = vst [vmem:[#allocation37_spill] sm:$0xff] %v15047_v24 }
  0xf7   : > { %12802 = vmatmul.mubr.msk.f32.gmra.mxu1 %vm390_vm1, %v20465_v63  ;;  %v673_v63 = vld [vmem:[#allocation2 + $0x1f8] sm:$0xff]  ;;  %v15068_v10 = vsel %vm850_vm3, %v2828_v42, %v2829_v20  ;;  %v2168_v42 = vrot.slane %v689_v15, 1 }
  0xf8   : > { %12707 = vmatmul.mubr.msk.f32.gmra.mxu0 %vm390_vm1, %v15013_v3  ;;  %12804 = vmatprep.mubr.msk.f32.mxu1 %vm390_vm1, %v20466_v28  ;;  %v2158_v53 = vrot.slane %v673_v63, 1  ;;  %v685_v28 = vld [vmem:[#allocation2 + $0x258] sm:$0xff]  ;;  %v2831_v63 = vrot.slane %v15050_v60, 7  ;;  %20477 = vst [vmem:[#allocation120_spill] sm:$0xff] %v15068_v10 }
  0xf9   : > { %12709 = vmatprep.mubr.msk.f32.mxu0 %vm390_vm1, %v15016_v16  ;;  %v2163_v12 = vrot.slane %v685_v28, 1  ;;  %v20482_v28 = vld [vmem:[#allocation38_spill] sm:$0xff] }
  0xfa   : > { %v15065_v14 = vsel %vm2079_vm4, %v2156_v57, %v2158_v53  ;;  %v20481_v53 = vld [vmem:[#allocation42_spill] sm:$0xff] }
  0xfb   : > { %12805 = vmatmul.mubr.msk.f32.gmra.mxu1 %vm390_vm1, %v20470_v46  ;;  %v15053_v46 = vsel %vm2079_vm4, %v2155_v49, %v2156_v57  ;;  %20476 = vst [vmem:[#allocation119_spill] sm:$0xff] %v15065_v14  ;;  %v2165_v49 = vrot.slane %v14477_v18, 1  ;;  %v15079_v57 = vsel %vm850_vm3, %v2829_v20, %v2831_v63  ;;  %v20483_v18 = vrot.slane %v20482_v28, 1  ;;  %v20486_v63 = vld [vmem:[#allocation45_spill] sm:$0xff]  ;;  %v20488_v28 = vld [vmem:[#allocation47_spill] sm:$0xff] }
  0xfc   : > { %12710 = vmatmul.mubr.msk.f32.gmra.mxu0 %vm390_vm1, %v15029_v9  ;;  %12807 = vmatprep.mubr.msk.f32.mxu1 %vm390_vm1, %v20471_v26  ;;  %20473 = vst [vmem:[#allocation118_spill] sm:$0xff] %v15053_v46  ;;  %v20475_v26 = vld [vmem:[#allocation40_spill] sm:$0xff] }
  0xfd   : > { %12712 = vmatprep.mubr.msk.f32.mxu0 %vm390_vm1, %v15032_v44 }
  0xff   : > { %12808 = vmatmul.mubr.msk.f32.gmra.mxu1 %vm390_vm1, %v20474_v38  ;;  %v20478_v38 = vld [vmem:[#allocation43_spill] sm:$0xff] }
 0x100   : > { %12713 = vmatmul.mubr.msk.f32.gmra.mxu0 %vm390_vm1, %v15047_v24  ;;  %12810 = vmatprep.mubr.msk.f32.mxu1 %vm390_vm1, %v20475_v26  ;;  %v2166_v19 = vrot.slane %v20478_v38, 1  ;;  %20480 = vst [vmem:[#allocation43_spill] sm:$0xff] %v15079_v57  ;;  %v2164_v38 = vsel %vm2079_vm4, %v20483_v18, %v2163_v12  ;;  %v12476_v26 = vpop.f32.mrf.mxu0  ;;  %v2175_v18 = vrot.slane %v20488_v28, 1 }
 0x101   : > { %12715 = vmatprep.mubr.msk.f32.mxu0 %vm390_vm1, %v15053_v46 }
 0x102   : > { %v15101_v15 = vsel %vm2079_vm4, %v2166_v19, %v2168_v42  ;;  %v1212_v34 = vpop.f32.mrf.mxu0 }
 0x103   : > { %12811 = vmatmul.mubr.msk.f32.gmra.mxu1 %vm390_vm1, %v20479_v62  ;;  %v15087_v62 = vsel %vm2079_vm4, %v2165_v49, %v2166_v19  ;;  %v20491_v19 = vld [vmem:[#allocation49_spill] sm:$0xff] }
 0x104   : > { %12716 = vmatmul.mubr.msk.f32.gmra.mxu0 %vm390_vm1, %v15065_v14  ;;  %12813 = vmatprep.mubr.msk.f32.mxu1 %vm390_vm1, %v15068_v10  ;;  %v693_v10 = vld [vmem:[#allocation2 + $0x298] sm:$0xff] }
 0x105   : > { %12718 = vmatprep.mubr.msk.f32.mxu0 %vm390_vm1, %v20481_v53  ;;  %v2173_v55 = vrot.slane %v693_v10, 1  ;;  %v15104_v53 = vsel %vm2079_vm4, %v2170_v39, %v2171_v25  ;;  %v2178_v10 = vrot.slane %v697_v21, 1  ;;  %v20498_v21 = vld [vmem:[#allocation53_spill] sm:$0xff] }
 0x106   : > { %20487 = vst [vmem:[#allocation42_spill] sm:$0xff] %v15104_v53 }
 0x107   : > { %12814 = vmatmul.mubr.msk.f32.gmra.mxu1 %vm390_vm1, %v15079_v57  ;;  %v15119_v39 = vsel %vm2079_vm4, %v2171_v25, %v2173_v55 }
 0x108   : > { %12719 = vmatmul.mubr.msk.f32.gmra.mxu0 %vm390_vm1, %v2164_v38  ;;  %12816 = vmatprep.mubr.msk.f32.mxu1 %vm390_vm1, %v20486_v63  ;;  %v20489_v38 = vld [vmem:[#allocation50_spill] sm:$0xff]  ;;  %20492 = vst [vmem:[#allocation38_spill] sm:$0xff] %v15119_v39 }
 0x109   : > { %12721 = vmatprep.mubr.msk.f32.mxu0 %vm390_vm1, %v15087_v62  ;;  %v2176_v57 = vrot.slane %v20489_v38, 1  ;;  %v20495_v38 = vld [vmem:[#allocation54_spill] sm:$0xff] }
 0x10b   : > { %v12574_v20 = vpop.f32.mrf.mxu1  ;;  %v15137_v55 = vsel %vm2079_vm4, %v2176_v57, %v2178_v10 }
 0x10c   : > { %v15096_v12 = vadd.f32 %v12574_v20, %v12476_v26  ;;  %v20490_v26 = vld [vmem:[#allocation48_spill] sm:$0xff]  ;;  %v12479_v20 = vpop.f32.mrf.mxu0  ;;  %12722 = vmatmul.mubr.msk.f32.gmra.mxu0 %vm390_vm1, %v15101_v15  ;;  %20499 = vst [vmem:[#allocation45_spill] sm:$0xff] %v15137_v55 }
 0x10d   : > { %v1728_v49 = vpop.f32.mrf.mxu1  ;;  %12817 = vmatmul.mubr.msk.f32.gmra.mxu1 %vm390_vm1, %v20490_v26  ;;  %12724 = vmatprep.mubr.msk.f32.mxu0 %vm390_vm1, %v15104_v53  ;;  %v2181_v26 = vrot.slane %v20495_v38, 1  ;;  %v20504_v53 = vld [vmem:[#allocation56_spill] sm:$0xff] }
 0x10e   : > { %v15108_v63 = vadd.f32 %v1728_v49, %v1212_v34  ;;  %12819 = vmatprep.mubr.msk.f32.mxu1 %vm390_vm1, %v20491_v19  ;;  %v1222_v42 = vpop.f32.mrf.mxu0  ;;  %v15122_v34 = vsel %vm2079_vm4, %v2175_v18, %v2176_v57  ;;  %v20494_v49 = vld [vmem:[#allocation51_spill] sm:$0xff]  ;;  %v2183_v18 = vrot.slane %v701_v11, 1  ;;  %v20506_v11 = vld [vmem:[#allocation57_spill] sm:$0xff] }
 0x10f   : > { %20493 = vst [vmem:[#allocation44_spill] sm:$0xff] %v15122_v34  ;;  %v2180_v28 = vrot.slane %v20494_v49, 1  ;;  %v12577_v6 = vpop.f32.mrf.mxu1 }
 0x110   : > { %v15128_v19 = vadd.f32 %v12577_v6, %v12479_v20  ;;  %v12482_v56 = vpop.f32.mrf.mxu0  ;;  %12725 = vmatmul.mubr.msk.f32.gmra.mxu0 %vm390_vm1, %v15119_v39  ;;  %v20502_v20 = vld [vmem:[#allocation55_spill] sm:$0xff]  ;;  %v2186_v39 = vrot.slane %v20503_v54, 1  ;;  %v15157_v54 = vsel %vm2079_vm4, %v2181_v26, %v2183_v18 }
 0x111   : > { %12820 = vmatmul.mubr.msk.f32.gmra.mxu1 %vm390_vm1, %v20496_v59  ;;  %v1738_v25 = vpop.f32.mrf.mxu1  ;;  %12727 = vmatprep.mubr.msk.f32.mxu0 %vm390_vm1, %v15122_v34  ;;  %v15142_v6 = vsel %vm2079_vm4, %v2180_v28, %v2181_v26  ;;  %v2185_v59 = vrot.slane %v20502_v20, 1  ;;  %20507 = vst [vmem:[#allocation51_spill] sm:$0xff] %v15157_v54 }
 0x112   : > { %20497 = vst [vmem:[#allocation46_spill] sm:$0xff] %v15128_v19  ;;  %12822 = vmatprep.mubr.msk.f32.mxu1 %vm390_vm1, %v20498_v21  ;;  %v15139_v49 = vadd.f32 %v1738_v25, %v1222_v42  ;;  %v1232_v38 = vpop.f32.mrf.mxu0  ;;  %20501 = vst [vmem:[#allocation50_spill] sm:$0xff] %v15142_v6  ;;  %v705_v19 = vld [vmem:[#allocation2 + $0x2f8] sm:$0xff] }
 0x113   : > { %v12580_v21 = vpop.f32.mrf.mxu1  ;;  %v2188_v42 = vrot.slane %v705_v19, 1  ;;  %v20514_v19 = vld [vmem:[#allocation61_spill] sm:$0xff] }
 0x114   : > { %20500 = vst [vmem:[#allocation47_spill] sm:$0xff] %v15139_v49  ;;  %v15148_v34 = vadd.f32 %v12580_v21, %v12482_v56  ;;  %v12485_v57 = vpop.f32.mrf.mxu0  ;;  %12728 = vmatmul.mubr.msk.f32.gmra.mxu0 %vm390_vm1, %v15137_v55  ;;  %v15162_v56 = vsel %vm2079_vm4, %v2185_v59, %v2186_v39  ;;  %v20510_v21 = vld [vmem:[#allocation59_spill] sm:$0xff]  ;;  %v20512_v49 = vld [vmem:[#allocation60_spill] sm:$0xff] }
 0x115   : > { %12823 = vmatmul.mubr.msk.f32.gmra.mxu1 %vm390_vm1, %v20504_v53  ;;  %v1748_v10 = vpop.f32.mrf.mxu1  ;;  %12730 = vmatprep.mubr.msk.f32.mxu0 %vm390_vm1, %v15142_v6  ;;  %20509 = vst [vmem:[#allocation55_spill] sm:$0xff] %v15162_v56  ;;  %v2190_v20 = vrot.slane %v20510_v21, 1  ;;  %v20511_v53 = vld [vmem:[#allocation62_spill] sm:$0xff] }
 0x116   : > { %20505 = vst [vmem:[#allocation48_spill] sm:$0xff] %v15148_v34  ;;  %12825 = vmatprep.mubr.msk.f32.mxu1 %vm390_vm1, %v20506_v11  ;;  %v15159_v28 = vadd.f32 %v1748_v10, %v1232_v38  ;;  %v1242_v25 = vpop.f32.mrf.mxu0  ;;  %v2191_v55 = vrot.slane %v20511_v53, 1  ;;  %v709_v34 = vld [vmem:[#allocation2 + $0x318] sm:$0xff]  ;;  %v15177_v53 = vsel %vm2079_vm4, %v2186_v39, %v2188_v42 }
 0x117   : > { %v12583_v11 = vpop.f32.mrf.mxu1  ;;  %20515 = vst [vmem:[#allocation59_spill] sm:$0xff] %v15177_v53  ;;  %v2193_v18 = vrot.slane %v709_v34, 1  ;;  %v20522_v34 = vld [vmem:[#allocation65_spill] sm:$0xff] }
 0x118   : > { %20508 = vst [vmem:[#allocation54_spill] sm:$0xff] %v15159_v28  ;;  %v15168_v6 = vadd.f32 %v12583_v11, %v12485_v57  ;;  %v12488_v26 = vpop.f32.mrf.mxu0  ;;  %12731 = vmatmul.mubr.msk.f32.gmra.mxu0 %vm390_vm1, %v15157_v54  ;;  %v15182_v57 = vsel %vm2079_vm4, %v2190_v20, %v2191_v55  ;;  %v20518_v11 = vld [vmem:[#allocation63_spill] sm:$0xff]  ;;  %v20520_v28 = vld [vmem:[#allocation64_spill] sm:$0xff] }
 0x119   : > { %12826 = vmatmul.mubr.msk.f32.gmra.mxu1 %vm390_vm1, %v20512_v49  ;;  %v1758_v59 = vpop.f32.mrf.mxu1  ;;  %12733 = vmatprep.mubr.msk.f32.mxu0 %vm390_vm1, %v15162_v56  ;;  %20517 = vst [vmem:[#allocation121_spill] sm:$0xff] %v15182_v57  ;;  %v2195_v21 = vrot.slane %v20518_v11, 1  ;;  %v20519_v49 = vld [vmem:[#allocation66_spill] sm:$0xff] }
 0x11a   : > { %20513 = vst [vmem:[#allocation58_spill] sm:$0xff] %v15168_v6  ;;  %12828 = vmatprep.mubr.msk.f32.mxu1 %vm390_vm1, %v20514_v19  ;;  %v15179_v38 = vadd.f32 %v1758_v59, %v1242_v25  ;;  %v1252_v10 = vpop.f32.mrf.mxu0  ;;  %v2196_v54 = vrot.slane %v20519_v49, 1  ;;  %v713_v6 = vld [vmem:[#allocation2 + $0x338] sm:$0xff]  ;;  %v15197_v49 = vsel %vm2079_vm4, %v2191_v55, %v2193_v18 }
 0x11b   : > { %v12586_v19 = vpop.f32.mrf.mxu1  ;;  %20523 = vst [vmem:[#allocation66_spill] sm:$0xff] %v15197_v49  ;;  %v2198_v25 = vrot.slane %v713_v6, 1  ;;  %v20530_v6 = vld [vmem:[#allocation69_spill] sm:$0xff] }
 0x11c   : > { %20516 = vst [vmem:[#allocation62_spill] sm:$0xff] %v15179_v38  ;;  %v15188_v56 = vadd.f32 %v12586_v19, %v12488_v26  ;;  %v12491_v39 = vpop.f32.mrf.mxu0  ;;  %12734 = vmatmul.mubr.msk.f32.gmra.mxu0 %vm390_vm1, %v15177_v53  ;;  %v15202_v26 = vsel %vm2079_vm4, %v2195_v21, %v2196_v54  ;;  %v20526_v19 = vld [vmem:[#allocation67_spill] sm:$0xff]  ;;  %v20528_v38 = vld [vmem:[#allocation68_spill] sm:$0xff] }
 0x11d   : > { %12829 = vmatmul.mubr.msk.f32.gmra.mxu1 %vm390_vm1, %v20520_v28  ;;  %v1768_v42 = vpop.f32.mrf.mxu1  ;;  %12736 = vmatprep.mubr.msk.f32.mxu0 %vm390_vm1, %v15182_v57  ;;  %20525 = vst [vmem:[#allocation123_spill] sm:$0xff] %v15202_v26  ;;  %v2200_v11 = vrot.slane %v20526_v19, 1  ;;  %v20527_v28 = vld [vmem:[#allocation70_spill] sm:$0xff] }
 0x11e   : > { %20521 = vst [vmem:[#allocation63_spill] sm:$0xff] %v15188_v56  ;;  %12831 = vmatprep.mubr.msk.f32.mxu1 %vm390_vm1, %v20522_v34  ;;  %v15199_v20 = vadd.f32 %v1768_v42, %v1252_v10  ;;  %v1262_v59 = vpop.f32.mrf.mxu0  ;;  %v2201_v53 = vrot.slane %v20527_v28, 1  ;;  %v717_v56 = vld [vmem:[#allocation2 + $0x358] sm:$0xff]  ;;  %v15217_v28 = vsel %vm2079_vm4, %v2196_v54, %v2198_v25 }
 0x11f   : > { %v12589_v34 = vpop.f32.mrf.mxu1  ;;  %20531 = vst [vmem:[#allocation70_spill] sm:$0xff] %v15217_v28  ;;  %v2203_v10 = vrot.slane %v717_v56, 1  ;;  %v20538_v56 = vld [vmem:[#allocation73_spill] sm:$0xff] }
 0x120   : > { %20524 = vst [vmem:[#allocation122_spill] sm:$0xff] %v15199_v20  ;;  %v15208_v57 = vadd.f32 %v12589_v34, %v12491_v39  ;;  %v12494_v55 = vpop.f32.mrf.mxu0  ;;  %12737 = vmatmul.mubr.msk.f32.gmra.mxu0 %vm390_vm1, %v15197_v49  ;;  %v15222_v39 = vsel %vm2079_vm4, %v2200_v11, %v2201_v53  ;;  %v20534_v34 = vld [vmem:[#allocation71_spill] sm:$0xff]  ;;  %v20536_v20 = vld [vmem:[#allocation72_spill] sm:$0xff] }
 0x121   : > { %12832 = vmatmul.mubr.msk.f32.gmra.mxu1 %vm390_vm1, %v20528_v38  ;;  %v1778_v18 = vpop.f32.mrf.mxu1  ;;  %12739 = vmatprep.mubr.msk.f32.mxu0 %vm390_vm1, %v15202_v26  ;;  %20533 = vst [vmem:[#allocation125_spill] sm:$0xff] %v15222_v39  ;;  %v2205_v19 = vrot.slane %v20534_v34, 1  ;;  %v20535_v38 = vld [vmem:[#allocation74_spill] sm:$0xff] }
 0x122   : > { %20529 = vst [vmem:[#allocation67_spill] sm:$0xff] %v15208_v57  ;;  %12834 = vmatprep.mubr.msk.f32.mxu1 %vm390_vm1, %v20530_v6  ;;  %v15219_v21 = vadd.f32 %v1778_v18, %v1262_v59  ;;  %v1272_v42 = vpop.f32.mrf.mxu0  ;;  %v2206_v49 = vrot.slane %v20535_v38, 1  ;;  %v721_v57 = vld [vmem:[#allocation2 + $0x378] sm:$0xff]  ;;  %v15237_v38 = vsel %vm2079_vm4, %v2201_v53, %v2203_v10 }
 0x123   : > { %v12592_v6 = vpop.f32.mrf.mxu1  ;;  %20539 = vst [vmem:[#allocation74_spill] sm:$0xff] %v15237_v38  ;;  %v2208_v59 = vrot.slane %v721_v57, 1  ;;  %v20546_v57 = vld [vmem:[#allocation77_spill] sm:$0xff] }
 0x124   : > { %20532 = vst [vmem:[#allocation124_spill] sm:$0xff] %v15219_v21  ;;  %v15228_v26 = vadd.f32 %v12592_v6, %v12494_v55  ;;  %v12497_v54 = vpop.f32.mrf.mxu0  ;;  %12740 = vmatmul.mubr.msk.f32.gmra.mxu0 %vm390_vm1, %v15217_v28  ;;  %v15242_v55 = vsel %vm2079_vm4, %v2205_v19, %v2206_v49  ;;  %v20542_v6 = vld [vmem:[#allocation75_spill] sm:$0xff]  ;;  %v20544_v21 = vld [vmem:[#allocation76_spill] sm:$0xff] }
 0x125   : > { %12835 = vmatmul.mubr.msk.f32.gmra.mxu1 %vm390_vm1, %v20536_v20  ;;  %v1788_v25 = vpop.f32.mrf.mxu1  ;;  %12742 = vmatprep.mubr.msk.f32.mxu0 %vm390_vm1, %v15222_v39  ;;  %20541 = vst [vmem:[#allocation127_spill] sm:$0xff] %v15242_v55  ;;  %v2210_v34 = vrot.slane %v20542_v6, 1  ;;  %v20543_v20 = vld [vmem:[#allocation78_spill] sm:$0xff] }
 0x126   : > { %20537 = vst [vmem:[#allocation71_spill] sm:$0xff] %v15228_v26  ;;  %12837 = vmatprep.mubr.msk.f32.mxu1 %vm390_vm1, %v20538_v56  ;;  %v15239_v11 = vadd.f32 %v1788_v25, %v1272_v42  ;;  %v1282_v18 = vpop.f32.mrf.mxu0  ;;  %v2211_v28 = vrot.slane %v20543_v20, 1  ;;  %v725_v26 = vld [vmem:[#allocation2 + $0x398] sm:$0xff]  ;;  %v15257_v20 = vsel %vm2079_vm4, %v2206_v49, %v2208_v59 }
 0x127   : > { %v12595_v56 = vpop.f32.mrf.mxu1  ;;  %20547 = vst [vmem:[#allocation78_spill] sm:$0xff] %v15257_v20  ;;  %v2213_v42 = vrot.slane %v725_v26, 1  ;;  %v20554_v26 = vld [vmem:[#allocation81_spill] sm:$0xff] }
 0x128   : > { %20540 = vst [vmem:[#allocation126_spill] sm:$0xff] %v15239_v11  ;;  %v15248_v39 = vadd.f32 %v12595_v56, %v12497_v54  ;;  %v12500_v53 = vpop.f32.mrf.mxu0  ;;  %12743 = vmatmul.mubr.msk.f32.gmra.mxu0 %vm390_vm1, %v15237_v38  ;;  %v15262_v54 = vsel %vm2079_vm4, %v2210_v34, %v2211_v28  ;;  %v20550_v56 = vld [vmem:[#allocation79_spill] sm:$0xff]  ;;  %v20552_v11 = vld [vmem:[#allocation80_spill] sm:$0xff] }
 0x129   : > { %12838 = vmatmul.mubr.msk.f32.gmra.mxu1 %vm390_vm1, %v20544_v21  ;;  %v1798_v10 = vpop.f32.mrf.mxu1  ;;  %12745 = vmatprep.mubr.msk.f32.mxu0 %vm390_vm1, %v15242_v55  ;;  %20549 = vst [vmem:[#allocation129_spill] sm:$0xff] %v15262_v54  ;;  %v2215_v6 = vrot.slane %v20550_v56, 1  ;;  %v20551_v21 = vld [vmem:[#allocation82_spill] sm:$0xff] }
 0x12a   : > { %20545 = vst [vmem:[#allocation75_spill] sm:$0xff] %v15248_v39  ;;  %12840 = vmatprep.mubr.msk.f32.mxu1 %vm390_vm1, %v20546_v57  ;;  %v15259_v19 = vadd.f32 %v1798_v10, %v1282_v18  ;;  %v1292_v25 = vpop.f32.mrf.mxu0  ;;  %v2216_v38 = vrot.slane %v20551_v21, 1  ;;  %v729_v39 = vld [vmem:[#allocation2 + $0x3b8] sm:$0xff]  ;;  %v15277_v21 = vsel %vm2079_vm4, %v2211_v28, %v2213_v42 }
 0x12b   : > { %v12598_v57 = vpop.f32.mrf.mxu1  ;;  %20555 = vst [vmem:[#allocation82_spill] sm:$0xff] %v15277_v21  ;;  %v2218_v18 = vrot.slane %v729_v39, 1  ;;  %v20562_v39 = vld [vmem:[#allocation85_spill] sm:$0xff] }
 0x12c   : > { %20548 = vst [vmem:[#allocation128_spill] sm:$0xff] %v15259_v19  ;;  %v15268_v55 = vadd.f32 %v12598_v57, %v12500_v53  ;;  %v12503_v49 = vpop.f32.mrf.mxu0  ;;  %12746 = vmatmul.mubr.msk.f32.gmra.mxu0 %vm390_vm1, %v15257_v20  ;;  %v15282_v53 = vsel %vm2079_vm4, %v2215_v6, %v2216_v38  ;;  %v20558_v57 = vld [vmem:[#allocation83_spill] sm:$0xff]  ;;  %v20560_v19 = vld [vmem:[#allocation84_spill] sm:$0xff] }
 0x12d   : > { %12841 = vmatmul.mubr.msk.f32.gmra.mxu1 %vm390_vm1, %v20552_v11  ;;  %v1808_v59 = vpop.f32.mrf.mxu1  ;;  %12748 = vmatprep.mubr.msk.f32.mxu0 %vm390_vm1, %v15262_v54  ;;  %20557 = vst [vmem:[#allocation131_spill] sm:$0xff] %v15282_v53  ;;  %v2220_v56 = vrot.slane %v20558_v57, 1  ;;  %v20559_v11 = vld [vmem:[#allocation86_spill] sm:$0xff] }
 0x12e   : > { %20553 = vst [vmem:[#allocation79_spill] sm:$0xff] %v15268_v55  ;;  %12843 = vmatprep.mubr.msk.f32.mxu1 %vm390_vm1, %v20554_v26  ;;  %v15279_v34 = vadd.f32 %v1808_v59, %v1292_v25  ;;  %v1302_v10 = vpop.f32.mrf.mxu0  ;;  %v2221_v20 = vrot.slane %v20559_v11, 1  ;;  %v733_v55 = vld [vmem:[#allocation2 + $0x3d8] sm:$0xff]  ;;  %v15297_v11 = vsel %vm2079_vm4, %v2216_v38, %v2218_v18 }
 0x12f   : > { %v12601_v26 = vpop.f32.mrf.mxu1  ;;  %20563 = vst [vmem:[#allocation86_spill] sm:$0xff] %v15297_v11  ;;  %v2223_v25 = vrot.slane %v733_v55, 1  ;;  %v20568_v55 = vld [vmem:[#allocation89_spill] sm:$0xff] }
 0x130   : > { %20556 = vst [vmem:[#allocation130_spill] sm:$0xff] %v15279_v34  ;;  %v15288_v54 = vadd.f32 %v12601_v26, %v12503_v49  ;;  %v12506_v28 = vpop.f32.mrf.mxu0  ;;  %12749 = vmatmul.mubr.msk.f32.gmra.mxu0 %vm390_vm1, %v15277_v21  ;;  %v15302_v49 = vsel %vm2079_vm4, %v2220_v56, %v2221_v20  ;;  %v20565_v26 = vld [vmem:[#allocation87_spill] sm:$0xff]  ;;  %v20567_v34 = vld [vmem:[#allocation88_spill] sm:$0xff] }
 0x131   : > { %12844 = vmatmul.mubr.msk.f32.gmra.mxu1 %vm390_vm1, %v20560_v19  ;;  %v1818_v42 = vpop.f32.mrf.mxu1  ;;  %12751 = vmatprep.mubr.msk.f32.mxu0 %vm390_vm1, %v15282_v53  ;;  %20564 = vst [vmem:[#allocation132_spill] sm:$0xff] %v15302_v49  ;;  %v2225_v57 = vrot.slane %v20565_v26, 1  ;;  %v20566_v19 = vld [vmem:[#allocation90_spill] sm:$0xff]  ;;  %v2231_v26 = vrot.slane %v14752_v13, 1 }
 0x132   : > { %20561 = vst [vmem:[#allocation83_spill] sm:$0xff] %v15288_v54  ;;  %12846 = vmatprep.mubr.msk.f32.mxu1 %vm390_vm1, %v20562_v39  ;;  %v15299_v6 = vadd.f32 %v1818_v42, %v1302_v10  ;;  %v1312_v59 = vpop.f32.mrf.mxu0  ;;  %v2226_v21 = vrot.slane %v20566_v19, 1  ;;  %v737_v54 = vld [vmem:[#allocation2 + $0x3f8] sm:$0xff]  ;;  %v15317_v19 = vsel %vm2079_vm4, %v2221_v20, %v2223_v25 }
 0x133   : > { %v12604_v39 = vpop.f32.mrf.mxu1  ;;  %20569 = vst [vmem:[#allocation87_spill] sm:$0xff] %v15317_v19  ;;  %v2228_v10 = vrot.slane %v737_v54, 1  ;;  %v20573_v54 = vld [vmem:[#allocation92_spill] sm:$0xff] }
 0x134   : > { %v15308_v53 = vadd.f32 %v12604_v39, %v12506_v28  ;;  %v12509_v38 = vpop.f32.mrf.mxu0  ;;  %12752 = vmatmul.mubr.msk.f32.gmra.mxu0 %vm390_vm1, %v15297_v11  ;;  %v15322_v28 = vsel %vm2079_vm4, %v2225_v57, %v2226_v21  ;;  %v2230_v39 = vrot.slane %v14735_v22, 1  ;;  %v20571_v11 = vld [vmem:[#allocation91_spill] sm:$0xff] }
 0x135   : > { %12847 = vmatmul.mubr.msk.f32.gmra.mxu1 %vm390_vm1, %v20567_v34  ;;  %v1828_v18 = vpop.f32.mrf.mxu1  ;;  %12754 = vmatprep.mubr.msk.f32.mxu0 %vm390_vm1, %v15302_v49  ;;  %20570 = vst [vmem:[#allocation90_spill] sm:$0xff] %v15322_v28  ;;  %v741_v34 = vld [vmem:[#allocation2 + $0x418] sm:$0xff]  ;;  %v15337_v22 = vsel %vm2079_vm4, %v2226_v21, %v2228_v10 }
 0x136   : > { %12849 = vmatprep.mubr.msk.f32.mxu1 %vm390_vm1, %v20568_v55  ;;  %v15319_v56 = vadd.f32 %v1828_v18, %v1312_v59  ;;  %v1322_v42 = vpop.f32.mrf.mxu0  ;;  %20574 = vst [vmem:[#allocation134_spill] sm:$0xff] %v15337_v22  ;;  %v2233_v13 = vrot.slane %v741_v34, 1  ;;  %v2236_v18 = vrot.slane %v14776_v35, 1  ;;  %v20578_v10 = vld [vmem:[#allocation94_spill] sm:$0xff] }
 0x137   : > { %v12607_v55 = vpop.f32.mrf.mxu1 }
 0x138   : > { %v15328_v49 = vadd.f32 %v12607_v55, %v12509_v38  ;;  %v12512_v20 = vpop.f32.mrf.mxu0  ;;  %12755 = vmatmul.mubr.msk.f32.gmra.mxu0 %vm390_vm1, %v15317_v19  ;;  %v15342_v38 = vsel %vm2079_vm4, %v2230_v39, %v2231_v26  ;;  %v2235_v55 = vrot.slane %v14755_v61, 1  ;;  %v15346_v19 = vld [vmem:[#allocation2 + $0x448] sm:$0xff]  ;;  %v15359_v35 = vsel %vm2079_vm4, %v2231_v26, %v2233_v13 }
 0x139   : > { %12850 = vmatmul.mubr.msk.f32.gmra.mxu1 %vm390_vm1, %v20571_v11  ;;  %v1838_v25 = vpop.f32.mrf.mxu1  ;;  %12757 = vmatprep.mubr.msk.f32.mxu0 %vm390_vm1, %v15322_v28  ;;  %20575 = vst [vmem:[#allocation135_spill] sm:$0xff] %v15342_v38  ;;  %v745_v11 = vld [vmem:[#allocation2 + $0x438] sm:$0xff]  ;;  %20579 = vst [vmem:[#allocation137_spill] sm:$0xff] %v15359_v35 }
 0x13a   : > { %20572 = vst [vmem:[#allocation133_spill] sm:$0xff] %v15328_v49  ;;  %12852 = vmatprep.mubr.msk.f32.mxu1 %vm390_vm1, %v20573_v54  ;;  %v15339_v59 = vadd.f32 %v1838_v25, %v1322_v42  ;;  %v1332_v57 = vpop.f32.mrf.mxu0  ;;  %v746_v54 = vld [vmem:[#allocation2 + $0x440] sm:$0xff]  ;;  %v20576_v28 = vld [vmem:[#allocation93_spill] sm:$0xff]  ;;  %v2238_v42 = vrot.slane %v745_v11, 1  ;;  %v2834_v25 = vrot.slane %v15346_v19, 7 }
 0x13b   : > { %v12610_v49 = vpop.f32.mrf.mxu1  ;;  %v2833_v39 = vrot.slane %v746_v54, 7 }
 0x13c   : > { %v15350_v21 = vadd.f32 %v12610_v49, %v12512_v20  ;;  %v12515_v34 = vpop.f32.mrf.mxu0  ;;  %12758 = vmatmul.mubr.msk.f32.gmra.mxu0 %vm390_vm1, %v15337_v22  ;;  %v15362_v49 = vld [vmem:[#allocation2 + $0x450] sm:$0xff]  ;;  %v15367_v22 = vsel %vm2079_vm4, %v2235_v55, %v2236_v18  ;;  %v15381_v13 = vsel %vm2079_vm4, %v2236_v18, %v2238_v42 }
 0x13d   : > { %12853 = vmatmul.mubr.msk.f32.gmra.mxu1 %vm390_vm1, %v20576_v28  ;;  %v1848_v61 = vpop.f32.mrf.mxu1  ;;  %12760 = vmatprep.mubr.msk.f32.mxu0 %vm390_vm1, %v15342_v38  ;;  %20580 = vst [vmem:[#allocation138_spill] sm:$0xff] %v15367_v22  ;;  %v2836_v11 = vrot.slane %v15362_v49, 7  ;;  %20582 = vst [vmem:[#allocation139_spill] sm:$0xff] %v15381_v13 }
 0x13e   : > { %20577 = vst [vmem:[#allocation136_spill] sm:$0xff] %v15350_v21  ;;  %12855 = vmatprep.mubr.msk.f32.mxu1 %vm390_vm1, %v20578_v10  ;;  %v15364_v20 = vadd.f32 %v1848_v61, %v1332_v57  ;;  %v1342_v28 = vpop.f32.mrf.mxu0  ;;  %v20581_v21 = vld [vmem:[#allocation95_spill] sm:$0xff]  ;;  %v15384_v57 = vsel %vm850_vm3, %v2833_v39, %v2834_v25 }
 0x13f   : > { %v12613_v10 = vpop.f32.mrf.mxu1  ;;  %20583 = vst [vmem:[#allocation140_spill] sm:$0xff] %v15384_v57  ;;  %v15397_v18 = vsel %vm850_vm3, %v2834_v25, %v2836_v11  ;;  %v13572_v11 = vld [vmem:[#allocation2 + $0x30] sm:$0xff] }
 0x140   : > { %v15371_v38 = vadd.f32 %v12613_v10, %v12515_v34  ;;  %v12518_v26 = vpop.f32.mrf.mxu0  ;;  %12761 = vmatmul.mubr.msk.f32.gmra.mxu0 %vm390_vm1, %v15359_v35  ;;  %20584 = vst [vmem:[#allocation141_spill] sm:$0xff] %v15397_v18 }
 0x141   : > { %12856 = vmatmul.mubr.msk.f32.gmra.mxu1 %vm390_vm1, %v20581_v21  ;;  %v1858_v54 = vpop.f32.mrf.mxu1  ;;  %12763 = vmatprep.mubr.msk.f32.mxu0 %vm390_vm1, %v15367_v22 }
 0x142   : > { %12858 = vmatprep.mubr.msk.f32.mxu1 %vm390_vm1, %v14792_v4  ;;  %v15386_v55 = vadd.f32 %v1858_v54, %v1342_v28  ;;  %v1352_v34 = vpop.f32.mrf.mxu0  ;;  %v13571_v28 = vld [vmem:[#allocation2 + $0x28] sm:$0xff] }
 0x143   : > { %v12616_v10 = vpop.f32.mrf.mxu1 }
 0x144   : > { %v15390_v61 = vadd.f32 %v12616_v10, %v12518_v26  ;;  %v12521_v4 = vpop.f32.mrf.mxu0  ;;  %12764 = vmatmul.mubr.msk.f32.gmra.mxu0 %vm390_vm1, %v15381_v13  ;;  %v11247_v26 = vld [vmem:[%s20339_s1 + $0x1c] sm:$0x7] }
 0x145   : > { %12859 = vmatmul.mubr.msk.f32.gmra.mxu1 %vm390_vm1, %v14803_v1  ;;  %v1868_v42 = vpop.f32.mrf.mxu1  ;;  %12866 = vmatprep.mubr.msk.f32.mxu0 %vm390_vm1, %v13571_v28  ;;  %v15420_v28 = vld [vmem:[#allocation2 + $0x48] sm:$0xff] }
 0x146   : > { %12861 = vmatprep.mubr.msk.f32.mxu1 %vm390_vm1, %v15384_v57  ;;  %v15400_v39 = vadd.f32 %v1868_v42, %v1352_v34  ;;  %v1362_v54 = vpop.f32.mrf.mxu0  ;;  %13158 = vmatprep.subr.msk.mxu1 %vm1142_vm0, %v11247_v26  ;;  %v15416_v34 = vld [vmem:[%s20339_s1 + $0x20] sm:$0x7]  ;;  %s13649_s1 = scalar_lea.vmem %s10720_s16, 32 }
 0x147   : > { %v12619_v10 = vpop.f32.mrf.mxu1  ;;  %p13650_p11 = scmp.ne.s32.totalorder %s10720_s16, %s13649_s1  ;;  %p13657_p1 = scmp.lt.s32.totalorder %s13655_s30, %s13649_s1 }
 0x148   : > { %v15408_v57 = vadd.f32 %v12619_v10, %v12521_v4  ;;  %v12524_v25 = vpop.f32.mrf.mxu0  ;;  %12867 = vmatmul.mubr.msk.f32.vlgmr.msra.gmra.mxu0 %vm390_vm1, %v13572_v11 }
 0x149   : > { %12862 = vmatmul.mubr.msk.f32.gmra.mxu1 %vm390_vm1, %v15397_v18  ;;  %13061 = vmatpush3.msk.msra.mxu0 %vm1142_vm0, %v14827_v5  ;;  %v1878_v42 = vpop.f32.mrf.mxu1  ;;  %v15432_v5 = vld [vmem:[#allocation2 + $0x50] sm:$0xff]  ;;  %p13651_p12 = pnand %p13650_p11, %p13814_p5  ;;  %p13658_p2 = por %p13657_p1, %p13656_p0 }
 0x14a   : > { %12964 = vmatprep.mubr.msk.f32.mxu1 %vm390_vm1, %v14811_v33  ;;  %12869 = vmatprep.mubr.msk.f32.mxu0 %vm390_vm1, %v15420_v28  ;;  %v15424_v4 = vadd.f32 %v1878_v42, %v1362_v54  ;;  %v1372_v10 = vpop.f32.mrf.mxu0  ;;  %20585 = vst [vmem:[#allocation142_spill] sm:$0xff] %v15432_v5  ;;  %v15438_v42 = vld [vmem:[#allocation2 + $0x68] sm:$0xff] }
 0x14b   : > { %13256 = vmatprep.subr.msk.mxu0 %vm1142_vm0, %v15416_v34  ;;  %v12622_v33 = vpop.f32.mrf.mxu1  ;;  %p13652_p13 = pneg %p13651_p12 }
 0x14c   : > { %v15430_v11 = vadd.f32 %v12622_v33, %v12524_v25  ;;  %v12527_v18 = vpop.f32.mrf.mxu0  ;;  %12870 = vmatmul.mubr.msk.f32.gmra.mxu0 %vm390_vm1, %v15432_v5  ;;  %v15449_v5 = vld [vmem:[#allocation2 + $0x70] sm:$0xff] }
 0x14d   : > { %12965 = vmatmul.mubr.msk.f32.vlgmr.msra.gmra.mxu1 %vm390_vm1, %v14834_v23  ;;  %v1888_v54 = vpop.f32.mrf.mxu1  ;;  %12872 = vmatprep.mubr.msk.f32.mxu0 %vm390_vm1, %v15438_v42  ;;  %20586 = vst [vmem:[#allocation143_spill] sm:$0xff] %v15449_v5  ;;  %p13659_p3 = pnand %p13658_p2, %p13652_p13 }
 0x14e   : > { %12967 = vmatprep.mubr.msk.f32.mxu1 %vm390_vm1, %v14837_v41  ;;  %13159 = vmatpush3.msk.msra.mxu1 %vm1142_vm0, %v11247_v26  ;;  %v15443_v23 = vadd.f32 %v1888_v54, %v1372_v10  ;;  %v1382_v25 = vpop.f32.mrf.mxu0  ;;  %v15455_v26 = vld [vmem:[#allocation2 + $0x88] sm:$0xff] }
 0x14f   : > { %v12625_v33 = vpop.f32.mrf.mxu1  ;;  %20587 = vst [vmem:[#allocation144_spill] sm:$0xff] %v15455_v26 }
 0x150   : > { %v15447_v1 = vadd.f32 %v12625_v33, %v12527_v18  ;;  %v12530_v21 = vpop.f32.mrf.mxu0  ;;  %12873 = vmatmul.mubr.msk.f32.gmra.mxu0 %vm390_vm1, %v15449_v5  ;;  %v15465_v5 = vld [vmem:[#allocation2 + $0x90] sm:$0xff] }
 0x151   : > { %12968 = vmatmul.mubr.msk.f32.gmra.mxu1 %vm390_vm1, %v14852_v45  ;;  %v1898_v41 = vpop.f32.mrf.mxu1  ;;  %12875 = vmatprep.mubr.msk.f32.mxu0 %vm390_vm1, %v15455_v26  ;;  %20588 = vst [vmem:[#allocation145_spill] sm:$0xff] %v15465_v5  ;;  %v15471_v26 = vld [vmem:[#allocation2 + $0xa8] sm:$0xff] }
 0x152   : > { %12970 = vmatprep.mubr.msk.f32.mxu1 %vm390_vm1, %v14856_v31  ;;  %v15459_v10 = vadd.f32 %v1898_v41, %v1382_v25  ;;  %v1392_v54 = vpop.f32.mrf.mxu0  ;;  %20589 = vst [vmem:[#allocation146_spill] sm:$0xff] %v15471_v26 }
 0x153   : > { %v12628_v18 = vpop.f32.mrf.mxu1 }
 0x154   : > { %v15463_v33 = vadd.f32 %v12628_v18, %v12530_v21  ;;  %v12533_v45 = vpop.f32.mrf.mxu0  ;;  %12876 = vmatmul.mubr.msk.f32.gmra.mxu0 %vm390_vm1, %v15465_v5  ;;  %v15481_v5 = vld [vmem:[#allocation2 + $0xb0] sm:$0xff] }
 0x155   : > { %12971 = vmatmul.mubr.msk.f32.gmra.mxu1 %vm390_vm1, %v14869_v51  ;;  %v1908_v31 = vpop.f32.mrf.mxu1  ;;  %12878 = vmatprep.mubr.msk.f32.mxu0 %vm390_vm1, %v15471_v26  ;;  %20590 = vst [vmem:[#allocation147_spill] sm:$0xff] %v15481_v5  ;;  %v15487_v26 = vld [vmem:[#allocation2 + $0xc8] sm:$0xff] }
 0x156   : > { %12973 = vmatprep.mubr.msk.f32.mxu1 %vm390_vm1, %v14872_v52  ;;  %v15475_v41 = vadd.f32 %v1908_v31, %v1392_v54  ;;  %v1402_v25 = vpop.f32.mrf.mxu0  ;;  %20591 = vst [vmem:[#allocation148_spill] sm:$0xff] %v15487_v26 }
 0x157   : > { %v12631_v21 = vpop.f32.mrf.mxu1 }
 0x158   : > { %v15479_v18 = vadd.f32 %v12631_v21, %v12533_v45  ;;  %v12536_v51 = vpop.f32.mrf.mxu0  ;;  %12879 = vmatmul.mubr.msk.f32.gmra.mxu0 %vm390_vm1, %v15481_v5  ;;  %v15497_v5 = vld [vmem:[#allocation2 + $0xd0] sm:$0xff] }
 0x159   : > { %12974 = vmatmul.mubr.msk.f32.gmra.mxu1 %vm390_vm1, %v14885_v36  ;;  %v1918_v52 = vpop.f32.mrf.mxu1  ;;  %12881 = vmatprep.mubr.msk.f32.mxu0 %vm390_vm1, %v15487_v26  ;;  %20592 = vst [vmem:[#allocation149_spill] sm:$0xff] %v15497_v5  ;;  %v15503_v26 = vld [vmem:[#allocation2 + $0xe8] sm:$0xff] }
 0x15a   : > { %12976 = vmatprep.mubr.msk.f32.mxu1 %vm390_vm1, %v14888_v0  ;;  %v15491_v31 = vadd.f32 %v1918_v52, %v1402_v25  ;;  %v1412_v54 = vpop.f32.mrf.mxu0  ;;  %20593 = vst [vmem:[#allocation150_spill] sm:$0xff] %v15503_v26 }
 0x15b   : > { %v12634_v45 = vpop.f32.mrf.mxu1 }
 0x15c   : > { %v15495_v21 = vadd.f32 %v12634_v45, %v12536_v51  ;;  %v12539_v36 = vpop.f32.mrf.mxu0  ;;  %12882 = vmatmul.mubr.msk.f32.gmra.mxu0 %vm390_vm1, %v15497_v5  ;;  %v15513_v5 = vld [vmem:[#allocation2 + $0xf0] sm:$0xff] }
 0x15d   : > { %12977 = vmatmul.mubr.msk.f32.gmra.mxu1 %vm390_vm1, %v14901_v40  ;;  %v1928_v0 = vpop.f32.mrf.mxu1  ;;  %12884 = vmatprep.mubr.msk.f32.mxu0 %vm390_vm1, %v15503_v26  ;;  %20594 = vst [vmem:[#allocation151_spill] sm:$0xff] %v15513_v5  ;;  %v15519_v26 = vld [vmem:[#allocation2 + $0x108] sm:$0xff] }
 0x15e   : > { %12979 = vmatprep.mubr.msk.f32.mxu1 %vm390_vm1, %v14904_v17  ;;  %v15507_v52 = vadd.f32 %v1928_v0, %v1412_v54  ;;  %v1422_v25 = vpop.f32.mrf.mxu0  ;;  %20595 = vst [vmem:[#allocation152_spill] sm:$0xff] %v15519_v26 }
 0x15f   : > { %v12637_v51 = vpop.f32.mrf.mxu1 }
 0x160   : > { %v15511_v45 = vadd.f32 %v12637_v51, %v12539_v36  ;;  %v12542_v40 = vpop.f32.mrf.mxu0  ;;  %12885 = vmatmul.mubr.msk.f32.gmra.mxu0 %vm390_vm1, %v15513_v5  ;;  %v15529_v5 = vld [vmem:[#allocation2 + $0x110] sm:$0xff] }
 0x161   : > { %12980 = vmatmul.mubr.msk.f32.gmra.mxu1 %vm390_vm1, %v14917_v47  ;;  %v1938_v17 = vpop.f32.mrf.mxu1  ;;  %12887 = vmatprep.mubr.msk.f32.mxu0 %vm390_vm1, %v15519_v26  ;;  %20596 = vst [vmem:[#allocation153_spill] sm:$0xff] %v15529_v5  ;;  %v15535_v26 = vld [vmem:[#allocation2 + $0x128] sm:$0xff] }
 0x162   : > { %12982 = vmatprep.mubr.msk.f32.mxu1 %vm390_vm1, %v14920_v29  ;;  %v15523_v0 = vadd.f32 %v1938_v17, %v1422_v25  ;;  %v1432_v54 = vpop.f32.mrf.mxu0  ;;  %20597 = vst [vmem:[#allocation154_spill] sm:$0xff] %v15535_v26 }
 0x163   : > { %v12640_v36 = vpop.f32.mrf.mxu1 }
 0x164   : > { %v15527_v51 = vadd.f32 %v12640_v36, %v12542_v40  ;;  %v12545_v47 = vpop.f32.mrf.mxu0  ;;  %12888 = vmatmul.mubr.msk.f32.gmra.mxu0 %vm390_vm1, %v15529_v5  ;;  %v15545_v5 = vld [vmem:[#allocation2 + $0x130] sm:$0xff] }
 0x165   : > { %12983 = vmatmul.mubr.msk.f32.gmra.mxu1 %vm390_vm1, %v14933_v2  ;;  %v1948_v29 = vpop.f32.mrf.mxu1  ;;  %12890 = vmatprep.mubr.msk.f32.mxu0 %vm390_vm1, %v15535_v26  ;;  %20598 = vst [vmem:[#allocation155_spill] sm:$0xff] %v15545_v5  ;;  %v15551_v26 = vld [vmem:[#allocation2 + $0x148] sm:$0xff] }
 0x166   : > { %12985 = vmatprep.mubr.msk.f32.mxu1 %vm390_vm1, %v14936_v48  ;;  %v15539_v17 = vadd.f32 %v1948_v29, %v1432_v54  ;;  %v1442_v25 = vpop.f32.mrf.mxu0  ;;  %20599 = vst [vmem:[#allocation156_spill] sm:$0xff] %v15551_v26 }
 0x167   : > { %v12643_v40 = vpop.f32.mrf.mxu1 }
 0x168   : > { %v15543_v36 = vadd.f32 %v12643_v40, %v12545_v47  ;;  %v12548_v2 = vpop.f32.mrf.mxu0  ;;  %12891 = vmatmul.mubr.msk.f32.gmra.mxu0 %vm390_vm1, %v15545_v5  ;;  %v15561_v5 = vld [vmem:[#allocation2 + $0x150] sm:$0xff] }
 0x169   : > { %12986 = vmatmul.mubr.msk.f32.gmra.mxu1 %vm390_vm1, %v14949_v37  ;;  %v1958_v48 = vpop.f32.mrf.mxu1  ;;  %12893 = vmatprep.mubr.msk.f32.mxu0 %vm390_vm1, %v15551_v26  ;;  %20600 = vst [vmem:[#allocation157_spill] sm:$0xff] %v15561_v5  ;;  %v15567_v26 = vld [vmem:[#allocation2 + $0x168] sm:$0xff] }
 0x16a   : > { %12988 = vmatprep.mubr.msk.f32.mxu1 %vm390_vm1, %v14952_v8  ;;  %v15555_v29 = vadd.f32 %v1958_v48, %v1442_v25  ;;  %v1452_v54 = vpop.f32.mrf.mxu0  ;;  %20601 = vst [vmem:[#allocation158_spill] sm:$0xff] %v15567_v26 }
 0x16b   : > { %v12646_v47 = vpop.f32.mrf.mxu1 }
 0x16c   : > { %v15559_v40 = vadd.f32 %v12646_v47, %v12548_v2  ;;  %v12551_v37 = vpop.f32.mrf.mxu0  ;;  %12894 = vmatmul.mubr.msk.f32.gmra.mxu0 %vm390_vm1, %v15561_v5  ;;  %v15577_v5 = vld [vmem:[#allocation2 + $0x170] sm:$0xff] }
 0x16d   : > { %12989 = vmatmul.mubr.msk.f32.gmra.mxu1 %vm390_vm1, %v14965_v43  ;;  %v1968_v8 = vpop.f32.mrf.mxu1  ;;  %12896 = vmatprep.mubr.msk.f32.mxu0 %vm390_vm1, %v15567_v26  ;;  %20602 = vst [vmem:[#allocation159_spill] sm:$0xff] %v15577_v5  ;;  %v15583_v26 = vld [vmem:[#allocation2 + $0x188] sm:$0xff] }
 0x16e   : > { %12991 = vmatprep.mubr.msk.f32.mxu1 %vm390_vm1, %v14968_v30  ;;  %v15571_v48 = vadd.f32 %v1968_v8, %v1452_v54  ;;  %v1462_v25 = vpop.f32.mrf.mxu0  ;;  %20603 = vst [vmem:[#allocation160_spill] sm:$0xff] %v15583_v26 }
 0x16f   : > { %v12649_v2 = vpop.f32.mrf.mxu1 }
 0x170   : > { %v15575_v47 = vadd.f32 %v12649_v2, %v12551_v37  ;;  %v12554_v43 = vpop.f32.mrf.mxu0  ;;  %12897 = vmatmul.mubr.msk.f32.gmra.mxu0 %vm390_vm1, %v15577_v5  ;;  %v15593_v5 = vld [vmem:[#allocation2 + $0x190] sm:$0xff] }
 0x171   : > { %12992 = vmatmul.mubr.msk.f32.gmra.mxu1 %vm390_vm1, %v14981_v50  ;;  %v1978_v30 = vpop.f32.mrf.mxu1  ;;  %12899 = vmatprep.mubr.msk.f32.mxu0 %vm390_vm1, %v15583_v26  ;;  %20604 = vst [vmem:[#allocation161_spill] sm:$0xff] %v15593_v5  ;;  %v15599_v26 = vld [vmem:[#allocation2 + $0x1a8] sm:$0xff] }
 0x172   : > { %12994 = vmatprep.mubr.msk.f32.mxu1 %vm390_vm1, %v14984_v58  ;;  %v15587_v8 = vadd.f32 %v1978_v30, %v1462_v25  ;;  %v1472_v54 = vpop.f32.mrf.mxu0  ;;  %20605 = vst [vmem:[#allocation162_spill] sm:$0xff] %v15599_v26 }
 0x173   : > { %v12652_v37 = vpop.f32.mrf.mxu1 }
 0x174   : > { %v15591_v2 = vadd.f32 %v12652_v37, %v12554_v43  ;;  %v12557_v50 = vpop.f32.mrf.mxu0  ;;  %12900 = vmatmul.mubr.msk.f32.gmra.mxu0 %vm390_vm1, %v15593_v5  ;;  %v15609_v5 = vld [vmem:[#allocation2 + $0x1b0] sm:$0xff] }
 0x175   : > { %12995 = vmatmul.mubr.msk.f32.gmra.mxu1 %vm390_vm1, %v14997_v32  ;;  %v1988_v58 = vpop.f32.mrf.mxu1  ;;  %12902 = vmatprep.mubr.msk.f32.mxu0 %vm390_vm1, %v15599_v26  ;;  %20607 = vst [vmem:[#allocation164_spill] sm:$0xff] %v15609_v5  ;;  %v15615_v26 = vld [vmem:[#allocation2 + $0x1c8] sm:$0xff] }
 0x176   : > { %12997 = vmatprep.mubr.msk.f32.mxu1 %vm390_vm1, %v15000_v27  ;;  %v15603_v30 = vadd.f32 %v1988_v58, %v1472_v54  ;;  %v1482_v25 = vpop.f32.mrf.mxu0  ;;  %20608 = vst [vmem:[#allocation165_spill] sm:$0xff] %v15615_v26 }
 0x177   : > { %v12655_v43 = vpop.f32.mrf.mxu1 }
 0x178   : > { %v15607_v37 = vadd.f32 %v12655_v43, %v12557_v50  ;;  %v12560_v32 = vpop.f32.mrf.mxu0  ;;  %12903 = vmatmul.mubr.msk.f32.gmra.mxu0 %vm390_vm1, %v15609_v5  ;;  %v15625_v5 = vld [vmem:[#allocation2 + $0x1d0] sm:$0xff] }
 0x179   : > { %12998 = vmatmul.mubr.msk.f32.gmra.mxu1 %vm390_vm1, %v15013_v3  ;;  %v1998_v27 = vpop.f32.mrf.mxu1  ;;  %12905 = vmatprep.mubr.msk.f32.mxu0 %vm390_vm1, %v15615_v26  ;;  %20611 = vst [vmem:[#allocation168_spill] sm:$0xff] %v15625_v5  ;;  %v15631_v26 = vld [vmem:[#allocation2 + $0x1e8] sm:$0xff] }
 0x17a   : > { %20606 = vst [vmem:[#allocation163_spill] sm:$0xff] %v15607_v37  ;;  %13000 = vmatprep.mubr.msk.f32.mxu1 %vm390_vm1, %v15016_v16  ;;  %v15619_v58 = vadd.f32 %v1998_v27, %v1482_v25  ;;  %v1492_v54 = vpop.f32.mrf.mxu0  ;;  %20612 = vst [vmem:[#allocation169_spill] sm:$0xff] %v15631_v26  ;;  %v3764_v27 = vrot.slane %v15036_v7, 1  ;;  %v677_v25 = vld [vmem:[#allocation2 + $0x218] sm:$0xff] }
 0x17b   : > { %v12658_v50 = vpop.f32.mrf.mxu1 }
 0x17c   : > { %20609 = vst [vmem:[#allocation166_spill] sm:$0xff] %v15619_v58  ;;  %v15623_v43 = vadd.f32 %v12658_v50, %v12560_v32  ;;  %v12563_v3 = vpop.f32.mrf.mxu0  ;;  %12906 = vmatmul.mubr.msk.f32.gmra.mxu0 %vm390_vm1, %v15625_v5  ;;  %v3765_v32 = vrot.slane %v15050_v60, 1  ;;  %v15643_v58 = vld [vmem:[#allocation2 + $0x1f0] sm:$0xff] }
 0x17d   : > { %13001 = vmatmul.mubr.msk.f32.gmra.mxu1 %vm390_vm1, %v15029_v9  ;;  %v2008_v16 = vpop.f32.mrf.mxu1  ;;  %12908 = vmatprep.mubr.msk.f32.mxu0 %vm390_vm1, %v15631_v26  ;;  %20613 = vst [vmem:[#allocation170_spill] sm:$0xff] %v15643_v58  ;;  %v3767_v26 = vrot.slane %v677_v25, 1 }
 0x17e   : > { %20610 = vst [vmem:[#allocation167_spill] sm:$0xff] %v15623_v43  ;;  %13003 = vmatprep.mubr.msk.f32.mxu1 %vm390_vm1, %v15032_v44  ;;  %v15637_v50 = vadd.f32 %v2008_v16, %v1492_v54  ;;  %v1502_v9 = vpop.f32.mrf.mxu0  ;;  %v15652_v16 = vsel %vm2079_vm4, %v3764_v27, %v3765_v32 }
 0x17f   : > { %v12661_v43 = vpop.f32.mrf.mxu1  ;;  %20614 = vst [vmem:[#allocation171_spill] sm:$0xff] %v15652_v16 }
 0x180   : > { %v15641_v5 = vadd.f32 %v12661_v43, %v12563_v3  ;;  %v12566_v44 = vpop.f32.mrf.mxu0  ;;  %12909 = vmatmul.mubr.msk.f32.gmra.mxu0 %vm390_vm1, %v15643_v58 }
 0x181   : > { %13004 = vmatmul.mubr.msk.f32.gmra.mxu1 %vm390_vm1, %v15047_v24  ;;  %v2018_v37 = vpop.f32.mrf.mxu1  ;;  %12911 = vmatprep.mubr.msk.f32.mxu0 %vm390_vm1, %v15036_v7  ;;  %v15665_v7 = vsel %vm2079_vm4, %v3765_v32, %v3767_v26 }
 0x182   : > { %13006 = vmatprep.mubr.msk.f32.mxu1 %vm390_vm1, %v15053_v46  ;;  %v15654_v54 = vadd.f32 %v2018_v37, %v1502_v9  ;;  %v1512_v3 = vpop.f32.mrf.mxu0  ;;  %20615 = vst [vmem:[#allocation172_spill] sm:$0xff] %v15665_v7  ;;  %v13601_v9 = vld [vmem:[#allocation2 + $0x268] sm:$0xff]  ;;  %v20623_v46 = vld [vmem:[#allocation38_spill] sm:$0xff] }
 0x183   : > { %v12664_v43 = vpop.f32.mrf.mxu1 }
 0x184   : > { %v15658_v24 = vadd.f32 %v12664_v43, %v12566_v44  ;;  %v12569_v58 = vpop.f32.mrf.mxu0  ;;  %12912 = vmatmul.mubr.msk.f32.gmra.mxu0 %vm390_vm1, %v15050_v60  ;;  %v13602_v43 = vld [vmem:[#allocation2 + $0x270] sm:$0xff] }
 0x185   : > { %13007 = vmatmul.mubr.msk.f32.gmra.mxu1 %vm390_vm1, %v15065_v14  ;;  %v2028_v27 = vpop.f32.mrf.mxu1  ;;  %12914 = vmatprep.mubr.msk.f32.mxu0 %vm390_vm1, %v13601_v9  ;;  %v15678_v9 = vld [vmem:[#allocation2 + $0x288] sm:$0xff] }
 0x186   : > { %13009 = vmatprep.mubr.msk.f32.mxu1 %vm390_vm1, %v15652_v16  ;;  %v15668_v37 = vadd.f32 %v2028_v27, %v1512_v3  ;;  %v1522_v25 = vpop.f32.mrf.mxu0  ;;  %v15696_v16 = vld [vmem:[#allocation2 + $0x2a8] sm:$0xff] }
 0x187   : > { %v12667_v14 = vpop.f32.mrf.mxu1 }
 0x188   : > { %v15672_v44 = vadd.f32 %v12667_v14, %v12569_v58  ;;  %v12672_v60 = vpop.f32.mrf.mxu0  ;;  %12915 = vmatmul.mubr.msk.f32.gmra.mxu0 %vm390_vm1, %v13602_v43 }
 0x189   : > { %13010 = vmatmul.mubr.msk.f32.gmra.mxu1 %vm390_vm1, %v15665_v7  ;;  %v2759_v26 = vadd.f32 %v12672_v60, %v15096_v12  ;;  %v2038_v32 = vpop.f32.mrf.mxu1  ;;  %12917 = vmatprep.mubr.msk.f32.mxu0 %vm390_vm1, %v15678_v9  ;;  %v15689_v7 = vld [vmem:[#allocation2 + $0x290] sm:$0xff]  ;;  %v20618_v12 = vld [vmem:[#allocation42_spill] sm:$0xff] }
 0x18a   : > { %13012 = vmatprep.mubr.msk.f32.mxu1 %vm390_vm1, %v15087_v62  ;;  %v15682_v3 = vadd.f32 %v2038_v32, %v1522_v25  ;;  %v2439_v27 = vpop.f32.mrf.mxu0  ;;  %20617 = vst [vmem:[#allocation174_spill] sm:$0xff] %v15689_v7  ;;  %v20619_v25 = vld [vmem:[#allocation46_spill] sm:$0xff] }
 0x18b   : > { %v2758_v14 = vadd.f32 %v2439_v27, %v15108_v63  ;;  %v12770_v58 = vpop.f32.mrf.mxu1  ;;  %20620 = vst [vmem:[#allocation46_spill] sm:$0xff] %v15696_v16 }
 0x18c   : > { %v15687_v43 = vadd.f32 %v12770_v58, %v2759_v26  ;;  %v12675_v62 = vpop.f32.mrf.mxu0  ;;  %12918 = vmatmul.mubr.msk.f32.gmra.mxu0 %vm390_vm1, %v15689_v7  ;;  %v20622_v26 = vld [vmem:[#allocation47_spill] sm:$0xff] }
 0x18d   : > { %13013 = vmatmul.mubr.msk.f32.gmra.mxu1 %vm390_vm1, %v15101_v15  ;;  %v2761_v60 = vadd.f32 %v12675_v62, %v20619_v25  ;;  %v2917_v32 = vpop.f32.mrf.mxu1  ;;  %12920 = vmatprep.mubr.msk.f32.mxu0 %vm390_vm1, %v15696_v16  ;;  %v20626_v62 = vld [vmem:[#allocation44_spill] sm:$0xff] }
 0x18e   : > { %20616 = vst [vmem:[#allocation173_spill] sm:$0xff] %v15687_v43  ;;  %13015 = vmatprep.mubr.msk.f32.mxu1 %vm390_vm1, %v20618_v12  ;;  %v15700_v15 = vadd.f32 %v2917_v32, %v2758_v14  ;;  %v2449_v63 = vpop.f32.mrf.mxu0  ;;  %v15707_v43 = vld [vmem:[#allocation2 + $0x2b0] sm:$0xff]  ;;  %v15714_v16 = vld [vmem:[#allocation2 + $0x2c8] sm:$0xff] }
 0x18f   : > { %v2760_v27 = vadd.f32 %v2449_v63, %v20622_v26  ;;  %v12773_v58 = vpop.f32.mrf.mxu1  ;;  %20625 = vst [vmem:[#allocation176_spill] sm:$0xff] %v15707_v43  ;;  %v20627_v14 = vld [vmem:[#allocation48_spill] sm:$0xff]  ;;  %v20630_v26 = vld [vmem:[#allocation54_spill] sm:$0xff] }
 0x190   : > { %20621 = vst [vmem:[#allocation175_spill] sm:$0xff] %v15700_v15  ;;  %v15705_v7 = vadd.f32 %v12773_v58, %v2761_v60  ;;  %v12678_v12 = vpop.f32.mrf.mxu0  ;;  %12921 = vmatmul.mubr.msk.f32.gmra.mxu0 %vm390_vm1, %v15707_v43  ;;  %20628 = vst [vmem:[#allocation48_spill] sm:$0xff] %v15714_v16  ;;  %v15725_v15 = vld [vmem:[#allocation2 + $0x2d0] sm:$0xff] }
 0x191   : > { %13016 = vmatmul.mubr.msk.f32.gmra.mxu1 %vm390_vm1, %v20623_v46  ;;  %v2763_v25 = vadd.f32 %v12678_v12, %v20627_v14  ;;  %v2927_v32 = vpop.f32.mrf.mxu1  ;;  %12923 = vmatprep.mubr.msk.f32.mxu0 %vm390_vm1, %v15714_v16  ;;  %20633 = vst [vmem:[#allocation178_spill] sm:$0xff] %v15725_v15  ;;  %v20634_v12 = vld [vmem:[#allocation50_spill] sm:$0xff]  ;;  %v15732_v16 = vld [vmem:[#allocation2 + $0x2e8] sm:$0xff] }
 0x192   : > { %20624 = vst [vmem:[#allocation47_spill] sm:$0xff] %v15705_v7  ;;  %13018 = vmatprep.mubr.msk.f32.mxu1 %vm390_vm1, %v20626_v62  ;;  %v15718_v63 = vadd.f32 %v2927_v32, %v2760_v27  ;;  %v2459_v60 = vpop.f32.mrf.mxu0  ;;  %v20631_v7 = vld [vmem:[#allocation45_spill] sm:$0xff]  ;;  %v20635_v27 = vld [vmem:[#allocation58_spill] sm:$0xff] }
 0x193   : > { %v2762_v58 = vadd.f32 %v2459_v60, %v20630_v26  ;;  %v12776_v46 = vpop.f32.mrf.mxu1  ;;  %20636 = vst [vmem:[#allocation58_spill] sm:$0xff] %v15732_v16 }
 0x194   : > { %20629 = vst [vmem:[#allocation177_spill] sm:$0xff] %v15718_v63  ;;  %v15723_v43 = vadd.f32 %v12776_v46, %v2763_v25  ;;  %v12681_v62 = vpop.f32.mrf.mxu0  ;;  %12924 = vmatmul.mubr.msk.f32.gmra.mxu0 %vm390_vm1, %v15725_v15  ;;  %v20638_v25 = vld [vmem:[#allocation62_spill] sm:$0xff]  ;;  %v15743_v63 = vld [vmem:[#allocation2 + $0x2f0] sm:$0xff] }
 0x195   : > { %13019 = vmatmul.mubr.msk.f32.gmra.mxu1 %vm390_vm1, %v20631_v7  ;;  %v2765_v14 = vadd.f32 %v12681_v62, %v20635_v27  ;;  %v2937_v32 = vpop.f32.mrf.mxu1  ;;  %12926 = vmatprep.mubr.msk.f32.mxu0 %vm390_vm1, %v15732_v16  ;;  %20641 = vst [vmem:[#allocation180_spill] sm:$0xff] %v15743_v63  ;;  %v20642_v62 = vld [vmem:[#allocation55_spill] sm:$0xff] }
 0x196   : > { %20632 = vst [vmem:[#allocation54_spill] sm:$0xff] %v15723_v43  ;;  %13021 = vmatprep.mubr.msk.f32.mxu1 %vm390_vm1, %v20634_v12  ;;  %v15736_v60 = vadd.f32 %v2937_v32, %v2762_v58  ;;  %v2469_v46 = vpop.f32.mrf.mxu0  ;;  %v20639_v43 = vld [vmem:[#allocation51_spill] sm:$0xff] }
 0x197   : > { %v2764_v26 = vadd.f32 %v2469_v46, %v20638_v25  ;;  %v12779_v7 = vpop.f32.mrf.mxu1  ;;  %v20643_v58 = vld [vmem:[#allocation63_spill] sm:$0xff] }
 0x198   : > { %20637 = vst [vmem:[#allocation179_spill] sm:$0xff] %v15736_v60  ;;  %v15741_v15 = vadd.f32 %v12779_v7, %v2765_v14  ;;  %v12684_v12 = vpop.f32.mrf.mxu0  ;;  %12927 = vmatmul.mubr.msk.f32.gmra.mxu0 %vm390_vm1, %v15743_v63  ;;  %v15750_v16 = vld [vmem:[#allocation2 + $0x308] sm:$0xff]  ;;  %v20646_v14 = vld [vmem:[#allocation122_spill] sm:$0xff]  ;;  %v15761_v60 = vld [vmem:[#allocation2 + $0x310] sm:$0xff] }
 0x199   : > { %13022 = vmatmul.mubr.msk.f32.gmra.mxu1 %vm390_vm1, %v20639_v43  ;;  %v2767_v27 = vadd.f32 %v12684_v12, %v20643_v58  ;;  %v2947_v32 = vpop.f32.mrf.mxu1  ;;  %20644 = vst [vmem:[#allocation63_spill] sm:$0xff] %v15750_v16  ;;  %12929 = vmatprep.mubr.msk.f32.mxu0 %vm390_vm1, %v15750_v16  ;;  %20649 = vst [vmem:[#allocation182_spill] sm:$0xff] %v15761_v60  ;;  %v20650_v12 = vld [vmem:[#allocation121_spill] sm:$0xff]  ;;  %v15768_v16 = vld [vmem:[#allocation2 + $0x328] sm:$0xff] }
 0x19a   : > { %20640 = vst [vmem:[#allocation62_spill] sm:$0xff] %v15741_v15  ;;  %13024 = vmatprep.mubr.msk.f32.mxu1 %vm390_vm1, %v20642_v62  ;;  %v15754_v46 = vadd.f32 %v2947_v32, %v2764_v26  ;;  %v2479_v7 = vpop.f32.mrf.mxu0  ;;  %v20647_v15 = vld [vmem:[#allocation59_spill] sm:$0xff] }
 0x19b   : > { %v2766_v25 = vadd.f32 %v2479_v7, %v20646_v14  ;;  %v12782_v43 = vpop.f32.mrf.mxu1  ;;  %v20651_v26 = vld [vmem:[#allocation67_spill] sm:$0xff] }
 0x19c   : > { %20645 = vst [vmem:[#allocation181_spill] sm:$0xff] %v15754_v46  ;;  %v15759_v63 = vadd.f32 %v12782_v43, %v2767_v27  ;;  %v12687_v62 = vpop.f32.mrf.mxu0  ;;  %12930 = vmatmul.mubr.msk.f32.gmra.mxu0 %vm390_vm1, %v15761_v60  ;;  %20652 = vst [vmem:[#allocation67_spill] sm:$0xff] %v15768_v16  ;;  %v20654_v27 = vld [vmem:[#allocation124_spill] sm:$0xff] }
 0x19d   : > { %13025 = vmatmul.mubr.msk.f32.gmra.mxu1 %vm390_vm1, %v20647_v15  ;;  %v2769_v58 = vadd.f32 %v12687_v62, %v20651_v26  ;;  %v2957_v32 = vpop.f32.mrf.mxu1  ;;  %12932 = vmatprep.mubr.msk.f32.mxu0 %vm390_vm1, %v15768_v16  ;;  %v15779_v46 = vld [vmem:[#allocation2 + $0x330] sm:$0xff]  ;;  %v20658_v62 = vld [vmem:[#allocation123_spill] sm:$0xff] }
 0x19e   : > { %20648 = vst [vmem:[#allocation122_spill] sm:$0xff] %v15759_v63  ;;  %13027 = vmatprep.mubr.msk.f32.mxu1 %vm390_vm1, %v20650_v12  ;;  %v15772_v7 = vadd.f32 %v2957_v32, %v2766_v25  ;;  %v2489_v43 = vpop.f32.mrf.mxu0  ;;  %v20655_v63 = vld [vmem:[#allocation66_spill] sm:$0xff]  ;;  %20657 = vst [vmem:[#allocation184_spill] sm:$0xff] %v15779_v46  ;;  %v20659_v25 = vld [vmem:[#allocation71_spill] sm:$0xff] }
 0x19f   : > { %v2768_v14 = vadd.f32 %v2489_v43, %v20654_v27  ;;  %v12785_v15 = vpop.f32.mrf.mxu1  ;;  %v15786_v16 = vld [vmem:[#allocation2 + $0x348] sm:$0xff] }
 0x1a0   : > { %20653 = vst [vmem:[#allocation183_spill] sm:$0xff] %v15772_v7  ;;  %v15777_v60 = vadd.f32 %v12785_v15, %v2769_v58  ;;  %v12690_v12 = vpop.f32.mrf.mxu0  ;;  %12933 = vmatmul.mubr.msk.f32.gmra.mxu0 %vm390_vm1, %v15779_v46  ;;  %20660 = vst [vmem:[#allocation71_spill] sm:$0xff] %v15786_v16  ;;  %v20662_v58 = vld [vmem:[#allocation126_spill] sm:$0xff]  ;;  %v15797_v7 = vld [vmem:[#allocation2 + $0x350] sm:$0xff] }
 0x1a1   : > { %13028 = vmatmul.mubr.msk.f32.gmra.mxu1 %vm390_vm1, %v20655_v63  ;;  %v2771_v26 = vadd.f32 %v12690_v12, %v20659_v25  ;;  %v2967_v32 = vpop.f32.mrf.mxu1  ;;  %12935 = vmatprep.mubr.msk.f32.mxu0 %vm390_vm1, %v15786_v16  ;;  %20665 = vst [vmem:[#allocation186_spill] sm:$0xff] %v15797_v7  ;;  %v20666_v12 = vld [vmem:[#allocation125_spill] sm:$0xff]  ;;  %v15804_v16 = vld [vmem:[#allocation2 + $0x368] sm:$0xff] }
 0x1a2   : > { %20656 = vst [vmem:[#allocation124_spill] sm:$0xff] %v15777_v60  ;;  %13030 = vmatprep.mubr.msk.f32.mxu1 %vm390_vm1, %v20658_v62  ;;  %v15790_v43 = vadd.f32 %v2967_v32, %v2768_v14  ;;  %v2499_v15 = vpop.f32.mrf.mxu0  ;;  %v20663_v60 = vld [vmem:[#allocation70_spill] sm:$0xff]  ;;  %v20667_v14 = vld [vmem:[#allocation75_spill] sm:$0xff] }
 0x1a3   : > { %v2770_v27 = vadd.f32 %v2499_v15, %v20662_v58  ;;  %v12788_v63 = vpop.f32.mrf.mxu1  ;;  %20668 = vst [vmem:[#allocation75_spill] sm:$0xff] %v15804_v16 }
 0x1a4   : > { %20661 = vst [vmem:[#allocation185_spill] sm:$0xff] %v15790_v43  ;;  %v15795_v46 = vadd.f32 %v12788_v63, %v2771_v26  ;;  %v12693_v62 = vpop.f32.mrf.mxu0  ;;  %12936 = vmatmul.mubr.msk.f32.gmra.mxu0 %vm390_vm1, %v15797_v7  ;;  %v20670_v26 = vld [vmem:[#allocation128_spill] sm:$0xff] }
 0x1a5   : > { %13031 = vmatmul.mubr.msk.f32.gmra.mxu1 %vm390_vm1, %v20663_v60  ;;  %v2773_v25 = vadd.f32 %v12693_v62, %v20667_v14  ;;  %v2977_v32 = vpop.f32.mrf.mxu1  ;;  %12938 = vmatprep.mubr.msk.f32.mxu0 %vm390_vm1, %v15804_v16  ;;  %v15815_v43 = vld [vmem:[#allocation2 + $0x370] sm:$0xff]  ;;  %v20674_v62 = vld [vmem:[#allocation127_spill] sm:$0xff] }
 0x1a6   : > { %20664 = vst [vmem:[#allocation126_spill] sm:$0xff] %v15795_v46  ;;  %13033 = vmatprep.mubr.msk.f32.mxu1 %vm390_vm1, %v20666_v12  ;;  %v15808_v15 = vadd.f32 %v2977_v32, %v2770_v27  ;;  %v2509_v63 = vpop.f32.mrf.mxu0  ;;  %v20671_v46 = vld [vmem:[#allocation74_spill] sm:$0xff]  ;;  %20673 = vst [vmem:[#allocation188_spill] sm:$0xff] %v15815_v43  ;;  %v20675_v27 = vld [vmem:[#allocation79_spill] sm:$0xff] }
 0x1a7   : > { %v2772_v58 = vadd.f32 %v2509_v63, %v20670_v26  ;;  %v12791_v60 = vpop.f32.mrf.mxu1  ;;  %v15822_v16 = vld [vmem:[#allocation2 + $0x388] sm:$0xff] }
 0x1a8   : > { %20669 = vst [vmem:[#allocation187_spill] sm:$0xff] %v15808_v15  ;;  %v15813_v7 = vadd.f32 %v12791_v60, %v2773_v25  ;;  %v12696_v12 = vpop.f32.mrf.mxu0  ;;  %12939 = vmatmul.mubr.msk.f32.gmra.mxu0 %vm390_vm1, %v15815_v43  ;;  %20676 = vst [vmem:[#allocation79_spill] sm:$0xff] %v15822_v16  ;;  %v20677_v25 = vld [vmem:[#allocation130_spill] sm:$0xff]  ;;  %v15833_v15 = vld [vmem:[#allocation2 + $0x390] sm:$0xff] }
 0x1a9   : > { %13034 = vmatmul.mubr.msk.f32.gmra.mxu1 %vm390_vm1, %v20671_v46  ;;  %v2775_v14 = vadd.f32 %v12696_v12, %v20675_v27  ;;  %v2987_v32 = vpop.f32.mrf.mxu1  ;;  %12941 = vmatprep.mubr.msk.f32.mxu0 %vm390_vm1, %v15822_v16  ;;  %20680 = vst [vmem:[#allocation189_spill] sm:$0xff] %v15833_v15  ;;  %v20681_v12 = vld [vmem:[#allocation129_spill] sm:$0xff]  ;;  %v15840_v16 = vld [vmem:[#allocation2 + $0x3a8] sm:$0xff] }
 0x1aa   : > { %20672 = vst [vmem:[#allocation128_spill] sm:$0xff] %v15813_v7  ;;  %13036 = vmatprep.mubr.msk.f32.mxu1 %vm390_vm1, %v20674_v62  ;;  %v15826_v63 = vadd.f32 %v2987_v32, %v2772_v58  ;;  %v2519_v60 = vpop.f32.mrf.mxu0  ;;  %v20678_v7 = vld [vmem:[#allocation78_spill] sm:$0xff]  ;;  %v20682_v58 = vld [vmem:[#allocation83_spill] sm:$0xff] }
 0x1ab   : > { %v2774_v26 = vadd.f32 %v2519_v60, %v20677_v25  ;;  %v12794_v46 = vpop.f32.mrf.mxu1 }
 0x1ac   : > { %v15831_v43 = vadd.f32 %v12794_v46, %v2775_v14  ;;  %v12699_v62 = vpop.f32.mrf.mxu0  ;;  %12942 = vmatmul.mubr.msk.f32.gmra.mxu0 %vm390_vm1, %v15833_v15 }
 0x1ad   : > { %13037 = vmatmul.mubr.msk.f32.gmra.mxu1 %vm390_vm1, %v20678_v7  ;;  %v2777_v27 = vadd.f32 %v12699_v62, %v20682_v58  ;;  %v2997_v32 = vpop.f32.mrf.mxu1  ;;  %12944 = vmatprep.mubr.msk.f32.mxu0 %vm390_vm1, %v15840_v16  ;;  %v20683_v7 = vld [vmem:[#allocation82_spill] sm:$0xff]  ;;  %v20686_v62 = vld [vmem:[#allocation131_spill] sm:$0xff] }
 0x1ae   : > { %20679 = vst [vmem:[#allocation130_spill] sm:$0xff] %v15831_v43  ;;  %13039 = vmatprep.mubr.msk.f32.mxu1 %vm390_vm1, %v20681_v12  ;;  %v15844_v60 = vadd.f32 %v2997_v32, %v2774_v26  ;;  %v2529_v46 = vpop.f32.mrf.mxu0  ;;  %v15851_v43 = vld [vmem:[#allocation2 + $0x3b0] sm:$0xff]  ;;  %v15858_v32 = vld [vmem:[#allocation2 + $0x3c8] sm:$0xff] }
 0x1af   : > { %v2776_v14 = vadd.f32 %v2529_v46, %v15299_v6  ;;  %v12797_v25 = vpop.f32.mrf.mxu1  ;;  %20685 = vst [vmem:[#allocation190_spill] sm:$0xff] %v15851_v43  ;;  %20687 = vst [vmem:[#allocation191_spill] sm:$0xff] %v15858_v32 }
 0x1b0   : > { %v15849_v15 = vadd.f32 %v12797_v25, %v2777_v27  ;;  %v12702_v12 = vpop.f32.mrf.mxu0  ;;  %12945 = vmatmul.mubr.msk.f32.gmra.mxu0 %vm390_vm1, %v15851_v43 }
 0x1b1   : > { %13040 = vmatmul.mubr.msk.f32.gmra.mxu1 %vm390_vm1, %v20683_v7  ;;  %v2779_v26 = vadd.f32 %v12702_v12, %v15308_v53  ;;  %v3007_v58 = vpop.f32.mrf.mxu1  ;;  %12947 = vmatprep.mubr.msk.f32.mxu0 %vm390_vm1, %v15858_v32  ;;  %v20688_v7 = vld [vmem:[#allocation86_spill] sm:$0xff]  ;;  %v20691_v53 = vld [vmem:[#allocation132_spill] sm:$0xff]  ;;  %v20692_v12 = vld [vmem:[#allocation133_spill] sm:$0xff] }
 0x1b2   : > { %20684 = vst [vmem:[#allocation83_spill] sm:$0xff] %v15849_v15  ;;  %13042 = vmatprep.mubr.msk.f32.mxu1 %vm390_vm1, %v20686_v62  ;;  %v15862_v6 = vadd.f32 %v3007_v58, %v2776_v14  ;;  %v2539_v27 = vpop.f32.mrf.mxu0  ;;  %v15869_v15 = vld [vmem:[#allocation2 + $0x3d0] sm:$0xff]  ;;  %v15876_v32 = vld [vmem:[#allocation2 + $0x3e8] sm:$0xff] }
 0x1b3   : > { %v2778_v46 = vadd.f32 %v2539_v27, %v15319_v56  ;;  %v12800_v25 = vpop.f32.mrf.mxu1  ;;  %20690 = vst [vmem:[#allocation193_spill] sm:$0xff] %v15869_v15  ;;  %20693 = vst [vmem:[#allocation133_spill] sm:$0xff] %v15876_v32 }
 0x1b4   : > { %v15867_v43 = vadd.f32 %v12800_v25, %v2779_v26  ;;  %v12705_v62 = vpop.f32.mrf.mxu0  ;;  %12948 = vmatmul.mubr.msk.f32.gmra.mxu0 %vm390_vm1, %v15869_v15 }
 0x1b5   : > { %13043 = vmatmul.mubr.msk.f32.gmra.mxu1 %vm390_vm1, %v20688_v7  ;;  %v2781_v14 = vadd.f32 %v12705_v62, %v20692_v12  ;;  %v3017_v58 = vpop.f32.mrf.mxu1  ;;  %12950 = vmatprep.mubr.msk.f32.mxu0 %vm390_vm1, %v15876_v32  ;;  %v20694_v7 = vld [vmem:[#allocation87_spill] sm:$0xff]  ;;  %v20697_v62 = vld [vmem:[#allocation90_spill] sm:$0xff] }
 0x1b6   : > { %20689 = vst [vmem:[#allocation192_spill] sm:$0xff] %v15867_v43  ;;  %13045 = vmatprep.mubr.msk.f32.mxu1 %vm390_vm1, %v20691_v53  ;;  %v15880_v56 = vadd.f32 %v3017_v58, %v2778_v46  ;;  %v2549_v26 = vpop.f32.mrf.mxu0  ;;  %v15887_v43 = vld [vmem:[#allocation2 + $0x3f0] sm:$0xff]  ;;  %v15894_v32 = vld [vmem:[#allocation2 + $0x408] sm:$0xff] }
 0x1b7   : > { %v2780_v27 = vadd.f32 %v2549_v26, %v15339_v59  ;;  %v12803_v25 = vpop.f32.mrf.mxu1  ;;  %20696 = vst [vmem:[#allocation195_spill] sm:$0xff] %v15887_v43  ;;  %v20698_v46 = vld [vmem:[#allocation136_spill] sm:$0xff] }
 0x1b8   : > { %v15885_v15 = vadd.f32 %v12803_v25, %v2781_v14  ;;  %v12708_v53 = vpop.f32.mrf.mxu0  ;;  %12951 = vmatmul.mubr.msk.f32.gmra.mxu0 %vm390_vm1, %v15887_v43 }
 0x1b9   : > { %13046 = vmatmul.mubr.msk.f32.gmra.mxu1 %vm390_vm1, %v20694_v7  ;;  %v2783_v12 = vadd.f32 %v12708_v53, %v20698_v46  ;;  %v3027_v58 = vpop.f32.mrf.mxu1  ;;  %12953 = vmatprep.mubr.msk.f32.mxu0 %vm390_vm1, %v15894_v32  ;;  %v20699_v7 = vld [vmem:[#allocation134_spill] sm:$0xff]  ;;  %v20702_v53 = vld [vmem:[#allocation135_spill] sm:$0xff] }
 0x1ba   : > { %20695 = vst [vmem:[#allocation194_spill] sm:$0xff] %v15885_v15  ;;  %13048 = vmatprep.mubr.msk.f32.mxu1 %vm390_vm1, %v20697_v62  ;;  %v15898_v59 = vadd.f32 %v3027_v58, %v2780_v27  ;;  %v2559_v14 = vpop.f32.mrf.mxu0  ;;  %v15905_v15 = vld [vmem:[#allocation2 + $0x410] sm:$0xff]  ;;  %v15912_v58 = vld [vmem:[#allocation2 + $0x428] sm:$0xff] }
 0x1bb   : > { %v2782_v26 = vadd.f32 %v2559_v14, %v15364_v20  ;;  %v12806_v25 = vpop.f32.mrf.mxu1  ;;  %20701 = vst [vmem:[#allocation196_spill] sm:$0xff] %v15905_v15  ;;  %20703 = vst [vmem:[#allocation197_spill] sm:$0xff] %v15912_v58  ;;  %v3769_v20 = vrot.slane %v15346_v19, 1  ;;  %v749_v14 = vld [vmem:[#allocation2 + $0x458] sm:$0xff] }
 0x1bc   : > { %v15903_v43 = vadd.f32 %v12806_v25, %v2783_v12  ;;  %v12711_v62 = vpop.f32.mrf.mxu0  ;;  %12954 = vmatmul.mubr.msk.f32.gmra.mxu0 %vm390_vm1, %v15905_v15  ;;  %v3770_v12 = vrot.slane %v15362_v49, 1 }
 0x1bd   : > { %13049 = vmatmul.mubr.msk.f32.gmra.mxu1 %vm390_vm1, %v20699_v7  ;;  %v2785_v27 = vadd.f32 %v12711_v62, %v15371_v38  ;;  %v3037_v46 = vpop.f32.mrf.mxu1  ;;  %12956 = vmatprep.mubr.msk.f32.mxu0 %vm390_vm1, %v15912_v58 }
 0x1be   : > { %20700 = vst [vmem:[#allocation136_spill] sm:$0xff] %v15903_v43  ;;  %13051 = vmatprep.mubr.msk.f32.mxu1 %vm390_vm1, %v20702_v53  ;;  %v15918_v25 = vadd.f32 %v3037_v46, %v2782_v26  ;;  %v2569_v7 = vpop.f32.mrf.mxu0  ;;  %v15925_v53 = vld [vmem:[#allocation2 + $0x430] sm:$0xff]  ;;  %v3772_v26 = vrot.slane %v749_v14, 1 }
 0x1bf   : > { %v2784_v15 = vadd.f32 %v2569_v7, %v15386_v55  ;;  %v12809_v43 = vpop.f32.mrf.mxu1  ;;  %v15935_v55 = vsel %vm2079_vm4, %v3769_v20, %v3770_v12 }
 0x1c0   : > { %v15923_v38 = vadd.f32 %v12809_v43, %v2785_v27  ;;  %v12714_v62 = vpop.f32.mrf.mxu0  ;;  %12957 = vmatmul.mubr.msk.f32.gmra.mxu0 %vm390_vm1, %v15925_v53  ;;  %20704 = vst [vmem:[#allocation198_spill] sm:$0xff] %v15935_v55 }
 0x1c1   : > { %13052 = vmatmul.mubr.msk.f32.gmra.mxu1 %vm390_vm1, %v15359_v35  ;;  %v2787_v46 = vadd.f32 %v12714_v62, %v15390_v61  ;;  %v3047_v58 = vpop.f32.mrf.mxu1  ;;  %12959 = vmatprep.mubr.msk.f32.mxu0 %vm390_vm1, %v15346_v19  ;;  %v15949_v19 = vsel %vm2079_vm4, %v3770_v12, %v3772_v26  ;;  %v20707_v12 = vld [vmem:[#allocation8_spill] sm:$0xff] }
 0x1c2   : > { %13054 = vmatprep.mubr.msk.f32.mxu1 %vm390_vm1, %v15367_v22  ;;  %v15937_v7 = vadd.f32 %v3047_v58, %v2784_v15  ;;  %v2579_v43 = vpop.f32.mrf.mxu0  ;;  %20705 = vst [vmem:[#allocation199_spill] sm:$0xff] %v15949_v19 }
 0x1c3   : > { %v2786_v27 = vadd.f32 %v2579_v43, %v15400_v39  ;;  %v12812_v35 = vpop.f32.mrf.mxu1  ;;  %v20706_v39 = vld [vmem:[#allocation7_spill] sm:$0xff] }
 0x1c4   : > { %v15942_v22 = vadd.f32 %v12812_v35, %v2787_v46  ;;  %v12717_v14 = vpop.f32.mrf.mxu0  ;;  %12960 = vmatmul.mubr.msk.f32.gmra.mxu0 %vm390_vm1, %v15362_v49 }
 0x1c5   : > { %13055 = vmatmul.mubr.msk.f32.gmra.mxu1 %vm390_vm1, %v15381_v13  ;;  %v2789_v61 = vadd.f32 %v12717_v14, %v15408_v57  ;;  %v3057_v15 = vpop.f32.mrf.mxu1  ;;  %13062 = vmatprep.mubr.msk.f32.mxu0 %vm390_vm1, %v20706_v39 }
 0x1c6   : > { %13057 = vmatprep.mubr.msk.f32.mxu1 %vm390_vm1, %v15935_v55  ;;  %v15954_v58 = vadd.f32 %v3057_v15, %v2786_v27  ;;  %v2589_v35 = vpop.f32.mrf.mxu0  ;;  %v20709_v15 = vld [vmem:[#allocation142_spill] sm:$0xff]  ;;  %v20759_v55 = vld [vmem:[#allocation168_spill] sm:$0xff] }
 0x1c7   : > { %v2788_v20 = vadd.f32 %v2589_v35, %v15424_v4  ;;  %v12815_v62 = vpop.f32.mrf.mxu1  ;;  %v20708_v4 = vld [vmem:[#allocation9_spill] sm:$0xff] }
 0x1c8   : > { %v15959_v49 = vadd.f32 %v12815_v62, %v2789_v61  ;;  %v12720_v46 = vpop.f32.mrf.mxu0  ;;  %13063 = vmatmul.mubr.msk.f32.vlgmr.msra.gmra.mxu0 %vm390_vm1, %v20707_v12 }
 0x1c9   : > { %13058 = vmatmul.mubr.msk.f32.gmra.mxu1 %vm390_vm1, %v15949_v19  ;;  %v2791_v57 = vadd.f32 %v12720_v46, %v15430_v11  ;;  %13257 = vmatpush3.msk.msra.mxu0 %vm1142_vm0, %v15416_v34  ;;  %v3067_v26 = vpop.f32.mrf.mxu1  ;;  %v20710_v11 = vld [vmem:[#allocation10_spill] sm:$0xff]  ;;  %vm13714_vm0 = vmmov 0  }
 0x1ca   : > { %13160 = vmatprep.mubr.msk.f32.mxu1 %vm390_vm1, %v15420_v28  ;;  %13065 = vmatprep.mubr.msk.f32.mxu0 %vm390_vm1, %v20708_v4  ;;  %v15970_v43 = vadd.f32 %v3067_v26, %v2788_v20  ;;  %v2599_v27 = vpop.f32.mrf.mxu0  ;;  %v20711_v20 = vld [vmem:[#allocation11_spill] sm:$0xff] }
 0x1cb   : > { %v2790_v14 = vadd.f32 %v2599_v27, %v15443_v23  ;;  %v20713_v27 = vld [vmem:[#allocation12_spill] sm:$0xff] }
 0x1cc   : > { %v12723_v28 = vpop.f32.mrf.mxu0  ;;  %13066 = vmatmul.mubr.msk.f32.gmra.mxu0 %vm390_vm1, %v20710_v11 }
 0x1cd   : > { %v12818_v61 = vpop.f32.mrf.mxu1  ;;  %13161 = vmatmul.mubr.msk.f32.vlgmr.msra.gmra.mxu1 %vm390_vm1, %v20709_v15  ;;  %v2793_v34 = vadd.f32 %v12723_v28, %v15447_v1  ;;  %13068 = vmatprep.mubr.msk.f32.mxu0 %vm390_vm1, %v20711_v20  ;;  %v20714_v1 = vld [vmem:[#allocation144_spill] sm:$0xff] }
 0x1ce   : > { %v15975_v39 = vadd.f32 %v12818_v61, %v2791_v57  ;;  %13163 = vmatprep.mubr.msk.f32.mxu1 %vm390_vm1, %v15438_v42  ;;  %v2609_v62 = vpop.f32.mrf.mxu0  ;;  %v20712_v57 = vld [vmem:[#allocation143_spill] sm:$0xff]  ;;  %v20715_v61 = vld [vmem:[#allocation13_spill] sm:$0xff] }
 0x1cf   : > { %v3077_v35 = vpop.f32.mrf.mxu1  ;;  %v2792_v46 = vadd.f32 %v2609_v62, %v15459_v10  ;;  %v20717_v62 = vld [vmem:[#allocation14_spill] sm:$0xff] }
 0x1d0   : > { %v15984_v23 = vadd.f32 %v3077_v35, %v2790_v14  ;;  %v12726_v4 = vpop.f32.mrf.mxu0  ;;  %13069 = vmatmul.mubr.msk.f32.gmra.mxu0 %vm390_vm1, %v20713_v27 }
 0x1d1   : > { %v12821_v12 = vpop.f32.mrf.mxu1  ;;  %13164 = vmatmul.mubr.msk.f32.gmra.mxu1 %vm390_vm1, %v20712_v57  ;;  %v2795_v42 = vadd.f32 %v12726_v4, %v15463_v33  ;;  %13071 = vmatprep.mubr.msk.f32.mxu0 %vm390_vm1, %v20715_v61  ;;  %v20718_v33 = vld [vmem:[#allocation146_spill] sm:$0xff]  ;;  %v20719_v57 = vld [vmem:[#allocation15_spill] sm:$0xff] }
 0x1d2   : > { %v15989_v26 = vadd.f32 %v12821_v12, %v2793_v34  ;;  %13166 = vmatprep.mubr.msk.f32.mxu1 %vm390_vm1, %v20714_v1  ;;  %v2619_v15 = vpop.f32.mrf.mxu0  ;;  %v20716_v34 = vld [vmem:[#allocation145_spill] sm:$0xff] }
 0x1d3   : > { %v3087_v14 = vpop.f32.mrf.mxu1  ;;  %v2794_v28 = vadd.f32 %v2619_v15, %v15475_v41  ;;  %v20721_v15 = vld [vmem:[#allocation16_spill] sm:$0xff] }
 0x1d4   : > { %v15998_v10 = vadd.f32 %v3087_v14, %v2792_v46  ;;  %v12729_v20 = vpop.f32.mrf.mxu0  ;;  %13072 = vmatmul.mubr.msk.f32.gmra.mxu0 %vm390_vm1, %v20717_v62 }
 0x1d5   : > { %v12824_v11 = vpop.f32.mrf.mxu1  ;;  %13167 = vmatmul.mubr.msk.f32.gmra.mxu1 %vm390_vm1, %v20716_v34  ;;  %v2797_v12 = vadd.f32 %v12729_v20, %v15479_v18  ;;  %13074 = vmatprep.mubr.msk.f32.mxu0 %vm390_vm1, %v20719_v57  ;;  %v20722_v18 = vld [vmem:[#allocation148_spill] sm:$0xff]  ;;  %v20723_v34 = vld [vmem:[#allocation17_spill] sm:$0xff] }
 0x1d6   : > { %v16003_v35 = vadd.f32 %v12824_v11, %v2795_v42  ;;  %13169 = vmatprep.mubr.msk.f32.mxu1 %vm390_vm1, %v20718_v33  ;;  %v2629_v4 = vpop.f32.mrf.mxu0  ;;  %v20720_v42 = vld [vmem:[#allocation147_spill] sm:$0xff] }
 0x1d7   : > { %v3097_v46 = vpop.f32.mrf.mxu1  ;;  %v2796_v27 = vadd.f32 %v2629_v4, %v15491_v31  ;;  %v20725_v4 = vld [vmem:[#allocation18_spill] sm:$0xff] }
 0x1d8   : > { %v16012_v41 = vadd.f32 %v3097_v46, %v2794_v28  ;;  %v12732_v61 = vpop.f32.mrf.mxu0  ;;  %13075 = vmatmul.mubr.msk.f32.gmra.mxu0 %vm390_vm1, %v20721_v15 }
 0x1d9   : > { %v12827_v1 = vpop.f32.mrf.mxu1  ;;  %13170 = vmatmul.mubr.msk.f32.gmra.mxu1 %vm390_vm1, %v20720_v42  ;;  %v2799_v11 = vadd.f32 %v12732_v61, %v15495_v21  ;;  %13077 = vmatprep.mubr.msk.f32.mxu0 %vm390_vm1, %v20723_v34  ;;  %v20726_v21 = vld [vmem:[#allocation150_spill] sm:$0xff]  ;;  %v20727_v42 = vld [vmem:[#allocation19_spill] sm:$0xff] }
 0x1da   : > { %v16017_v14 = vadd.f32 %v12827_v1, %v2797_v12  ;;  %13172 = vmatprep.mubr.msk.f32.mxu1 %vm390_vm1, %v20722_v18  ;;  %v2639_v20 = vpop.f32.mrf.mxu0  ;;  %v20724_v12 = vld [vmem:[#allocation149_spill] sm:$0xff] }
 0x1db   : > { %v3107_v28 = vpop.f32.mrf.mxu1  ;;  %v2798_v62 = vadd.f32 %v2639_v20, %v15507_v52  ;;  %v20729_v20 = vld [vmem:[#allocation20_spill] sm:$0xff] }
 0x1dc   : > { %v16026_v31 = vadd.f32 %v3107_v28, %v2796_v27  ;;  %v12735_v57 = vpop.f32.mrf.mxu0  ;;  %13078 = vmatmul.mubr.msk.f32.gmra.mxu0 %vm390_vm1, %v20725_v4 }
 0x1dd   : > { %v12830_v33 = vpop.f32.mrf.mxu1  ;;  %13173 = vmatmul.mubr.msk.f32.gmra.mxu1 %vm390_vm1, %v20724_v12  ;;  %v2801_v1 = vadd.f32 %v12735_v57, %v15511_v45  ;;  %13080 = vmatprep.mubr.msk.f32.mxu0 %vm390_vm1, %v20727_v42  ;;  %v20730_v45 = vld [vmem:[#allocation152_spill] sm:$0xff]  ;;  %v20731_v12 = vld [vmem:[#allocation21_spill] sm:$0xff] }
 0x1de   : > { %v16031_v46 = vadd.f32 %v12830_v33, %v2799_v11  ;;  %13175 = vmatprep.mubr.msk.f32.mxu1 %vm390_vm1, %v20726_v21  ;;  %v2649_v61 = vpop.f32.mrf.mxu0  ;;  %v20728_v11 = vld [vmem:[#allocation151_spill] sm:$0xff] }
 0x1df   : > { %v3117_v27 = vpop.f32.mrf.mxu1  ;;  %v2800_v15 = vadd.f32 %v2649_v61, %v15523_v0  ;;  %v20733_v61 = vld [vmem:[#allocation22_spill] sm:$0xff] }
 0x1e0   : > { %v16040_v52 = vadd.f32 %v3117_v27, %v2798_v62  ;;  %v12738_v34 = vpop.f32.mrf.mxu0  ;;  %13081 = vmatmul.mubr.msk.f32.gmra.mxu0 %vm390_vm1, %v20729_v20 }
 0x1e1   : > { %v12833_v18 = vpop.f32.mrf.mxu1  ;;  %13176 = vmatmul.mubr.msk.f32.gmra.mxu1 %vm390_vm1, %v20728_v11  ;;  %v2803_v33 = vadd.f32 %v12738_v34, %v15527_v51  ;;  %13083 = vmatprep.mubr.msk.f32.mxu0 %vm390_vm1, %v20731_v12  ;;  %v20734_v51 = vld [vmem:[#allocation154_spill] sm:$0xff]  ;;  %v20735_v11 = vld [vmem:[#allocation23_spill] sm:$0xff] }
 0x1e2   : > { %v16045_v28 = vadd.f32 %v12833_v18, %v2801_v1  ;;  %13178 = vmatprep.mubr.msk.f32.mxu1 %vm390_vm1, %v20730_v45  ;;  %v2659_v57 = vpop.f32.mrf.mxu0  ;;  %v20732_v1 = vld [vmem:[#allocation153_spill] sm:$0xff] }
 0x1e3   : > { %v3127_v62 = vpop.f32.mrf.mxu1  ;;  %v2802_v4 = vadd.f32 %v2659_v57, %v15539_v17  ;;  %v20737_v57 = vld [vmem:[#allocation24_spill] sm:$0xff] }
 0x1e4   : > { %v16054_v0 = vadd.f32 %v3127_v62, %v2800_v15  ;;  %v12741_v42 = vpop.f32.mrf.mxu0  ;;  %13084 = vmatmul.mubr.msk.f32.gmra.mxu0 %vm390_vm1, %v20733_v61 }
 0x1e5   : > { %v12836_v21 = vpop.f32.mrf.mxu1  ;;  %13179 = vmatmul.mubr.msk.f32.gmra.mxu1 %vm390_vm1, %v20732_v1  ;;  %v2805_v18 = vadd.f32 %v12741_v42, %v15543_v36  ;;  %13086 = vmatprep.mubr.msk.f32.mxu0 %vm390_vm1, %v20735_v11  ;;  %v20738_v36 = vld [vmem:[#allocation156_spill] sm:$0xff]  ;;  %v20739_v1 = vld [vmem:[#allocation25_spill] sm:$0xff] }
 0x1e6   : > { %v16059_v27 = vadd.f32 %v12836_v21, %v2803_v33  ;;  %13181 = vmatprep.mubr.msk.f32.mxu1 %vm390_vm1, %v20734_v51  ;;  %v2669_v34 = vpop.f32.mrf.mxu0  ;;  %v20736_v33 = vld [vmem:[#allocation155_spill] sm:$0xff] }
 0x1e7   : > { %v3137_v15 = vpop.f32.mrf.mxu1  ;;  %v2804_v20 = vadd.f32 %v2669_v34, %v15555_v29  ;;  %v20741_v34 = vld [vmem:[#allocation28_spill] sm:$0xff] }
 0x1e8   : > { %v16068_v17 = vadd.f32 %v3137_v15, %v2802_v4  ;;  %v12744_v12 = vpop.f32.mrf.mxu0  ;;  %13087 = vmatmul.mubr.msk.f32.gmra.mxu0 %vm390_vm1, %v20737_v57 }
 0x1e9   : > { %v12839_v45 = vpop.f32.mrf.mxu1  ;;  %13182 = vmatmul.mubr.msk.f32.gmra.mxu1 %vm390_vm1, %v20736_v33  ;;  %v2807_v21 = vadd.f32 %v12744_v12, %v15559_v40  ;;  %13089 = vmatprep.mubr.msk.f32.mxu0 %vm390_vm1, %v20739_v1  ;;  %v20742_v40 = vld [vmem:[#allocation158_spill] sm:$0xff]  ;;  %v20743_v33 = vld [vmem:[#allocation29_spill] sm:$0xff] }
 0x1ea   : > { %v16073_v62 = vadd.f32 %v12839_v45, %v2805_v18  ;;  %13184 = vmatprep.mubr.msk.f32.mxu1 %vm390_vm1, %v20738_v36  ;;  %v2679_v42 = vpop.f32.mrf.mxu0  ;;  %v20740_v18 = vld [vmem:[#allocation157_spill] sm:$0xff] }
 0x1eb   : > { %v3147_v4 = vpop.f32.mrf.mxu1  ;;  %v2806_v61 = vadd.f32 %v2679_v42, %v15571_v48  ;;  %v20745_v42 = vld [vmem:[#allocation32_spill] sm:$0xff] }
 0x1ec   : > { %v16082_v29 = vadd.f32 %v3147_v4, %v2804_v20  ;;  %v12747_v11 = vpop.f32.mrf.mxu0  ;;  %13090 = vmatmul.mubr.msk.f32.gmra.mxu0 %vm390_vm1, %v20741_v34 }
 0x1ed   : > { %v12842_v51 = vpop.f32.mrf.mxu1  ;;  %13185 = vmatmul.mubr.msk.f32.gmra.mxu1 %vm390_vm1, %v20740_v18  ;;  %v2809_v45 = vadd.f32 %v12747_v11, %v15575_v47  ;;  %13092 = vmatprep.mubr.msk.f32.mxu0 %vm390_vm1, %v20743_v33  ;;  %v20746_v47 = vld [vmem:[#allocation160_spill] sm:$0xff]  ;;  %v20747_v18 = vld [vmem:[#allocation33_spill] sm:$0xff] }
 0x1ee   : > { %v16087_v15 = vadd.f32 %v12842_v51, %v2807_v21  ;;  %13187 = vmatprep.mubr.msk.f32.mxu1 %vm390_vm1, %v20742_v40  ;;  %v2689_v12 = vpop.f32.mrf.mxu0  ;;  %v20744_v21 = vld [vmem:[#allocation159_spill] sm:$0xff] }
 0x1ef   : > { %v3157_v20 = vpop.f32.mrf.mxu1  ;;  %v2808_v57 = vadd.f32 %v2689_v12, %v15587_v8  ;;  %v20749_v12 = vld [vmem:[#allocation35_spill] sm:$0xff] }
 0x1f0   : > { %v16096_v48 = vadd.f32 %v3157_v20, %v2806_v61  ;;  %v12750_v1 = vpop.f32.mrf.mxu0  ;;  %13093 = vmatmul.mubr.msk.f32.gmra.mxu0 %vm390_vm1, %v20745_v42 }
 0x1f1   : > { %v12845_v36 = vpop.f32.mrf.mxu1  ;;  %13188 = vmatmul.mubr.msk.f32.gmra.mxu1 %vm390_vm1, %v20744_v21  ;;  %v2811_v51 = vadd.f32 %v12750_v1, %v15591_v2  ;;  %13095 = vmatprep.mubr.msk.f32.mxu0 %vm390_vm1, %v20747_v18  ;;  %v20750_v2 = vld [vmem:[#allocation162_spill] sm:$0xff]  ;;  %v20752_v1 = vld [vmem:[#allocation36_spill] sm:$0xff] }
 0x1f2   : > { %v16101_v4 = vadd.f32 %v12845_v36, %v2809_v45  ;;  %13190 = vmatprep.mubr.msk.f32.mxu1 %vm390_vm1, %v20746_v47  ;;  %v2699_v11 = vpop.f32.mrf.mxu0  ;;  %v20748_v45 = vld [vmem:[#allocation161_spill] sm:$0xff]  ;;  %v20751_v36 = vld [vmem:[#allocation163_spill] sm:$0xff]  ;;  %v20753_v47 = vld [vmem:[#allocation166_spill] sm:$0xff] }
 0x1f3   : > { %v3167_v61 = vpop.f32.mrf.mxu1  ;;  %v2810_v34 = vadd.f32 %v2699_v11, %v15603_v30  ;;  %v20754_v18 = vld [vmem:[#allocation164_spill] sm:$0xff]  ;;  %v678_v11 = vld [vmem:[#allocation2 + $0x220] sm:$0xff] }
 0x1f4   : > { %v16110_v8 = vadd.f32 %v3167_v61, %v2808_v57  ;;  %v12753_v33 = vpop.f32.mrf.mxu0  ;;  %13096 = vmatmul.mubr.msk.f32.gmra.mxu0 %vm390_vm1, %v20749_v12 }
 0x1f5   : > { %v12848_v40 = vpop.f32.mrf.mxu1  ;;  %13191 = vmatmul.mubr.msk.f32.gmra.mxu1 %vm390_vm1, %v20748_v45  ;;  %v2813_v21 = vadd.f32 %v12753_v33, %v20751_v36  ;;  %13098 = vmatprep.mubr.msk.f32.mxu0 %vm390_vm1, %v20752_v1  ;;  %v20755_v33 = vld [vmem:[#allocation39_spill] sm:$0xff]  ;;  %v20758_v1 = vld [vmem:[#allocation40_spill] sm:$0xff] }
 0x1f6   : > { %v16115_v20 = vadd.f32 %v12848_v40, %v2811_v51  ;;  %13193 = vmatprep.mubr.msk.f32.mxu1 %vm390_vm1, %v20750_v2  ;;  %v2709_v42 = vpop.f32.mrf.mxu0  ;;  %v16129_v40 = vld [vmem:[#allocation2 + $0x228] sm:$0xff]  ;;  %v20756_v2 = vld [vmem:[#allocation165_spill] sm:$0xff] }
 0x1f7   : > { %v3177_v57 = vpop.f32.mrf.mxu1  ;;  %v2812_v61 = vadd.f32 %v2709_v42, %v20753_v47 }
 0x1f8   : > { %v16124_v30 = vadd.f32 %v3177_v57, %v2810_v34  ;;  %v12756_v12 = vpop.f32.mrf.mxu0  ;;  %13099 = vmatmul.mubr.msk.f32.gmra.mxu0 %vm390_vm1, %v20755_v33  ;;  %v20757_v34 = vld [vmem:[#allocation167_spill] sm:$0xff] }
 0x1f9   : > { %v12851_v51 = vpop.f32.mrf.mxu1  ;;  %13194 = vmatmul.mubr.msk.f32.gmra.mxu1 %vm390_vm1, %v20754_v18  ;;  %v2815_v36 = vadd.f32 %v12756_v12, %v20757_v34  ;;  %13101 = vmatprep.mubr.msk.f32.mxu0 %vm390_vm1, %v20758_v1  ;;  %v4242_v18 = vrot.slane %v678_v11, 7  ;;  %v20760_v34 = vld [vmem:[#allocation41_spill] sm:$0xff]  ;;  %v20762_v1 = vld [vmem:[#allocation120_spill] sm:$0xff] }
 0x1fa   : > { %v16131_v45 = vadd.f32 %v12851_v51, %v2813_v21  ;;  %13196 = vmatprep.mubr.msk.f32.mxu1 %vm390_vm1, %v20756_v2  ;;  %v2719_v47 = vpop.f32.mrf.mxu0  ;;  %v4243_v21 = vrot.slane %v16129_v40, 7  ;;  %v16143_v51 = vld [vmem:[#allocation2 + $0x230] sm:$0xff] }
 0x1fb   : > { %v3187_v57 = vpop.f32.mrf.mxu1  ;;  %v2814_v19 = vadd.f32 %v2719_v47, %v15637_v50  ;;  %v4245_v50 = vrot.slane %v16143_v51, 7 }
 0x1fc   : > { %v16140_v42 = vadd.f32 %v3187_v57, %v2812_v61  ;;  %v12759_v12 = vpop.f32.mrf.mxu0  ;;  %13102 = vmatmul.mubr.msk.f32.gmra.mxu0 %vm390_vm1, %v20760_v34  ;;  %v20761_v61 = vld [vmem:[#allocation169_spill] sm:$0xff]  ;;  %v20763_v34 = vld [vmem:[#allocation170_spill] sm:$0xff] }
 0x1fd   : > { %v12854_v33 = vpop.f32.mrf.mxu1  ;;  %13197 = vmatmul.mubr.msk.f32.gmra.mxu1 %vm390_vm1, %v20759_v55  ;;  %v2817_v11 = vadd.f32 %v12759_v12, %v15641_v5  ;;  %13104 = vmatprep.mubr.msk.f32.mxu0 %vm390_vm1, %v20762_v1  ;;  %v20765_v12 = vld [vmem:[#allocation43_spill] sm:$0xff] }
 0x1fe   : > { %v16148_v2 = vadd.f32 %v12854_v33, %v2815_v36  ;;  %13199 = vmatprep.mubr.msk.f32.mxu1 %vm390_vm1, %v20761_v61  ;;  %v2729_v55 = vpop.f32.mrf.mxu0  ;;  %v4244_v36 = vsel %vm850_vm3, %v4242_v18, %v4243_v21  ;;  %v13631_v1 = vld [vmem:[#allocation2 + $0x208] sm:$0xff] }
 0x1ff   : > { %v3197_v57 = vpop.f32.mrf.mxu1  ;;  %v2816_v33 = vadd.f32 %v2729_v55, %v15654_v54  ;;  %v4246_v54 = vsel %vm850_vm3, %v4243_v21, %v4245_v50  ;;  %v20766_v50 = vld [vmem:[#allocation49_spill] sm:$0xff] }
 0x200   : > { %v16158_v47 = vadd.f32 %v3197_v57, %v2814_v19  ;;  %v12762_v5 = vpop.f32.mrf.mxu0  ;;  %13105 = vmatmul.mubr.msk.f32.gmra.mxu0 %vm390_vm1, %v20765_v12 }
 0x201   : > { %v12857_v13 = vpop.f32.mrf.mxu1  ;;  %13200 = vmatmul.mubr.msk.f32.gmra.mxu1 %vm390_vm1, %v20763_v34  ;;  %v2819_v19 = vadd.f32 %v12762_v5, %v15658_v24  ;;  %13107 = vmatprep.mubr.msk.f32.mxu0 %vm390_vm1, %v4244_v36  ;;  %v13632_v34 = vld [vmem:[#allocation2 + $0x210] sm:$0xff] }
 0x202   : > { %v16164_v61 = vadd.f32 %v12857_v13, %v2817_v11  ;;  %13202 = vmatprep.mubr.msk.f32.mxu1 %vm390_vm1, %v13631_v1  ;;  %v2739_v55 = vpop.f32.mrf.mxu0 }
 0x203   : > { %v3207_v57 = vpop.f32.mrf.mxu1  ;;  %v2818_v13 = vadd.f32 %v2739_v55, %v15668_v37  ;;  %v20769_v55 = vld [vmem:[#allocation53_spill] sm:$0xff] }
 0x204   : > { %20764 = vst [vmem:[#allocation7_spill] sm:$0xff] %v16164_v61  ;;  %v16172_v18 = vadd.f32 %v3207_v57, %v2816_v33  ;;  %v12765_v61 = vpop.f32.mrf.mxu0  ;;  %13108 = vmatmul.mubr.msk.f32.gmra.mxu0 %vm390_vm1, %v4246_v54  ;;  %v20767_v57 = vld [vmem:[#allocation52_spill] sm:$0xff] }
 0x205   : > { %v12860_v11 = vpop.f32.mrf.mxu1  ;;  %13203 = vmatmul.mubr.msk.f32.gmra.mxu1 %vm390_vm1, %v13632_v34  ;;  %v2821_v24 = vadd.f32 %v12765_v61, %v15672_v44  ;;  %13110 = vmatprep.mubr.msk.f32.mxu0 %vm390_vm1, %v20766_v50  ;;  %v20768_v44 = vld [vmem:[#allocation173_spill] sm:$0xff] }
 0x206   : > { %v16176_v12 = vadd.f32 %v12860_v11, %v2819_v19  ;;  %13205 = vmatprep.mubr.msk.f32.mxu1 %vm390_vm1, %v16129_v40  ;;  %v2749_v37 = vpop.f32.mrf.mxu0  ;;  %v20770_v11 = vld [vmem:[#allocation175_spill] sm:$0xff] }
 0x207   : > { %v3217_v21 = vpop.f32.mrf.mxu1  ;;  %v2820_v33 = vadd.f32 %v2749_v37, %v15682_v3 }
 0x208   : > { %v16184_v36 = vadd.f32 %v3217_v21, %v2818_v13  ;;  %v12868_v19 = vpop.f32.mrf.mxu0  ;;  %13111 = vmatmul.mubr.msk.f32.gmra.mxu0 %vm390_vm1, %v20767_v57  ;;  %v20771_v21 = vld [vmem:[#allocation174_spill] sm:$0xff] }
 0x209   : > { %v12863_v5 = vpop.f32.mrf.mxu1  ;;  %13206 = vmatmul.mubr.msk.f32.gmra.mxu1 %vm390_vm1, %v16143_v51  ;;  %v3699_v61 = vadd.f32 %v12868_v19, %v20768_v44  ;;  %13113 = vmatprep.mubr.msk.f32.mxu0 %vm390_vm1, %v20769_v55  ;;  %v20775_v19 = vld [vmem:[#allocation47_spill] sm:$0xff]  ;;  %v20776_v44 = vld [vmem:[#allocation57_spill] sm:$0xff] }
 0x20a   : > { %v16189_v1 = vadd.f32 %v12863_v5, %v2821_v24  ;;  %13208 = vmatprep.mubr.msk.f32.mxu1 %vm390_vm1, %v15678_v9  ;;  %v3379_v13 = vpop.f32.mrf.mxu0  ;;  %v20773_v5 = vld [vmem:[#allocation56_spill] sm:$0xff]  ;;  %v20774_v9 = vld [vmem:[#allocation46_spill] sm:$0xff] }
 0x20b   : > { %v3227_v54 = vpop.f32.mrf.mxu1  ;;  %v3698_v34 = vadd.f32 %v3379_v13, %v20770_v11  ;;  %v20778_v13 = vld [vmem:[#allocation177_spill] sm:$0xff] }
 0x20c   : > { %v16198_v3 = vadd.f32 %v3227_v54, %v2820_v33  ;;  %v12871_v37 = vpop.f32.mrf.mxu0  ;;  %13114 = vmatmul.mubr.msk.f32.gmra.mxu0 %vm390_vm1, %v20773_v5 }
 0x20d   : > { %v12966_v24 = vpop.f32.mrf.mxu1  ;;  %13209 = vmatmul.mubr.msk.f32.gmra.mxu1 %vm390_vm1, %v20771_v21  ;;  %v3701_v57 = vadd.f32 %v12871_v37, %v20775_v19  ;;  %13116 = vmatprep.mubr.msk.f32.mxu0 %vm390_vm1, %v20776_v44  ;;  %v20782_v37 = vld [vmem:[#allocation48_spill] sm:$0xff] }
 0x20e   : > { %v16203_v50 = vadd.f32 %v12966_v24, %v3699_v61  ;;  %13211 = vmatprep.mubr.msk.f32.mxu1 %vm390_vm1, %v20774_v9  ;;  %v3389_v55 = vpop.f32.mrf.mxu0  ;;  %v20779_v24 = vld [vmem:[#allocation176_spill] sm:$0xff]  ;;  %v20783_v9 = vld [vmem:[#allocation54_spill] sm:$0xff] }
 0x20f   : > { %v3853_v33 = vpop.f32.mrf.mxu1  ;;  %v3700_v11 = vadd.f32 %v3389_v55, %v20778_v13  ;;  %v20786_v13 = vld [vmem:[#allocation179_spill] sm:$0xff] }
 0x210   : > { %20772 = vst [vmem:[#allocation8_spill] sm:$0xff] %v16203_v50  ;;  %v16212_v54 = vadd.f32 %v3853_v33, %v3698_v34  ;;  %v12874_v5 = vpop.f32.mrf.mxu0  ;;  %v20781_v50 = vld [vmem:[#allocation60_spill] sm:$0xff]  ;;  %v20784_v33 = vld [vmem:[#allocation61_spill] sm:$0xff] }
 0x211   : > { %v12969_v61 = vpop.f32.mrf.mxu1  ;;  %13212 = vmatmul.mubr.msk.f32.gmra.mxu1 %vm390_vm1, %v20779_v24  ;;  %13117 = vmatmul.mubr.msk.f32.gmra.mxu0 %vm390_vm1, %v20781_v50  ;;  %v3703_v19 = vadd.f32 %v12874_v5, %v20783_v9  ;;  %v20790_v5 = vld [vmem:[#allocation58_spill] sm:$0xff] }
 0x212   : > { %20777 = vst [vmem:[#allocation9_spill] sm:$0xff] %v16212_v54  ;;  %v16217_v21 = vadd.f32 %v12969_v61, %v3701_v57  ;;  %13214 = vmatprep.mubr.msk.f32.mxu1 %vm390_vm1, %v20782_v37  ;;  %13119 = vmatprep.mubr.msk.f32.mxu0 %vm390_vm1, %v20784_v33  ;;  %v3399_v55 = vpop.f32.mrf.mxu0  ;;  %v20787_v61 = vld [vmem:[#allocation178_spill] sm:$0xff]  ;;  %v20789_v54 = vld [vmem:[#allocation64_spill] sm:$0xff] }
 0x213   : > { %v3863_v34 = vpop.f32.mrf.mxu1  ;;  %v3702_v24 = vadd.f32 %v3399_v55, %v20786_v13  ;;  %v20791_v37 = vld [vmem:[#allocation62_spill] sm:$0xff]  ;;  %v20794_v13 = vld [vmem:[#allocation181_spill] sm:$0xff] }
 0x214   : > { %20780 = vst [vmem:[#allocation142_spill] sm:$0xff] %v16217_v21  ;;  %v16226_v44 = vadd.f32 %v3863_v34, %v3700_v11  ;;  %v12877_v50 = vpop.f32.mrf.mxu0  ;;  %v20792_v34 = vld [vmem:[#allocation65_spill] sm:$0xff] }
 0x215   : > { %v12972_v57 = vpop.f32.mrf.mxu1  ;;  %13215 = vmatmul.mubr.msk.f32.gmra.mxu1 %vm390_vm1, %v20787_v61  ;;  %13120 = vmatmul.mubr.msk.f32.gmra.mxu0 %vm390_vm1, %v20789_v54  ;;  %v3705_v9 = vadd.f32 %v12877_v50, %v20791_v37  ;;  %v20798_v50 = vld [vmem:[#allocation63_spill] sm:$0xff] }
 0x216   : > { %20785 = vst [vmem:[#allocation10_spill] sm:$0xff] %v16226_v44  ;;  %v16231_v21 = vadd.f32 %v12972_v57, %v3703_v19  ;;  %13217 = vmatprep.mubr.msk.f32.mxu1 %vm390_vm1, %v20790_v5  ;;  %13122 = vmatprep.mubr.msk.f32.mxu0 %vm390_vm1, %v20792_v34  ;;  %v3409_v55 = vpop.f32.mrf.mxu0  ;;  %v20795_v57 = vld [vmem:[#allocation180_spill] sm:$0xff]  ;;  %v20799_v5 = vld [vmem:[#allocation122_spill] sm:$0xff] }
 0x217   : > { %v3873_v11 = vpop.f32.mrf.mxu1  ;;  %v3704_v61 = vadd.f32 %v3409_v55, %v20794_v13  ;;  %v20797_v44 = vld [vmem:[#allocation68_spill] sm:$0xff]  ;;  %v20802_v13 = vld [vmem:[#allocation183_spill] sm:$0xff] }
 0x218   : > { %20788 = vst [vmem:[#allocation11_spill] sm:$0xff] %v16231_v21  ;;  %v16240_v33 = vadd.f32 %v3873_v11, %v3702_v24  ;;  %v12880_v54 = vpop.f32.mrf.mxu0  ;;  %v20800_v11 = vld [vmem:[#allocation69_spill] sm:$0xff] }
 0x219   : > { %v12975_v19 = vpop.f32.mrf.mxu1  ;;  %13218 = vmatmul.mubr.msk.f32.gmra.mxu1 %vm390_vm1, %v20795_v57  ;;  %13123 = vmatmul.mubr.msk.f32.gmra.mxu0 %vm390_vm1, %v20797_v44  ;;  %v3707_v37 = vadd.f32 %v12880_v54, %v20799_v5  ;;  %v20806_v54 = vld [vmem:[#allocation67_spill] sm:$0xff] }
 0x21a   : > { %20793 = vst [vmem:[#allocation143_spill] sm:$0xff] %v16240_v33  ;;  %v16245_v21 = vadd.f32 %v12975_v19, %v3705_v9  ;;  %13220 = vmatprep.mubr.msk.f32.mxu1 %vm390_vm1, %v20798_v50  ;;  %13125 = vmatprep.mubr.msk.f32.mxu0 %vm390_vm1, %v20800_v11  ;;  %v3419_v55 = vpop.f32.mrf.mxu0  ;;  %v20803_v19 = vld [vmem:[#allocation182_spill] sm:$0xff]  ;;  %v20805_v33 = vld [vmem:[#allocation72_spill] sm:$0xff] }
 0x21b   : > { %v3883_v24 = vpop.f32.mrf.mxu1  ;;  %v3706_v57 = vadd.f32 %v3419_v55, %v20802_v13  ;;  %v20807_v50 = vld [vmem:[#allocation124_spill] sm:$0xff]  ;;  %v20810_v13 = vld [vmem:[#allocation185_spill] sm:$0xff] }
 0x21c   : > { %20796 = vst [vmem:[#allocation12_spill] sm:$0xff] %v16245_v21  ;;  %v16254_v34 = vadd.f32 %v3883_v24, %v3704_v61  ;;  %v12883_v44 = vpop.f32.mrf.mxu0  ;;  %v20808_v24 = vld [vmem:[#allocation73_spill] sm:$0xff] }
 0x21d   : > { %v12978_v9 = vpop.f32.mrf.mxu1  ;;  %13221 = vmatmul.mubr.msk.f32.gmra.mxu1 %vm390_vm1, %v20803_v19  ;;  %13126 = vmatmul.mubr.msk.f32.gmra.mxu0 %vm390_vm1, %v20805_v33  ;;  %v3709_v5 = vadd.f32 %v12883_v44, %v20807_v50  ;;  %v20814_v44 = vld [vmem:[#allocation71_spill] sm:$0xff] }
 0x21e   : > { %20801 = vst [vmem:[#allocation144_spill] sm:$0xff] %v16254_v34  ;;  %v16259_v21 = vadd.f32 %v12978_v9, %v3707_v37  ;;  %13223 = vmatprep.mubr.msk.f32.mxu1 %vm390_vm1, %v20806_v54  ;;  %13128 = vmatprep.mubr.msk.f32.mxu0 %vm390_vm1, %v20808_v24  ;;  %v3429_v55 = vpop.f32.mrf.mxu0  ;;  %v20811_v9 = vld [vmem:[#allocation184_spill] sm:$0xff]  ;;  %v20815_v54 = vld [vmem:[#allocation126_spill] sm:$0xff] }
 0x21f   : > { %v3893_v61 = vpop.f32.mrf.mxu1  ;;  %v3708_v19 = vadd.f32 %v3429_v55, %v20810_v13  ;;  %v20813_v34 = vld [vmem:[#allocation76_spill] sm:$0xff]  ;;  %v20817_v13 = vld [vmem:[#allocation187_spill] sm:$0xff] }
 0x220   : > { %20804 = vst [vmem:[#allocation13_spill] sm:$0xff] %v16259_v21  ;;  %v16268_v11 = vadd.f32 %v3893_v61, %v3706_v57  ;;  %v12886_v33 = vpop.f32.mrf.mxu0  ;;  %v20816_v61 = vld [vmem:[#allocation77_spill] sm:$0xff] }
 0x221   : > { %v12981_v37 = vpop.f32.mrf.mxu1  ;;  %13224 = vmatmul.mubr.msk.f32.gmra.mxu1 %vm390_vm1, %v20811_v9  ;;  %13129 = vmatmul.mubr.msk.f32.gmra.mxu0 %vm390_vm1, %v20813_v34  ;;  %v3711_v50 = vadd.f32 %v12886_v33, %v20815_v54  ;;  %v20821_v33 = vld [vmem:[#allocation75_spill] sm:$0xff] }
 0x222   : > { %20809 = vst [vmem:[#allocation145_spill] sm:$0xff] %v16268_v11  ;;  %v16273_v21 = vadd.f32 %v12981_v37, %v3709_v5  ;;  %13226 = vmatprep.mubr.msk.f32.mxu1 %vm390_vm1, %v20814_v44  ;;  %13131 = vmatprep.mubr.msk.f32.mxu0 %vm390_vm1, %v20816_v61  ;;  %v3439_v55 = vpop.f32.mrf.mxu0  ;;  %v20818_v37 = vld [vmem:[#allocation186_spill] sm:$0xff]  ;;  %v20820_v11 = vld [vmem:[#allocation80_spill] sm:$0xff] }
 0x223   : > { %v3903_v57 = vpop.f32.mrf.mxu1  ;;  %v3710_v9 = vadd.f32 %v3439_v55, %v20817_v13  ;;  %v20822_v44 = vld [vmem:[#allocation128_spill] sm:$0xff] }
 0x224   : > { %20812 = vst [vmem:[#allocation14_spill] sm:$0xff] %v16273_v21  ;;  %v16282_v24 = vadd.f32 %v3903_v57, %v3708_v19  ;;  %v12889_v34 = vpop.f32.mrf.mxu0  ;;  %v20823_v57 = vld [vmem:[#allocation81_spill] sm:$0xff] }
 0x225   : > { %v12984_v5 = vpop.f32.mrf.mxu1  ;;  %13227 = vmatmul.mubr.msk.f32.gmra.mxu1 %vm390_vm1, %v20818_v37  ;;  %13132 = vmatmul.mubr.msk.f32.gmra.mxu0 %vm390_vm1, %v20820_v11  ;;  %v3713_v54 = vadd.f32 %v12889_v34, %v20822_v44  ;;  %v20826_v34 = vld [vmem:[#allocation79_spill] sm:$0xff] }
 0x226   : > { %v16287_v21 = vadd.f32 %v12984_v5, %v3711_v50  ;;  %13229 = vmatprep.mubr.msk.f32.mxu1 %vm390_vm1, %v20821_v33  ;;  %13134 = vmatprep.mubr.msk.f32.mxu0 %vm390_vm1, %v20823_v57  ;;  %v3449_v55 = vpop.f32.mrf.mxu0  ;;  %v20824_v5 = vld [vmem:[#allocation188_spill] sm:$0xff]  ;;  %v20827_v33 = vld [vmem:[#allocation130_spill] sm:$0xff] }
 0x227   : > { %v3913_v19 = vpop.f32.mrf.mxu1  ;;  %v3712_v13 = vadd.f32 %v3449_v55, %v15826_v63 }
 0x228   : > { %20819 = vst [vmem:[#allocation146_spill] sm:$0xff] %v16287_v21  ;;  %v16296_v61 = vadd.f32 %v3913_v19, %v3710_v9  ;;  %v12892_v11 = vpop.f32.mrf.mxu0  ;;  %v20825_v21 = vld [vmem:[#allocation84_spill] sm:$0xff]  ;;  %v20828_v19 = vld [vmem:[#allocation85_spill] sm:$0xff] }
 0x229   : > { %v12987_v50 = vpop.f32.mrf.mxu1  ;;  %13230 = vmatmul.mubr.msk.f32.gmra.mxu1 %vm390_vm1, %v20824_v5  ;;  %13135 = vmatmul.mubr.msk.f32.gmra.mxu0 %vm390_vm1, %v20825_v21  ;;  %v3715_v44 = vadd.f32 %v12892_v11, %v20827_v33  ;;  %v20832_v11 = vld [vmem:[#allocation83_spill] sm:$0xff] }
 0x22a   : > { %v16301_v37 = vadd.f32 %v12987_v50, %v3713_v54  ;;  %13232 = vmatprep.mubr.msk.f32.mxu1 %vm390_vm1, %v20826_v34  ;;  %13137 = vmatprep.mubr.msk.f32.mxu0 %vm390_vm1, %v20828_v19  ;;  %v3459_v57 = vpop.f32.mrf.mxu0  ;;  %v20830_v50 = vld [vmem:[#allocation189_spill] sm:$0xff]  ;;  %v20831_v34 = vld [vmem:[#allocation88_spill] sm:$0xff] }
 0x22b   : > { %v3923_v9 = vpop.f32.mrf.mxu1  ;;  %v16313_v55 = vadd.f32 %v3459_v57, %v15844_v60  ;;  %v20836_v57 = vld [vmem:[#allocation190_spill] sm:$0xff] }
 0x22c   : > { %v16310_v63 = vadd.f32 %v3923_v9, %v3712_v13  ;;  %v12895_v5 = vpop.f32.mrf.mxu0  ;;  %v20834_v9 = vld [vmem:[#allocation89_spill] sm:$0xff] }
 0x22d   : > { %20829 = vst [vmem:[#allocation15_spill] sm:$0xff] %v16313_v55  ;;  %v12990_v54 = vpop.f32.mrf.mxu1  ;;  %13233 = vmatmul.mubr.msk.f32.gmra.mxu1 %vm390_vm1, %v20830_v50  ;;  %13138 = vmatmul.mubr.msk.f32.gmra.mxu0 %vm390_vm1, %v20831_v34  ;;  %v3717_v13 = vadd.f32 %v12895_v5, %v20832_v11  ;;  %v20837_v34 = vld [vmem:[#allocation91_spill] sm:$0xff]  ;;  %v20839_v5 = vld [vmem:[#allocation192_spill] sm:$0xff] }
 0x22e   : > { %v16317_v21 = vadd.f32 %v12990_v54, %v3715_v44  ;;  %13235 = vmatprep.mubr.msk.f32.mxu1 %vm390_vm1, %v15840_v16  ;;  %13140 = vmatprep.mubr.msk.f32.mxu0 %vm390_vm1, %v20834_v9  ;;  %v3469_v60 = vpop.f32.mrf.mxu0  ;;  %v20838_v16 = vld [vmem:[#allocation191_spill] sm:$0xff]  ;;  %v20857_v55 = vld [vmem:[#allocation196_spill] sm:$0xff] }
 0x22f   : > { %v16324_v33 = vpop.f32.mrf.mxu1  ;;  %v16329_v19 = vadd.f32 %v3469_v60, %v15862_v6 }
 0x230   : > { %20833 = vst [vmem:[#allocation147_spill] sm:$0xff] %v16324_v33  ;;  %v12898_v50 = vpop.f32.mrf.mxu0  ;;  %v20841_v33 = vld [vmem:[#allocation92_spill] sm:$0xff] }
 0x231   : > { %20835 = vst [vmem:[#allocation16_spill] sm:$0xff] %v16329_v19  ;;  %v12993_v44 = vpop.f32.mrf.mxu1  ;;  %13236 = vmatmul.mubr.msk.f32.gmra.mxu1 %vm390_vm1, %v20836_v57  ;;  %13141 = vmatmul.mubr.msk.f32.gmra.mxu0 %vm390_vm1, %v20837_v34  ;;  %v3719_v11 = vadd.f32 %v12898_v50, %v20839_v5  ;;  %v20844_v19 = vld [vmem:[#allocation93_spill] sm:$0xff] }
 0x232   : > { %v16333_v54 = vadd.f32 %v12993_v44, %v3717_v13  ;;  %13238 = vmatprep.mubr.msk.f32.mxu1 %vm390_vm1, %v20838_v16  ;;  %13143 = vmatprep.mubr.msk.f32.mxu0 %vm390_vm1, %v20841_v33  ;;  %v3479_v6 = vpop.f32.mrf.mxu0  ;;  %v20843_v44 = vld [vmem:[#allocation193_spill] sm:$0xff]  ;;  %v20846_v16 = vld [vmem:[#allocation194_spill] sm:$0xff] }
 0x233   : > { %v16340_v9 = vpop.f32.mrf.mxu1  ;;  %v16345_v60 = vadd.f32 %v3479_v6, %v15880_v56  ;;  %v20845_v50 = vld [vmem:[#allocation133_spill] sm:$0xff] }
 0x234   : > { %20840 = vst [vmem:[#allocation148_spill] sm:$0xff] %v16340_v9  ;;  %v12901_v34 = vpop.f32.mrf.mxu0  ;;  %v20848_v9 = vld [vmem:[#allocation94_spill] sm:$0xff] }
 0x235   : > { %20842 = vst [vmem:[#allocation17_spill] sm:$0xff] %v16345_v60  ;;  %v12996_v13 = vpop.f32.mrf.mxu1  ;;  %13239 = vmatmul.mubr.msk.f32.gmra.mxu1 %vm390_vm1, %v20843_v44  ;;  %13144 = vmatmul.mubr.msk.f32.gmra.mxu0 %vm390_vm1, %v20844_v19  ;;  %v3721_v5 = vadd.f32 %v12901_v34, %v20846_v16  ;;  %v750_v44 = vld [vmem:[#allocation2 + $0x460] sm:$0xff]  ;;  %v16365_v19 = vld [vmem:[#allocation2 + $0x468] sm:$0xff] }
 0x236   : > { %v16349_v57 = vadd.f32 %v12996_v13, %v3719_v11  ;;  %13241 = vmatprep.mubr.msk.f32.mxu1 %vm390_vm1, %v20845_v50  ;;  %13146 = vmatprep.mubr.msk.f32.mxu0 %vm390_vm1, %v20848_v9  ;;  %v3489_v56 = vpop.f32.mrf.mxu0  ;;  %v20850_v13 = vld [vmem:[#allocation195_spill] sm:$0xff]  ;;  %v20853_v9 = vld [vmem:[#allocation136_spill] sm:$0xff] }
 0x237   : > { %v16356_v33 = vpop.f32.mrf.mxu1  ;;  %v16361_v6 = vadd.f32 %v3489_v56, %v15898_v59  ;;  %v20852_v34 = vld [vmem:[#allocation95_spill] sm:$0xff]  ;;  %v20855_v56 = vld [vmem:[#allocation96_spill] sm:$0xff] }
 0x238   : > { %20847 = vst [vmem:[#allocation149_spill] sm:$0xff] %v16356_v33  ;;  %v12904_v50 = vpop.f32.mrf.mxu0  ;;  %v4248_v33 = vrot.slane %v16365_v19, 7 }
 0x239   : > { %20849 = vst [vmem:[#allocation18_spill] sm:$0xff] %v16361_v6  ;;  %v12999_v11 = vpop.f32.mrf.mxu1  ;;  %13242 = vmatmul.mubr.msk.f32.gmra.mxu1 %vm390_vm1, %v20850_v13  ;;  %13147 = vmatmul.mubr.msk.f32.gmra.mxu0 %vm390_vm1, %v20852_v34  ;;  %v3723_v16 = vadd.f32 %v12904_v50, %v20853_v9  ;;  %v4247_v6 = vrot.slane %v750_v44, 7  ;;  %v20858_v9 = vld [vmem:[#allocation97_spill] sm:$0xff] }
 0x23a   : > { %v16367_v60 = vadd.f32 %v12999_v11, %v3721_v5  ;;  %13244 = vmatprep.mubr.msk.f32.mxu1 %vm390_vm1, %v15894_v32  ;;  %13149 = vmatprep.mubr.msk.f32.mxu0 %vm390_vm1, %v20855_v56  ;;  %v3499_v13 = vpop.f32.mrf.mxu0  ;;  %v16379_v5 = vld [vmem:[#allocation2 + $0x470] sm:$0xff] }
 0x23b   : > { %v16374_v59 = vpop.f32.mrf.mxu1  ;;  %v16382_v11 = vadd.f32 %v3499_v13, %v15918_v25  ;;  %v20859_v56 = vld [vmem:[#allocation197_spill] sm:$0xff]  ;;  %v4250_v25 = vrot.slane %v16379_v5, 7 }
 0x23c   : > { %20851 = vst [vmem:[#allocation150_spill] sm:$0xff] %v16367_v60  ;;  %20854 = vst [vmem:[#allocation19_spill] sm:$0xff] %v16374_v59  ;;  %v12907_v50 = vpop.f32.mrf.mxu0  ;;  %v20861_v60 = vld [vmem:[#allocation140_spill] sm:$0xff] }
 0x23d   : > { %20856 = vst [vmem:[#allocation151_spill] sm:$0xff] %v16382_v11  ;;  %v13002_v34 = vpop.f32.mrf.mxu1  ;;  %13245 = vmatmul.mubr.msk.f32.gmra.mxu1 %vm390_vm1, %v20857_v55  ;;  %13150 = vmatmul.mubr.msk.f32.gmra.mxu0 %vm390_vm1, %v20858_v9  ;;  %v3725_v44 = vadd.f32 %v12907_v50, %v15923_v38  ;;  %v4249_v55 = vsel %vm850_vm3, %v4247_v6, %v4248_v33  ;;  %v20863_v50 = vld [vmem:[#allocation141_spill] sm:$0xff] }
 0x23e   : > { %v16386_v32 = vadd.f32 %v13002_v34, %v3723_v16  ;;  %13247 = vmatprep.mubr.msk.f32.mxu1 %vm390_vm1, %v20859_v56  ;;  %13152 = vmatprep.mubr.msk.f32.mxu0 %vm390_vm1, %v20861_v60  ;;  %v3509_v13 = vpop.f32.mrf.mxu0  ;;  %v13633_v56 = vld [vmem:[#allocation2 + $0x448] sm:$0xff] }
 0x23f   : > { %v16393_v59 = vpop.f32.mrf.mxu1  ;;  %v16400_v16 = vadd.f32 %v3509_v13, %v15937_v7  ;;  %v4251_v7 = vsel %vm850_vm3, %v4248_v33, %v4250_v25  ;;  %v13634_v13 = vld [vmem:[#allocation2 + $0x450] sm:$0xff]  ;;  %v20867_v33 = vld [vmem:[#allocation98_spill] sm:$0xff] }
 0x240   : > { %20860 = vst [vmem:[#allocation20_spill] sm:$0xff] %v16393_v59  ;;  %v12910_v38 = vpop.f32.mrf.mxu0 }
 0x241   : > { %20862 = vst [vmem:[#allocation152_spill] sm:$0xff] %v16400_v16  ;;  %v13005_v34 = vpop.f32.mrf.mxu1  ;;  %13248 = vmatmul.mubr.msk.f32.gmra.mxu1 %vm390_vm1, %v15925_v53  ;;  %13153 = vmatmul.mubr.msk.f32.gmra.mxu0 %vm390_vm1, %v20863_v50  ;;  %v3727_v60 = vadd.f32 %v12910_v38, %v15942_v22 }
 0x242   : > { %v16404_v9 = vadd.f32 %v13005_v34, %v3725_v44  ;;  %13250 = vmatprep.mubr.msk.f32.mxu1 %vm390_vm1, %v13633_v56  ;;  %13155 = vmatprep.mubr.msk.f32.mxu0 %vm390_vm1, %v4249_v55  ;;  %v3519_v6 = vpop.f32.mrf.mxu0 }
 0x243   : > { %v16410_v59 = vpop.f32.mrf.mxu1  ;;  %v16415_v53 = vadd.f32 %v3519_v6, %v15954_v58 }
 0x244   : > { %20864 = vst [vmem:[#allocation21_spill] sm:$0xff] %v16410_v59  ;;  %v12913_v50 = vpop.f32.mrf.mxu0  ;;  %v20905_v59 = vld [vmem:[#allocation119_spill] sm:$0xff] }
 0x245   : > { %20865 = vst [vmem:[#allocation153_spill] sm:$0xff] %v16415_v53  ;;  %v13008_v44 = vpop.f32.mrf.mxu1  ;;  %13251 = vmatmul.mubr.msk.f32.gmra.mxu1 %vm390_vm1, %v13634_v13  ;;  %13156 = vmatmul.mubr.msk.f32.gmra.mxu0 %vm390_vm1, %v4251_v7  ;;  %v3729_v22 = vadd.f32 %v12913_v50, %v15959_v49  ;;  %v20869_v7 = vld [vmem:[#allocation99_spill] sm:$0xff] }
 0x246   : > { %v16418_v34 = vadd.f32 %v13008_v44, %v3727_v60  ;;  %13253 = vmatprep.mubr.msk.f32.mxu1 %vm390_vm1, %v16365_v19  ;;  %13258 = vmatprep.mubr.msk.f32.mxu0 %vm390_vm1, %v20867_v33  ;;  %v3529_v58 = vpop.f32.mrf.mxu0  ;;  %v20871_v44 = vld [vmem:[#allocation100_spill] sm:$0xff] }
 0x247   : > { %v16424_v55 = vpop.f32.mrf.mxu1  ;;  %v16429_v25 = vadd.f32 %v3529_v58, %v15970_v43  ;;  %v20873_v58 = vld [vmem:[#allocation101_spill] sm:$0xff] }
 0x248   : > { %20866 = vst [vmem:[#allocation22_spill] sm:$0xff] %v16424_v55  ;;  %v12916_v60 = vpop.f32.mrf.mxu0 }
 0x249   : > { %20868 = vst [vmem:[#allocation154_spill] sm:$0xff] %v16429_v25  ;;  %v13011_v38 = vpop.f32.mrf.mxu1  ;;  %13254 = vmatmul.mubr.msk.f32.gmra.mxu1 %vm390_vm1, %v16379_v5  ;;  %13259 = vmatmul.mubr.msk.f32.vlgmr.msra.gmra.mxu0 %vm390_vm1, %v20869_v7  ;;  %v3731_v49 = vadd.f32 %v12916_v60, %v15975_v39  ;;  %v20875_v39 = vld [vmem:[#allocation102_spill] sm:$0xff] }
 0x24a   : > { %v16433_v56 = vadd.f32 %v13011_v38, %v3729_v22  ;;  %13261 = vmatprep.mubr.msk.f32.mxu0 %vm390_vm1, %v20871_v44  ;;  %v3539_v13 = vpop.f32.mrf.mxu0 }
 0x24b   : > { %v16438_v6 = vpop.f32.mrf.mxu1  ;;  %v16443_v43 = vadd.f32 %v3539_v13, %v15984_v23 }
 0x24c   : > { %20870 = vst [vmem:[#allocation23_spill] sm:$0xff] %v16438_v6  ;;  %v12919_v22 = vpop.f32.mrf.mxu0 }
 0x24d   : > { %20872 = vst [vmem:[#allocation155_spill] sm:$0xff] %v16443_v43  ;;  %v13014_v50 = vpop.f32.mrf.mxu1  ;;  %13262 = vmatmul.mubr.msk.f32.gmra.mxu0 %vm390_vm1, %v20873_v58  ;;  %v3733_v38 = vadd.f32 %v12919_v22, %v15989_v26  ;;  %v20879_v26 = vld [vmem:[#allocation104_spill] sm:$0xff] }
 0x24e   : > { %v16445_v33 = vadd.f32 %v13014_v50, %v3731_v49  ;;  %13264 = vmatprep.mubr.msk.f32.mxu0 %vm390_vm1, %v20875_v39  ;;  %v3549_v60 = vpop.f32.mrf.mxu0  ;;  %v20877_v50 = vld [vmem:[#allocation103_spill] sm:$0xff] }
 0x24f   : > { %v16450_v7 = vpop.f32.mrf.mxu1  ;;  %v16455_v44 = vadd.f32 %v3549_v60, %v15998_v10 }
 0x250   : > { %20874 = vst [vmem:[#allocation24_spill] sm:$0xff] %v16450_v7  ;;  %v12922_v49 = vpop.f32.mrf.mxu0 }
 0x251   : > { %20876 = vst [vmem:[#allocation156_spill] sm:$0xff] %v16455_v44  ;;  %v13017_v23 = vpop.f32.mrf.mxu1  ;;  %13265 = vmatmul.mubr.msk.f32.gmra.mxu0 %vm390_vm1, %v20877_v50  ;;  %v3735_v58 = vadd.f32 %v12922_v49, %v16003_v35  ;;  %v20883_v35 = vld [vmem:[#allocation106_spill] sm:$0xff] }
 0x252   : > { %v16457_v13 = vadd.f32 %v13017_v23, %v3733_v38  ;;  %13267 = vmatprep.mubr.msk.f32.mxu0 %vm390_vm1, %v20879_v26  ;;  %v3559_v22 = vpop.f32.mrf.mxu0  ;;  %v20881_v23 = vld [vmem:[#allocation105_spill] sm:$0xff] }
 0x253   : > { %v16462_v43 = vpop.f32.mrf.mxu1  ;;  %v16467_v39 = vadd.f32 %v3559_v22, %v16012_v41 }
 0x254   : > { %20878 = vst [vmem:[#allocation25_spill] sm:$0xff] %v16462_v43  ;;  %v12925_v38 = vpop.f32.mrf.mxu0 }
 0x255   : > { %20880 = vst [vmem:[#allocation157_spill] sm:$0xff] %v16467_v39  ;;  %v13020_v10 = vpop.f32.mrf.mxu1  ;;  %13268 = vmatmul.mubr.msk.f32.gmra.mxu0 %vm390_vm1, %v20881_v23  ;;  %v3737_v50 = vadd.f32 %v12925_v38, %v16017_v14  ;;  %v20887_v14 = vld [vmem:[#allocation108_spill] sm:$0xff] }
 0x256   : > { %v16469_v60 = vadd.f32 %v13020_v10, %v3735_v58  ;;  %13270 = vmatprep.mubr.msk.f32.mxu0 %vm390_vm1, %v20883_v35  ;;  %v3569_v49 = vpop.f32.mrf.mxu0  ;;  %v20885_v10 = vld [vmem:[#allocation107_spill] sm:$0xff] }
 0x257   : > { %v16474_v44 = vpop.f32.mrf.mxu1  ;;  %v16479_v26 = vadd.f32 %v3569_v49, %v16026_v31 }
 0x258   : > { %20882 = vst [vmem:[#allocation28_spill] sm:$0xff] %v16474_v44  ;;  %v12928_v58 = vpop.f32.mrf.mxu0 }
 0x259   : > { %20884 = vst [vmem:[#allocation158_spill] sm:$0xff] %v16479_v26  ;;  %v13023_v41 = vpop.f32.mrf.mxu1  ;;  %13271 = vmatmul.mubr.msk.f32.gmra.mxu0 %vm390_vm1, %v20885_v10  ;;  %v3739_v23 = vadd.f32 %v12928_v58, %v16031_v46  ;;  %v20889_v46 = vld [vmem:[#allocation110_spill] sm:$0xff] }
 0x25a   : > { %v16481_v22 = vadd.f32 %v13023_v41, %v3737_v50  ;;  %13273 = vmatprep.mubr.msk.f32.mxu0 %vm390_vm1, %v20887_v14  ;;  %v3579_v38 = vpop.f32.mrf.mxu0  ;;  %v20888_v41 = vld [vmem:[#allocation109_spill] sm:$0xff] }
 0x25b   : > { %v16486_v39 = vpop.f32.mrf.mxu1  ;;  %v16491_v35 = vadd.f32 %v3579_v38, %v16040_v52 }
 0x25c   : > { %20886 = vst [vmem:[#allocation29_spill] sm:$0xff] %v16486_v39  ;;  %v12931_v50 = vpop.f32.mrf.mxu0 }
 0x25d   : > { %v13026_v31 = vpop.f32.mrf.mxu1  ;;  %13274 = vmatmul.mubr.msk.f32.gmra.mxu0 %vm390_vm1, %v20888_v41  ;;  %v3741_v10 = vadd.f32 %v12931_v50, %v16045_v28  ;;  %v20891_v28 = vld [vmem:[#allocation112_spill] sm:$0xff] }
 0x25e   : > { %v16493_v49 = vadd.f32 %v13026_v31, %v3739_v23  ;;  %13276 = vmatprep.mubr.msk.f32.mxu0 %vm390_vm1, %v20889_v46  ;;  %v3589_v58 = vpop.f32.mrf.mxu0  ;;  %v20890_v31 = vld [vmem:[#allocation111_spill] sm:$0xff] }
 0x25f   : > { %v16498_v26 = vpop.f32.mrf.mxu1  ;;  %v16503_v14 = vadd.f32 %v3589_v58, %v16054_v0 }
 0x260   : > { %v12934_v23 = vpop.f32.mrf.mxu0 }
 0x261   : > { %v13029_v52 = vpop.f32.mrf.mxu1  ;;  %13277 = vmatmul.mubr.msk.f32.gmra.mxu0 %vm390_vm1, %v20890_v31  ;;  %v3743_v41 = vadd.f32 %v12934_v23, %v16059_v27  ;;  %v20893_v27 = vld [vmem:[#allocation114_spill] sm:$0xff] }
 0x262   : > { %v16505_v38 = vadd.f32 %v13029_v52, %v3741_v10  ;;  %13279 = vmatprep.mubr.msk.f32.mxu0 %vm390_vm1, %v20891_v28  ;;  %v3599_v50 = vpop.f32.mrf.mxu0  ;;  %v20892_v52 = vld [vmem:[#allocation113_spill] sm:$0xff] }
 0x263   : > { %v16510_v39 = vpop.f32.mrf.mxu1  ;;  %v16515_v46 = vadd.f32 %v3599_v50, %v16068_v17 }
 0x264   : > { %v12937_v10 = vpop.f32.mrf.mxu0 }
 0x265   : > { %v13032_v0 = vpop.f32.mrf.mxu1  ;;  %13280 = vmatmul.mubr.msk.f32.gmra.mxu0 %vm390_vm1, %v20892_v52  ;;  %v3745_v31 = vadd.f32 %v12937_v10, %v16073_v62  ;;  %v20895_v62 = vld [vmem:[#allocation116_spill] sm:$0xff] }
 0x266   : > { %v16517_v58 = vadd.f32 %v13032_v0, %v3743_v41  ;;  %13282 = vmatprep.mubr.msk.f32.mxu0 %vm390_vm1, %v20893_v27  ;;  %v3609_v23 = vpop.f32.mrf.mxu0  ;;  %v20894_v0 = vld [vmem:[#allocation115_spill] sm:$0xff] }
 0x267   : > { %v16522_v44 = vpop.f32.mrf.mxu1  ;;  %v16527_v28 = vadd.f32 %v3609_v23, %v16082_v29 }
 0x268   : > { %v12940_v41 = vpop.f32.mrf.mxu0 }
 0x269   : > { %v13035_v17 = vpop.f32.mrf.mxu1  ;;  %13283 = vmatmul.mubr.msk.f32.gmra.mxu0 %vm390_vm1, %v20894_v0  ;;  %v3747_v52 = vadd.f32 %v12940_v41, %v16087_v15  ;;  %v20897_v15 = vld [vmem:[#allocation117_spill] sm:$0xff] }
 0x26a   : > { %v16529_v50 = vadd.f32 %v13035_v17, %v3745_v31  ;;  %13285 = vmatprep.mubr.msk.f32.mxu0 %vm390_vm1, %v20895_v62  ;;  %v3619_v10 = vpop.f32.mrf.mxu0  ;;  %v20896_v17 = vld [vmem:[#allocation26_spill] sm:$0xff] }
 0x26b   : > { %v16534_v43 = vpop.f32.mrf.mxu1  ;;  %v16539_v27 = vadd.f32 %v3619_v10, %v16096_v48 }
 0x26c   : > { %v12943_v31 = vpop.f32.mrf.mxu0 }
 0x26d   : > { %v13038_v29 = vpop.f32.mrf.mxu1  ;;  %13286 = vmatmul.mubr.msk.f32.gmra.mxu0 %vm390_vm1, %v20896_v17  ;;  %v3749_v0 = vadd.f32 %v12943_v31, %v16101_v4  ;;  %v20899_v4 = vld [vmem:[#allocation30_spill] sm:$0xff] }
 0x26e   : > { %v16541_v23 = vadd.f32 %v13038_v29, %v3747_v52  ;;  %13288 = vmatprep.mubr.msk.f32.mxu0 %vm390_vm1, %v20897_v15  ;;  %v3629_v41 = vpop.f32.mrf.mxu0  ;;  %v20898_v29 = vld [vmem:[#allocation27_spill] sm:$0xff] }
 0x26f   : > { %v16546_v7 = vpop.f32.mrf.mxu1  ;;  %v16551_v62 = vadd.f32 %v3629_v41, %v16110_v8 }
 0x270   : > { %v12946_v52 = vpop.f32.mrf.mxu0 }
 0x271   : > { %v13041_v48 = vpop.f32.mrf.mxu1  ;;  %13289 = vmatmul.mubr.msk.f32.gmra.mxu0 %vm390_vm1, %v20898_v29  ;;  %v3751_v17 = vadd.f32 %v12946_v52, %v16115_v20  ;;  %v20901_v20 = vld [vmem:[#allocation34_spill] sm:$0xff] }
 0x272   : > { %v16553_v10 = vadd.f32 %v13041_v48, %v3749_v0  ;;  %13291 = vmatprep.mubr.msk.f32.mxu0 %vm390_vm1, %v20899_v4  ;;  %v3639_v31 = vpop.f32.mrf.mxu0  ;;  %v20900_v48 = vld [vmem:[#allocation31_spill] sm:$0xff] }
 0x273   : > { %v16558_v6 = vpop.f32.mrf.mxu1  ;;  %v16563_v15 = vadd.f32 %v3639_v31, %v16124_v30 }
 0x274   : > { %v12949_v0 = vpop.f32.mrf.mxu0 }
 0x275   : > { %v13044_v8 = vpop.f32.mrf.mxu1  ;;  %13292 = vmatmul.mubr.msk.f32.gmra.mxu0 %vm390_vm1, %v20900_v48  ;;  %v3753_v29 = vadd.f32 %v12949_v0, %v16131_v45  ;;  %v20903_v45 = vld [vmem:[#allocation118_spill] sm:$0xff] }
 0x276   : > { %v16565_v41 = vadd.f32 %v13044_v8, %v3751_v17  ;;  %13294 = vmatprep.mubr.msk.f32.mxu0 %vm390_vm1, %v20901_v20  ;;  %v3649_v52 = vpop.f32.mrf.mxu0  ;;  %v20902_v8 = vld [vmem:[#allocation37_spill] sm:$0xff]  ;;  %v5178_v20 = vrot.slane %v16129_v40, 1 }
 0x277   : > { %v16570_v25 = vpop.f32.mrf.mxu1  ;;  %v16575_v4 = vadd.f32 %v3649_v52, %v16140_v42  ;;  %v5179_v42 = vrot.slane %v16143_v51, 1  ;;  %v681_v52 = vld [vmem:[#allocation2 + $0x238] sm:$0xff] }
 0x278   : > { %v12952_v17 = vpop.f32.mrf.mxu0  ;;  %v5181_v40 = vrot.slane %v681_v52, 1 }
 0x279   : > { %v13047_v30 = vpop.f32.mrf.mxu1  ;;  %13295 = vmatmul.mubr.msk.f32.gmra.mxu0 %vm390_vm1, %v20902_v8  ;;  %v3755_v48 = vadd.f32 %v12952_v17, %v16148_v2  ;;  %v20906_v2 = vld [vmem:[#allocation7_spill] sm:$0xff]  ;;  %v5180_v11 = vsel %vm2079_vm4, %v5178_v20, %v5179_v42 }
 0x27a   : > { %v16577_v31 = vadd.f32 %v13047_v30, %v3753_v29  ;;  %13297 = vmatprep.mubr.msk.f32.mxu0 %vm390_vm1, %v20903_v45  ;;  %v3659_v0 = vpop.f32.mrf.mxu0  ;;  %v20907_v45 = vld [vmem:[#allocation171_spill] sm:$0xff]  ;;  %v5182_v52 = vsel %vm2079_vm4, %v5179_v42, %v5181_v40 }
 0x27b   : > { %v16582_v55 = vpop.f32.mrf.mxu1  ;;  %v16589_v29 = vadd.f32 %v3659_v0, %v16158_v47 }
 0x27c   : > { %v12955_v8 = vpop.f32.mrf.mxu0 }
 0x27d   : > { %v13050_v30 = vpop.f32.mrf.mxu1  ;;  %13298 = vmatmul.mubr.msk.f32.gmra.mxu0 %vm390_vm1, %v20905_v59  ;;  %v3757_v17 = vadd.f32 %v12955_v8, %v20906_v2 }
 0x27e   : > { %v16591_v53 = vadd.f32 %v13050_v30, %v3755_v48  ;;  %13300 = vmatprep.mubr.msk.f32.mxu0 %vm390_vm1, %v20907_v45  ;;  %v3669_v51 = vpop.f32.mrf.mxu0 }
 0x27f   : > { %v16596_v16 = vpop.f32.mrf.mxu1  ;;  %v16602_v47 = vadd.f32 %v3669_v51, %v16172_v18 }
 0x280   : > { %20904 = vst [vmem:[#allocation159_spill] sm:$0xff] %v16591_v53  ;;  %v12958_v30 = vpop.f32.mrf.mxu0  ;;  %v20909_v53 = vld [vmem:[#allocation172_spill] sm:$0xff] }
 0x281   : > { %v13053_v48 = vpop.f32.mrf.mxu1  ;;  %13301 = vmatmul.mubr.msk.f32.gmra.mxu0 %vm390_vm1, %v20909_v53  ;;  %v3759_v59 = vadd.f32 %v12958_v30, %v16176_v12  ;;  %v20911_v12 = vld [vmem:[#allocation42_spill] sm:$0xff] }
 0x282   : > { %v16604_v0 = vadd.f32 %v13053_v48, %v3757_v17  ;;  %13303 = vmatprep.mubr.msk.f32.mxu0 %vm390_vm1, %v5180_v11  ;;  %v3679_v2 = vpop.f32.mrf.mxu0  ;;  %v20913_v30 = vld [vmem:[#allocation38_spill] sm:$0xff] }
 0x283   : > { %v16609_v8 = vpop.f32.mrf.mxu1  ;;  %v16614_v20 = vadd.f32 %v3679_v2, %v16184_v36  ;;  %v20915_v2 = vld [vmem:[#allocation44_spill] sm:$0xff] }
 0x284   : > { %20908 = vst [vmem:[#allocation32_spill] sm:$0xff] %v16604_v0  ;;  %v12961_v17 = vpop.f32.mrf.mxu0  ;;  %v20927_v0 = vld [vmem:[#allocation51_spill] sm:$0xff] }
 0x285   : > { %v13056_v18 = vpop.f32.mrf.mxu1  ;;  %13304 = vmatmul.mubr.msk.f32.gmra.mxu0 %vm390_vm1, %v5182_v52  ;;  %v3761_v53 = vadd.f32 %v12961_v17, %v16189_v1  ;;  %v20916_v17 = vmov 0.0  }
 0x286   : > { %v16616_v45 = vadd.f32 %v13056_v18, %v3759_v59  ;;  %13306 = vmatprep.mubr.msk.f32.mxu0 %vm390_vm1, %v20911_v12  ;;  %v3689_v11 = vpop.f32.mrf.mxu0  ;;  %v20914_v59 = vld [vmem:[#allocation8_spill] sm:$0xff]  ;;  %7611 = vst.msk [vmem:[#allocation3] sm:$0xff] %vm5651_vm5, %v20916_v17  ;;  %7612 = vst.msk [vmem:[#allocation3 + $0x8] sm:$0xff] %vm5651_vm5, %v20916_v17 }
 0x287   : > { %v16620_v51 = vpop.f32.mrf.mxu1  ;;  %v16625_v42 = vadd.f32 %v3689_v11, %v16198_v3  ;;  %7613 = vst.msk [vmem:[#allocation3 + $0x10] sm:$0xff] %vm5651_vm5, %v20916_v17  ;;  %7614 = vst.msk [vmem:[#allocation3 + $0xf0] sm:$0xff] %vm5651_vm5, %v20916_v17  ;;  %v20917_v3 = vld [vmem:[#allocation9_spill] sm:$0xff] }
 0x288   : > { %20910 = vst [vmem:[#allocation160_spill] sm:$0xff] %v16616_v45  ;;  %v13064_v48 = vpop.f32.mrf.mxu0  ;;  %7615 = vst.msk [vmem:[#allocation3 + $0xf8] sm:$0xff] %vm5651_vm5, %v20916_v17  ;;  %v20924_v45 = vld [vmem:[#allocation10_spill] sm:$0xff] }
 0x289   : > { %v13059_v40 = vpop.f32.mrf.mxu1  ;;  %13307 = vmatmul.mubr.msk.f32.gmra.mxu0 %vm390_vm1, %v20913_v30  ;;  %v16632_v52 = vadd.f32 %v13064_v48, %v20914_v59  ;;  %7616 = vst.msk [vmem:[#allocation3 + $0x100] sm:$0xff] %vm5651_vm5, %v20916_v17  ;;  %7618 = vst.msk [vmem:[#allocation3 + $0xd8] sm:$0xff] %vm5651_vm5, %v20916_v17  ;;  %v20920_v48 = vld [vmem:[#allocation142_spill] sm:$0xff] }
 0x28a   : > { %v16627_v36 = vadd.f32 %v13059_v40, %v3761_v53  ;;  %13309 = vmatprep.mubr.msk.f32.mxu0 %vm390_vm1, %v20915_v2  ;;  %v4331_v18 = vpop.f32.mrf.mxu0  ;;  %7619 = vst.msk [vmem:[#allocation3 + $0xe0] sm:$0xff] %vm5651_vm5, %v20916_v17  ;;  %7620 = vst.msk [vmem:[#allocation3 + $0xe8] sm:$0xff] %vm5651_vm5, %v20916_v17  ;;  %v20919_v40 = vld [vmem:[#allocation45_spill] sm:$0xff]  ;;  %v20923_v2 = vld [vmem:[#allocation50_spill] sm:$0xff] }
 0x28b   : > { %v16634_v1 = vpop.f32.mrf.mxu1  ;;  %7621 = vst.msk [vmem:[#allocation3 + $0x1c8] sm:$0xff] %vm5651_vm5, %v20916_v17  ;;  %7622 = vst.msk [vmem:[#allocation3 + $0x1d0] sm:$0xff] %vm5651_vm5, %v20916_v17  ;;  %v16663_v53 = vadd.f32 %v4331_v18, %v20917_v3 }
 0x28c   : > { %20912 = vst [vmem:[#allocation33_spill] sm:$0xff] %v16627_v36  ;;  %7623 = vst.msk [vmem:[#allocation3 + $0x1d8] sm:$0xff] %vm5651_vm5, %v20916_v17  ;;  %v13067_v11 = vpop.f32.mrf.mxu0 }
 0x28d   : > { %20918 = vst [vmem:[#allocation161_spill] sm:$0xff] %v16663_v53  ;;  %v16665_v12 = vpop.f32.mrf.mxu1  ;;  %13310 = vmatmul.mubr.msk.f32.gmra.mxu0 %vm390_vm1, %v20919_v40  ;;  %v16670_v30 = vadd.f32 %v13067_v11, %v20920_v48  ;;  %v20928_v53 = vld [vmem:[#allocation11_spill] sm:$0xff] }
 0x28e   : > { %13312 = vmatprep.mubr.msk.f32.mxu0 %vm390_vm1, %v20923_v2  ;;  %v4341_v36 = vpop.f32.mrf.mxu0  ;;  %v20931_v48 = vld [vmem:[#allocation55_spill] sm:$0xff] }
 0x28f   : > { %20921 = vst [vmem:[#allocation35_spill] sm:$0xff] %v16670_v30  ;;  %v16672_v59 = vpop.f32.mrf.mxu1  ;;  %v16677_v17 = vadd.f32 %v4341_v36, %v20924_v45  ;;  %v20932_v2 = vld [vmem:[#allocation143_spill] sm:$0xff] }
 0x290   : > { %20922 = vst [vmem:[#allocation162_spill] sm:$0xff] %v16672_v59  ;;  %v13070_v3 = vpop.f32.mrf.mxu0 }
 0x291   : > { %20925 = vst [vmem:[#allocation163_spill] sm:$0xff] %v16677_v17  ;;  %v16679_v18 = vpop.f32.mrf.mxu1  ;;  %13313 = vmatmul.mubr.msk.f32.gmra.mxu0 %vm390_vm1, %v20927_v0  ;;  %v16684_v40 = vadd.f32 %v13070_v3, %v20928_v53  ;;  %v20935_v17 = vld [vmem:[#allocation59_spill] sm:$0xff]  ;;  %v20939_v3 = vld [vmem:[#allocation121_spill] sm:$0xff] }
 0x292   : > { %20926 = vst [vmem:[#allocation36_spill] sm:$0xff] %v16679_v18  ;;  %13315 = vmatprep.mubr.msk.f32.mxu0 %vm390_vm1, %v20931_v48  ;;  %v4351_v30 = vpop.f32.mrf.mxu0  ;;  %v20936_v18 = vld [vmem:[#allocation12_spill] sm:$0xff] }
 0x293   : > { %20929 = vst [vmem:[#allocation166_spill] sm:$0xff] %v16684_v40  ;;  %v16686_v11 = vpop.f32.mrf.mxu1  ;;  %v16691_v59 = vadd.f32 %v4351_v30, %v20932_v2  ;;  %v20940_v48 = vld [vmem:[#allocation144_spill] sm:$0xff] }
 0x294   : > { %20930 = vst [vmem:[#allocation164_spill] sm:$0xff] %v16686_v11  ;;  %v13073_v36 = vpop.f32.mrf.mxu0 }
 0x295   : > { %20933 = vst [vmem:[#allocation39_spill] sm:$0xff] %v16691_v59  ;;  %v16693_v45 = vpop.f32.mrf.mxu1  ;;  %13316 = vmatmul.mubr.msk.f32.gmra.mxu0 %vm390_vm1, %v20935_v17  ;;  %v16698_v0 = vadd.f32 %v13073_v36, %v20936_v18  ;;  %v20943_v59 = vld [vmem:[#allocation66_spill] sm:$0xff]  ;;  %v20946_v36 = vld [vmem:[#allocation123_spill] sm:$0xff] }
 0x296   : > { %20934 = vst [vmem:[#allocation165_spill] sm:$0xff] %v16693_v45  ;;  %13318 = vmatprep.mubr.msk.f32.mxu0 %vm390_vm1, %v20939_v3  ;;  %v4361_v40 = vpop.f32.mrf.mxu0  ;;  %v20944_v45 = vld [vmem:[#allocation13_spill] sm:$0xff] }
 0x297   : > { %20937 = vst [vmem:[#allocation167_spill] sm:$0xff] %v16698_v0  ;;  %v16700_v53 = vpop.f32.mrf.mxu1  ;;  %v16705_v11 = vadd.f32 %v4361_v40, %v20940_v48  ;;  %v20947_v3 = vld [vmem:[#allocation145_spill] sm:$0xff] }
 0x298   : > { %20938 = vst [vmem:[#allocation40_spill] sm:$0xff] %v16700_v53  ;;  %v13076_v2 = vpop.f32.mrf.mxu0 }
 0x299   : > { %20941 = vst [vmem:[#allocation168_spill] sm:$0xff] %v16705_v11  ;;  %v16707_v30 = vpop.f32.mrf.mxu1  ;;  %13319 = vmatmul.mubr.msk.f32.gmra.mxu0 %vm390_vm1, %v20943_v59  ;;  %v16712_v17 = vadd.f32 %v13076_v2, %v20944_v45  ;;  %v20950_v11 = vld [vmem:[#allocation70_spill] sm:$0xff]  ;;  %v20953_v2 = vld [vmem:[#allocation125_spill] sm:$0xff] }
 0x29a   : > { %20942 = vst [vmem:[#allocation41_spill] sm:$0xff] %v16707_v30  ;;  %13321 = vmatprep.mubr.msk.f32.mxu0 %vm390_vm1, %v20946_v36  ;;  %v4371_v0 = vpop.f32.mrf.mxu0  ;;  %v20951_v30 = vld [vmem:[#allocation14_spill] sm:$0xff] }
 0x29b   : > { %20945 = vst [vmem:[#allocation169_spill] sm:$0xff] %v16712_v17  ;;  %v16714_v18 = vpop.f32.mrf.mxu1  ;;  %v16719_v53 = vadd.f32 %v4371_v0, %v20947_v3 }
 0x29c   : > { %v13079_v48 = vpop.f32.mrf.mxu0 }
 0x29d   : > { %20948 = vst [vmem:[#allocation120_spill] sm:$0xff] %v16719_v53  ;;  %v16721_v40 = vpop.f32.mrf.mxu1  ;;  %13322 = vmatmul.mubr.msk.f32.gmra.mxu0 %vm390_vm1, %v20950_v11  ;;  %v16726_v59 = vadd.f32 %v13079_v48, %v20951_v30  ;;  %v20955_v53 = vld [vmem:[#allocation74_spill] sm:$0xff]  ;;  %v20958_v48 = vld [vmem:[#allocation127_spill] sm:$0xff] }
 0x29e   : > { %20949 = vst [vmem:[#allocation170_spill] sm:$0xff] %v16721_v40  ;;  %13324 = vmatprep.mubr.msk.f32.mxu0 %vm390_vm1, %v20953_v2  ;;  %v4381_v17 = vpop.f32.mrf.mxu0  ;;  %v20956_v40 = vld [vmem:[#allocation146_spill] sm:$0xff] }
 0x29f   : > { %20952 = vst [vmem:[#allocation43_spill] sm:$0xff] %v16726_v59  ;;  %v16728_v45 = vpop.f32.mrf.mxu1  ;;  %v16733_v36 = vadd.f32 %v4381_v17, %v16282_v24 }
 0x2a0   : > { %v13082_v3 = vpop.f32.mrf.mxu0 }
 0x2a1   : > { %20954 = vst [vmem:[#allocation49_spill] sm:$0xff] %v16733_v36  ;;  %v16735_v0 = vpop.f32.mrf.mxu1  ;;  %13325 = vmatmul.mubr.msk.f32.gmra.mxu0 %vm390_vm1, %v20955_v53  ;;  %v16740_v11 = vadd.f32 %v13082_v3, %v20956_v40  ;;  %v20960_v36 = vld [vmem:[#allocation78_spill] sm:$0xff]  ;;  %v20962_v3 = vld [vmem:[#allocation129_spill] sm:$0xff] }
 0x2a2   : > { %13327 = vmatprep.mubr.msk.f32.mxu0 %vm390_vm1, %v20958_v48  ;;  %v4391_v59 = vpop.f32.mrf.mxu0 }
 0x2a3   : > { %20957 = vst [vmem:[#allocation52_spill] sm:$0xff] %v16740_v11  ;;  %v16742_v30 = vpop.f32.mrf.mxu1  ;;  %v16747_v2 = vadd.f32 %v4391_v59, %v16296_v61 }
 0x2a4   : > { %v13085_v17 = vpop.f32.mrf.mxu0 }
 0x2a5   : > { %20959 = vst [vmem:[#allocation173_spill] sm:$0xff] %v16747_v2  ;;  %v16749_v24 = vpop.f32.mrf.mxu1  ;;  %13328 = vmatmul.mubr.msk.f32.gmra.mxu0 %vm390_vm1, %v20960_v36  ;;  %v16754_v53 = vadd.f32 %v13085_v17, %v16301_v37  ;;  %v20965_v2 = vld [vmem:[#allocation82_spill] sm:$0xff]  ;;  %v20968_v17 = vld [vmem:[#allocation131_spill] sm:$0xff] }
 0x2a6   : > { %13330 = vmatprep.mubr.msk.f32.mxu0 %vm390_vm1, %v20962_v3  ;;  %v4401_v11 = vpop.f32.mrf.mxu0 }
 0x2a7   : > { %20961 = vst [vmem:[#allocation53_spill] sm:$0xff] %v16754_v53  ;;  %v16756_v40 = vpop.f32.mrf.mxu1  ;;  %v16761_v48 = vadd.f32 %v4401_v11, %v16310_v63  ;;  %v20970_v11 = vld [vmem:[#allocation86_spill] sm:$0xff] }
 0x2a8   : > { %v13088_v59 = vpop.f32.mrf.mxu0 }
 0x2a9   : > { %20963 = vst [vmem:[#allocation175_spill] sm:$0xff] %v16761_v48  ;;  %v16763_v61 = vpop.f32.mrf.mxu1  ;;  %13331 = vmatmul.mubr.msk.f32.gmra.mxu0 %vm390_vm1, %v20965_v2  ;;  %v16768_v36 = vadd.f32 %v13088_v59, %v16317_v21  ;;  %v20973_v21 = vld [vmem:[#allocation132_spill] sm:$0xff] }
 0x2aa   : > { %20964 = vst [vmem:[#allocation174_spill] sm:$0xff] %v16763_v61  ;;  %13333 = vmatprep.mubr.msk.f32.mxu0 %vm390_vm1, %v20968_v17  ;;  %v16774_v53 = vpop.f32.mrf.mxu0 }
 0x2ab   : > { %20966 = vst [vmem:[#allocation56_spill] sm:$0xff] %v16768_v36  ;;  %v16770_v37 = vpop.f32.mrf.mxu1 }
 0x2ac   : > { %20967 = vst [vmem:[#allocation46_spill] sm:$0xff] %v16770_v37  ;;  %v13091_v63 = vpop.f32.mrf.mxu0  ;;  %v20975_v37 = vld [vmem:[#allocation87_spill] sm:$0xff] }
 0x2ad   : > { %v16776_v3 = vpop.f32.mrf.mxu1  ;;  %13334 = vmatmul.mubr.msk.f32.gmra.mxu0 %vm390_vm1, %v20970_v11  ;;  %v16781_v48 = vadd.f32 %v13091_v63, %v16333_v54  ;;  %v20978_v54 = vld [vmem:[#allocation90_spill] sm:$0xff] }
 0x2ae   : > { %20969 = vst [vmem:[#allocation47_spill] sm:$0xff] %v16776_v3  ;;  %13336 = vmatprep.mubr.msk.f32.mxu0 %vm390_vm1, %v20973_v21  ;;  %v16787_v59 = vpop.f32.mrf.mxu0 }
 0x2af   : > { %20971 = vst [vmem:[#allocation57_spill] sm:$0xff] %v16781_v48  ;;  %v16783_v2 = vpop.f32.mrf.mxu1 }
 0x2b0   : > { %20972 = vst [vmem:[#allocation177_spill] sm:$0xff] %v16783_v2  ;;  %v13094_v17 = vpop.f32.mrf.mxu0  ;;  %v20981_v2 = vld [vmem:[#allocation134_spill] sm:$0xff] }
 0x2b1   : > { %v16789_v36 = vpop.f32.mrf.mxu1  ;;  %13337 = vmatmul.mubr.msk.f32.gmra.mxu0 %vm390_vm1, %v20975_v37  ;;  %v16794_v3 = vadd.f32 %v13094_v17, %v16349_v57  ;;  %v20985_v57 = vld [vmem:[#allocation135_spill] sm:$0xff] }
 0x2b2   : > { %20974 = vst [vmem:[#allocation176_spill] sm:$0xff] %v16789_v36  ;;  %13339 = vmatprep.mubr.msk.f32.mxu0 %vm390_vm1, %v20978_v54  ;;  %v16800_v63 = vpop.f32.mrf.mxu0  ;;  %v20982_v36 = vld [vmem:[#allocation150_spill] sm:$0xff] }
 0x2b3   : > { %20976 = vst [vmem:[#allocation60_spill] sm:$0xff] %v16794_v3  ;;  %v16796_v11 = vpop.f32.mrf.mxu1  ;;  %20979 = vst [vmem:[#allocation54_spill] sm:$0xff] %v16800_v63  ;;  %v20993_v63 = vld [vmem:[#allocation139_spill] sm:$0xff] }
 0x2b4   : > { %20977 = vst [vmem:[#allocation48_spill] sm:$0xff] %v16796_v11  ;;  %v13097_v21 = vpop.f32.mrf.mxu0  ;;  %v20988_v11 = vld [vmem:[#allocation137_spill] sm:$0xff] }
 0x2b5   : > { %v16802_v48 = vpop.f32.mrf.mxu1  ;;  %13340 = vmatmul.mubr.msk.f32.gmra.mxu0 %vm390_vm1, %v20981_v2  ;;  %v16807_v61 = vadd.f32 %v13097_v21, %v20982_v36  ;;  %v20991_v36 = vld [vmem:[#allocation138_spill] sm:$0xff] }
 0x2b6   : > { %20980 = vst [vmem:[#allocation61_spill] sm:$0xff] %v16802_v48  ;;  %13342 = vmatprep.mubr.msk.f32.mxu0 %vm390_vm1, %v20985_v57  ;;  %v16813_v17 = vpop.f32.mrf.mxu0  ;;  %v5183_v57 = vrot.slane %v16365_v19, 1 }
 0x2b7   : > { %20983 = vst [vmem:[#allocation179_spill] sm:$0xff] %v16807_v61  ;;  %v16809_v37 = vpop.f32.mrf.mxu1  ;;  %20986 = vst [vmem:[#allocation64_spill] sm:$0xff] %v16813_v17  ;;  %v5184_v61 = vrot.slane %v16379_v5, 1 }
 0x2b8   : > { %20984 = vst [vmem:[#allocation178_spill] sm:$0xff] %v16809_v37  ;;  %v13100_v54 = vpop.f32.mrf.mxu0  ;;  %v753_v37 = vld [vmem:[#allocation2 + $0x478] sm:$0xff] }
 0x2b9   : > { %v16815_v3 = vpop.f32.mrf.mxu1  ;;  %13343 = vmatmul.mubr.msk.f32.gmra.mxu0 %vm390_vm1, %v20988_v11  ;;  %v16820_v48 = vadd.f32 %v13100_v54, %v16386_v32  ;;  %v20994_v54 = vld [vmem:[#allocation198_spill] sm:$0xff]  ;;  %v5185_v19 = vsel %vm2079_vm4, %v5183_v57, %v5184_v61 }
 0x2ba   : > { %20987 = vst [vmem:[#allocation58_spill] sm:$0xff] %v16815_v3  ;;  %13345 = vmatprep.mubr.msk.f32.mxu0 %vm390_vm1, %v20991_v36  ;;  %v16826_v21 = vpop.f32.mrf.mxu0  ;;  %v5186_v36 = vrot.slane %v753_v37, 1 }
 0x2bb   : > { %20989 = vst [vmem:[#allocation62_spill] sm:$0xff] %v16820_v48  ;;  %v16822_v2 = vpop.f32.mrf.mxu1 }
 0x2bc   : > { %20990 = vst [vmem:[#allocation65_spill] sm:$0xff] %v16822_v2  ;;  %v13103_v17 = vpop.f32.mrf.mxu0  ;;  %v20996_v2 = vld [vmem:[#allocation199_spill] sm:$0xff] }
 0x2bd   : > { %v16830_v3 = vpop.f32.mrf.mxu1  ;;  %13346 = vmatmul.mubr.msk.f32.gmra.mxu0 %vm390_vm1, %v20993_v63  ;;  %v16835_v32 = vadd.f32 %v13103_v17, %v16404_v9  ;;  %v5187_v17 = vsel %vm2079_vm4, %v5184_v61, %v5186_v36 }
 0x2be   : > { %20992 = vst [vmem:[#allocation181_spill] sm:$0xff] %v16830_v3  ;;  %13348 = vmatprep.mubr.msk.f32.mxu0 %vm390_vm1, %v20994_v54  ;;  %v16841_v48 = vpop.f32.mrf.mxu0 }
 0x2bf   : > { %v16837_v11 = vpop.f32.mrf.mxu1 }
 0x2c0   : > { %v13106_v3 = vpop.f32.mrf.mxu0 }
 0x2c1   : > { %v16844_v5 = vpop.f32.mrf.mxu1  ;;  %13349 = vmatmul.mubr.msk.f32.gmra.mxu0 %vm390_vm1, %v20996_v2  ;;  %v16849_v63 = vadd.f32 %v13106_v3, %v16418_v34 }
 0x2c2   : > { %20995 = vst [vmem:[#allocation180_spill] sm:$0xff] %v16844_v5  ;;  %13351 = vmatprep.mubr.msk.f32.mxu0 %vm390_vm1, %v5185_v19  ;;  %v16855_v37 = vpop.f32.mrf.mxu0 }
 0x2c3   : > { %20997 = vst [vmem:[#allocation68_spill] sm:$0xff] %v16849_v63  ;;  %v16851_v9 = vpop.f32.mrf.mxu1 }
 0x2c4   : > { %v13109_v57 = vpop.f32.mrf.mxu0 }
 0x2c5   : > { %v16857_v54 = vpop.f32.mrf.mxu1  ;;  %13352 = vmatmul.mubr.msk.f32.gmra.mxu0 %vm390_vm1, %v5187_v17  ;;  %v16861_v5 = vadd.f32 %v13109_v57, %v16433_v56  ;;  %vm10630_vm1 = vcmask 392192  }
 0x2c6   : > { %20998 = vst [vmem:[#allocation63_spill] sm:$0xff] %v16857_v54  ;;  %v16865_v34 = vpop.f32.mrf.mxu0 }
 0x2c7   : > { %20999 = vst [vmem:[#allocation122_spill] sm:$0xff] %v16861_v5  ;;  %v16863_v2 = vpop.f32.mrf.mxu1 }
 0x2c8   : > { %21000 = vst [vmem:[#allocation69_spill] sm:$0xff] %v16863_v2  ;;  %v13112_v63 = vpop.f32.mrf.mxu0 }
 0x2c9   : > { %v16867_v3 = vpop.f32.mrf.mxu1  ;;  %v16870_v19 = vadd.f32 %v13112_v63, %v16445_v33 }
 0x2ca   : > { %21001 = vst [vmem:[#allocation183_spill] sm:$0xff] %v16867_v3  ;;  %v16874_v36 = vpop.f32.mrf.mxu0 }
 0x2cb   : > { %21002 = vst [vmem:[#allocation182_spill] sm:$0xff] %v16870_v19  ;;  %v16872_v61 = vpop.f32.mrf.mxu1 }
 0x2cc   : > { %21003 = vst [vmem:[#allocation72_spill] sm:$0xff] %v16872_v61  ;;  %v13115_v17 = vpop.f32.mrf.mxu0 }
 0x2cd   : > { %v16876_v54 = vpop.f32.mrf.mxu1  ;;  %v16879_v56 = vadd.f32 %v13115_v17, %v16457_v13 }
 0x2ce   : > { %21004 = vst [vmem:[#allocation67_spill] sm:$0xff] %v16876_v54  ;;  %v16883_v5 = vpop.f32.mrf.mxu0 }
 0x2cf   : > { %21005 = vst [vmem:[#allocation124_spill] sm:$0xff] %v16879_v56  ;;  %v16881_v57 = vpop.f32.mrf.mxu1 }
 0x2d0   : > { %21006 = vst [vmem:[#allocation73_spill] sm:$0xff] %v16881_v57 }
 0x2d1   : > { %v16885_v2 = vpop.f32.mrf.mxu1  ;;  %v13118_v3 = vpop.f32.mrf.mxu0 }
 0x2d2   : > { %21007 = vst [vmem:[#allocation185_spill] sm:$0xff] %v16885_v2  ;;  %v16888_v33 = vadd.f32 %v13118_v3, %v16469_v60  ;;  %v4212_v60 = vadd.f32 %v16498_v26, %v16491_v35 }
 0x2d3   : > { %v16890_v63 = vpop.f32.mrf.mxu1  ;;  %v16892_v19 = vpop.f32.mrf.mxu0 }
 0x2d4   : > { %21008 = vst [vmem:[#allocation184_spill] sm:$0xff] %v16888_v33  ;;  %21009 = vst [vmem:[#allocation76_spill] sm:$0xff] %v16890_v63 }
 0x2d5   : > { %v16894_v61 = vpop.f32.mrf.mxu1  ;;  %v13121_v54 = vpop.f32.mrf.mxu0 }
 0x2d6   : > { %21010 = vst [vmem:[#allocation71_spill] sm:$0xff] %v16894_v61  ;;  %v16897_v13 = vadd.f32 %v13121_v54, %v16481_v22 }
 0x2d7   : > { %v16899_v17 = vpop.f32.mrf.mxu1  ;;  %v16901_v56 = vpop.f32.mrf.mxu0 }
 0x2d8   : > { %21011 = vst [vmem:[#allocation126_spill] sm:$0xff] %v16897_v13  ;;  %21012 = vst [vmem:[#allocation77_spill] sm:$0xff] %v16899_v17  ;;  %v4214_v13 = vadd.f32 %v16510_v39, %v16503_v14 }
 0x2d9   : > { %v16903_v57 = vpop.f32.mrf.mxu1  ;;  %v13124_v2 = vpop.f32.mrf.mxu0 }
 0x2da   : > { %21013 = vst [vmem:[#allocation187_spill] sm:$0xff] %v16903_v57  ;;  %v16908_v3 = vadd.f32 %v13124_v2, %v16493_v49 }
 0x2db   : > { %v16910_v33 = vpop.f32.mrf.mxu1  ;;  %v4531_v61 = vpop.f32.mrf.mxu0 }
 0x2dc   : > { %v16912_v63 = vadd.f32 %v4531_v61, %v4212_v60  ;;  %v4216_v61 = vadd.f32 %v16522_v44, %v16515_v46 }
 0x2dd   : > { %v16914_v22 = vpop.f32.mrf.mxu1  ;;  %v13127_v54 = vpop.f32.mrf.mxu0 }
 0x2de   : > { %21014 = vst [vmem:[#allocation186_spill] sm:$0xff] %v16912_v63  ;;  %v16919_v57 = vadd.f32 %v13127_v54, %v16505_v38 }
 0x2df   : > { %v16921_v17 = vpop.f32.mrf.mxu1  ;;  %v4541_v26 = vpop.f32.mrf.mxu0 }
 0x2e0   : > { %v16923_v35 = vadd.f32 %v4541_v26, %v4214_v13  ;;  %v4218_v13 = vadd.f32 %v16534_v43, %v16527_v28 }
 0x2e1   : > { %v16925_v49 = vpop.f32.mrf.mxu1  ;;  %v13130_v2 = vpop.f32.mrf.mxu0 }
 0x2e2   : > { %21015 = vst [vmem:[#allocation80_spill] sm:$0xff] %v16923_v35  ;;  %v16930_v60 = vadd.f32 %v13130_v2, %v16517_v58 }
 0x2e3   : > { %v16932_v63 = vpop.f32.mrf.mxu1  ;;  %v4551_v39 = vpop.f32.mrf.mxu0 }
 0x2e4   : > { %21016 = vst [vmem:[#allocation75_spill] sm:$0xff] %v16930_v60  ;;  %v16934_v14 = vadd.f32 %v4551_v39, %v4216_v61  ;;  %v4220_v61 = vadd.f32 %v16546_v7, %v16539_v27 }
 0x2e5   : > { %v16936_v38 = vpop.f32.mrf.mxu1  ;;  %v13133_v54 = vpop.f32.mrf.mxu0 }
 0x2e6   : > { %21017 = vst [vmem:[#allocation128_spill] sm:$0xff] %v16934_v14  ;;  %21018 = vst [vmem:[#allocation81_spill] sm:$0xff] %v16936_v38  ;;  %v16941_v26 = vadd.f32 %v13133_v54, %v16529_v50 }
 0x2e7   : > { %v16943_v35 = vpop.f32.mrf.mxu1  ;;  %v4561_v44 = vpop.f32.mrf.mxu0 }
 0x2e8   : > { %21019 = vst [vmem:[#allocation188_spill] sm:$0xff] %v16941_v26  ;;  %21020 = vst [vmem:[#allocation84_spill] sm:$0xff] %v16943_v35  ;;  %v16945_v46 = vadd.f32 %v4561_v44, %v4218_v13  ;;  %v4222_v13 = vadd.f32 %v16558_v6, %v16551_v62 }
 0x2e9   : > { %v16947_v58 = vpop.f32.mrf.mxu1  ;;  %v13136_v2 = vpop.f32.mrf.mxu0 }
 0x2ea   : > { %21021 = vst [vmem:[#allocation79_spill] sm:$0xff] %v16945_v46  ;;  %21022 = vst [vmem:[#allocation130_spill] sm:$0xff] %v16947_v58  ;;  %v16952_v39 = vadd.f32 %v13136_v2, %v16541_v23  ;;  %v21052_v58 = vld [vmem:[#allocation22_spill] sm:$0xff] }
 0x2eb   : > { %v16954_v14 = vpop.f32.mrf.mxu1  ;;  %v4571_v43 = vpop.f32.mrf.mxu0 }
 0x2ec   : > { %21023 = vst [vmem:[#allocation85_spill] sm:$0xff] %v16952_v39  ;;  %21024 = vst [vmem:[#allocation189_spill] sm:$0xff] %v16954_v14  ;;  %v16956_v28 = vadd.f32 %v4571_v43, %v4220_v61  ;;  %v4224_v61 = vadd.f32 %v16570_v25, %v16563_v15  ;;  %v21037_v15 = vld [vmem:[#allocation15_spill] sm:$0xff] }
 0x2ed   : > { %v16958_v50 = vpop.f32.mrf.mxu1  ;;  %v13139_v54 = vpop.f32.mrf.mxu0  ;;  %v21045_v14 = vld [vmem:[#allocation151_spill] sm:$0xff] }
 0x2ee   : > { %21025 = vst [vmem:[#allocation88_spill] sm:$0xff] %v16956_v28  ;;  %21026 = vst [vmem:[#allocation83_spill] sm:$0xff] %v16958_v50  ;;  %v16963_v44 = vadd.f32 %v13139_v54, %v16553_v10  ;;  %v21044_v50 = vld [vmem:[#allocation19_spill] sm:$0xff] }
 0x2ef   : > { %v16965_v46 = vpop.f32.mrf.mxu1  ;;  %v4581_v7 = vpop.f32.mrf.mxu0 }
 0x2f0   : > { %21027 = vst [vmem:[#allocation89_spill] sm:$0xff] %v16963_v44  ;;  %21028 = vst [vmem:[#allocation190_spill] sm:$0xff] %v16965_v46  ;;  %v16967_v27 = vadd.f32 %v4581_v7, %v4222_v13  ;;  %v13712_v44 = vmov 1983009808   ;;  %v5784_v7 = vlaneseq }
 0x2f1   : > { %v16969_v23 = vpop.f32.mrf.mxu1  ;;  %v13142_v2 = vpop.f32.mrf.mxu0  ;;  %v5782_v13 = vunpack.c.l.s4 %v13712_v44  ;;  %v21043_v44 = vld [vmem:[#allocation18_spill] sm:$0xff] }
 0x2f2   : > { %21029 = vst [vmem:[#allocation91_spill] sm:$0xff] %v16967_v27  ;;  %21030 = vst [vmem:[#allocation191_spill] sm:$0xff] %v16969_v23  ;;  %v16974_v43 = vadd.f32 %v13142_v2, %v16565_v41  ;;  %v4226_v27 = vadd.f32 %v16582_v55, %v16575_v4  ;;  %v21038_v41 = vld [vmem:[#allocation147_spill] sm:$0xff]  ;;  %v4194_v39 = vadd.f32 %v21044_v50, %v21043_v44  ;;  %v21046_v55 = vld [vmem:[#allocation20_spill] sm:$0xff]  ;;  %v5785_v35 = vshrl.u32 %v5784_v7, 7 }
 0x2f3   : > { %v16976_v28 = vpop.f32.mrf.mxu1  ;;  %v4591_v6 = vpop.f32.mrf.mxu0  ;;  %v4188_v2 = vadd.f32 %v21038_v41, %v21037_v15  ;;  %v4196_v4 = vadd.f32 %v21046_v55, %v21045_v14  ;;  %v21051_v41 = vld [vmem:[#allocation153_spill] sm:$0xff]  ;;  %v5783_v26 = vunpack.c.0.s8 %v5782_v13  ;;  %v21055_v50 = vld [vmem:[#allocation155_spill] sm:$0xff]  ;;  %v21056_v44 = vld [vmem:[#allocation24_spill] sm:$0xff]  ;;  %v4228_v14 = vadd.f32 %v16596_v16, %v16589_v29 }
 0x2f4   : > { %21031 = vst [vmem:[#allocation192_spill] sm:$0xff] %v16974_v43  ;;  %21032 = vst [vmem:[#allocation92_spill] sm:$0xff] %v16976_v28  ;;  %v16978_v62 = vadd.f32 %v4591_v6, %v4224_v61  ;;  %v21039_v43 = vld [vmem:[#allocation16_spill] sm:$0xff]  ;;  %v21042_v28 = vld [vmem:[#allocation149_spill] sm:$0xff]  ;;  %v4204_v60 = vadd.f32 %v21056_v44, %v21055_v50  ;;  %v4232_v16 = vadd.f32 %v16620_v51, %v16614_v20 }
 0x2f5   : > { %v16980_v10 = vpop.f32.mrf.mxu1  ;;  %v13145_v54 = vpop.f32.mrf.mxu0  ;;  %v21040_v61 = vld [vmem:[#allocation148_spill] sm:$0xff]  ;;  %v4234_v29 = vadd.f32 %v16634_v1, %v16625_v42  ;;  %v21070_v20 = vld [vmem:[#allocation163_spill] sm:$0xff]  ;;  %v17050_v1 = vsub.s32 %v5783_v26, %v5785_v35  ;;  %v21082_v26 = vld [vmem:[#allocation169_spill] sm:$0xff] }
 0x2f6   : > { %21033 = vst [vmem:[#allocation193_spill] sm:$0xff] %v16978_v62  ;;  %21034 = vst [vmem:[#allocation93_spill] sm:$0xff] %v16980_v10  ;;  %v16985_v23 = vadd.f32 %v13145_v54, %v16577_v31  ;;  %v4190_v6 = vadd.f32 %v21040_v61, %v21039_v43  ;;  %v21041_v10 = vld [vmem:[#allocation17_spill] sm:$0xff]  ;;  %v4200_v43 = vadd.f32 %v21052_v58, %v21051_v41  ;;  %v21061_v13 = vld [vmem:[#allocation28_spill] sm:$0xff] }
 0x2f7   : > { %v16987_v25 = vpop.f32.mrf.mxu1  ;;  %v4601_v62 = vpop.f32.mrf.mxu0  ;;  %v4192_v46 = vadd.f32 %v21042_v28, %v21041_v10  ;;  %v21053_v28 = vld [vmem:[#allocation154_spill] sm:$0xff]  ;;  %v21054_v10 = vld [vmem:[#allocation23_spill] sm:$0xff]  ;;  %v21060_v41 = vld [vmem:[#allocation157_spill] sm:$0xff] }
 0x2f8   : > { %21035 = vst [vmem:[#allocation133_spill] sm:$0xff] %v16985_v23  ;;  %21036 = vst [vmem:[#allocation194_spill] sm:$0xff] %v16987_v25  ;;  %v16999_v31 = vadd.f32 %v4601_v62, %v4226_v27  ;;  %v21049_v23 = vld [vmem:[#allocation152_spill] sm:$0xff]  ;;  %v21050_v25 = vld [vmem:[#allocation21_spill] sm:$0xff]  ;;  %v4202_v38 = vadd.f32 %v21054_v10, %v21053_v28  ;;  %v4208_v7 = vadd.f32 %v21061_v13, %v21060_v41 }
 0x2f9   : > { %v17001_v54 = vpop.f32.mrf.mxu1  ;;  %v4198_v15 = vadd.f32 %v21050_v25, %v21049_v23  ;;  %v13148_v61 = vpop.f32.mrf.mxu0  ;;  %v21057_v27 = vld [vmem:[#allocation159_spill] sm:$0xff]  ;;  %v21058_v23 = vld [vmem:[#allocation156_spill] sm:$0xff]  ;;  %v21059_v25 = vld [vmem:[#allocation25_spill] sm:$0xff]  ;;  %v4230_v10 = vadd.f32 %v16609_v8, %v16602_v47 }
 0x2fa   : > { %21047 = vst [vmem:[#allocation94_spill] sm:$0xff] %v16999_v31  ;;  %21048 = vst [vmem:[#allocation195_spill] sm:$0xff] %v17001_v54  ;;  %v17014_v62 = vadd.f32 %v13148_v61, %v21057_v27  ;;  %v4206_v58 = vadd.f32 %v21059_v25, %v21058_v23  ;;  %v21062_v31 = vld [vmem:[#allocation158_spill] sm:$0xff]  ;;  %v21063_v54 = vld [vmem:[#allocation29_spill] sm:$0xff]  ;;  %v17032_v61 = vadd.f32 %v16665_v12, %v16632_v52 }
 0x2fb   : > { %v17016_v55 = vpop.f32.mrf.mxu1  ;;  %v4210_v28 = vadd.f32 %v21063_v54, %v21062_v31  ;;  %v4611_v50 = vpop.f32.mrf.mxu0  ;;  %v21066_v23 = vld [vmem:[#allocation161_spill] sm:$0xff]  ;;  %v21067_v31 = vld [vmem:[#allocation162_spill] sm:$0xff]  ;;  %v21068_v47 = vld [vmem:[#allocation35_spill] sm:$0xff] }
 0x2fc   : > { %v17034_v44 = vadd.f32 %v4611_v50, %v4228_v14  ;;  %v17040_v54 = vadd.f32 %v21067_v31, %v21066_v23  ;;  %v21069_v8 = vld [vmem:[#allocation36_spill] sm:$0xff]  ;;  %v21072_v52 = vld [vmem:[#allocation166_spill] sm:$0xff]  ;;  %v21073_v12 = vld [vmem:[#allocation165_spill] sm:$0xff] }
 0x2fd   : > { %v17036_v27 = vpop.f32.mrf.mxu1  ;;  %v17044_v25 = vadd.f32 %v21069_v8, %v21068_v47  ;;  %v21071_v51 = vld [vmem:[#allocation164_spill] sm:$0xff]  ;;  %v13151_v42 = vpop.f32.mrf.mxu0  ;;  %v17054_v14 = vadd.f32 %v21073_v12, %v21072_v52  ;;  %v21074_v13 = vld [vmem:[#allocation39_spill] sm:$0xff]  ;;  %v21078_v31 = vld [vmem:[#allocation41_spill] sm:$0xff] }
 0x2fe   : > { %21064 = vst [vmem:[#allocation95_spill] sm:$0xff] %v17034_v44  ;;  %21065 = vst [vmem:[#allocation136_spill] sm:$0xff] %v17036_v27  ;;  %v17048_v41 = vadd.f32 %v21071_v51, %v21070_v20  ;;  %v21075_v50 = vld [vmem:[#allocation40_spill] sm:$0xff]  ;;  %v21077_v23 = vld [vmem:[#allocation167_spill] sm:$0xff] }
 0x2ff   : > { %v17058_v44 = vadd.f32 %v21075_v50, %v21074_v13  ;;  %v17062_v27 = vadd.f32 %v21078_v31, %v21077_v23  ;;  %v21080_v47 = vld [vmem:[#allocation32_spill] sm:$0xff]  ;;  %v17067_v20 = vpop.f32.mrf.mxu1  ;;  %v21083_v52 = vld [vmem:[#allocation170_spill] sm:$0xff]  ;;  %v4666_v13 = vadd.f32 %v16774_v53, %v4188_v2  ;;  %v4668_v50 = vadd.f32 %v16787_v59, %v4190_v6  ;;  %v21092_v2 = vld [vmem:[#allocation173_spill] sm:$0xff] }
 0x300   : > { %v17065_v8 = vadd.f32 %v13151_v42, %v21080_v47  ;;  %v21081_v51 = vld [vmem:[#allocation168_spill] sm:$0xff]  ;;  %v17075_v12 = vadd.f32 %v21083_v52, %v21082_v26  ;;  %v21086_v42 = vld [vmem:[#allocation43_spill] sm:$0xff]  ;;  %v21093_v6 = vld [vmem:[#allocation53_spill] sm:$0xff] }
 0x301   : > { %21076 = vst [vmem:[#allocation96_spill] sm:$0xff] %v17058_v44  ;;  %21079 = vst [vmem:[#allocation196_spill] sm:$0xff] %v17062_v27  ;;  %v17071_v35 = vadd.f32 %v16714_v18, %v21081_v51  ;;  %v4621_v44 = vpop.f32.mrf.mxu0  ;;  %v21084_v23 = vld [vmem:[#allocation120_spill] sm:$0xff]  ;;  %v17085_v47 = vadd.f32 %v16735_v0, %v21086_v42  ;;  %v21088_v27 = vld [vmem:[#allocation49_spill] sm:$0xff]  ;;  %v17093_v26 = vpop.f32.mrf.mxu1 }
 0x302   : > { %v17081_v31 = vadd.f32 %v16728_v45, %v21084_v23  ;;  %v17089_v18 = vadd.f32 %v16742_v30, %v21088_v27  ;;  %v17091_v51 = vadd.f32 %v4621_v44, %v4230_v10  ;;  %v21090_v53 = vld [vmem:[#allocation52_spill] sm:$0xff]  ;;  %v17101_v45 = vadd.f32 %v16756_v40, %v21092_v2  ;;  %v21094_v52 = vld [vmem:[#allocation174_spill] sm:$0xff]  ;;  %v21097_v27 = vld [vmem:[#allocation175_spill] sm:$0xff] }
 0x303   : > { %21087 = vst [vmem:[#allocation197_spill] sm:$0xff] %v17085_v47  ;;  %v17097_v59 = vadd.f32 %v16749_v24, %v21090_v53  ;;  %v17105_v0 = vadd.f32 %v21094_v52, %v21093_v6  ;;  %v21096_v23 = vld [vmem:[#allocation54_spill] sm:$0xff]  ;;  %v13154_v30 = vpop.f32.mrf.mxu0  ;;  %v21100_v47 = vld [vmem:[#allocation47_spill] sm:$0xff]  ;;  %v21102_v24 = vld [vmem:[#allocation64_spill] sm:$0xff]  ;;  %v17120_v2 = vpop.f32.mrf.mxu1 }
 0x304   : > { %21085 = vst [vmem:[#allocation97_spill] sm:$0xff] %v17081_v31  ;;  %21089 = vst [vmem:[#allocation140_spill] sm:$0xff] %v17089_v18  ;;  %v4670_v42 = vadd.f32 %v21096_v23, %v4192_v46  ;;  %v21098_v10 = vld [vmem:[#allocation46_spill] sm:$0xff]  ;;  %v21099_v18 = vld [vmem:[#allocation56_spill] sm:$0xff]  ;;  %v4672_v53 = vadd.f32 %v21102_v24, %v4194_v39 }
 0x305   : > { %21091 = vst [vmem:[#allocation141_spill] sm:$0xff] %v17097_v59  ;;  %21095 = vst [vmem:[#allocation98_spill] sm:$0xff] %v17105_v0  ;;  %v17110_v44 = vadd.f32 %v21098_v10, %v21097_v27  ;;  %v17114_v31 = vadd.f32 %v21100_v47, %v21099_v18  ;;  %v21103_v59 = vld [vmem:[#allocation160_spill] sm:$0xff]  ;;  %v21104_v6 = vld [vmem:[#allocation177_spill] sm:$0xff]  ;;  %v4674_v47 = vadd.f32 %v16826_v21, %v4196_v4  ;;  %v4631_v18 = vpop.f32.mrf.mxu0 }
 0x306   : > { %v17118_v40 = vadd.f32 %v13154_v30, %v21103_v59  ;;  %v17123_v52 = vadd.f32 %v21104_v6, %v4666_v13  ;;  %v21106_v46 = vld [vmem:[#allocation57_spill] sm:$0xff]  ;;  %v21107_v23 = vld [vmem:[#allocation176_spill] sm:$0xff]  ;;  %v4676_v59 = vadd.f32 %v16841_v48, %v4198_v15  ;;  %v4678_v30 = vadd.f32 %v16855_v37, %v4200_v43  ;;  %v21111_v6 = vld [vmem:[#allocation178_spill] sm:$0xff] }
 0x307   : > { %21101 = vst [vmem:[#allocation99_spill] sm:$0xff] %v17114_v31  ;;  %v17127_v0 = vadd.f32 %v21107_v23, %v21106_v46  ;;  %v21108_v27 = vld [vmem:[#allocation48_spill] sm:$0xff]  ;;  %v21110_v39 = vld [vmem:[#allocation61_spill] sm:$0xff]  ;;  %v17139_v13 = vadd.f32 %v4631_v18, %v4232_v16  ;;  %v21112_v46 = vld [vmem:[#allocation179_spill] sm:$0xff]  ;;  %v4680_v21 = vadd.f32 %v16865_v34, %v4202_v38  ;;  %v4682_v4 = vadd.f32 %v16874_v36, %v4204_v60 }
 0x308   : > { %21105 = vst [vmem:[#allocation100_spill] sm:$0xff] %v17123_v52  ;;  %v17130_v10 = vadd.f32 %v21108_v27, %v4668_v50  ;;  %v21109_v31 = vld [vmem:[#allocation60_spill] sm:$0xff]  ;;  %v17142_v52 = vadd.f32 %v21111_v6, %v4670_v42  ;;  %v21113_v23 = vld [vmem:[#allocation58_spill] sm:$0xff]  ;;  %v17150_v27 = vpop.f32.mrf.mxu1  ;;  %v4684_v37 = vadd.f32 %v16883_v5, %v4206_v58  ;;  %v4686_v15 = vadd.f32 %v16892_v19, %v4208_v7  ;;  %v21115_v43 = vld [vmem:[#allocation33_spill] sm:$0xff] }
 0x309   : > { %v17135_v24 = vadd.f32 %v21110_v39, %v21109_v31  ;;  %v17146_v50 = vadd.f32 %v21113_v23, %v21112_v46  ;;  %v13157_v31 = vpop.f32.mrf.mxu0  ;;  %v21114_v39 = vld [vmem:[#allocation65_spill] sm:$0xff]  ;;  %v21116_v42 = vld [vmem:[#allocation62_spill] sm:$0xff]  ;;  %v17165_v34 = vadd.f32 %v16837_v11, %v4674_v47  ;;  %v21118_v36 = vld [vmem:[#allocation180_spill] sm:$0xff]  ;;  %v4688_v38 = vadd.f32 %v16901_v56, %v4210_v28 }
 0x30a   : > { %v17153_v48 = vadd.f32 %v21114_v39, %v4672_v53  ;;  %v17158_v16 = vadd.f32 %v13157_v31, %v21115_v43  ;;  %v21117_v18 = vld [vmem:[#allocation181_spill] sm:$0xff]  ;;  %v17169_v60 = vadd.f32 %v21118_v36, %v16835_v32  ;;  %v17173_v5 = vadd.f32 %v16851_v9, %v4676_v59  ;;  %v21119_v19 = vld [vmem:[#allocation68_spill] sm:$0xff]  ;;  %v21120_v58 = vld [vmem:[#allocation63_spill] sm:$0xff] }
 0x30b   : > { %v17162_v6 = vadd.f32 %v21117_v18, %v21116_v42  ;;  %v4641_v53 = vpop.f32.mrf.mxu0  ;;  %v17177_v7 = vadd.f32 %v21120_v58, %v21119_v19  ;;  %v21121_v46 = vld [vmem:[#allocation69_spill] sm:$0xff]  ;;  %v21122_v11 = vld [vmem:[#allocation122_spill] sm:$0xff]  ;;  %v21123_v47 = vld [vmem:[#allocation183_spill] sm:$0xff]  ;;  %v5093_v18 = vpop.f32.mrf.mxu1 }
 0x30c   : > { %v17180_v23 = vadd.f32 %v21121_v46, %v4678_v30  ;;  %v4712_v31 = vadd.f32 %v4641_v53, %v4234_v29  ;;  %v17184_v39 = vadd.f32 %v21123_v47, %v21122_v11  ;;  %v21124_v32 = vld [vmem:[#allocation72_spill] sm:$0xff]  ;;  %v21125_v56 = vld [vmem:[#allocation182_spill] sm:$0xff]  ;;  %v21126_v28 = vld [vmem:[#allocation67_spill] sm:$0xff] }
 0x30d   : > { %v17187_v43 = vadd.f32 %v21124_v32, %v4680_v21  ;;  %v17191_v42 = vadd.f32 %v21126_v28, %v21125_v56  ;;  %v21127_v9 = vld [vmem:[#allocation73_spill] sm:$0xff]  ;;  %v13260_v36 = vpop.f32.mrf.mxu0  ;;  %v21128_v19 = vld [vmem:[#allocation124_spill] sm:$0xff]  ;;  %v21132_v11 = vld [vmem:[#allocation71_spill] sm:$0xff] }
 0x30e   : > { %v17194_v59 = vadd.f32 %v21127_v9, %v4682_v4  ;;  %v21129_v30 = vld [vmem:[#allocation185_spill] sm:$0xff]  ;;  %v21130_v29 = vld [vmem:[#allocation76_spill] sm:$0xff]  ;;  %v21134_v56 = vld [vmem:[#allocation126_spill] sm:$0xff]  ;;  %v17215_v9 = vadd.f32 %v16910_v33, %v4688_v38 }
 0x30f   : > { %v17198_v58 = vadd.f32 %v21129_v30, %v21128_v19  ;;  %v17201_v53 = vadd.f32 %v21130_v29, %v4684_v37  ;;  %v21131_v46 = vld [vmem:[#allocation184_spill] sm:$0xff]  ;;  %v21133_v47 = vld [vmem:[#allocation77_spill] sm:$0xff]  ;;  %v21135_v4 = vld [vmem:[#allocation187_spill] sm:$0xff]  ;;  %v17219_v19 = vadd.f32 %v16914_v22, %v16908_v3  ;;  %v5267_v29 = vpop.f32.mrf.mxu0  ;;  %v5587_v3 = vadd.f32 %v13260_v36, %v17032_v61 }
 0x310   : > { %v17205_v21 = vadd.f32 %v21132_v11, %v21131_v46  ;;  %v17208_v32 = vadd.f32 %v21133_v47, %v4686_v15  ;;  %v17212_v28 = vadd.f32 %v21135_v4, %v21134_v56  ;;  %v21137_v37 = vld [vmem:[#allocation186_spill] sm:$0xff]  ;;  %v17227_v15 = vadd.f32 %v16925_v49, %v16919_v57  ;;  %v21140_v46 = vld [vmem:[#allocation80_spill] sm:$0xff]  ;;  %v21142_v47 = vld [vmem:[#allocation75_spill] sm:$0xff] }
 0x311   : > { %21136 = vst [vmem:[#allocation101_spill] sm:$0xff] %v17219_v19  ;;  %v17223_v30 = vadd.f32 %v16921_v17, %v21137_v37  ;;  %v17231_v11 = vadd.f32 %v16932_v63, %v21140_v46  ;;  %v21143_v33 = vld [vmem:[#allocation81_spill] sm:$0xff]  ;;  %v21145_v22 = vld [vmem:[#allocation128_spill] sm:$0xff]  ;;  %v21149_v37 = vld [vmem:[#allocation130_spill] sm:$0xff] }
 0x312   : > { %21139 = vst [vmem:[#allocation103_spill] sm:$0xff] %v17227_v15  ;;  %v17235_v38 = vadd.f32 %v21143_v33, %v21142_v47  ;;  %v21146_v56 = vld [vmem:[#allocation84_spill] sm:$0xff]  ;;  %v21151_v57 = vld [vmem:[#allocation79_spill] sm:$0xff]  ;;  %v21152_v49 = vld [vmem:[#allocation189_spill] sm:$0xff]  ;;  %v13255_v47 = vpop.f32.mrf.mxu1  ;;  %v13263_v33 = vpop.f32.mrf.mxu0 }
 0x313   : > { %21138 = vst [vmem:[#allocation102_spill] sm:$0xff] %v17223_v30  ;;  %21141 = vst [vmem:[#allocation104_spill] sm:$0xff] %v17231_v11  ;;  %v17240_v4 = vadd.f32 %v21146_v56, %v21145_v22  ;;  %v21148_v17 = vld [vmem:[#allocation188_spill] sm:$0xff]  ;;  %v17248_v15 = vadd.f32 %v21152_v49, %v21151_v57  ;;  %v21154_v63 = vld [vmem:[#allocation85_spill] sm:$0xff] }
 0x314   : > { %21144 = vst [vmem:[#allocation105_spill] sm:$0xff] %v17235_v38  ;;  %v17244_v30 = vadd.f32 %v21149_v37, %v21148_v17  ;;  %v21155_v46 = vld [vmem:[#allocation83_spill] sm:$0xff]  ;;  %v21157_v38 = vld [vmem:[#allocation88_spill] sm:$0xff]  ;;  %v21158_v61 = vld [vmem:[#allocation190_spill] sm:$0xff]  ;;  %v5586_v17 = vadd.f32 %v5267_v29, %v17040_v54  ;;  %v5589_v37 = vadd.f32 %v13263_v33, %v17044_v25  ;;  %v5655_v29 = vsel %vm5651_vm5, %v5587_v3, -inf }
 0x315   : > { %21147 = vst [vmem:[#allocation106_spill] sm:$0xff] %v17240_v4  ;;  %21153 = vst [vmem:[#allocation108_spill] sm:$0xff] %v17248_v15  ;;  %v17252_v11 = vadd.f32 %v21155_v46, %v21154_v63  ;;  %v17256_v36 = vadd.f32 %v21158_v61, %v21157_v38  ;;  %v21160_v22 = vld [vmem:[#allocation89_spill] sm:$0xff]  ;;  %v21161_v56 = vld [vmem:[#allocation191_spill] sm:$0xff]  ;;  %v17301_v3 = vadd.f32 %v17120_v2, %v17091_v51 }
 0x316   : > { %21150 = vst [vmem:[#allocation107_spill] sm:$0xff] %v17244_v30  ;;  %v17260_v4 = vadd.f32 %v21161_v56, %v21160_v22  ;;  %v21162_v57 = vld [vmem:[#allocation91_spill] sm:$0xff]  ;;  %v21163_v49 = vld [vmem:[#allocation92_spill] sm:$0xff]  ;;  %v21166_v46 = vld [vmem:[#allocation93_spill] sm:$0xff]  ;;  %v5277_v56 = vpop.f32.mrf.mxu0  ;;  %v5656_v33 = vsel %vm5651_vm5, %v5589_v37, -inf  ;;  %v17315_v51 = vadd.f32 %v13255_v47, %v17158_v16 }
 0x317   : > { %21156 = vst [vmem:[#allocation109_spill] sm:$0xff] %v17252_v11  ;;  %21159 = vst [vmem:[#allocation110_spill] sm:$0xff] %v17256_v36  ;;  %v17266_v15 = vadd.f32 %v21163_v49, %v21162_v57  ;;  %v21165_v63 = vld [vmem:[#allocation192_spill] sm:$0xff]  ;;  %v21168_v30 = vld [vmem:[#allocation193_spill] sm:$0xff]  ;;  %v5588_v57 = vadd.f32 %v5277_v56, %v17048_v41  ;;  %v5652_v41 = vsel %vm5651_vm5, %v5586_v17, -inf }
 0x318   : > { %v17270_v11 = vadd.f32 %v21166_v46, %v21165_v63  ;;  %v21169_v19 = vld [vmem:[#allocation194_spill] sm:$0xff]  ;;  %v21171_v61 = vld [vmem:[#allocation133_spill] sm:$0xff]  ;;  %v21172_v36 = vld [vmem:[#allocation195_spill] sm:$0xff]  ;;  %v5657_v46 = vmax.f32 %v5655_v29, %v5656_v33  ;;  %21181 = vst [vmem:[#allocation27_spill] sm:$0xff] %v17301_v3  ;;  %v17312_v29 = vadd.f32 %v5093_v18, %v17139_v13 }
 0x319   : > { %21164 = vst [vmem:[#allocation111_spill] sm:$0xff] %v17266_v15  ;;  %v17274_v38 = vadd.f32 %v21169_v19, %v21168_v30  ;;  %v17278_v22 = vadd.f32 %v21172_v36, %v21171_v61  ;;  %v21174_v54 = vld [vmem:[#allocation94_spill] sm:$0xff]  ;;  %v21176_v49 = vld [vmem:[#allocation136_spill] sm:$0xff]  ;;  %v21178_v19 = vld [vmem:[#allocation95_spill] sm:$0xff]  ;;  %v17297_v36 = vadd.f32 %v17093_v26, %v17065_v8  ;;  %v13266_v61 = vpop.f32.mrf.mxu0 }
 0x31a   : > { %21167 = vst [vmem:[#allocation112_spill] sm:$0xff] %v17270_v11  ;;  %v17282_v25 = vadd.f32 %v17016_v55, %v21174_v54  ;;  %v17289_v63 = vadd.f32 %v21176_v49, %v17014_v62  ;;  %v17293_v30 = vadd.f32 %v17067_v20, %v21178_v19  ;;  %v5103_v55 = vpop.f32.mrf.mxu1  ;;  %v5653_v62 = vsel %vm5651_vm5, %v5588_v57, -inf  ;;  %21183 = vst [vmem:[#allocation31_spill] sm:$0xff] %v17312_v29  ;;  %v21186_v13 = vld [vmem:[#allocation96_spill] sm:$0xff] }
 0x31b   : > { %21170 = vst [vmem:[#allocation113_spill] sm:$0xff] %v17274_v38  ;;  %21173 = vst [vmem:[#allocation114_spill] sm:$0xff] %v17278_v22  ;;  %v5591_v37 = vadd.f32 %v13266_v61, %v17054_v14  ;;  %v17308_v20 = vadd.f32 %v17150_v27, %v17118_v40  ;;  %v5797_v56 = vcombine.high %v5657_v46, %v5657_v46  ;;  %v5287_v54 = vpop.f32.mrf.mxu0  ;;  %v21187_v16 = vld [vmem:[#allocation196_spill] sm:$0xff] }
 0x31c   : > { %21175 = vst [vmem:[#allocation115_spill] sm:$0xff] %v17282_v25  ;;  %21177 = vst [vmem:[#allocation116_spill] sm:$0xff] %v17289_v63  ;;  %v5804_v8 = vrot.slane %v5657_v46, %v17050_v1  ;;  %v5654_v26 = vmax.f32 %v5652_v41, %v5653_v62  ;;  %v17317_v2 = vadd.f32 %v5103_v55, %v4712_v31 }
 0x31d   : > { %21179 = vst [vmem:[#allocation26_spill] sm:$0xff] %v17293_v30  ;;  %21180 = vst [vmem:[#allocation117_spill] sm:$0xff] %v17297_v36  ;;  %v17320_v17 = vsel %vm5651_vm5, %v5591_v37, -inf  ;;  %v5811_v14 = vrot.slane %v5797_v56, %v17050_v1  ;;  %v13269_v57 = vpop.f32.mrf.mxu0  ;;  %v17326_v18 = vadd.f32 %v5287_v54, %v21186_v13 }
 0x31e   : > { %21182 = vst [vmem:[#allocation30_spill] sm:$0xff] %v17308_v20  ;;  %21184 = vst [vmem:[#allocation34_spill] sm:$0xff] %v17315_v51  ;;  %v5812_v40 = vcombine.high %v5804_v8, %v5804_v8  ;;  %v6481_v27 = vsel %vm6452_vm6, %v5804_v8, -inf  ;;  %v5780_v33 = vcombine.high %v5654_v26, %v5654_v26  ;;  %v5787_v19 = vrot.slane %v5654_v26, %v17050_v1 }
 0x31f   : > { %21185 = vst [vmem:[#allocation37_spill] sm:$0xff] %v17317_v2  ;;  %v6482_v49 = vrot.slane %v6481_v27, 4  ;;  %v17329_v47 = vadd.f32 %v13269_v57, %v21187_v16  ;;  %v5813_v31 = vcombine.high %v5811_v14, %v5811_v14  ;;  %v6495_v46 = vsel %vm6452_vm6, %v5811_v14, -inf }
 0x320   : > { %v6488_v55 = vsel %vm6452_vm6, %v5812_v40, -inf  ;;  %v5794_v61 = vrot.slane %v5780_v33, %v17050_v1  ;;  %v6496_v37 = vrot.slane %v6495_v46, 4  ;;  %v5795_v56 = vcombine.high %v5787_v19, %v5787_v19 }
 0x321   : > { %v6483_v41 = vmax.f32 %v6481_v27, %v6482_v49  ;;  %v6489_v62 = vrot.slane %v6488_v55, 4  ;;  %v6502_v8 = vsel %vm6452_vm6, %v5813_v31, -inf  ;;  %v6453_v54 = vsel %vm6452_vm6, %v5787_v19, -inf }
 0x322   : > { %v5796_v26 = vcombine.high %v5794_v61, %v5794_v61  ;;  %v6467_v13 = vsel %vm6452_vm6, %v5794_v61, -inf  ;;  %v6497_v2 = vmax.f32 %v6495_v46, %v6496_v37  ;;  %v6503_v51 = vrot.slane %v6502_v8, 4  ;;  %v17342_v46 = vld [vmem:[%s20054_s2] ss:$0 sm:$0xff] }
 0x323   : > { %v6484_v57 = vrot.slane %v6483_v41, 2  ;;  %v6490_v16 = vmax.f32 %v6488_v55, %v6489_v62  ;;  %v6454_v40 = vrot.slane %v6453_v54, 4  ;;  %v6460_v14 = vsel %vm6452_vm6, %v5795_v56, -inf }
 0x324   : > { %v6468_v29 = vrot.slane %v6467_v13, 4  ;;  %v6474_v27 = vsel %vm6452_vm6, %v5796_v26, -inf  ;;  %v6498_v20 = vrot.slane %v6497_v2, 2  ;;  %v6504_v3 = vmax.f32 %v6502_v8, %v6503_v51  ;;  %v5297_v26 = vpop.f32.mrf.mxu0 }
 0x325   : > { %v6485_v33 = vmax.f32 %v6483_v41, %v6484_v57  ;;  %v6491_v49 = vrot.slane %v6490_v16, 2  ;;  %v6455_v31 = vmax.f32 %v6453_v54, %v6454_v40  ;;  %v6461_v36 = vrot.slane %v6460_v14, 4 }
 0x326   : > { %v6469_v30 = vmax.f32 %v6467_v13, %v6468_v29  ;;  %v6475_v19 = vrot.slane %v6474_v27, 4  ;;  %v6499_v25 = vmax.f32 %v6497_v2, %v6498_v20  ;;  %v6505_v55 = vrot.slane %v6504_v3, 2 }
 0x327   : > { %v6486_v63 = vrot.slane %v6485_v33, 1  ;;  %v6492_v61 = vmax.f32 %v6490_v16, %v6491_v49  ;;  %v6456_v62 = vrot.slane %v6455_v31, 2  ;;  %v6462_v37 = vmax.f32 %v6460_v14, %v6461_v36  ;;  %v13272_v14 = vpop.f32.mrf.mxu0 }
 0x328   : > { %v6470_v56 = vrot.slane %v6469_v30, 2  ;;  %v6476_v41 = vmax.f32 %v6474_v27, %v6475_v19  ;;  %v6500_v8 = vrot.slane %v6499_v25, 1  ;;  %v6506_v54 = vmax.f32 %v6504_v3, %v6505_v55 }
 0x329   : > { %v6487_v57 = vmax.f32 %v6485_v33, %v6486_v63  ;;  %v6493_v51 = vrot.slane %v6492_v61, 1  ;;  %v6457_v29 = vmax.f32 %v6455_v31, %v6456_v62  ;;  %v6463_v13 = vrot.slane %v6462_v37, 2 }
 0x32a   : > { %v6471_v40 = vmax.f32 %v6469_v30, %v6470_v56  ;;  %v6477_v16 = vrot.slane %v6476_v41, 2  ;;  %v6501_v2 = vmax.f32 %v6499_v25, %v6500_v8  ;;  %v6507_v49 = vrot.slane %v6506_v54, 1 }
 0x32b   : > { %v6494_v20 = vmax.f32 %v6492_v61, %v6493_v51  ;;  %v7359_v22 = vadd.f32 %v17342_v46, %v6487_v57  ;;  %v6458_v38 = vrot.slane %v6457_v29, 1  ;;  %v6464_v11 = vmax.f32 %v6462_v37, %v6463_v13 }
 0x32c   : > { %v6472_v15 = vrot.slane %v6471_v40, 1  ;;  %v6478_v36 = vmax.f32 %v6476_v41, %v6477_v16  ;;  %v6508_v27 = vmax.f32 %v6506_v54, %v6507_v49  ;;  %v7361_v33 = vadd.f32 %v17342_v46, %v6501_v2  ;;  %v8612_v49 = vld [vmem:[%s20055_s3 + $0x238] sm:$0xff] }
 0x32d   : > { %v7360_v63 = vadd.f32 %v17342_v46, %v6494_v20  ;;  %v7487_v3 = vmax.f32 %v7359_v22, 0.0  ;;  %v6459_v31 = vmax.f32 %v6457_v29, %v6458_v38  ;;  %v6465_v30 = vrot.slane %v6464_v11, 1  ;;  %v5307_v38 = vpop.f32.mrf.mxu0  ;;  %13354 = vmatprep.subr.mxu0 %v8612_v49 }
 0x32e   : > { %v6473_v19 = vmax.f32 %v6471_v40, %v6472_v15  ;;  %v6479_v61 = vrot.slane %v6478_v36, 1  ;;  %v7362_v25 = vadd.f32 %v17342_v46, %v6508_v27  ;;  %v7489_v62 = vmax.f32 %v7361_v33, 0.0  ;;  %13355 = vmatpush3.msra.mxu0 %v8612_v49 }
 0x32f   : > { %v7488_v55 = vmax.f32 %v7360_v63, 0.0  ;;  %v5658_v37 = vsel %vm5651_vm5, %v17326_v18, -inf  ;;  %v6466_v56 = vmax.f32 %v6464_v11, %v6465_v30  ;;  %v7355_v57 = vadd.f32 %v17342_v46, %v6459_v31  ;;  %v13275_v33 = vpop.f32.mrf.mxu0 }
 0x330   : > { %v6480_v41 = vmax.f32 %v6478_v36, %v6479_v61  ;;  %v7357_v22 = vadd.f32 %v17342_v46, %v6473_v19  ;;  %v7490_v51 = vmax.f32 %v7362_v25, 0.0  ;;  %v7802_v15 = vrot.slane %v7487_v3, 4 }
 0x331   : > { %v7805_v8 = vrot.slane %v7488_v55, 3  ;;  %v5662_v54 = vsel %vm5651_vm5, %v17329_v47, -inf  ;;  %v7808_v29 = vrot.slane %v7489_v62, 2  ;;  %v7356_v13 = vadd.f32 %v17342_v46, %v6466_v56  ;;  %v21189_v62 = vld [vmem:[#allocation197_spill] sm:$0xff] }
 0x332   : > { %v7358_v18 = vadd.f32 %v17342_v46, %v6480_v41  ;;  %v7485_v11 = vmax.f32 %v7357_v22, 0.0  ;;  %v7483_v40 = vmax.f32 %v7355_v57, 0.0  ;;  %v5663_v16 = vmax.f32 %v17320_v17, %v5662_v54  ;;  %v21188_v17 = vld [vmem:[#allocation97_spill] sm:$0xff] }
 0x333   : > { %v5592_v20 = vadd.f32 %v5297_v26, %v17071_v35  ;;  %v5595_v2 = vadd.f32 %v13272_v14, %v17075_v12  ;;  %v7811_v47 = vrot.slane %v7490_v51, 1  ;;  %v7484_v36 = vmax.f32 %v7356_v13, 0.0 }
 0x334   : > { %v7486_v27 = vmax.f32 %v7358_v18, 0.0  ;;  %v7796_v63 = vrot.slane %v7485_v11, 6  ;;  %v5831_v3 = vcombine.high %v5663_v16, %v5663_v16  ;;  %v5838_v31 = vrot.slane %v5663_v16, %v17050_v1 }
 0x335   : > { %v5659_v30 = vsel %vm5651_vm5, %v5592_v20, -inf  ;;  %v17365_v19 = vadd.f32 %v5307_v38, %v21188_v17  ;;  %v7793_v35 = vrot.slane %v7484_v36, 7  ;;  %v17368_v14 = vsel %vm5651_vm5, %v5595_v2, -inf }
 0x336   : > { %v7799_v12 = vrot.slane %v7486_v27, 5  ;;  %v5660_v26 = vmax.f32 %v5658_v37, %v5659_v30  ;;  %v5845_v61 = vrot.slane %v5831_v3, %v17050_v1  ;;  %v5846_v25 = vcombine.high %v5838_v31, %v5838_v31 }
 0x337   : > { %v6537_v55 = vsel %vm6452_vm6, %v5838_v31, -inf  ;;  %v17373_v56 = vadd.f32 %v13275_v33, %v21189_v62  ;;  %v7795_v41 = vsel %vm7794_vm7, %v7793_v35, %v7483_v40 }
 0x338   : > { %v6538_v57 = vrot.slane %v6537_v55, 4  ;;  %v5814_v22 = vcombine.high %v5660_v26, %v5660_v26  ;;  %v5821_v38 = vrot.slane %v5660_v26, %v17050_v1  ;;  %v7798_v51 = vsel %vm7797_vm8, %v7796_v63, %v7795_v41 }
 0x339   : > { %v5847_v37 = vcombine.high %v5845_v61, %v5845_v61  ;;  %v6544_v54 = vsel %vm6452_vm6, %v5846_v25, -inf  ;;  %v6551_v13 = vsel %vm6452_vm6, %v5845_v61, -inf  ;;  %v7801_v18 = vsel %vm7800_vm9, %v7799_v12, %v7798_v51 }
 0x33a   : > { %v6539_v11 = vmax.f32 %v6537_v55, %v6538_v57  ;;  %v6545_v16 = vrot.slane %v6544_v54, 4  ;;  %v6552_v20 = vrot.slane %v6551_v13, 4  ;;  %v7804_v2 = vsel %vm7803_vm10, %v7802_v15, %v7801_v18  ;;  %v8611_v15 = vld [vmem:[%s20055_s3 + $0x230] sm:$0xff] }
 0x33b   : > { %v6558_v40 = vsel %vm6452_vm6, %v5847_v37, -inf  ;;  %v5828_v49 = vrot.slane %v5814_v22, %v17050_v1  ;;  %v5829_v36 = vcombine.high %v5821_v38, %v5821_v38  ;;  %v7807_v27 = vsel %vm7806_vm11, %v7805_v8, %v7804_v2  ;;  %13356 = vmatprep.subr.mxu0 %v8611_v15 }
 0x33c   : > { %v6540_v63 = vrot.slane %v6539_v11, 2  ;;  %v6546_v33 = vmax.f32 %v6544_v54, %v6545_v16  ;;  %v6553_v3 = vmax.f32 %v6551_v13, %v6552_v20  ;;  %v7810_v31 = vsel %vm7809_vm12, %v7808_v29, %v7807_v27  ;;  %13357 = vmatpush3.msra.mxu0 %v8611_v15 }
 0x33d   : > { %v6559_v30 = vrot.slane %v6558_v40, 4  ;;  %v5830_v17 = vcombine.high %v5828_v49, %v5828_v49  ;;  %v6509_v35 = vsel %vm6452_vm6, %v5821_v38, -inf  ;;  %v7813_v12 = vsel %vm7812_vm13, %v7811_v47, %v7810_v31 }
 0x33e   : > { %v6541_v26 = vmax.f32 %v6539_v11, %v6540_v63  ;;  %v6547_v61 = vrot.slane %v6546_v33, 2  ;;  %v6554_v25 = vrot.slane %v6553_v3, 2  ;;  %8041 = vst.msk [vmem:[#allocation3 + $0x20] sm:$0xff] %vm5651_vm5, %v7813_v12  ;;  %v6510_v55 = vrot.slane %v6509_v35, 4 }
 0x33f   : > { %v6560_v8 = vmax.f32 %v6558_v40, %v6559_v30  ;;  %v6516_v29 = vsel %vm6452_vm6, %v5829_v36, -inf  ;;  %v6523_v62 = vsel %vm6452_vm6, %v5828_v49, -inf  ;;  %v6530_v54 = vsel %vm6452_vm6, %v5830_v17, -inf }
 0x340   : > { %v6542_v41 = vrot.slane %v6541_v26, 1  ;;  %v6548_v57 = vmax.f32 %v6546_v33, %v6547_v61  ;;  %v6555_v22 = vmax.f32 %v6553_v3, %v6554_v25  ;;  %v6517_v38 = vrot.slane %v6516_v29, 4  ;;  %v5317_v61 = vpop.f32.mrf.mxu0 }
 0x341   : > { %v6561_v51 = vrot.slane %v6560_v8, 2  ;;  %v6511_v37 = vmax.f32 %v6509_v35, %v6510_v55  ;;  %v6524_v47 = vrot.slane %v6523_v62, 4  ;;  %v6531_v36 = vrot.slane %v6530_v54, 4 }
 0x342   : > { %v6543_v13 = vmax.f32 %v6541_v26, %v6542_v41  ;;  %v6549_v18 = vrot.slane %v6548_v57, 1  ;;  %v6556_v11 = vrot.slane %v6555_v22, 1  ;;  %v6518_v16 = vmax.f32 %v6516_v29, %v6517_v38 }
 0x343   : > { %v6562_v20 = vmax.f32 %v6560_v8, %v6561_v51  ;;  %v6512_v2 = vrot.slane %v6511_v37, 2  ;;  %v6525_v40 = vmax.f32 %v6523_v62, %v6524_v47  ;;  %v6532_v35 = vmax.f32 %v6530_v54, %v6531_v36 }
 0x344   : > { %v6550_v27 = vmax.f32 %v6548_v57, %v6549_v18  ;;  %v6557_v49 = vmax.f32 %v6555_v22, %v6556_v11  ;;  %v7367_v63 = vadd.f32 %v17342_v46, %v6543_v13  ;;  %v6519_v33 = vrot.slane %v6518_v16, 2 }
 0x345   : > { %v6563_v3 = vrot.slane %v6562_v20, 1  ;;  %v6513_v31 = vmax.f32 %v6511_v37, %v6512_v2  ;;  %v6526_v30 = vrot.slane %v6525_v40, 2  ;;  %v6533_v29 = vrot.slane %v6532_v35, 2 }
 0x346   : > { %v7368_v15 = vadd.f32 %v17342_v46, %v6550_v27  ;;  %v7369_v17 = vadd.f32 %v17342_v46, %v6557_v49  ;;  %v7495_v12 = vmax.f32 %v7367_v63, 0.0  ;;  %v6520_v26 = vmax.f32 %v6518_v16, %v6519_v33  ;;  %v13278_v16 = vpop.f32.mrf.mxu0  ;;  %v21190_v63 = vld [vmem:[#allocation140_spill] sm:$0xff] }
 0x347   : > { %v6564_v25 = vmax.f32 %v6562_v20, %v6563_v3  ;;  %v6514_v8 = vrot.slane %v6513_v31, 1  ;;  %v6527_v55 = vmax.f32 %v6525_v40, %v6526_v30  ;;  %v5664_v22 = vsel %vm5651_vm5, %v17365_v19, -inf }
 0x348   : > { %v7496_v62 = vmax.f32 %v7368_v15, 0.0  ;;  %v7497_v41 = vmax.f32 %v7369_v17, 0.0  ;;  %v6521_v57 = vrot.slane %v6520_v26, 1  ;;  %v6534_v47 = vmax.f32 %v6532_v35, %v6533_v29  ;;  %v21191_v35 = vld [vmem:[#allocation141_spill] sm:$0xff] }
 0x349   : > { %v7370_v38 = vadd.f32 %v17342_v46, %v6564_v25  ;;  %v6515_v51 = vmax.f32 %v6513_v31, %v6514_v8  ;;  %v6528_v37 = vrot.slane %v6527_v55, 1  ;;  %v7820_v54 = vrot.slane %v7495_v12, 4 }
 0x34a   : > { %v7822_v13 = vrot.slane %v7496_v62, 3  ;;  %v6522_v18 = vmax.f32 %v6520_v26, %v6521_v57  ;;  %v5668_v11 = vsel %vm5651_vm5, %v17373_v56, -inf  ;;  %v6535_v40 = vrot.slane %v6534_v47, 1 }
 0x34b   : > { %v7498_v20 = vmax.f32 %v7370_v38, 0.0  ;;  %v6529_v2 = vmax.f32 %v6527_v55, %v6528_v37  ;;  %v7363_v36 = vadd.f32 %v17342_v46, %v6515_v51  ;;  %v7824_v27 = vrot.slane %v7497_v41, 2 }
 0x34c   : > { %v7364_v19 = vadd.f32 %v17342_v46, %v6522_v18  ;;  %v5669_v49 = vmax.f32 %v17368_v14, %v5668_v11  ;;  %v5596_v33 = vadd.f32 %v5317_v61, %v21190_v63  ;;  %v6536_v31 = vmax.f32 %v6534_v47, %v6535_v40 }
 0x34d   : > { %v7826_v3 = vrot.slane %v7498_v20, 1  ;;  %v7365_v30 = vadd.f32 %v17342_v46, %v6529_v2  ;;  %v17409_v15 = vadd.f32 %v13278_v16, %v21191_v35  ;;  %v7491_v8 = vmax.f32 %v7363_v36, 0.0 }
 0x34e   : > { %v7492_v56 = vmax.f32 %v7364_v19, 0.0  ;;  %v5865_v17 = vcombine.high %v5669_v49, %v5669_v49  ;;  %v5872_v12 = vrot.slane %v5669_v49, %v17050_v1  ;;  %v5665_v26 = vsel %vm5651_vm5, %v5596_v33, -inf  ;;  %v17423_v33 = vpop.f32.mrf.mxu0 }
 0x34f   : > { %v7366_v25 = vadd.f32 %v17342_v46, %v6536_v31  ;;  %v7493_v55 = vmax.f32 %v7365_v30, 0.0  ;;  %v5666_v14 = vmax.f32 %v5664_v22, %v5665_v26  ;;  %v8610_v31 = vld [vmem:[%s20055_s3 + $0x228] sm:$0xff] }
 0x350   : > { %v7814_v29 = vrot.slane %v7492_v56, 7  ;;  %v5879_v61 = vrot.slane %v5865_v17, %v17050_v1  ;;  %v5880_v62 = vcombine.high %v5872_v12, %v5872_v12  ;;  %v6593_v41 = vsel %vm6452_vm6, %v5872_v12, -inf  ;;  %13358 = vmatprep.subr.mxu0 %v8610_v31 }
 0x351   : > { %v7494_v57 = vmax.f32 %v7366_v25, 0.0  ;;  %v7816_v38 = vrot.slane %v7493_v55, 6  ;;  %v6594_v51 = vrot.slane %v6593_v41, 4  ;;  %v5848_v37 = vcombine.high %v5666_v14, %v5666_v14  ;;  %13359 = vmatpush3.msra.mxu0 %v8610_v31  ;;  %v8609_v55 = vld [vmem:[%s20055_s3 + $0x220] sm:$0xff] }
 0x352   : > { %v7815_v47 = vsel %vm7794_vm7, %v7814_v29, %v7491_v8  ;;  %v5881_v18 = vcombine.high %v5879_v61, %v5879_v61  ;;  %v6600_v11 = vsel %vm6452_vm6, %v5880_v62, -inf  ;;  %v6607_v16 = vsel %vm6452_vm6, %v5879_v61, -inf  ;;  %13360 = vmatprep.subr.mxu0 %v8609_v55 }
 0x353   : > { %v7817_v20 = vsel %vm7797_vm8, %v7816_v38, %v7815_v47  ;;  %v7818_v22 = vrot.slane %v7494_v57, 5  ;;  %v6595_v2 = vmax.f32 %v6593_v41, %v6594_v51  ;;  %v6601_v40 = vrot.slane %v6600_v11, 4  ;;  %v17437_v51 = vpop.f32.mrf.mxu0  ;;  %13361 = vmatpush3.msra.mxu0 %v8609_v55 }
 0x354   : > { %v6608_v36 = vrot.slane %v6607_v16, 4  ;;  %v6614_v19 = vsel %vm6452_vm6, %v5881_v18, -inf  ;;  %v5855_v49 = vrot.slane %v5666_v14, %v17050_v1  ;;  %v5862_v63 = vrot.slane %v5848_v37, %v17050_v1  ;;  %v8608_v37 = vld [vmem:[%s20055_s3 + $0x218] sm:$0xff] }
 0x355   : > { %v7819_v30 = vsel %vm7800_vm9, %v7818_v22, %v7817_v20  ;;  %v6596_v35 = vrot.slane %v6595_v2, 2  ;;  %v6602_v56 = vmax.f32 %v6600_v11, %v6601_v40  ;;  %v6615_v17 = vrot.slane %v6614_v19, 4  ;;  %13362 = vmatprep.subr.mxu0 %v8608_v37 }
 0x356   : > { %v7821_v12 = vsel %vm7803_vm10, %v7820_v54, %v7819_v30  ;;  %v6609_v26 = vmax.f32 %v6607_v16, %v6608_v36  ;;  %v5863_v25 = vcombine.high %v5855_v49, %v5855_v49  ;;  %v5864_v8 = vcombine.high %v5862_v63, %v5862_v63  ;;  %13363 = vmatpush3.msra.mxu0 %v8608_v37 }
 0x357   : > { %v7823_v14 = vsel %vm7806_vm11, %v7822_v13, %v7821_v12  ;;  %v6597_v29 = vmax.f32 %v6595_v2, %v6596_v35  ;;  %v6603_v61 = vrot.slane %v6602_v56, 2  ;;  %v6616_v62 = vmax.f32 %v6614_v19, %v6615_v17  ;;  %v8607_v2 = vld [vmem:[%s20055_s3 + $0x210] sm:$0xff] }
 0x358   : > { %v7825_v41 = vsel %vm7809_vm12, %v7824_v27, %v7823_v14  ;;  %v6610_v57 = vrot.slane %v6609_v26, 2  ;;  %v6565_v38 = vsel %vm6452_vm6, %v5855_v49, -inf  ;;  %v6572_v54 = vsel %vm6452_vm6, %v5863_v25, -inf  ;;  %13364 = vmatprep.subr.mxu0 %v8607_v2 }
 0x359   : > { %v7827_v13 = vsel %vm7812_vm13, %v7826_v3, %v7825_v41  ;;  %v6598_v47 = vrot.slane %v6597_v29, 1  ;;  %v6604_v18 = vmax.f32 %v6602_v56, %v6603_v61  ;;  %v6617_v11 = vrot.slane %v6616_v62, 2  ;;  %v5337_v56 = vpop.f32.mrf.mxu0  ;;  %13365 = vmatpush3.msra.mxu0 %v8607_v2 }
 0x35a   : > { %8042 = vst.msk [vmem:[#allocation3 + $0x38] sm:$0xff] %vm5651_vm5, %v7827_v13  ;;  %v6611_v27 = vmax.f32 %v6609_v26, %v6610_v57  ;;  %v6566_v16 = vrot.slane %v6565_v38, 4  ;;  %v6573_v20 = vrot.slane %v6572_v54, 4  ;;  %v6579_v22 = vsel %vm6452_vm6, %v5862_v63, -inf }
 0x35b   : > { %v6599_v40 = vmax.f32 %v6597_v29, %v6598_v47  ;;  %v6605_v36 = vrot.slane %v6604_v18, 1  ;;  %v6618_v19 = vmax.f32 %v6616_v62, %v6617_v11  ;;  %v6580_v3 = vrot.slane %v6579_v22, 4  ;;  %v13284_v13 = vpop.f32.mrf.mxu0 }
 0x35c   : > { %v6612_v49 = vrot.slane %v6611_v27, 1  ;;  %v6567_v31 = vmax.f32 %v6565_v38, %v6566_v16  ;;  %v6574_v30 = vmax.f32 %v6572_v54, %v6573_v20  ;;  %v6586_v35 = vsel %vm6452_vm6, %v5864_v8, -inf }
 0x35d   : > { %v6606_v17 = vmax.f32 %v6604_v18, %v6605_v36  ;;  %v6619_v12 = vrot.slane %v6618_v19, 1  ;;  %v7375_v63 = vadd.f32 %v17342_v46, %v6599_v40  ;;  %v6581_v26 = vmax.f32 %v6579_v22, %v6580_v3 }
 0x35e   : > { %v6613_v25 = vmax.f32 %v6611_v27, %v6612_v49  ;;  %v6568_v55 = vrot.slane %v6567_v31, 2  ;;  %v6575_v14 = vrot.slane %v6574_v30, 2  ;;  %v6587_v29 = vrot.slane %v6586_v35, 4 }
 0x35f   : > { %v6620_v61 = vmax.f32 %v6618_v19, %v6619_v12  ;;  %v7376_v62 = vadd.f32 %v17342_v46, %v6606_v17  ;;  %v7503_v41 = vmax.f32 %v7375_v63, 0.0  ;;  %v6582_v57 = vrot.slane %v6581_v26, 2  ;;  %v5347_v17 = vpop.f32.mrf.mxu0 }
 0x360   : > { %v7377_v38 = vadd.f32 %v17342_v46, %v6613_v25  ;;  %v6569_v54 = vmax.f32 %v6567_v31, %v6568_v55  ;;  %v6576_v8 = vmax.f32 %v6574_v30, %v6575_v14  ;;  %v6588_v37 = vmax.f32 %v6586_v35, %v6587_v29 }
 0x361   : > { %v7378_v47 = vadd.f32 %v17342_v46, %v6620_v61  ;;  %v7504_v18 = vmax.f32 %v7376_v62, 0.0  ;;  %v6583_v11 = vmax.f32 %v6581_v26, %v6582_v57  ;;  %v5673_v27 = vsel %vm5651_vm5, %v17409_v15, -inf  ;;  %v21192_v26 = vld [vmem:[#allocation98_spill] sm:$0xff]  ;;  %v21194_v57 = vld [vmem:[#allocation100_spill] sm:$0xff] }
 0x362   : > { %v7505_v16 = vmax.f32 %v7377_v38, 0.0  ;;  %v6570_v20 = vrot.slane %v6569_v54, 1  ;;  %v6577_v22 = vrot.slane %v6576_v8, 1  ;;  %v6589_v2 = vrot.slane %v6588_v37, 2 }
 0x363   : > { %v7506_v40 = vmax.f32 %v7378_v47, 0.0  ;;  %v7834_v36 = vrot.slane %v7503_v41, 4  ;;  %v17455_v19 = vrot.slane %v7504_v18, 3  ;;  %v6584_v3 = vrot.slane %v6583_v11, 1  ;;  %v13287_v47 = vpop.f32.mrf.mxu0 }
 0x364   : > { %v6571_v49 = vmax.f32 %v6569_v54, %v6570_v20  ;;  %v6578_v31 = vmax.f32 %v6576_v8, %v6577_v22  ;;  %v6590_v30 = vmax.f32 %v6588_v37, %v6589_v2  ;;  %v5598_v35 = vadd.f32 %v17423_v33, %v17101_v45  ;;  %v21193_v33 = vld [vmem:[#allocation99_spill] sm:$0xff] }
 0x365   : > { %v17459_v12 = vrot.slane %v7505_v16, 2  ;;  %v17461_v63 = vrot.slane %v7506_v40, 1  ;;  %v6585_v15 = vmax.f32 %v6583_v11, %v6584_v3  ;;  %v5601_v25 = vadd.f32 %v17437_v51, %v21192_v26 }
 0x366   : > { %v6591_v55 = vrot.slane %v6590_v30, 1  ;;  %v7371_v14 = vadd.f32 %v17342_v46, %v6571_v49  ;;  %v7372_v29 = vadd.f32 %v17342_v46, %v6578_v31  ;;  %v5600_v61 = vadd.f32 %v5337_v56, %v17110_v44 }
 0x367   : > { %v7373_v62 = vadd.f32 %v17342_v46, %v6585_v15  ;;  %v5674_v45 = vsel %vm5651_vm5, %v5601_v25, -inf  ;;  %v5603_v41 = vadd.f32 %v13284_v13, %v21193_v33  ;;  %v5602_v38 = vadd.f32 %v5347_v17, %v21194_v57 }
 0x368   : > { %v6592_v54 = vmax.f32 %v6590_v30, %v6591_v55  ;;  %v7500_v8 = vmax.f32 %v7372_v29, 0.0  ;;  %v5670_v37 = vsel %vm5651_vm5, %v5598_v35, -inf  ;;  %v5675_v51 = vmax.f32 %v5673_v27, %v5674_v45 }
 0x369   : > { %v7499_v18 = vmax.f32 %v7371_v14, 0.0  ;;  %v7501_v11 = vmax.f32 %v7373_v62, 0.0  ;;  %v5671_v16 = vsel %vm5651_vm5, %v5600_v61, -inf  ;;  %v17475_v44 = vsel %vm5651_vm5, %v5603_v41, -inf  ;;  %v8606_v41 = vld [vmem:[%s20055_s3 + $0x208] sm:$0xff] }
 0x36a   : > { %v7374_v56 = vadd.f32 %v17342_v46, %v6592_v54  ;;  %v7828_v20 = vrot.slane %v7500_v8, 7  ;;  %v5899_v22 = vcombine.high %v5675_v51, %v5675_v51  ;;  %v5906_v13 = vrot.slane %v5675_v51, %v17050_v1  ;;  %13366 = vmatprep.subr.mxu0 %v8606_v41 }
 0x36b   : > { %v7830_v2 = vrot.slane %v7501_v11, 6  ;;  %v5672_v40 = vmax.f32 %v5670_v37, %v5671_v16  ;;  %v17480_v3 = vsel %vm5651_vm5, %v5602_v38, -inf  ;;  %v17483_v27 = vadd.f32 %v13287_v47, %v17127_v0  ;;  %13367 = vmatpush3.msra.mxu0 %v8606_v41  ;;  %v8605_v11 = vld [vmem:[%s20055_s3 + $0x200] sm:$0xff] }
 0x36c   : > { %v7502_v49 = vmax.f32 %v7374_v56, 0.0  ;;  %v7829_v31 = vsel %vm7794_vm7, %v7828_v20, %v7499_v18  ;;  %v5913_v30 = vrot.slane %v5899_v22, %v17050_v1  ;;  %v5914_v35 = vcombine.high %v5906_v13, %v5906_v13  ;;  %13368 = vmatprep.subr.mxu0 %v8605_v11 }
 0x36d   : > { %v7831_v17 = vsel %vm7797_vm8, %v7830_v2, %v7829_v31  ;;  %v6649_v15 = vsel %vm6452_vm6, %v5906_v13, -inf  ;;  %v5882_v26 = vcombine.high %v5672_v40, %v5672_v40  ;;  %v5889_v25 = vrot.slane %v5672_v40, %v17050_v1  ;;  %13369 = vmatpush3.msra.mxu0 %v8605_v11 }
 0x36e   : > { %v7832_v55 = vrot.slane %v7502_v49, 5  ;;  %v5915_v14 = vcombine.high %v5913_v30, %v5913_v30  ;;  %v6650_v29 = vrot.slane %v6649_v15, 4  ;;  %v6656_v61 = vsel %vm6452_vm6, %v5914_v35, -inf }
 0x36f   : > { %v6657_v0 = vrot.slane %v6656_v61, 4  ;;  %v6663_v62 = vsel %vm6452_vm6, %v5913_v30, -inf  ;;  %v5896_v45 = vrot.slane %v5882_v26, %v17050_v1  ;;  %v5897_v33 = vcombine.high %v5889_v25, %v5889_v25 }
 0x370   : > { %v7833_v57 = vsel %vm7800_vm9, %v7832_v55, %v7831_v17  ;;  %v6651_v38 = vmax.f32 %v6649_v15, %v6650_v29  ;;  %v6664_v54 = vrot.slane %v6663_v62, 4  ;;  %v6670_v8 = vsel %vm6452_vm6, %v5915_v14, -inf }
 0x371   : > { %v7835_v37 = vsel %vm7803_vm10, %v7834_v36, %v7833_v57  ;;  %v6658_v51 = vmax.f32 %v6656_v61, %v6657_v0  ;;  %v6671_v47 = vrot.slane %v6670_v8, 4  ;;  %v5898_v18 = vcombine.high %v5896_v45, %v5896_v45 }
 0x372   : > { %v7837_v16 = vsel %vm7806_vm11, %v17455_v19, %v7835_v37  ;;  %v6652_v56 = vrot.slane %v6651_v38, 2  ;;  %v6665_v20 = vmax.f32 %v6663_v62, %v6664_v54  ;;  %v6621_v22 = vsel %vm6452_vm6, %v5889_v25, -inf }
 0x373   : > { %v7839_v13 = vsel %vm7809_vm12, %v17459_v12, %v7837_v16  ;;  %v6659_v36 = vrot.slane %v6658_v51, 2  ;;  %v6672_v2 = vmax.f32 %v6670_v8, %v6671_v47  ;;  %v6622_v40 = vrot.slane %v6621_v22, 4 }
 0x374   : > { %v7841_v49 = vsel %vm7812_vm13, %v17461_v63, %v7839_v13  ;;  %v6653_v31 = vmax.f32 %v6651_v38, %v6652_v56  ;;  %v6666_v30 = vrot.slane %v6665_v20, 2  ;;  %v6628_v35 = vsel %vm6452_vm6, %v5897_v33, -inf }
 0x375   : > { %8043 = vst.msk [vmem:[#allocation3 + $0x50] sm:$0xff] %vm5651_vm5, %v7841_v49  ;;  %v6660_v19 = vmax.f32 %v6658_v51, %v6659_v36  ;;  %v6673_v17 = vrot.slane %v6672_v2, 2  ;;  %v6623_v15 = vmax.f32 %v6621_v22, %v6622_v40  ;;  %v6629_v26 = vrot.slane %v6628_v35, 4  ;;  %v5357_v51 = vpop.f32.mrf.mxu0 }
 0x376   : > { %v6654_v25 = vrot.slane %v6653_v31, 1  ;;  %v6667_v55 = vmax.f32 %v6665_v20, %v6666_v30  ;;  %v6635_v12 = vsel %vm6452_vm6, %v5896_v45, -inf  ;;  %v6642_v14 = vsel %vm6452_vm6, %v5898_v18, -inf }
 0x377   : > { %v6661_v29 = vrot.slane %v6660_v19, 1  ;;  %v6674_v61 = vmax.f32 %v6672_v2, %v6673_v17  ;;  %v6624_v0 = vrot.slane %v6623_v15, 2  ;;  %v6630_v63 = vmax.f32 %v6628_v35, %v6629_v26 }
 0x378   : > { %v6655_v62 = vmax.f32 %v6653_v31, %v6654_v25  ;;  %v6668_v41 = vrot.slane %v6667_v55, 1  ;;  %v6636_v57 = vrot.slane %v6635_v12, 4  ;;  %v6643_v33 = vrot.slane %v6642_v14, 4 }
 0x379   : > { %v6662_v38 = vmax.f32 %v6660_v19, %v6661_v29  ;;  %v6675_v54 = vrot.slane %v6674_v61, 1  ;;  %v6625_v8 = vmax.f32 %v6623_v15, %v6624_v0  ;;  %v6631_v37 = vrot.slane %v6630_v63, 2  ;;  %v13290_v19 = vpop.f32.mrf.mxu0 }
 0x37a   : > { %v6669_v47 = vmax.f32 %v6667_v55, %v6668_v41  ;;  %v7383_v11 = vadd.f32 %v17342_v46, %v6655_v62  ;;  %v6637_v16 = vmax.f32 %v6635_v12, %v6636_v57  ;;  %v6644_v45 = vmax.f32 %v6642_v14, %v6643_v33 }
 0x37b   : > { %v6676_v56 = vmax.f32 %v6674_v61, %v6675_v54  ;;  %v7384_v18 = vadd.f32 %v17342_v46, %v6662_v38  ;;  %v6626_v20 = vrot.slane %v6625_v8, 1  ;;  %v6632_v22 = vmax.f32 %v6630_v63, %v6631_v37  ;;  %v5367_v54 = vpop.f32.mrf.mxu0 }
 0x37c   : > { %v7385_v13 = vadd.f32 %v17342_v46, %v6669_v47  ;;  %v7511_v36 = vmax.f32 %v7383_v11, 0.0  ;;  %v6638_v2 = vrot.slane %v6637_v16, 2  ;;  %v6645_v40 = vrot.slane %v6644_v45, 2 }
 0x37d   : > { %v7386_v49 = vadd.f32 %v17342_v46, %v6676_v56  ;;  %v7512_v31 = vmax.f32 %v7384_v18, 0.0  ;;  %v6627_v30 = vmax.f32 %v6625_v8, %v6626_v20  ;;  %v6633_v35 = vrot.slane %v6632_v22, 1 }
 0x37e   : > { %v7513_v17 = vmax.f32 %v7385_v13, 0.0  ;;  %v6639_v15 = vmax.f32 %v6637_v16, %v6638_v2  ;;  %v6646_v26 = vmax.f32 %v6644_v45, %v6645_v40  ;;  %v5604_v25 = vadd.f32 %v5357_v51, %v17130_v10 }
 0x37f   : > { %v7514_v55 = vmax.f32 %v7386_v49, 0.0  ;;  %v7848_v12 = vrot.slane %v7511_v36, 4  ;;  %v6634_v14 = vmax.f32 %v6632_v22, %v6633_v35  ;;  %v7379_v29 = vadd.f32 %v17342_v46, %v6627_v30 }
 0x380   : > { %v7850_v61 = vrot.slane %v7512_v31, 3  ;;  %v6640_v0 = vrot.slane %v6639_v15, 1  ;;  %v6647_v63 = vrot.slane %v6646_v26, 1  ;;  %v5680_v62 = vsel %vm5651_vm5, %v17483_v27, -inf }
 0x381   : > { %v7852_v41 = vrot.slane %v7513_v17, 2  ;;  %v7854_v57 = vrot.slane %v7514_v55, 1  ;;  %v7380_v33 = vadd.f32 %v17342_v46, %v6634_v14  ;;  %v5681_v38 = vmax.f32 %v17475_v44, %v5680_v62 }
 0x382   : > { %v6641_v8 = vmax.f32 %v6639_v15, %v6640_v0  ;;  %v6648_v10 = vmax.f32 %v6646_v26, %v6647_v63  ;;  %v7507_v37 = vmax.f32 %v7379_v29, 0.0  ;;  %v5677_v51 = vsel %vm5651_vm5, %v5604_v25, -inf }
 0x383   : > { %v7508_v47 = vmax.f32 %v7380_v33, 0.0  ;;  %v5933_v11 = vcombine.high %v5681_v38, %v5681_v38  ;;  %v5940_v16 = vrot.slane %v5681_v38, %v17050_v1  ;;  %v5678_v45 = vmax.f32 %v17480_v3, %v5677_v51 }
 0x384   : > { %v7381_v27 = vadd.f32 %v17342_v46, %v6641_v8  ;;  %v7382_v56 = vadd.f32 %v17342_v46, %v6648_v10  ;;  %v17529_v18 = vadd.f32 %v13290_v19, %v17135_v24  ;;  %v17532_v44 = vadd.f32 %v5367_v54, %v17142_v52 }
 0x385   : > { %v7842_v20 = vrot.slane %v7508_v47, 7  ;;  %v5947_v22 = vrot.slane %v5933_v11, %v17050_v1  ;;  %v5948_v13 = vcombine.high %v5940_v16, %v5940_v16  ;;  %v6705_v36 = vsel %vm6452_vm6, %v5940_v16, -inf }
 0x386   : > { %v7509_v2 = vmax.f32 %v7381_v27, 0.0  ;;  %v7510_v40 = vmax.f32 %v7382_v56, 0.0  ;;  %v6706_v49 = vrot.slane %v6705_v36, 4  ;;  %v5916_v3 = vcombine.high %v5678_v45, %v5678_v45  ;;  %v13293_v56 = vpop.f32.mrf.mxu0 }
 0x387   : > { %v7843_v31 = vsel %vm7794_vm7, %v7842_v20, %v7507_v37  ;;  %v5949_v30 = vcombine.high %v5947_v22, %v5947_v22  ;;  %v6712_v35 = vsel %vm6452_vm6, %v5948_v13, -inf  ;;  %v6719_v24 = vsel %vm6452_vm6, %v5947_v22, -inf }
 0x388   : > { %v7844_v19 = vrot.slane %v7509_v2, 6  ;;  %v7846_v52 = vrot.slane %v7510_v40, 5  ;;  %v6707_v17 = vmax.f32 %v6705_v36, %v6706_v49  ;;  %v6713_v15 = vrot.slane %v6712_v35, 4 }
 0x389   : > { %v6720_v26 = vrot.slane %v6719_v24, 4  ;;  %v6726_v25 = vsel %vm6452_vm6, %v5949_v30, -inf  ;;  %v5923_v55 = vrot.slane %v5678_v45, %v17050_v1  ;;  %v5930_v14 = vrot.slane %v5916_v3, %v17050_v1 }
 0x38a   : > { %v7845_v29 = vsel %vm7797_vm8, %v7844_v19, %v7843_v31  ;;  %v6708_v0 = vrot.slane %v6707_v17, 2  ;;  %v6714_v63 = vmax.f32 %v6712_v35, %v6713_v15  ;;  %v6727_v62 = vrot.slane %v6726_v25, 4 }
 0x38b   : > { %v7847_v33 = vsel %vm7800_vm9, %v7846_v52, %v7845_v29  ;;  %v6721_v38 = vmax.f32 %v6719_v24, %v6720_v26  ;;  %v5931_v54 = vcombine.high %v5923_v55, %v5923_v55  ;;  %v5932_v8 = vcombine.high %v5930_v14, %v5930_v14 }
 0x38c   : > { %v7849_v10 = vsel %vm7803_vm10, %v7848_v12, %v7847_v33  ;;  %v6709_v37 = vmax.f32 %v6707_v17, %v6708_v0  ;;  %v6715_v51 = vrot.slane %v6714_v63, 2  ;;  %v6728_v47 = vmax.f32 %v6726_v25, %v6727_v62 }
 0x38d   : > { %v7851_v11 = vsel %vm7806_vm11, %v7850_v61, %v7849_v10  ;;  %v6722_v16 = vrot.slane %v6721_v38, 2  ;;  %v6677_v45 = vsel %vm6452_vm6, %v5923_v55, -inf  ;;  %v6684_v27 = vsel %vm6452_vm6, %v5931_v54, -inf }
 0x38e   : > { %v7853_v20 = vsel %vm7809_vm12, %v7852_v41, %v7851_v11  ;;  %v6710_v22 = vrot.slane %v6709_v37, 1  ;;  %v6716_v13 = vmax.f32 %v6714_v63, %v6715_v51  ;;  %v6729_v36 = vrot.slane %v6728_v47, 2  ;;  %v5377_v41 = vpop.f32.mrf.mxu0 }
 0x38f   : > { %v7855_v2 = vsel %vm7812_vm13, %v7854_v57, %v7853_v20  ;;  %v6723_v40 = vmax.f32 %v6721_v38, %v6722_v16  ;;  %v6678_v12 = vrot.slane %v6677_v45, 4  ;;  %v6685_v49 = vrot.slane %v6684_v27, 4 }
 0x390   : > { %8044 = vst.msk [vmem:[#allocation3 + $0x68] sm:$0xff] %vm5651_vm5, %v7855_v2  ;;  %v6711_v3 = vmax.f32 %v6709_v37, %v6710_v22  ;;  %v6717_v61 = vrot.slane %v6716_v13, 1  ;;  %v6730_v31 = vmax.f32 %v6728_v47, %v6729_v36  ;;  %v6691_v30 = vsel %vm6452_vm6, %v5930_v14, -inf  ;;  %v13296_v51 = vpop.f32.mrf.mxu0 }
 0x391   : > { %v6724_v35 = vrot.slane %v6723_v40, 1  ;;  %v6679_v24 = vmax.f32 %v6677_v45, %v6678_v12  ;;  %v6686_v19 = vmax.f32 %v6684_v27, %v6685_v49  ;;  %v6692_v52 = vrot.slane %v6691_v30, 4 }
 0x392   : > { %v6718_v17 = vmax.f32 %v6716_v13, %v6717_v61  ;;  %v6731_v15 = vrot.slane %v6730_v31, 1  ;;  %v7391_v26 = vadd.f32 %v17342_v46, %v6711_v3  ;;  %v6698_v57 = vsel %vm6452_vm6, %v5932_v8, -inf  ;;  %v5387_v61 = vpop.f32.mrf.mxu0 }
 0x393   : > { %v6725_v25 = vmax.f32 %v6723_v40, %v6724_v35  ;;  %v6680_v55 = vrot.slane %v6679_v24, 2  ;;  %v6687_v29 = vrot.slane %v6686_v19, 2  ;;  %v6693_v0 = vmax.f32 %v6691_v30, %v6692_v52 }
 0x394   : > { %v6732_v63 = vmax.f32 %v6730_v31, %v6731_v15  ;;  %v7392_v62 = vadd.f32 %v17342_v46, %v6718_v17  ;;  %v7519_v33 = vmax.f32 %v7391_v26, 0.0  ;;  %v6699_v14 = vrot.slane %v6698_v57, 4 }
 0x395   : > { %v7393_v38 = vadd.f32 %v17342_v46, %v6725_v25  ;;  %v6681_v54 = vmax.f32 %v6679_v24, %v6680_v55  ;;  %v6688_v10 = vmax.f32 %v6686_v19, %v6687_v29  ;;  %v6694_v37 = vrot.slane %v6693_v0, 2  ;;  %v17572_v19 = vld [vmem:[%s20054_s2] ss:$0 sm:$0xff]  ;;  %v13299_v55 = vpop.f32.mrf.mxu0 }
 0x396   : > { %v7394_v47 = vadd.f32 %v17342_v46, %v6732_v63  ;;  %v7520_v11 = vmax.f32 %v7392_v62, 0.0  ;;  %v6700_v16 = vmax.f32 %v6698_v57, %v6699_v14  ;;  %v5685_v8 = vsel %vm5651_vm5, %v17529_v18, -inf }
 0x397   : > { %v7521_v45 = vmax.f32 %v7393_v38, 0.0  ;;  %v6682_v27 = vrot.slane %v6681_v54, 1  ;;  %v6689_v20 = vrot.slane %v6688_v10, 1  ;;  %v6695_v22 = vmax.f32 %v6693_v0, %v6694_v37 }
 0x398   : > { %v7522_v13 = vmax.f32 %v7394_v47, 0.0  ;;  %v17559_v36 = vrot.slane %v7519_v33, 4  ;;  %v17561_v2 = vrot.slane %v7520_v11, 3  ;;  %v6701_v40 = vrot.slane %v6700_v16, 2 }
 0x399   : > { %v6683_v12 = vmax.f32 %v6681_v54, %v6682_v27  ;;  %v6690_v49 = vmax.f32 %v6688_v10, %v6689_v20  ;;  %v6696_v3 = vrot.slane %v6695_v22, 1  ;;  %v5682_v46 = vsel %vm5651_vm5, %v17532_v44, -inf }
 0x39a   : > { %v17565_v31 = vrot.slane %v7521_v45, 2  ;;  %v6702_v18 = vmax.f32 %v6700_v16, %v6701_v40  ;;  %v5609_v30 = vadd.f32 %v13293_v56, %v17146_v50  ;;  %v5608_v35 = vadd.f32 %v5377_v41, %v17153_v48 }
 0x39b   : > { %v6697_v24 = vmax.f32 %v6695_v22, %v6696_v3  ;;  %v7387_v52 = vadd.f32 %v17572_v19, %v6683_v12  ;;  %v7388_v17 = vadd.f32 %v17572_v19, %v6690_v49  ;;  %v5611_v44 = vadd.f32 %v13296_v51, %v17162_v6 }
 0x39c   : > { %v7868_v15 = vrot.slane %v7522_v13, 1  ;;  %v6703_v26 = vrot.slane %v6702_v18, 1  ;;  %v5686_v57 = vsel %vm5651_vm5, %v5609_v30, -inf  ;;  %v5683_v50 = vsel %vm5651_vm5, %v5608_v35, -inf }
 0x39d   : > { %v7389_v48 = vadd.f32 %v17572_v19, %v6697_v24  ;;  %v7516_v56 = vmax.f32 %v7388_v17, 0.0  ;;  %v5687_v41 = vmax.f32 %v5685_v8, %v5686_v57  ;;  %v17581_v25 = vadd.f32 %v5387_v61, %v17165_v34 }
 0x39e   : > { %v6704_v29 = vmax.f32 %v6702_v18, %v6703_v26  ;;  %v7515_v0 = vmax.f32 %v7387_v52, 0.0  ;;  %v5684_v63 = vmax.f32 %v5682_v46, %v5683_v50  ;;  %v17584_v62 = vsel %vm5651_vm5, %v5611_v44, -inf }
 0x39f   : > { %v7517_v6 = vmax.f32 %v7389_v48, 0.0  ;;  %v7856_v33 = vrot.slane %v7516_v56, 7  ;;  %v5967_v14 = vcombine.high %v5687_v41, %v5687_v41  ;;  %v5974_v38 = vrot.slane %v5687_v41, %v17050_v1 }
 0x3a0   : > { %v7390_v54 = vadd.f32 %v17572_v19, %v6704_v29  ;;  %v5950_v10 = vcombine.high %v5684_v63, %v5684_v63  ;;  %v5957_v37 = vrot.slane %v5684_v63, %v17050_v1  ;;  %v17590_v34 = vadd.f32 %v13299_v55, %v17169_v60 }
 0x3a1   : > { %v7857_v51 = vsel %vm7794_vm7, %v7856_v33, %v7515_v0  ;;  %v7858_v47 = vrot.slane %v7517_v6, 6  ;;  %v5981_v11 = vrot.slane %v5967_v14, %v17050_v1  ;;  %v5982_v16 = vcombine.high %v5974_v38, %v5974_v38 }
 0x3a2   : > { %v7518_v8 = vmax.f32 %v7390_v54, 0.0  ;;  %v6761_v45 = vsel %vm6452_vm6, %v5974_v38, -inf  ;;  %v5964_v27 = vrot.slane %v5950_v10, %v17050_v1  ;;  %v5965_v20 = vcombine.high %v5957_v37, %v5957_v37 }
 0x3a3   : > { %v7859_v22 = vsel %vm7797_vm8, %v7858_v47, %v7857_v51  ;;  %v5983_v13 = vcombine.high %v5981_v11, %v5981_v11  ;;  %v6762_v40 = vrot.slane %v6761_v45, 4  ;;  %v6768_v12 = vsel %vm6452_vm6, %v5982_v16, -inf }
 0x3a4   : > { %v7860_v60 = vrot.slane %v7518_v8, 5  ;;  %v6769_v49 = vrot.slane %v6768_v12, 4  ;;  %v6775_v3 = vsel %vm6452_vm6, %v5981_v11, -inf  ;;  %v5966_v46 = vcombine.high %v5964_v27, %v5964_v27 }
 0x3a5   : > { %v6763_v61 = vmax.f32 %v6761_v45, %v6762_v40  ;;  %v6776_v18 = vrot.slane %v6775_v3, 4  ;;  %v6782_v30 = vsel %vm6452_vm6, %v5983_v13, -inf  ;;  %v6733_v35 = vsel %vm6452_vm6, %v5957_v37, -inf }
 0x3a6   : > { %v7861_v24 = vsel %vm7800_vm9, %v7860_v60, %v7859_v22  ;;  %v6770_v52 = vmax.f32 %v6768_v12, %v6769_v49  ;;  %v6783_v17 = vrot.slane %v6782_v30, 4  ;;  %v6734_v44 = vrot.slane %v6733_v35, 4 }
 0x3a7   : > { %v7863_v26 = vsel %vm7803_vm10, %v17559_v36, %v7861_v24  ;;  %v6764_v57 = vrot.slane %v6763_v61, 2  ;;  %v6777_v50 = vmax.f32 %v6775_v3, %v6776_v18  ;;  %v6740_v48 = vsel %vm6452_vm6, %v5965_v20, -inf }
 0x3a8   : > { %v7865_v56 = vsel %vm7806_vm11, %v17561_v2, %v7863_v26  ;;  %v6771_v41 = vrot.slane %v6770_v52, 2  ;;  %v6784_v55 = vmax.f32 %v6782_v30, %v6783_v17  ;;  %v6735_v29 = vmax.f32 %v6733_v35, %v6734_v44 }
 0x3a9   : > { %v7867_v0 = vsel %vm7809_vm12, %v17565_v31, %v7865_v56  ;;  %v6765_v63 = vmax.f32 %v6763_v61, %v6764_v57  ;;  %v6778_v6 = vrot.slane %v6777_v50, 2  ;;  %v6741_v33 = vrot.slane %v6740_v48, 4 }
 0x3aa   : > { %v7869_v14 = vsel %vm7812_vm13, %v7868_v15, %v7867_v0  ;;  %v6772_v38 = vmax.f32 %v6770_v52, %v6771_v41  ;;  %v6785_v36 = vrot.slane %v6784_v55, 2  ;;  %v6736_v54 = vrot.slane %v6735_v29, 2 }
 0x3ab   : > { %8045 = vst.msk [vmem:[#allocation3 + $0x80] sm:$0xff] %vm5651_vm5, %v7869_v14  ;;  %v6766_v10 = vrot.slane %v6765_v63, 1  ;;  %v6779_v37 = vmax.f32 %v6777_v50, %v6778_v6  ;;  %v6742_v51 = vmax.f32 %v6740_v48, %v6741_v33  ;;  %v6747_v2 = vsel %vm6452_vm6, %v5964_v27, -inf }
 0x3ac   : > { %v6773_v47 = vrot.slane %v6772_v38, 1  ;;  %v6786_v11 = vmax.f32 %v6784_v55, %v6785_v36  ;;  %v6737_v16 = vmax.f32 %v6735_v29, %v6736_v54  ;;  %v6748_v8 = vrot.slane %v6747_v2, 4  ;;  %v5397_v29 = vpop.f32.mrf.mxu0 }
 0x3ad   : > { %v6767_v31 = vmax.f32 %v6765_v63, %v6766_v10  ;;  %v6780_v45 = vrot.slane %v6779_v37, 1  ;;  %v6743_v20 = vrot.slane %v6742_v51, 2  ;;  %v6754_v22 = vsel %vm6452_vm6, %v5966_v46, -inf }
 0x3ae   : > { %v6774_v15 = vmax.f32 %v6772_v38, %v6773_v47  ;;  %v6787_v13 = vrot.slane %v6786_v11, 1  ;;  %v6738_v40 = vrot.slane %v6737_v16, 1  ;;  %v6749_v12 = vmax.f32 %v6747_v2, %v6748_v8 }
 0x3af   : > { %v6781_v60 = vmax.f32 %v6779_v37, %v6780_v45  ;;  %v7399_v49 = vadd.f32 %v17572_v19, %v6767_v31  ;;  %v6744_v3 = vmax.f32 %v6742_v51, %v6743_v20  ;;  %v6755_v61 = vrot.slane %v6754_v22, 4  ;;  %v17643_v20 = vld [vmem:[#allocation3 + $0x8] sm:$0xff] }
 0x3b0   : > { %v6788_v18 = vmax.f32 %v6786_v11, %v6787_v13  ;;  %v7400_v27 = vadd.f32 %v17572_v19, %v6774_v15  ;;  %v6739_v30 = vmax.f32 %v6737_v16, %v6738_v40  ;;  %v6750_v35 = vrot.slane %v6749_v12, 2 }
 0x3b1   : > { %v7401_v24 = vadd.f32 %v17572_v19, %v6781_v60  ;;  %v7527_v52 = vmax.f32 %v7399_v49, 0.0  ;;  %v6745_v17 = vrot.slane %v6744_v3, 1  ;;  %v6756_v44 = vmax.f32 %v6754_v22, %v6755_v61 }
 0x3b2   : > { %v7402_v46 = vadd.f32 %v17572_v19, %v6788_v18  ;;  %v7528_v26 = vmax.f32 %v7400_v27, 0.0  ;;  %v6751_v57 = vmax.f32 %v6749_v12, %v6750_v35  ;;  %v17618_v50 = vadd.f32 %v17572_v19, %v6739_v30 }
 0x3b3   : > { %v7529_v48 = vmax.f32 %v7401_v24, 0.0  ;;  %v6746_v56 = vmax.f32 %v6744_v3, %v6745_v17  ;;  %v6757_v41 = vrot.slane %v6756_v44, 2  ;;  %v17622_v55 = vsel %vm5651_vm5, %v17581_v25, -inf }
 0x3b4   : > { %v7530_v0 = vmax.f32 %v7402_v46, 0.0  ;;  %v17624_v63 = vrot.slane %v7527_v52, 4  ;;  %v17626_v6 = vrot.slane %v7528_v26, 3  ;;  %v6752_v33 = vrot.slane %v6751_v57, 1 }
 0x3b5   : > { %v6758_v14 = vmax.f32 %v6756_v44, %v6757_v41  ;;  %v7396_v38 = vadd.f32 %v17572_v19, %v6746_v56  ;;  %v7523_v36 = vmax.f32 %v17618_v50, 0.0  ;;  %v5692_v54 = vsel %vm5651_vm5, %v17590_v34, -inf }
 0x3b6   : > { %v17632_v10 = vrot.slane %v7529_v48, 2  ;;  %v6753_v37 = vmax.f32 %v6751_v57, %v6752_v33  ;;  %v5693_v25 = vmax.f32 %v17584_v62, %v5692_v54  ;;  %v5612_v51 = vadd.f32 %v5397_v29, %v17173_v5 }
 0x3b7   : > { %v17636_v2 = vrot.slane %v7530_v0, 1  ;;  %v6759_v47 = vrot.slane %v6758_v14, 1  ;;  %v7524_v11 = vmax.f32 %v7396_v38, 0.0  ;;  %v21195_v34 = vmov 0.0  }
 0x3b8   : > { %v7397_v16 = vadd.f32 %v17572_v19, %v6753_v37  ;;  %v6001_v8 = vcombine.high %v5693_v25, %v5693_v25  ;;  %v6008_v31 = vrot.slane %v5693_v25, %v17050_v1  ;;  %v5689_v45 = vsel %vm5651_vm5, %v5612_v51, -inf  ;;  %7626 = vst.msk [vmem:[#allocation3 + $0x1f] sm:$0x1] %vm7624_vm14, %v21195_v34  ;;  %7625 = vst.msk [vmem:[#allocation3 + $0x7] sm:$0x1] %vm7624_vm14, %v21195_v34 }
 0x3b9   : > { %7627 = vst.msk [vmem:[#allocation3 + $0x37] sm:$0x1] %vm7624_vm14, %v21195_v34  ;;  %7628 = vst.msk [vmem:[#allocation3 + $0x4f] sm:$0x1] %vm7624_vm14, %v21195_v34  ;;  %v6760_v5 = vmax.f32 %v6758_v14, %v6759_v47  ;;  %v7870_v62 = vrot.slane %v7524_v11, 7  ;;  %v5690_v22 = vmax.f32 %v17622_v55, %v5689_v45  ;;  %v8150_v15 = vrot.slane %v17643_v20, 7 }
 0x3ba   : > { %7629 = vst.msk [vmem:[#allocation3 + $0x67] sm:$0x1] %vm7624_vm14, %v21195_v34  ;;  %7630 = vst.msk [vmem:[#allocation3 + $0x7f] sm:$0x1] %vm7624_vm14, %v21195_v34  ;;  %v7525_v13 = vmax.f32 %v7397_v16, 0.0  ;;  %v6015_v40 = vrot.slane %v6001_v8, %v17050_v1  ;;  %v6016_v12 = vcombine.high %v6008_v31, %v6008_v31  ;;  %v6817_v60 = vsel %vm6452_vm6, %v6008_v31, -inf }
 0x3bb   : > { %7631 = vst.msk [vmem:[#allocation3 + $0x97] sm:$0x1] %vm7624_vm14, %v21195_v34  ;;  %7632 = vst.msk [vmem:[#allocation3 + $0xaf] sm:$0x1] %vm7624_vm14, %v21195_v34  ;;  %v7398_v49 = vadd.f32 %v17572_v19, %v6760_v5  ;;  %v7871_v3 = vsel %vm7794_vm7, %v7870_v62, %v7523_v36  ;;  %v6818_v61 = vrot.slane %v6817_v60, 4  ;;  %v5984_v18 = vcombine.high %v5690_v22, %v5690_v22 }
 0x3bc   : > { %7633 = vst.msk [vmem:[#allocation3 + $0xc7] sm:$0x1] %vm7624_vm14, %v21195_v34  ;;  %7634 = vst.msk [vmem:[#allocation3 + $0xdf] sm:$0x1] %vm7624_vm14, %v21195_v34  ;;  %v7872_v27 = vrot.slane %v7525_v13, 6  ;;  %v6017_v30 = vcombine.high %v6015_v40, %v6015_v40  ;;  %v6824_v35 = vsel %vm6452_vm6, %v6016_v12, -inf  ;;  %v5991_v50 = vrot.slane %v5690_v22, %v17050_v1  ;;  %v13302_v12 = vpop.f32.mrf.mxu0 }
 0x3bd   : > { %7635 = vst.msk [vmem:[#allocation3 + $0xf7] sm:$0x1] %vm7624_vm14, %v21195_v34  ;;  %7636 = vst.msk [vmem:[#allocation3 + $0x10f] sm:$0x1] %vm7624_vm14, %v21195_v34  ;;  %v6831_v24 = vsel %vm6452_vm6, %v6015_v40, -inf  ;;  %v7526_v52 = vmax.f32 %v7398_v49, 0.0  ;;  %v6819_v17 = vmax.f32 %v6817_v60, %v6818_v61  ;;  %v5998_v48 = vrot.slane %v5984_v18, %v17050_v1 }
 0x3be   : > { %7637 = vst.msk [vmem:[#allocation3 + $0x127] sm:$0x1] %vm7624_vm14, %v21195_v34  ;;  %7638 = vst.msk [vmem:[#allocation3 + $0x13f] sm:$0x1] %vm7624_vm14, %v21195_v34  ;;  %v6825_v44 = vrot.slane %v6824_v35, 4  ;;  %v6832_v46 = vrot.slane %v6831_v24, 4  ;;  %v7873_v26 = vsel %vm7797_vm8, %v7872_v27, %v7871_v3  ;;  %v5999_v33 = vcombine.high %v5991_v50, %v5991_v50 }
 0x3bf   : > { %7639 = vst.msk [vmem:[#allocation3 + $0x157] sm:$0x1] %vm7624_vm14, %v21195_v34  ;;  %7640 = vst.msk [vmem:[#allocation3 + $0x16f] sm:$0x1] %vm7624_vm14, %v21195_v34  ;;  %v6838_v57 = vsel %vm6452_vm6, %v6017_v30, -inf  ;;  %v7874_v56 = vrot.slane %v7526_v52, 5  ;;  %v6000_v14 = vcombine.high %v5998_v48, %v5998_v48 }
 0x3c0   : > { %7641 = vst.msk [vmem:[#allocation3 + $0x187] sm:$0x1] %vm7624_vm14, %v21195_v34  ;;  %7642 = vst.msk [vmem:[#allocation3 + $0x19f] sm:$0x1] %vm7624_vm14, %v21195_v34  ;;  %v6820_v41 = vrot.slane %v6819_v17, 2  ;;  %v6826_v55 = vmax.f32 %v6824_v35, %v6825_v44  ;;  %v6833_v29 = vmax.f32 %v6831_v24, %v6832_v46  ;;  %v6839_v0 = vrot.slane %v6838_v57, 4 }
 0x3c1   : > { %7643 = vst.msk [vmem:[#allocation3 + $0x1b7] sm:$0x1] %vm7624_vm14, %v21195_v34  ;;  %7644 = vst.msk [vmem:[#allocation3 + $0x1cf] sm:$0x1] %vm7624_vm14, %v21195_v34  ;;  %v6789_v38 = vsel %vm6452_vm6, %v5991_v50, -inf  ;;  %v7875_v36 = vsel %vm7800_vm9, %v7874_v56, %v7873_v26  ;;  %v6796_v16 = vsel %vm6452_vm6, %v5999_v33, -inf  ;;  %v5407_v26 = vpop.f32.mrf.mxu0 }
 0x3c2   : > { %7645 = vst.msk [vmem:[#allocation3 + $0x10] sm:$0x1] %vm7624_vm14, %v21195_v34  ;;  %7646 = vst.msk [vmem:[#allocation3 + $0x28] sm:$0x1] %vm7624_vm14, %v21195_v34  ;;  %v6821_v54 = vmax.f32 %v6819_v17, %v6820_v41  ;;  %v6827_v37 = vrot.slane %v6826_v55, 2  ;;  %v6834_v25 = vrot.slane %v6833_v29, 2  ;;  %v7877_v51 = vsel %vm7803_vm10, %v17624_v63, %v7875_v36 }
 0x3c3   : > { %7647 = vst.msk [vmem:[#allocation3 + $0x40] sm:$0x1] %vm7624_vm14, %v21195_v34  ;;  %7648 = vst.msk [vmem:[#allocation3 + $0x58] sm:$0x1] %vm7624_vm14, %v21195_v34  ;;  %v6840_v47 = vmax.f32 %v6838_v57, %v6839_v0  ;;  %v6790_v11 = vrot.slane %v6789_v38, 4  ;;  %v7879_v8 = vsel %vm7806_vm11, %v17626_v6, %v7877_v51  ;;  %v6797_v40 = vrot.slane %v6796_v16, 4 }
 0x3c4   : > { %7649 = vst.msk [vmem:[#allocation3 + $0x70] sm:$0x1] %vm7624_vm14, %v21195_v34  ;;  %7650 = vst.msk [vmem:[#allocation3 + $0x88] sm:$0x1] %vm7624_vm14, %v21195_v34  ;;  %v6822_v31 = vrot.slane %v6821_v54, 1  ;;  %v6828_v45 = vmax.f32 %v6826_v55, %v6827_v37  ;;  %v6835_v5 = vmax.f32 %v6833_v29, %v6834_v25  ;;  %v7881_v62 = vsel %vm7809_vm12, %v17632_v10, %v7879_v8  ;;  %v17752_v46 = vld [vmem:[#allocation3 + $0x20] sm:$0xff] }
 0x3c5   : > { %7651 = vst.msk [vmem:[#allocation3 + $0xa0] sm:$0x1] %vm7624_vm14, %v21195_v34  ;;  %7652 = vst.msk [vmem:[#allocation3 + $0xb8] sm:$0x1] %vm7624_vm14, %v21195_v34  ;;  %v6841_v22 = vrot.slane %v6840_v47, 2  ;;  %v6791_v13 = vmax.f32 %v6789_v38, %v6790_v11  ;;  %v7883_v63 = vsel %vm7812_vm13, %v17636_v2, %v7881_v62  ;;  %v6798_v18 = vmax.f32 %v6796_v16, %v6797_v40  ;;  %v8060_v33 = vld [vmem:[#allocation3 + $0x18] sm:$0xff]  ;;  %v13305_v11 = vpop.f32.mrf.mxu0 }
 0x3c6   : > { %7653 = vst.msk [vmem:[#allocation3 + $0xd0] sm:$0x1] %vm7624_vm14, %v21195_v34  ;;  %7654 = vst.msk [vmem:[#allocation3 + $0xe8] sm:$0x1] %vm7624_vm14, %v21195_v34  ;;  %v6823_v60 = vmax.f32 %v6821_v54, %v6822_v31  ;;  %v6829_v49 = vrot.slane %v6828_v45, 1  ;;  %v6836_v3 = vrot.slane %v6835_v5, 1 }
 0x3c7   : > { %7655 = vst.msk [vmem:[#allocation3 + $0x100] sm:$0x1] %vm7624_vm14, %v21195_v34  ;;  %7656 = vst.msk [vmem:[#allocation3 + $0x118] sm:$0x1] %vm7624_vm14, %v21195_v34  ;;  %v6842_v61 = vmax.f32 %v6840_v47, %v6841_v22  ;;  %v6792_v6 = vrot.slane %v6791_v13, 2  ;;  %v6803_v27 = vsel %vm6452_vm6, %v5998_v48, -inf }
 0x3c8   : > { %7657 = vst.msk [vmem:[#allocation3 + $0x130] sm:$0x1] %vm7624_vm14, %v21195_v34  ;;  %7658 = vst.msk [vmem:[#allocation3 + $0x148] sm:$0x1] %vm7624_vm14, %v21195_v34  ;;  %v6830_v30 = vmax.f32 %v6828_v45, %v6829_v49  ;;  %v6837_v35 = vmax.f32 %v6835_v5, %v6836_v3  ;;  %v7407_v10 = vadd.f32 %v17572_v19, %v6823_v60  ;;  %v6804_v24 = vrot.slane %v6803_v27, 4  ;;  %v17769_v3 = vld [vmem:[#allocation3 + $0x38] sm:$0xff] }
 0x3c9   : > { %7659 = vst.msk [vmem:[#allocation3 + $0x160] sm:$0x1] %vm7624_vm14, %v21195_v34  ;;  %7660 = vst.msk [vmem:[#allocation3 + $0x178] sm:$0x1] %vm7624_vm14, %v21195_v34  ;;  %v6843_v52 = vrot.slane %v6842_v61, 1  ;;  %v6793_v17 = vmax.f32 %v6791_v13, %v6792_v6  ;;  %v6799_v44 = vrot.slane %v6798_v18, 2  ;;  %v5615_v49 = vadd.f32 %v13302_v12, %v17177_v7 }
 0x3ca   : > { %7661 = vst.msk [vmem:[#allocation3 + $0x190] sm:$0x1] %vm7624_vm14, %v21195_v34  ;;  %7662 = vst.msk [vmem:[#allocation3 + $0x1a8] sm:$0x1] %vm7624_vm14, %v21195_v34  ;;  %v6810_v2 = vsel %vm6452_vm6, %v6000_v14, -inf  ;;  %v7408_v57 = vadd.f32 %v17572_v19, %v6830_v30  ;;  %v7409_v50 = vadd.f32 %v17572_v19, %v6837_v35  ;;  %v7535_v56 = vmax.f32 %v7407_v10, 0.0  ;;  %v5417_v35 = vpop.f32.mrf.mxu0 }
 0x3cb   : > { %7663 = vst.msk [vmem:[#allocation3 + $0x1c0] sm:$0x1] %vm7624_vm14, %v21195_v34  ;;  %7664 = vst.msk [vmem:[#allocation3 + $0x1d8] sm:$0x1] %vm7624_vm14, %v21195_v34  ;;  %v6805_v41 = vmax.f32 %v6803_v27, %v6804_v24  ;;  %v6844_v48 = vmax.f32 %v6842_v61, %v6843_v52  ;;  %v6794_v55 = vrot.slane %v6793_v17, 1  ;;  %v6800_v29 = vmax.f32 %v6798_v18, %v6799_v44  ;;  %v8065_v30 = vld [vmem:[#allocation3 + $0x40] sm:$0xff] }
 0x3cc   : > { %8046 = vst.msk [vmem:[#allocation3 + $0x98] sm:$0xff] %vm5651_vm5, %v7883_v63  ;;  %v6811_v0 = vrot.slane %v6810_v2, 4  ;;  %v7536_v38 = vmax.f32 %v7408_v57, 0.0  ;;  %v7537_v36 = vmax.f32 %v7409_v50, 0.0  ;;  %v8153_v37 = vrot.slane %v17752_v46, 7  ;;  %v8063_v44 = vld [vmem:[#allocation3 + $0x30] sm:$0xff] }
 0x3cd   : > { %v6806_v54 = vrot.slane %v6805_v41, 2  ;;  %v7410_v14 = vadd.f32 %v17572_v19, %v6844_v48  ;;  %v6795_v25 = vmax.f32 %v6793_v17, %v6794_v55  ;;  %v6801_v51 = vrot.slane %v6800_v29, 1 }
 0x3ce   : > { %v6812_v47 = vmax.f32 %v6810_v2, %v6811_v0  ;;  %v17758_v16 = vrot.slane %v7535_v56, 4  ;;  %v17760_v8 = vrot.slane %v7536_v38, 3  ;;  %v8152_v45 = vrot.slane %v8060_v33, 7  ;;  %v13308_v0 = vpop.f32.mrf.mxu0 }
 0x3cf   : > { %v6807_v31 = vmax.f32 %v6805_v41, %v6806_v54  ;;  %v7538_v5 = vmax.f32 %v7410_v14, 0.0  ;;  %v6802_v62 = vmax.f32 %v6800_v29, %v6801_v51  ;;  %v7403_v13 = vadd.f32 %v17572_v19, %v6795_v25 }
 0x3d0   : > { %v6813_v22 = vrot.slane %v6812_v47, 2  ;;  %v17763_v40 = vrot.slane %v7537_v36, 2  ;;  %v17766_v60 = vsel %vm850_vm3, %v8152_v45, %v8153_v37  ;;  %v5697_v52 = vsel %vm5651_vm5, %v5615_v49, -inf }
 0x3d1   : > { %v6808_v63 = vrot.slane %v6807_v31, 1  ;;  %v17771_v61 = vrot.slane %v7538_v5, 1  ;;  %v7404_v18 = vadd.f32 %v17572_v19, %v6802_v62  ;;  %v7531_v27 = vmax.f32 %v7403_v13, 0.0 }
 0x3d2   : > { %v6814_v6 = vmax.f32 %v6812_v47, %v6813_v22  ;;  %v13471_v24 = vpack.i.bf16 %v17643_v20, %v17766_v60  ;;  %v5614_v17 = vadd.f32 %v5407_v26, %v17180_v23  ;;  %v5617_v2 = vadd.f32 %v13305_v11, %v17184_v39 }
 0x3d3   : > { %v6809_v10 = vmax.f32 %v6807_v31, %v6808_v63  ;;  %v7532_v12 = vmax.f32 %v7404_v18, 0.0  ;;  %v8235_v57 = vrot.slane %v17769_v3, 1  ;;  %v8236_v41 = vrot.slane %v8065_v30, 1 }
 0x3d4   : > { %v6815_v7 = vrot.slane %v6814_v6, 1  ;;  %13472 = vrot.lane.b32.xlu0 %v13471_v24, %s13713_s13  ;;  %v5694_v56 = vsel %vm5651_vm5, %v5614_v17, -inf  ;;  %v5616_v48 = vadd.f32 %v5417_v35, %v17187_v43  ;;  %v5698_v23 = vsel %vm5651_vm5, %v5617_v2, -inf }
 0x3d5   : > { %v7405_v50 = vadd.f32 %v17572_v19, %v6809_v10  ;;  %v7884_v29 = vrot.slane %v7532_v12, 7  ;;  %v8155_v26 = vrot.slane %v8063_v44, 7  ;;  %v5699_v39 = vmax.f32 %v5697_v52, %v5698_v23 }
 0x3d6   : > { %v6816_v55 = vmax.f32 %v6814_v6, %v6815_v7  ;;  %v17786_v38 = vsel %vm2079_vm4, %v8235_v57, %v8236_v41  ;;  %v5695_v36 = vsel %vm5651_vm5, %v5616_v48, -inf  ;;  %v8156_v14 = vrot.slane %v17769_v3, 7 }
 0x3d7   : > { %v7533_v33 = vmax.f32 %v7405_v50, 0.0  ;;  %v7885_v37 = vsel %vm7794_vm7, %v7884_v29, %v7531_v27  ;;  %13370 = vmatprep.mubr.msk.f32.mxu0 %vm5651_vm5, %v17786_v38  ;;  %v5696_v43 = vmax.f32 %v5694_v56, %v5695_v36  ;;  %v6035_v51 = vcombine.high %v5699_v39, %v5699_v39 }
 0x3d8   : > { %v7406_v54 = vadd.f32 %v17572_v19, %v6816_v55  ;;  %v6042_v47 = vrot.slane %v5699_v39, %v17050_v1  ;;  %v17796_v11 = vadd.f32 %v13308_v0, %v17191_v42  ;;  %v17800_v62 = vsel %vm850_vm3, %v8155_v26, %v8156_v14 }
 0x3d9   : > { %v7886_v25 = vrot.slane %v7533_v33, 6  ;;  %v6018_v45 = vcombine.high %v5696_v43, %v5696_v43  ;;  %v6025_v5 = vrot.slane %v5696_v43, %v17050_v1  ;;  %v6049_v13 = vrot.slane %v6035_v51, %v17050_v1 }
 0x3da   : > { %v7534_v31 = vmax.f32 %v7406_v54, 0.0  ;;  %v6050_v63 = vcombine.high %v6042_v47, %v6042_v47  ;;  %v6873_v49 = vsel %vm6452_vm6, %v6042_v47, -inf }
 0x3db   : > { %v7887_v22 = vsel %vm7797_vm8, %v7886_v25, %v7885_v37  ;;  %v6874_v18 = vrot.slane %v6873_v49, 4  ;;  %v6032_v27 = vrot.slane %v6018_v45, %v17050_v1  ;;  %v6033_v42 = vcombine.high %v6025_v5, %v6025_v5 }
 0x3dc   : > { %v7888_v6 = vrot.slane %v7534_v31, 5  ;;  %v6051_v30 = vcombine.high %v6049_v13, %v6049_v13  ;;  %v6880_v35 = vsel %vm6452_vm6, %v6050_v63, -inf  ;;  %v6887_v10 = vsel %vm6452_vm6, %v6049_v13, -inf }
 0x3dd   : > { %v6845_v24 = vsel %vm6452_vm6, %v6025_v5, -inf  ;;  %v6875_v17 = vmax.f32 %v6873_v49, %v6874_v18  ;;  %v6881_v44 = vrot.slane %v6880_v35, 4  ;;  %v6888_v7 = vrot.slane %v6887_v10, 4 }
 0x3de   : > { %v7889_v52 = vsel %vm7800_vm9, %v7888_v6, %v7887_v22  ;;  %v6894_v2 = vsel %vm6452_vm6, %v6051_v30, -inf  ;;  %v6034_v57 = vcombine.high %v6032_v27, %v6032_v27  ;;  %v6846_v50 = vrot.slane %v6845_v24, 4  ;;  %v5427_v30 = vpop.f32.mrf.mxu0 }
 0x3df   : > { %v7891_v12 = vsel %vm7803_vm10, %v17758_v16, %v7889_v52  ;;  %v6876_v41 = vrot.slane %v6875_v17, 2  ;;  %v6882_v48 = vmax.f32 %v6880_v35, %v6881_v44  ;;  %v6889_v55 = vmax.f32 %v6887_v10, %v6888_v7 }
 0x3e0   : > { %v7893_v56 = vsel %vm7806_vm11, %v17760_v8, %v7891_v12  ;;  %v6895_v23 = vrot.slane %v6894_v2, 4  ;;  %v6847_v26 = vmax.f32 %v6845_v24, %v6846_v50  ;;  %v6852_v0 = vsel %vm6452_vm6, %v6033_v42, -inf }
 0x3e1   : > { %v7895_v29 = vsel %vm7809_vm12, %v17763_v40, %v7893_v56  ;;  %v6877_v33 = vmax.f32 %v6875_v17, %v6876_v41  ;;  %v6883_v39 = vrot.slane %v6882_v48, 2  ;;  %v6890_v36 = vrot.slane %v6889_v55, 2 }
 0x3e2   : > { %v7897_v16 = vsel %vm7812_vm13, %v17771_v61, %v7895_v29  ;;  %v6896_v54 = vmax.f32 %v6894_v2, %v6895_v23  ;;  %v6848_v8 = vrot.slane %v6847_v26, 2  ;;  %v6853_v37 = vrot.slane %v6852_v0, 4  ;;  %v13311_v29 = vpop.f32.mrf.mxu0 }
 0x3e3   : > { %8047 = vst.msk [vmem:[#allocation3 + $0xb0] sm:$0xff] %vm5651_vm5, %v7897_v16  ;;  %v6859_v43 = vsel %vm6452_vm6, %v6032_v27, -inf  ;;  %v6878_v14 = vrot.slane %v6877_v33, 1  ;;  %v6884_v25 = vmax.f32 %v6882_v48, %v6883_v39  ;;  %v6891_v40 = vmax.f32 %v6889_v55, %v6890_v36 }
 0x3e4   : > { %v6860_v51 = vrot.slane %v6859_v43, 4  ;;  %v6897_v47 = vrot.slane %v6896_v54, 2  ;;  %v6849_v31 = vmax.f32 %v6847_v26, %v6848_v8  ;;  %v6854_v45 = vmax.f32 %v6852_v0, %v6853_v37  ;;  %v17828_v8 = vld [vmem:[#allocation3 + $0x50] sm:$0xff] }
 0x3e5   : > { %v6866_v5 = vsel %vm6452_vm6, %v6034_v57, -inf  ;;  %v6879_v61 = vmax.f32 %v6877_v33, %v6878_v14  ;;  %v6885_v22 = vrot.slane %v6884_v25, 1  ;;  %v6892_v13 = vrot.slane %v6891_v40, 1 }
 0x3e6   : > { %v6861_v63 = vmax.f32 %v6859_v43, %v6860_v51  ;;  %v6898_v49 = vmax.f32 %v6896_v54, %v6897_v47  ;;  %v6850_v6 = vrot.slane %v6849_v31, 1  ;;  %v6855_v18 = vrot.slane %v6854_v45, 2 }
 0x3e7   : > { %v6867_v42 = vrot.slane %v6866_v5, 4  ;;  %v6886_v35 = vmax.f32 %v6884_v25, %v6885_v22  ;;  %v6893_v27 = vmax.f32 %v6891_v40, %v6892_v13  ;;  %v7415_v10 = vadd.f32 %v17572_v19, %v6879_v61  ;;  %v8068_v40 = vld [vmem:[#allocation3 + $0x58] sm:$0xff] }
 0x3e8   : > { %v6862_v24 = vrot.slane %v6861_v63, 2  ;;  %v6899_v52 = vrot.slane %v6898_v49, 1  ;;  %v6851_v17 = vmax.f32 %v6849_v31, %v6850_v6  ;;  %v6856_v44 = vmax.f32 %v6854_v45, %v6855_v18 }
 0x3e9   : > { %v6868_v7 = vmax.f32 %v6866_v5, %v6867_v42  ;;  %v7416_v12 = vadd.f32 %v17572_v19, %v6886_v35  ;;  %v7417_v2 = vadd.f32 %v17572_v19, %v6893_v27  ;;  %v7543_v57 = vmax.f32 %v7415_v10, 0.0  ;;  %v5437_v5 = vpop.f32.mrf.mxu0  ;;  %v8066_v42 = vld [vmem:[#allocation3 + $0x48] sm:$0xff] }
 0x3ea   : > { %v6863_v50 = vmax.f32 %v6861_v63, %v6862_v24  ;;  %v6900_v56 = vmax.f32 %v6898_v49, %v6899_v52  ;;  %v6857_v41 = vrot.slane %v6856_v44, 1  ;;  %v7411_v55 = vadd.f32 %v17572_v19, %v6851_v17 }
 0x3eb   : > { %v6869_v48 = vrot.slane %v6868_v7, 2  ;;  %v7544_v23 = vmax.f32 %v7416_v12, 0.0  ;;  %v7545_v26 = vmax.f32 %v7417_v2, 0.0  ;;  %v7904_v0 = vrot.slane %v7543_v57, 4 }
 0x3ec   : > { %v6864_v16 = vrot.slane %v6863_v50, 1  ;;  %v7418_v33 = vadd.f32 %v17572_v19, %v6900_v56  ;;  %v6858_v39 = vmax.f32 %v6856_v44, %v6857_v41  ;;  %v7539_v54 = vmax.f32 %v7411_v55, 0.0 }
 0x3ed   : > { %v6870_v36 = vmax.f32 %v6868_v7, %v6869_v48  ;;  %v7906_v37 = vrot.slane %v7544_v23, 3  ;;  %v17830_v43 = vrot.slane %v7545_v26, 2  ;;  %v13476_v25 = vpack.i.bf16 %v17752_v46, %v17800_v62 }
 0x3ee   : > { %v6865_v14 = vmax.f32 %v6863_v50, %v6864_v16  ;;  %v7546_v51 = vmax.f32 %v7418_v33, 0.0  ;;  %v7412_v31 = vadd.f32 %v17572_v19, %v6858_v39  ;;  %v5703_v45 = vsel %vm5651_vm5, %v17796_v11, -inf }
 0x3ef   : > { %v6871_v47 = vrot.slane %v6870_v36, 1  ;;  %13477 = vrot.lane.b32.xlu0 %v13476_v25, %s13713_s13  ;;  %v5618_v22 = vadd.f32 %v5427_v30, %v17194_v59  ;;  %v5621_v13 = vadd.f32 %v13311_v29, %v17198_v58  ;;  %v8238_v63 = vrot.slane %v17828_v8, 1  ;;  %v13314_v30 = vpop.f32.mrf.mxu0 }
 0x3f0   : > { %v7413_v61 = vadd.f32 %v17572_v19, %v6865_v14  ;;  %v7910_v46 = vrot.slane %v7546_v51, 1  ;;  %v7540_v6 = vmax.f32 %v7412_v31, 0.0  ;;  %v8239_v18 = vrot.slane %v8068_v40, 1 }
 0x3f1   : > { %v6872_v49 = vmax.f32 %v6870_v36, %v6871_v47  ;;  %v5700_v27 = vsel %vm5651_vm5, %v5618_v22, -inf  ;;  %v5704_v11 = vsel %vm5651_vm5, %v5621_v13, -inf  ;;  %v5620_v10 = vadd.f32 %v5437_v5, %v17201_v53 }
 0x3f2   : > { %v7541_v35 = vmax.f32 %v7413_v61, 0.0  ;;  %v7898_v52 = vrot.slane %v7540_v6, 7  ;;  %v5705_v59 = vmax.f32 %v5703_v45, %v5704_v11  ;;  %v17847_v58 = vsel %vm2079_vm4, %v8238_v63, %v8239_v18 }
 0x3f3   : > { %v7414_v24 = vadd.f32 %v17572_v19, %v6872_v49  ;;  %13371 = vmatmul.mubr.msk.f32.vlgmr.msra.gmra.mxu0 %vm5651_vm5, %v17847_v58  ;;  %v5701_v44 = vsel %vm5651_vm5, %v5620_v10, -inf  ;;  %v8158_v7 = vrot.slane %v8066_v42, 7  ;;  %v8159_v12 = vrot.slane %v17828_v8, 7 }
 0x3f4   : > { %v7900_v17 = vrot.slane %v7541_v35, 6  ;;  %v7899_v53 = vsel %vm7794_vm7, %v7898_v52, %v7539_v54  ;;  %v6069_v57 = vcombine.high %v5705_v59, %v5705_v59  ;;  %v6076_v50 = vrot.slane %v5705_v59, %v17050_v1 }
 0x3f5   : > { %v7542_v2 = vmax.f32 %v7414_v24, 0.0  ;;  %v5702_v41 = vmax.f32 %v5700_v27, %v5701_v44  ;;  %v17857_v48 = vsel %vm850_vm3, %v8158_v7, %v8159_v12  ;;  %v17860_v55 = vadd.f32 %v13314_v30, %v17205_v21  ;;  %v5447_v7 = vpop.f32.mrf.mxu0 }
 0x3f6   : > { %v7901_v56 = vsel %vm7797_vm8, %v7900_v17, %v7899_v53  ;;  %v6083_v23 = vrot.slane %v6069_v57, %v17050_v1  ;;  %v6084_v26 = vcombine.high %v6076_v50, %v6076_v50  ;;  %v6929_v16 = vsel %vm6452_vm6, %v6076_v50, -inf }
 0x3f7   : > { %v7902_v29 = vrot.slane %v7542_v2, 5  ;;  %v6930_v33 = vrot.slane %v6929_v16, 4  ;;  %v6052_v39 = vcombine.high %v5702_v41, %v5702_v41  ;;  %v6059_v36 = vrot.slane %v5702_v41, %v17050_v1 }
 0x3f8   : > { %v13481_v54 = vpack.i.bf16 %v17769_v3, %v17857_v48  ;;  %v6085_v25 = vcombine.high %v6083_v23, %v6083_v23  ;;  %v6936_v40 = vsel %vm6452_vm6, %v6084_v26, -inf  ;;  %v6943_v21 = vsel %vm6452_vm6, %v6083_v23, -inf }
 0x3f9   : > { %v7903_v14 = vsel %vm7800_vm9, %v7902_v29, %v7901_v56  ;;  %v6931_v47 = vmax.f32 %v6929_v16, %v6930_v33  ;;  %v6937_v31 = vrot.slane %v6936_v40, 4  ;;  %v6944_v45 = vrot.slane %v6943_v21, 4 }
 0x3fa   : > { %v7905_v51 = vsel %vm7803_vm10, %v7904_v0, %v7903_v14  ;;  %13482 = vrot.lane.b32.xlu1 %v13481_v54, %s13713_s13  ;;  %v6950_v61 = vsel %vm6452_vm6, %v6085_v25, -inf  ;;  %v6066_v3 = vrot.slane %v6052_v39, %v17050_v1  ;;  %v6067_v22 = vcombine.high %v6059_v36, %v6059_v36  ;;  %v13317_v25 = vpop.f32.mrf.mxu0 }
 0x3fb   : > { %v7907_v5 = vsel %vm7806_vm11, %v7906_v37, %v7905_v51  ;;  %v6932_v63 = vrot.slane %v6931_v47, 2  ;;  %v6938_v49 = vmax.f32 %v6936_v40, %v6937_v31  ;;  %v6945_v6 = vmax.f32 %v6943_v21, %v6944_v45 }
 0x3fc   : > { %v7909_v13 = vsel %vm7809_vm12, %v17830_v43, %v7907_v5  ;;  %v6951_v18 = vrot.slane %v6950_v61, 4  ;;  %v6068_v42 = vcombine.high %v6066_v3, %v6066_v3  ;;  %v6901_v35 = vsel %vm6452_vm6, %v6059_v36, -inf }
 0x3fd   : > { %v7911_v0 = vsel %vm7812_vm13, %v7910_v46, %v7909_v13  ;;  %v6933_v37 = vmax.f32 %v6931_v47, %v6932_v63  ;;  %v6939_v27 = vrot.slane %v6938_v49, 2  ;;  %v6946_v11 = vrot.slane %v6945_v6, 2 }
 0x3fe   : > { %8048 = vst.msk [vmem:[#allocation3 + $0xc8] sm:$0xff] %vm5651_vm5, %v7911_v0  ;;  %v6902_v10 = vrot.slane %v6901_v35, 4  ;;  %v6952_v24 = vmax.f32 %v6950_v61, %v6951_v18  ;;  %v6908_v52 = vsel %vm6452_vm6, %v6067_v22, -inf  ;;  %v6915_v43 = vsel %vm6452_vm6, %v6066_v3, -inf }
 0x3ff   : > { %v6922_v59 = vsel %vm6452_vm6, %v6068_v42, -inf  ;;  %v6934_v30 = vrot.slane %v6933_v37, 1  ;;  %v6940_v17 = vmax.f32 %v6938_v49, %v6939_v27  ;;  %v6947_v46 = vmax.f32 %v6945_v6, %v6946_v11  ;;  %v5457_v42 = vpop.f32.mrf.mxu0 }
 0x400   : > { %v6903_v44 = vmax.f32 %v6901_v35, %v6902_v10  ;;  %v6953_v12 = vrot.slane %v6952_v24, 2  ;;  %v6909_v2 = vrot.slane %v6908_v52, 4  ;;  %v6916_v53 = vrot.slane %v6915_v43, 4  ;;  %v17889_v10 = vld [vmem:[#allocation3 + $0x68] sm:$0xff] }
 0x401   : > { %v6923_v57 = vrot.slane %v6922_v59, 4  ;;  %v6935_v50 = vmax.f32 %v6933_v37, %v6934_v30  ;;  %v6941_v56 = vrot.slane %v6940_v17, 1  ;;  %v6948_v41 = vrot.slane %v6947_v46, 1 }
 0x402   : > { %v6904_v29 = vrot.slane %v6903_v44, 2  ;;  %v6954_v23 = vmax.f32 %v6952_v24, %v6953_v12  ;;  %v6910_v26 = vmax.f32 %v6908_v52, %v6909_v2  ;;  %v6917_v16 = vmax.f32 %v6915_v43, %v6916_v53  ;;  %v8071_v12 = vld [vmem:[#allocation3 + $0x70] sm:$0xff] }
 0x403   : > { %v6924_v33 = vmax.f32 %v6922_v59, %v6923_v57  ;;  %v6942_v39 = vmax.f32 %v6940_v17, %v6941_v56  ;;  %v6949_v36 = vmax.f32 %v6947_v46, %v6948_v41  ;;  %v7423_v54 = vadd.f32 %v17572_v19, %v6935_v50  ;;  %v13320_v56 = vpop.f32.mrf.mxu0 }
 0x404   : > { %v6905_v14 = vmax.f32 %v6903_v44, %v6904_v29  ;;  %v6955_v40 = vrot.slane %v6954_v23, 1  ;;  %v6911_v21 = vrot.slane %v6910_v26, 2  ;;  %v6918_v51 = vrot.slane %v6917_v16, 2  ;;  %v17910_v29 = vld [vmem:[%s20054_s2] ss:$0 sm:$0xff] }
 0x405   : > { %v6925_v47 = vrot.slane %v6924_v33, 2  ;;  %v7424_v31 = vadd.f32 %v17572_v19, %v6942_v39  ;;  %v7425_v45 = vadd.f32 %v17572_v19, %v6949_v36  ;;  %v7551_v5 = vmax.f32 %v7423_v54, 0.0 }
 0x406   : > { %v6906_v61 = vrot.slane %v6905_v14, 1  ;;  %v6956_v3 = vmax.f32 %v6954_v23, %v6955_v40  ;;  %v6912_v22 = vmax.f32 %v6910_v26, %v6911_v21  ;;  %v6919_v13 = vmax.f32 %v6917_v16, %v6918_v51  ;;  %v8069_v23 = vld [vmem:[#allocation3 + $0x60] sm:$0xff] }
 0x407   : > { %v6926_v63 = vmax.f32 %v6924_v33, %v6925_v47  ;;  %v7552_v49 = vmax.f32 %v7424_v31, 0.0  ;;  %v7553_v6 = vmax.f32 %v7425_v45, 0.0  ;;  %v17886_v0 = vrot.slane %v7551_v5, 4  ;;  %v5467_v31 = vpop.f32.mrf.mxu0 }
 0x408   : > { %v6907_v18 = vmax.f32 %v6905_v14, %v6906_v61  ;;  %v7426_v35 = vadd.f32 %v17572_v19, %v6956_v3  ;;  %v6913_v37 = vrot.slane %v6912_v22, 1  ;;  %v6920_v27 = vrot.slane %v6919_v13, 1 }
 0x409   : > { %v6927_v11 = vrot.slane %v6926_v63, 1  ;;  %v17891_v24 = vrot.slane %v7552_v49, 3  ;;  %v17893_v52 = vrot.slane %v7553_v6, 2  ;;  %v5709_v59 = vsel %vm5651_vm5, %v17860_v55, -inf  ;;  %v8556_v55 = vld [vmem:[%s20055_s3 + $0x78] sm:$0xff] }
 0x40a   : > { %v7419_v43 = vadd.f32 %v17572_v19, %v6907_v18  ;;  %v7554_v30 = vmax.f32 %v7426_v35, 0.0  ;;  %v6914_v17 = vmax.f32 %v6912_v22, %v6913_v37  ;;  %v6921_v46 = vmax.f32 %v6919_v13, %v6920_v27  ;;  %v8572_v19 = vld [vmem:[%s20055_s3 + $0xf8] sm:$0xff] }
 0x40b   : > { %v6928_v44 = vmax.f32 %v6926_v63, %v6927_v11  ;;  %v5622_v53 = vadd.f32 %v5447_v7, %v17208_v32  ;;  %v5625_v57 = vadd.f32 %v13317_v25, %v17212_v28  ;;  %v8241_v50 = vrot.slane %v17889_v10, 1  ;;  %11992 = vmatprep.subr.mxu1 %v8572_v19  ;;  %v21196_v63 = vld [vmem:[#allocation101_spill] sm:$0xff]  ;;  %v21197_v35 = vld [vmem:[#allocation102_spill] sm:$0xff] }
 0x40c   : > { %v7547_v2 = vmax.f32 %v7419_v43, 0.0  ;;  %v7924_v41 = vrot.slane %v7554_v30, 1  ;;  %v7420_v32 = vadd.f32 %v17910_v29, %v6914_v17  ;;  %v7421_v28 = vadd.f32 %v17910_v29, %v6921_v46  ;;  %11993 = vmatpush3.msra.mxu1 %v8556_v55 }
 0x40d   : > { %v7422_v7 = vadd.f32 %v17910_v29, %v6928_v44  ;;  %v5706_v26 = vsel %vm5651_vm5, %v5622_v53, -inf  ;;  %v5710_v16 = vsel %vm5651_vm5, %v5625_v57, -inf  ;;  %v8242_v33 = vrot.slane %v8071_v12, 1 }
 0x40e   : > { %v5624_v39 = vadd.f32 %v5457_v42, %v17215_v9  ;;  %v7548_v36 = vmax.f32 %v7420_v32, 0.0  ;;  %v7549_v54 = vmax.f32 %v7421_v28, 0.0  ;;  %v5711_v25 = vmax.f32 %v5709_v59, %v5710_v16 }
 0x40f   : > { %v7550_v14 = vmax.f32 %v7422_v7, 0.0  ;;  %v17919_v40 = vsel %vm2079_vm4, %v8241_v50, %v8242_v33  ;;  %v8161_v51 = vrot.slane %v8069_v23, 7  ;;  %v8162_v47 = vrot.slane %v17889_v10, 7 }
 0x410   : > { %v5707_v21 = vsel %vm5651_vm5, %v5624_v39, -inf  ;;  %v7912_v45 = vrot.slane %v7548_v36, 7  ;;  %v7914_v5 = vrot.slane %v7549_v54, 6  ;;  %v6103_v3 = vcombine.high %v5711_v25, %v5711_v25  ;;  %13373 = vmatprep.mubr.msk.f32.mxu0 %vm5651_vm5, %v17919_v40 }
 0x411   : > { %v7916_v61 = vrot.slane %v7550_v14, 5  ;;  %v6110_v9 = vrot.slane %v5711_v25, %v17050_v1  ;;  %v5708_v22 = vmax.f32 %v5706_v26, %v5707_v21  ;;  %v17927_v13 = vsel %vm850_vm3, %v8161_v51, %v8162_v47 }
 0x412   : > { %v17930_v49 = vadd.f32 %v13320_v56, %v21196_v63  ;;  %v7913_v6 = vsel %vm7794_vm7, %v7912_v45, %v7547_v2  ;;  %v6117_v18 = vrot.slane %v6103_v3, %v17050_v1  ;;  %v13486_v42 = vpack.i.bf16 %v17828_v8, %v17927_v13 }
 0x413   : > { %v17937_v37 = vadd.f32 %v5467_v31, %v21197_v35  ;;  %v7915_v27 = vsel %vm7797_vm8, %v7914_v5, %v7913_v6  ;;  %v6118_v11 = vcombine.high %v6110_v9, %v6110_v9  ;;  %v6985_v43 = vsel %vm6452_vm6, %v6110_v9, -inf }
 0x414   : > { %v6086_v59 = vcombine.high %v5708_v22, %v5708_v22  ;;  %v7917_v30 = vsel %vm7800_vm9, %v7916_v61, %v7915_v27  ;;  %v6119_v17 = vcombine.high %v6117_v18, %v6117_v18  ;;  %v6986_v46 = vrot.slane %v6985_v43, 4  ;;  %13487 = vrot.lane.b32.xlu1 %v13486_v42, %s13713_s13 }
 0x415   : > { %v6999_v44 = vsel %vm6452_vm6, %v6117_v18, -inf  ;;  %v7919_v8 = vsel %vm7803_vm10, %v17886_v0, %v7917_v30  ;;  %v6992_v12 = vsel %vm6452_vm6, %v6118_v11, -inf  ;;  %v6093_v53 = vrot.slane %v5708_v22, %v17050_v1 }
 0x416   : > { %v7000_v2 = vrot.slane %v6999_v44, 4  ;;  %v7921_v57 = vsel %vm7806_vm11, %v17891_v24, %v7919_v8  ;;  %v6987_v50 = vmax.f32 %v6985_v43, %v6986_v46  ;;  %v6993_v56 = vrot.slane %v6992_v12, 4 }
 0x417   : > { %v7006_v19 = vsel %vm6452_vm6, %v6119_v17, -inf  ;;  %v7923_v55 = vsel %vm7809_vm12, %v17893_v52, %v7921_v57  ;;  %v6100_v7 = vrot.slane %v6086_v59, %v17050_v1  ;;  %v6101_v16 = vcombine.high %v6093_v53, %v6093_v53  ;;  %v13323_v57 = vpop.f32.mrf.mxu0 }
 0x418   : > { %v7001_v32 = vmax.f32 %v6999_v44, %v7000_v2  ;;  %v7007_v28 = vrot.slane %v7006_v19, 4  ;;  %v7925_v0 = vsel %vm7812_vm13, %v7924_v41, %v7923_v55  ;;  %v6988_v23 = vrot.slane %v6987_v50, 2 }
 0x419   : > { %v6994_v26 = vmax.f32 %v6992_v12, %v6993_v56  ;;  %8049 = vst.msk [vmem:[#allocation3 + $0x110] sm:$0xff] %vm5651_vm5, %v7925_v0  ;;  %v6102_v39 = vcombine.high %v6100_v7, %v6100_v7  ;;  %v6957_v36 = vsel %vm6452_vm6, %v6093_v53, -inf  ;;  %v6964_v52 = vsel %vm6452_vm6, %v6101_v16, -inf }
 0x41a   : > { %v7002_v33 = vrot.slane %v7001_v32, 2  ;;  %v7008_v24 = vmax.f32 %v7006_v19, %v7007_v28  ;;  %v6989_v54 = vmax.f32 %v6987_v50, %v6988_v23  ;;  %v6958_v25 = vrot.slane %v6957_v36, 4 }
 0x41b   : > { %v6995_v14 = vrot.slane %v6994_v26, 2  ;;  %v6965_v47 = vrot.slane %v6964_v52, 4  ;;  %v6971_v41 = vsel %vm6452_vm6, %v6100_v7, -inf  ;;  %v6978_v63 = vsel %vm6452_vm6, %v6102_v39, -inf }
 0x41c   : > { %v7003_v21 = vmax.f32 %v7001_v32, %v7002_v33  ;;  %v7009_v51 = vrot.slane %v7008_v24, 2  ;;  %v6990_v31 = vrot.slane %v6989_v54, 1  ;;  %v6959_v5 = vmax.f32 %v6957_v36, %v6958_v25  ;;  %v5477_v25 = vpop.f32.mrf.mxu0 }
 0x41d   : > { %v6996_v45 = vmax.f32 %v6994_v26, %v6995_v14  ;;  %v6972_v61 = vrot.slane %v6971_v41, 4  ;;  %v6966_v22 = vmax.f32 %v6964_v52, %v6965_v47  ;;  %v6979_v59 = vrot.slane %v6978_v63, 4  ;;  %v17968_v14 = vld [vmem:[#allocation3 + $0x80] sm:$0xff] }
 0x41e   : > { %v7004_v3 = vrot.slane %v7003_v21, 1  ;;  %v7010_v9 = vmax.f32 %v7008_v24, %v7009_v51  ;;  %v6991_v6 = vmax.f32 %v6989_v54, %v6990_v31  ;;  %v6960_v42 = vrot.slane %v6959_v5, 2  ;;  %v8571_v31 = vld [vmem:[%s20055_s3 + $0xf0] sm:$0xff] }
 0x41f   : > { %v6997_v18 = vrot.slane %v6996_v45, 1  ;;  %v6973_v35 = vmax.f32 %v6971_v41, %v6972_v61  ;;  %v6967_v43 = vrot.slane %v6966_v22, 2  ;;  %v6980_v53 = vmax.f32 %v6978_v63, %v6979_v59  ;;  %v8074_v41 = vld [vmem:[#allocation3 + $0x88] sm:$0xff]  ;;  %11994 = vmatprep.subr.mxu1 %v8571_v31 }
 0x420   : > { %v7005_v27 = vmax.f32 %v7003_v21, %v7004_v3  ;;  %v7011_v11 = vrot.slane %v7010_v9, 1  ;;  %v7431_v17 = vadd.f32 %v17910_v29, %v6991_v6  ;;  %v6961_v46 = vmax.f32 %v6959_v5, %v6960_v42  ;;  %v21198_v6 = vld [vmem:[#allocation103_spill] sm:$0xff] }
 0x421   : > { %v6998_v30 = vmax.f32 %v6996_v45, %v6997_v18  ;;  %v6974_v44 = vrot.slane %v6973_v35, 2  ;;  %v6968_v2 = vmax.f32 %v6966_v22, %v6967_v43  ;;  %v6981_v0 = vrot.slane %v6980_v53, 2  ;;  %v8555_v45 = vld [vmem:[%s20055_s3 + $0x70] sm:$0xff]  ;;  %v8072_v22 = vld [vmem:[#allocation3 + $0x78] sm:$0xff] }
 0x422   : > { %v7012_v8 = vmax.f32 %v7010_v9, %v7011_v11  ;;  %v7433_v12 = vadd.f32 %v17910_v29, %v7005_v27  ;;  %v7559_v56 = vmax.f32 %v7431_v17, 0.0  ;;  %v6962_v19 = vrot.slane %v6961_v46, 1  ;;  %11995 = vmatpush3.msra.mxu1 %v8555_v45  ;;  %v21199_v43 = vld [vmem:[#allocation104_spill] sm:$0xff]  ;;  %v21201_v45 = vld [vmem:[#allocation106_spill] sm:$0xff] }
 0x423   : > { %v7432_v50 = vadd.f32 %v17910_v29, %v6998_v30  ;;  %v6975_v55 = vmax.f32 %v6973_v35, %v6974_v44  ;;  %v6969_v7 = vrot.slane %v6968_v2, 1  ;;  %v6982_v54 = vmax.f32 %v6980_v53, %v6981_v0  ;;  %v13326_v30 = vpop.f32.mrf.mxu0 }
 0x424   : > { %v7434_v32 = vadd.f32 %v17910_v29, %v7012_v8  ;;  %v7561_v28 = vmax.f32 %v7433_v12, 0.0  ;;  %v17964_v26 = vrot.slane %v7559_v56, 4  ;;  %v6963_v16 = vmax.f32 %v6961_v46, %v6962_v19  ;;  %v21200_v19 = vld [vmem:[#allocation105_spill] sm:$0xff] }
 0x425   : > { %v7560_v23 = vmax.f32 %v7432_v50, 0.0  ;;  %v6976_v33 = vrot.slane %v6975_v55, 1  ;;  %v6970_v36 = vmax.f32 %v6968_v2, %v6969_v7  ;;  %v5715_v47 = vsel %vm5651_vm5, %v17930_v49, -inf }
 0x426   : > { %v7562_v24 = vmax.f32 %v7434_v32, 0.0  ;;  %v17966_v39 = vrot.slane %v7561_v28, 2  ;;  %v7427_v51 = vadd.f32 %v17910_v29, %v6963_v16  ;;  %v6983_v61 = vrot.slane %v6982_v54, 1 }
 0x427   : > { %v17970_v52 = vrot.slane %v7560_v23, 3  ;;  %v6977_v21 = vmax.f32 %v6975_v55, %v6976_v33  ;;  %v7428_v3 = vadd.f32 %v17910_v29, %v6970_v36  ;;  %v5712_v9 = vsel %vm5651_vm5, %v17937_v37, -inf  ;;  %v5487_v23 = vpop.f32.mrf.mxu0 }
 0x428   : > { %v17981_v5 = vrot.slane %v7562_v24, 1  ;;  %v7555_v63 = vmax.f32 %v7427_v51, 0.0  ;;  %v5629_v18 = vadd.f32 %v13323_v57, %v21198_v6  ;;  %v8244_v42 = vrot.slane %v17968_v14, 1 }
 0x429   : > { %v7429_v49 = vadd.f32 %v17910_v29, %v6977_v21  ;;  %v6984_v35 = vmax.f32 %v6982_v54, %v6983_v61  ;;  %v7556_v27 = vmax.f32 %v7428_v3, 0.0  ;;  %v8245_v11 = vrot.slane %v8074_v41, 1 }
 0x42a   : > { %v5628_v59 = vadd.f32 %v5477_v25, %v21199_v43  ;;  %v5716_v46 = vsel %vm5651_vm5, %v5629_v18, -inf  ;;  %v8164_v37 = vrot.slane %v8072_v22, 7  ;;  %v8165_v44 = vrot.slane %v17968_v14, 7 }
 0x42b   : > { %v7557_v17 = vmax.f32 %v7429_v49, 0.0  ;;  %v7430_v8 = vadd.f32 %v17910_v29, %v6984_v35  ;;  %v7926_v12 = vrot.slane %v7556_v27, 7  ;;  %v5717_v2 = vmax.f32 %v5715_v47, %v5716_v46 }
 0x42c   : > { %v17994_v53 = vsel %vm2079_vm4, %v8244_v42, %v8245_v11  ;;  %v5713_v50 = vsel %vm5651_vm5, %v5628_v59, -inf  ;;  %v18000_v56 = vsel %vm850_vm3, %v8164_v37, %v8165_v44  ;;  %v5631_v55 = vadd.f32 %v13326_v30, %v21200_v19 }
 0x42d   : > { %v7928_v57 = vrot.slane %v7557_v17, 6  ;;  %13374 = vmatmul.mubr.msk.f32.gmra.mxu0 %vm5651_vm5, %v17994_v53  ;;  %v7558_v32 = vmax.f32 %v7430_v8, 0.0  ;;  %v7927_v28 = vsel %vm7794_vm7, %v7926_v12, %v7555_v63  ;;  %v6137_v7 = vcombine.high %v5717_v2, %v5717_v2 }
 0x42e   : > { %v6144_v0 = vrot.slane %v5717_v2, %v17050_v1  ;;  %v5714_v33 = vmax.f32 %v5712_v9, %v5713_v50  ;;  %v13491_v24 = vpack.i.bf16 %v17889_v10, %v18000_v56  ;;  %v18009_v36 = vsel %vm5651_vm5, %v5631_v55, -inf }
 0x42f   : > { %v7929_v16 = vsel %vm7797_vm8, %v7928_v57, %v7927_v28  ;;  %v7930_v54 = vrot.slane %v7558_v32, 5  ;;  %v6151_v25 = vrot.slane %v6137_v7, %v17050_v1  ;;  %v18016_v61 = vadd.f32 %v5487_v23, %v21201_v45 }
 0x430   : > { %v6152_v21 = vcombine.high %v6144_v0, %v6144_v0  ;;  %v7041_v51 = vsel %vm6452_vm6, %v6144_v0, -inf  ;;  %v6120_v41 = vcombine.high %v5714_v33, %v5714_v33  ;;  %v6127_v31 = vrot.slane %v5714_v33, %v17050_v1  ;;  %13492 = vrot.lane.b32.xlu0 %v13491_v24, %s13713_s13  ;;  %v13329_v33 = vpop.f32.mrf.mxu0 }
 0x431   : > { %v7042_v47 = vrot.slane %v7041_v51, 4  ;;  %v7931_v10 = vsel %vm7800_vm9, %v7930_v54, %v7929_v16  ;;  %v6153_v3 = vcombine.high %v6151_v25, %v6151_v25  ;;  %v7055_v22 = vsel %vm6452_vm6, %v6151_v25, -inf }
 0x432   : > { %v7048_v9 = vsel %vm6452_vm6, %v6152_v21, -inf  ;;  %v7933_v49 = vsel %vm7803_vm10, %v17964_v26, %v7931_v10  ;;  %v7056_v18 = vrot.slane %v7055_v22, 4  ;;  %v6134_v27 = vrot.slane %v6120_v41, %v17050_v1 }
 0x433   : > { %v7043_v63 = vmax.f32 %v7041_v51, %v7042_v47  ;;  %v7049_v6 = vrot.slane %v7048_v9, 4  ;;  %v7935_v42 = vsel %vm7806_vm11, %v17970_v52, %v7933_v49  ;;  %v7062_v35 = vsel %vm6452_vm6, %v6153_v3, -inf }
 0x434   : > { %v6135_v11 = vcombine.high %v6127_v31, %v6127_v31  ;;  %v7937_v43 = vsel %vm7809_vm12, %v17966_v39, %v7935_v42  ;;  %v7057_v17 = vmax.f32 %v7055_v22, %v7056_v18  ;;  %v7063_v46 = vrot.slane %v7062_v35, 4  ;;  %v5497_v18 = vpop.f32.mrf.mxu0 }
 0x435   : > { %v7044_v59 = vrot.slane %v7043_v63, 2  ;;  %v7050_v30 = vmax.f32 %v7048_v9, %v7049_v6  ;;  %v7939_v26 = vsel %vm7812_vm13, %v17981_v5, %v7937_v43  ;;  %v6136_v37 = vcombine.high %v6134_v27, %v6134_v27 }
 0x436   : > { %v7013_v44 = vsel %vm6452_vm6, %v6127_v31, -inf  ;;  %8050 = vst.msk [vmem:[#allocation3 + $0x128] sm:$0xff] %vm5651_vm5, %v7939_v26  ;;  %v7058_v12 = vrot.slane %v7057_v17, 2  ;;  %v7064_v57 = vmax.f32 %v7062_v35, %v7063_v46  ;;  %v7020_v50 = vsel %vm6452_vm6, %v6135_v11, -inf }
 0x437   : > { %v7045_v52 = vmax.f32 %v7043_v63, %v7044_v59  ;;  %v7051_v8 = vrot.slane %v7050_v30, 2  ;;  %v7014_v2 = vrot.slane %v7013_v44, 4  ;;  %v7027_v39 = vsel %vm6452_vm6, %v6134_v27, -inf }
 0x438   : > { %v7034_v19 = vsel %vm6452_vm6, %v6136_v37, -inf  ;;  %v7059_v5 = vmax.f32 %v7057_v17, %v7058_v12  ;;  %v7065_v7 = vrot.slane %v7064_v57, 2  ;;  %v7021_v0 = vrot.slane %v7020_v50, 4 }
 0x439   : > { %v7046_v55 = vrot.slane %v7045_v52, 1  ;;  %v7052_v32 = vmax.f32 %v7050_v30, %v7051_v8  ;;  %v7015_v28 = vmax.f32 %v7013_v44, %v7014_v2  ;;  %v7028_v23 = vrot.slane %v7027_v39, 4 }
 0x43a   : > { %v7035_v16 = vrot.slane %v7034_v19, 4  ;;  %v7060_v25 = vrot.slane %v7059_v5, 1  ;;  %v7066_v51 = vmax.f32 %v7064_v57, %v7065_v7  ;;  %v7022_v47 = vmax.f32 %v7020_v50, %v7021_v0  ;;  %v18042_v50 = vld [vmem:[#allocation3 + $0x98] sm:$0xff] }
 0x43b   : > { %v7047_v24 = vmax.f32 %v7045_v52, %v7046_v55  ;;  %v7053_v54 = vrot.slane %v7052_v32, 1  ;;  %v7016_v21 = vrot.slane %v7015_v28, 2  ;;  %v7029_v41 = vmax.f32 %v7027_v39, %v7028_v23  ;;  %v8077_v52 = vld [vmem:[#allocation3 + $0xa0] sm:$0xff]  ;;  %v13332_v39 = vpop.f32.mrf.mxu0  ;;  %v8554_v55 = vld [vmem:[%s20055_s3 + $0x68] sm:$0xff] }
 0x43c   : > { %v7036_v31 = vmax.f32 %v7034_v19, %v7035_v16  ;;  %v7061_v10 = vmax.f32 %v7059_v5, %v7060_v25  ;;  %v7067_v22 = vrot.slane %v7066_v51, 1  ;;  %v7023_v49 = vrot.slane %v7022_v47, 2  ;;  %v8570_v19 = vld [vmem:[%s20055_s3 + $0xe8] sm:$0xff] }
 0x43d   : > { %v7054_v45 = vmax.f32 %v7052_v32, %v7053_v54  ;;  %v7439_v3 = vadd.f32 %v17910_v29, %v7047_v24  ;;  %v7017_v9 = vmax.f32 %v7015_v28, %v7016_v21  ;;  %v7030_v63 = vrot.slane %v7029_v41, 2  ;;  %11996 = vmatprep.subr.mxu1 %v8570_v19  ;;  %v8075_v54 = vld [vmem:[#allocation3 + $0x90] sm:$0xff]  ;;  %v21202_v21 = vld [vmem:[#allocation107_spill] sm:$0xff] }
 0x43e   : > { %v7037_v6 = vrot.slane %v7036_v31, 2  ;;  %v7441_v35 = vadd.f32 %v17910_v29, %v7061_v10  ;;  %v7068_v43 = vmax.f32 %v7066_v51, %v7067_v22  ;;  %v7024_v59 = vmax.f32 %v7022_v47, %v7023_v49  ;;  %11997 = vmatpush3.msra.mxu1 %v8554_v55  ;;  %v21203_v49 = vld [vmem:[#allocation108_spill] sm:$0xff] }
 0x43f   : > { %v7440_v42 = vadd.f32 %v17910_v29, %v7054_v45  ;;  %v7567_v27 = vmax.f32 %v7439_v3, 0.0  ;;  %v7018_v11 = vrot.slane %v7017_v9, 1  ;;  %v7031_v30 = vmax.f32 %v7029_v41, %v7030_v63  ;;  %v5507_v3 = vpop.f32.mrf.mxu0 }
 0x440   : > { %v7038_v17 = vmax.f32 %v7036_v31, %v7037_v6  ;;  %v7569_v46 = vmax.f32 %v7441_v35, 0.0  ;;  %v7442_v8 = vadd.f32 %v17910_v29, %v7068_v43  ;;  %v7025_v12 = vrot.slane %v7024_v59, 1 }
 0x441   : > { %v7568_v26 = vmax.f32 %v7440_v42, 0.0  ;;  %v18039_v37 = vrot.slane %v7567_v27, 4  ;;  %v7019_v44 = vmax.f32 %v7017_v9, %v7018_v11  ;;  %v7032_v2 = vrot.slane %v7031_v30, 1 }
 0x442   : > { %v7039_v57 = vrot.slane %v7038_v17, 1  ;;  %v7950_v5 = vrot.slane %v7569_v46, 2  ;;  %v5718_v7 = vsel %vm5651_vm5, %v18016_v61, -inf  ;;  %v7570_v0 = vmax.f32 %v7442_v8, 0.0 }
 0x443   : > { %v7948_v32 = vrot.slane %v7568_v26, 3  ;;  %v7435_v28 = vadd.f32 %v17910_v29, %v7019_v44  ;;  %v7026_v23 = vmax.f32 %v7024_v59, %v7025_v12  ;;  %v7033_v16 = vmax.f32 %v7031_v30, %v7032_v2  ;;  %v21204_v59 = vld [vmem:[#allocation109_spill] sm:$0xff] }
 0x444   : > { %v7040_v24 = vmax.f32 %v7038_v17, %v7039_v57  ;;  %v5633_v51 = vadd.f32 %v13329_v33, %v21202_v21  ;;  %v8247_v47 = vrot.slane %v18042_v50, 1  ;;  %v8248_v41 = vrot.slane %v8077_v52, 1  ;;  %v21205_v17 = vld [vmem:[#allocation110_spill] sm:$0xff] }
 0x445   : > { %v7563_v25 = vmax.f32 %v7435_v28, 0.0  ;;  %v7952_v31 = vrot.slane %v7570_v0, 1  ;;  %v7436_v45 = vadd.f32 %v17910_v29, %v7026_v23  ;;  %v7437_v10 = vadd.f32 %v17910_v29, %v7033_v16 }
 0x446   : > { %v7438_v61 = vadd.f32 %v17910_v29, %v7040_v24  ;;  %v5722_v9 = vsel %vm5651_vm5, %v5633_v51, -inf  ;;  %v18060_v22 = vsel %vm2079_vm4, %v8247_v47, %v8248_v41  ;;  %v5632_v63 = vadd.f32 %v5497_v18, %v21203_v49 }
 0x447   : > { %v8167_v6 = vrot.slane %v8075_v54, 7  ;;  %v7564_v33 = vmax.f32 %v7436_v45, 0.0  ;;  %v7565_v42 = vmax.f32 %v7437_v10, 0.0  ;;  %v5723_v27 = vmax.f32 %v18009_v36, %v5722_v9  ;;  %13376 = vmatprep.mubr.msk.f32.mxu0 %vm5651_vm5, %v18060_v22 }
 0x448   : > { %v7566_v35 = vmax.f32 %v7438_v61, 0.0  ;;  %v5719_v11 = vsel %vm5651_vm5, %v5632_v63, -inf  ;;  %v8168_v43 = vrot.slane %v18042_v50, 7  ;;  %v5635_v30 = vadd.f32 %v13332_v39, %v21204_v59 }
 0x449   : > { %v5634_v26 = vadd.f32 %v5507_v3, %v21205_v17  ;;  %v7940_v46 = vrot.slane %v7564_v33, 7  ;;  %v7942_v44 = vrot.slane %v7565_v42, 6  ;;  %v6171_v52 = vcombine.high %v5723_v27, %v5723_v27 }
 0x44a   : > { %v7944_v18 = vrot.slane %v7566_v35, 5  ;;  %v6178_v8 = vrot.slane %v5723_v27, %v17050_v1  ;;  %v5720_v12 = vmax.f32 %v5718_v7, %v5719_v11  ;;  %v18072_v36 = vsel %vm850_vm3, %v8167_v6, %v8168_v43 }
 0x44b   : > { %v18075_v2 = vsel %vm5651_vm5, %v5635_v30, -inf  ;;  %v7941_v57 = vsel %vm7794_vm7, %v7940_v46, %v7563_v25  ;;  %v6185_v19 = vrot.slane %v6171_v52, %v17050_v1  ;;  %v13496_v39 = vpack.i.bf16 %v17968_v14, %v18072_v36 }
 0x44c   : > { %v18082_v55 = vsel %vm5651_vm5, %v5634_v26, -inf  ;;  %v7943_v28 = vsel %vm7797_vm8, %v7942_v44, %v7941_v57  ;;  %v6186_v0 = vcombine.high %v6178_v8, %v6178_v8  ;;  %v7097_v7 = vsel %vm6452_vm6, %v6178_v8, -inf }
 0x44d   : > { %v6154_v23 = vcombine.high %v5720_v12, %v5720_v12  ;;  %v7945_v16 = vsel %vm7800_vm9, %v7944_v18, %v7943_v28  ;;  %v6187_v24 = vcombine.high %v6185_v19, %v6185_v19  ;;  %v7098_v54 = vrot.slane %v7097_v7, 4  ;;  %13497 = vrot.lane.b32.xlu1 %v13496_v39, %s13713_s13 }
 0x44e   : > { %v7111_v25 = vsel %vm6452_vm6, %v6185_v19, -inf  ;;  %v7947_v14 = vsel %vm7803_vm10, %v18039_v37, %v7945_v16  ;;  %v7104_v21 = vsel %vm6452_vm6, %v6186_v0, -inf  ;;  %v6161_v47 = vrot.slane %v5720_v12, %v17050_v1 }
 0x44f   : > { %v7112_v51 = vrot.slane %v7111_v25, 4  ;;  %v7949_v41 = vsel %vm7806_vm11, %v7948_v32, %v7947_v14  ;;  %v7099_v45 = vmax.f32 %v7097_v7, %v7098_v54  ;;  %v7105_v10 = vrot.slane %v7104_v21, 4  ;;  %v8569_v14 = vld [vmem:[%s20055_s3 + $0xe0] sm:$0xff] }
 0x450   : > { %v7118_v61 = vsel %vm6452_vm6, %v6187_v24, -inf  ;;  %v7951_v3 = vsel %vm7809_vm12, %v7950_v5, %v7949_v41  ;;  %v6168_v63 = vrot.slane %v6154_v23, %v17050_v1  ;;  %v6169_v42 = vcombine.high %v6161_v47, %v6161_v47  ;;  %11998 = vmatprep.subr.mxu1 %v8569_v14 }
 0x451   : > { %v7113_v9 = vmax.f32 %v7111_v25, %v7112_v51  ;;  %v7119_v49 = vrot.slane %v7118_v61, 4  ;;  %v7953_v6 = vsel %vm7812_vm13, %v7952_v31, %v7951_v3  ;;  %v7100_v37 = vrot.slane %v7099_v45, 2 }
 0x452   : > { %v7106_v33 = vmax.f32 %v7104_v21, %v7105_v10  ;;  %8051 = vst.msk [vmem:[#allocation3 + $0x140] sm:$0xff] %vm5651_vm5, %v7953_v6  ;;  %v6170_v32 = vcombine.high %v6168_v63, %v6168_v63  ;;  %v7069_v11 = vsel %vm6452_vm6, %v6161_v47, -inf  ;;  %v7076_v5 = vsel %vm6452_vm6, %v6169_v42, -inf }
 0x453   : > { %v7114_v35 = vrot.slane %v7113_v9, 2  ;;  %v7120_v27 = vmax.f32 %v7118_v61, %v7119_v49  ;;  %v7101_v43 = vmax.f32 %v7099_v45, %v7100_v37  ;;  %v7070_v30 = vrot.slane %v7069_v11, 4  ;;  %v8553_v45 = vld [vmem:[%s20055_s3 + $0x60] sm:$0xff]  ;;  %v13335_v49 = vpop.f32.mrf.mxu0 }
 0x454   : > { %v7107_v59 = vrot.slane %v7106_v33, 2  ;;  %v7077_v46 = vrot.slane %v7076_v5, 4  ;;  %v7083_v31 = vsel %vm6452_vm6, %v6168_v63, -inf  ;;  %v7090_v39 = vsel %vm6452_vm6, %v6170_v32, -inf  ;;  %11999 = vmatpush3.msra.mxu1 %v8553_v45 }
 0x455   : > { %v7115_v17 = vmax.f32 %v7113_v9, %v7114_v35  ;;  %v7121_v26 = vrot.slane %v7120_v27, 2  ;;  %v7102_v44 = vrot.slane %v7101_v43, 1  ;;  %v7071_v52 = vmax.f32 %v7069_v11, %v7070_v30 }
 0x456   : > { %v7108_v18 = vmax.f32 %v7106_v33, %v7107_v59  ;;  %v7084_v8 = vrot.slane %v7083_v31, 4  ;;  %v7078_v19 = vmax.f32 %v7076_v5, %v7077_v46  ;;  %v7091_v25 = vrot.slane %v7090_v39, 4  ;;  %v18115_v5 = vld [vmem:[#allocation3 + $0xb0] sm:$0xff] }
 0x457   : > { %v7116_v12 = vrot.slane %v7115_v17, 1  ;;  %v7122_v57 = vmax.f32 %v7120_v27, %v7121_v26  ;;  %v7103_v28 = vmax.f32 %v7101_v43, %v7102_v44  ;;  %v7072_v7 = vrot.slane %v7071_v52, 2  ;;  %v8080_v44 = vld [vmem:[#allocation3 + $0xb8] sm:$0xff] }
 0x458   : > { %v7109_v0 = vrot.slane %v7108_v18, 1  ;;  %v7085_v23 = vmax.f32 %v7083_v31, %v7084_v8  ;;  %v7079_v54 = vrot.slane %v7078_v19, 2  ;;  %v7092_v9 = vmax.f32 %v7090_v39, %v7091_v25  ;;  %v8552_v39 = vld [vmem:[%s20055_s3 + $0x58] sm:$0xff] }
 0x459   : > { %v7117_v16 = vmax.f32 %v7115_v17, %v7116_v12  ;;  %v7123_v24 = vrot.slane %v7122_v57, 1  ;;  %v7447_v51 = vadd.f32 %v17910_v29, %v7103_v28  ;;  %v7073_v47 = vmax.f32 %v7071_v52, %v7072_v7  ;;  %v8567_v28 = vld [vmem:[%s20055_s3 + $0xd0] sm:$0xff] }
 0x45a   : > { %v7110_v21 = vmax.f32 %v7108_v18, %v7109_v0  ;;  %v7086_v41 = vrot.slane %v7085_v23, 2  ;;  %v7080_v3 = vmax.f32 %v7078_v19, %v7079_v54  ;;  %v7093_v32 = vrot.slane %v7092_v9, 2  ;;  %v5517_v18 = vpop.f32.mrf.mxu0  ;;  %v8568_v19 = vld [vmem:[%s20055_s3 + $0xd8] sm:$0xff] }
 0x45b   : > { %v7124_v10 = vmax.f32 %v7122_v57, %v7123_v24  ;;  %v7449_v61 = vadd.f32 %v17910_v29, %v7117_v16  ;;  %v7575_v6 = vmax.f32 %v7447_v51, 0.0  ;;  %v7074_v37 = vrot.slane %v7073_v47, 1  ;;  %12000 = vmatprep.subr.mxu1 %v8568_v19  ;;  %v8551_v24 = vld [vmem:[%s20055_s3 + $0x50] sm:$0xff]  ;;  %v8566_v51 = vld [vmem:[%s20055_s3 + $0xc8] sm:$0xff] }
 0x45c   : > { %v7448_v63 = vadd.f32 %v17910_v29, %v7110_v21  ;;  %v7087_v33 = vmax.f32 %v7085_v23, %v7086_v41  ;;  %v7081_v27 = vrot.slane %v7080_v3, 1  ;;  %v7094_v31 = vmax.f32 %v7092_v9, %v7093_v32  ;;  %12001 = vmatpush3.msra.mxu1 %v8552_v39  ;;  %v8550_v9 = vld [vmem:[%s20055_s3 + $0x48] sm:$0xff]  ;;  %v8549_v32 = vld [vmem:[%s20055_s3 + $0x40] sm:$0xff] }
 0x45d   : > { %v7450_v42 = vadd.f32 %v17910_v29, %v7124_v10  ;;  %v7577_v35 = vmax.f32 %v7449_v61, 0.0  ;;  %v18113_v43 = vrot.slane %v7575_v6, 4  ;;  %v7075_v59 = vmax.f32 %v7073_v47, %v7074_v37  ;;  %v21206_v10 = vld [vmem:[#allocation111_spill] sm:$0xff]  ;;  %12002 = vmatprep.subr.mxu1 %v8567_v28 }
 0x45e   : > { %v7576_v11 = vmax.f32 %v7448_v63, 0.0  ;;  %v7088_v30 = vrot.slane %v7087_v33, 1  ;;  %v7082_v46 = vmax.f32 %v7080_v3, %v7081_v27  ;;  %v5637_v57 = vadd.f32 %v13335_v49, %v17260_v4  ;;  %v8078_v4 = vld [vmem:[#allocation3 + $0xa8] sm:$0xff]  ;;  %v13338_v3 = vpop.f32.mrf.mxu0  ;;  %12003 = vmatpush3.msra.mxu1 %v8551_v24 }
 0x45f   : > { %v7578_v17 = vmax.f32 %v7450_v42, 0.0  ;;  %v18117_v26 = vrot.slane %v7577_v35, 2  ;;  %v7443_v12 = vadd.f32 %v17910_v29, %v7075_v59  ;;  %v7095_v7 = vrot.slane %v7094_v31, 1  ;;  %12004 = vmatprep.subr.mxu1 %v8566_v51  ;;  %v8562_v51 = vld [vmem:[%s20055_s3 + $0xa8] sm:$0xff] }
 0x460   : > { %v18119_v52 = vrot.slane %v7576_v11, 3  ;;  %v7089_v8 = vmax.f32 %v7087_v33, %v7088_v30  ;;  %v7444_v23 = vadd.f32 %v17910_v29, %v7082_v46  ;;  %v8250_v16 = vrot.slane %v18115_v5, 1  ;;  %12005 = vmatpush3.msra.mxu1 %v8550_v9 }
 0x461   : > { %v18132_v0 = vrot.slane %v7578_v17, 1  ;;  %v7571_v25 = vmax.f32 %v7443_v12, 0.0  ;;  %v5728_v14 = vsel %vm5651_vm5, %v5637_v57, -inf  ;;  %v8251_v21 = vrot.slane %v8080_v44, 1  ;;  %v21207_v17 = vld [vmem:[#allocation112_spill] sm:$0xff]  ;;  %v8548_v57 = vld [vmem:[%s20055_s3 + $0x38] sm:$0xff] }
 0x462   : > { %v7445_v54 = vadd.f32 %v17910_v29, %v7089_v8  ;;  %v7096_v47 = vmax.f32 %v7094_v31, %v7095_v7  ;;  %v7572_v41 = vmax.f32 %v7444_v23, 0.0  ;;  %v5729_v45 = vmax.f32 %v18075_v2, %v5728_v14  ;;  %v8565_v2 = vld [vmem:[%s20055_s3 + $0xc0] sm:$0xff]  ;;  %v8564_v31 = vld [vmem:[%s20055_s3 + $0xb8] sm:$0xff]  ;;  %v8563_v23 = vld [vmem:[%s20055_s3 + $0xb0] sm:$0xff] }
 0x463   : > { %v5636_v61 = vadd.f32 %v5517_v18, %v21206_v10  ;;  %v18150_v63 = vsel %vm2079_vm4, %v8250_v16, %v8251_v21  ;;  %v8170_v6 = vrot.slane %v8078_v4, 7  ;;  %v8171_v37 = vrot.slane %v18115_v5, 7  ;;  %12006 = vmatprep.subr.mxu1 %v8565_v2 }
 0x464   : > { %v7573_v49 = vmax.f32 %v7445_v54, 0.0  ;;  %v7446_v33 = vadd.f32 %v17910_v29, %v7096_v47  ;;  %v7954_v42 = vrot.slane %v7572_v41, 7  ;;  %v6205_v35 = vcombine.high %v5729_v45, %v5729_v45  ;;  %13377 = vmatmul.mubr.msk.f32.gmra.mxu0 %vm5651_vm5, %v18150_v63  ;;  %12007 = vmatpush3.msra.mxu1 %v8549_v32 }
 0x465   : > { %v6212_v27 = vrot.slane %v5729_v45, %v17050_v1  ;;  %v5725_v59 = vsel %vm5651_vm5, %v5636_v61, -inf  ;;  %v18165_v30 = vsel %vm850_vm3, %v8170_v6, %v8171_v37  ;;  %v18168_v46 = vadd.f32 %v13338_v3, %v21207_v17  ;;  %12008 = vmatprep.subr.mxu1 %v8564_v31  ;;  %v8546_v61 = vld [vmem:[%s20055_s3 + $0x28] sm:$0xff]  ;;  %v8561_v37 = vld [vmem:[%s20055_s3 + $0xa0] sm:$0xff]  ;;  %v8560_v17 = vld [vmem:[%s20055_s3 + $0x98] sm:$0xff] }
 0x466   : > { %v7956_v11 = vrot.slane %v7573_v49, 6  ;;  %v7574_v44 = vmax.f32 %v7446_v33, 0.0  ;;  %v7955_v18 = vsel %vm7794_vm7, %v7954_v42, %v7571_v25  ;;  %v6219_v8 = vrot.slane %v6205_v35, %v17050_v1  ;;  %v8547_v25 = vld [vmem:[%s20055_s3 + $0x30] sm:$0xff]  ;;  %12009 = vmatpush3.msra.mxu1 %v8548_v57 }
 0x467   : > { %v6220_v12 = vcombine.high %v6212_v27, %v6212_v27  ;;  %v7153_v39 = vsel %vm6452_vm6, %v6212_v27, -inf  ;;  %v5726_v28 = vmax.f32 %v18082_v55, %v5725_v59  ;;  %v13501_v7 = vpack.i.bf16 %v18042_v50, %v18165_v30  ;;  %12010 = vmatprep.subr.mxu1 %v8563_v23 }
 0x468   : > { %v7957_v19 = vsel %vm7797_vm8, %v7956_v11, %v7955_v18  ;;  %v7958_v16 = vrot.slane %v7574_v44, 5  ;;  %v6221_v4 = vcombine.high %v6219_v8, %v6219_v8  ;;  %v7154_v24 = vrot.slane %v7153_v39, 4  ;;  %12011 = vmatpush3.msra.mxu1 %v8547_v25 }
 0x469   : > { %v7160_v54 = vsel %vm6452_vm6, %v6220_v12, -inf  ;;  %v7167_v55 = vsel %vm6452_vm6, %v6219_v8, -inf  ;;  %v6188_v21 = vcombine.high %v5726_v28, %v5726_v28  ;;  %v6195_v50 = vrot.slane %v5726_v28, %v17050_v1  ;;  %13502 = vrot.lane.b32.xlu0 %v13501_v7, %s13713_s13  ;;  %12012 = vmatprep.subr.mxu1 %v8562_v51 }
 0x46a   : > { %v7161_v14 = vrot.slane %v7160_v54, 4  ;;  %v7959_v47 = vsel %vm7800_vm9, %v7958_v16, %v7957_v19  ;;  %v7155_v41 = vmax.f32 %v7153_v39, %v7154_v24  ;;  %v7168_v45 = vrot.slane %v7167_v55, 4  ;;  %12013 = vmatpush3.msra.mxu1 %v8546_v61  ;;  %v8543_v16 = vld [vmem:[%s20055_s3 + $0x10] sm:$0xff] }
 0x46b   : > { %v7174_v10 = vsel %vm6452_vm6, %v6221_v4, -inf  ;;  %v7961_v3 = vsel %vm7803_vm10, %v18113_v43, %v7959_v47  ;;  %v6202_v6 = vrot.slane %v6188_v21, %v17050_v1  ;;  %v6203_v35 = vcombine.high %v6195_v50, %v6195_v50  ;;  %v8545_v43 = vld [vmem:[%s20055_s3 + $0x20] sm:$0xff]  ;;  %12014 = vmatprep.subr.mxu1 %v8561_v37  ;;  %v8542_v47 = vld [vmem:[%s20055_s3 + $0x8] sm:$0xff] }
 0x46c   : > { %v7162_v9 = vmax.f32 %v7160_v54, %v7161_v14  ;;  %v7175_v49 = vrot.slane %v7174_v10, 4  ;;  %v7963_v2 = vsel %vm7806_vm11, %v18119_v52, %v7961_v3  ;;  %v7156_v33 = vrot.slane %v7155_v41, 2  ;;  %12015 = vmatpush3.msra.mxu1 %v8545_v43  ;;  %v8558_v14 = vld [vmem:[%s20055_s3 + $0x88] sm:$0xff]  ;;  %v5527_v3 = vpop.f32.mrf.mxu0 }
 0x46d   : > { %v7169_v42 = vmax.f32 %v7167_v55, %v7168_v45  ;;  %v7965_v27 = vsel %vm7809_vm12, %v18117_v26, %v7963_v2  ;;  %v6204_v59 = vcombine.high %v6202_v6, %v6202_v6  ;;  %v7125_v18 = vsel %vm6452_vm6, %v6195_v50, -inf  ;;  %v8544_v26 = vld [vmem:[%s20055_s3 + $0x18] sm:$0xff]  ;;  %12016 = vmatprep.subr.mxu1 %v8560_v17 }
 0x46e   : > { %v7163_v32 = vrot.slane %v7162_v9, 2  ;;  %v7176_v11 = vmax.f32 %v7174_v10, %v7175_v49  ;;  %v7967_v52 = vsel %vm7812_vm13, %v18132_v0, %v7965_v27  ;;  %v7157_v31 = vmax.f32 %v7155_v41, %v7156_v33  ;;  %v8559_v0 = vld [vmem:[%s20055_s3 + $0x90] sm:$0xff]  ;;  %12017 = vmatpush3.msra.mxu1 %v8544_v26  ;;  %v8541_v33 = vld [vmem:[%s20055_s3] sm:$0xff]  ;;  %v13341_v26 = vpop.f32.mrf.mxu0 }
 0x46f   : > { %v7170_v44 = vrot.slane %v7169_v42, 2  ;;  %8052 = vst.msk [vmem:[#allocation3 + $0x158] sm:$0xff] %vm5651_vm5, %v7967_v52  ;;  %v7126_v57 = vrot.slane %v7125_v18, 4  ;;  %v7132_v19 = vsel %vm6452_vm6, %v6203_v35, -inf  ;;  %v7139_v23 = vsel %vm6452_vm6, %v6202_v6, -inf  ;;  %12018 = vmatprep.subr.mxu1 %v8559_v0 }
 0x470   : > { %v7164_v8 = vmax.f32 %v7162_v9, %v7163_v32  ;;  %v7177_v12 = vrot.slane %v7176_v11, 2  ;;  %v7158_v39 = vrot.slane %v7157_v31, 1  ;;  %v7133_v7 = vrot.slane %v7132_v19, 4  ;;  %12019 = vmatpush3.msra.mxu1 %v8543_v16  ;;  %v8557_v9 = vld [vmem:[%s20055_s3 + $0x80] sm:$0xff]  ;;  %v8082_v16 = vld [vmem:[#allocation3 + $0xc8] sm:$0xff] }
 0x471   : > { %v7171_v28 = vmax.f32 %v7169_v42, %v7170_v44  ;;  %v7127_v54 = vmax.f32 %v7125_v18, %v7126_v57  ;;  %v7140_v25 = vrot.slane %v7139_v23, 4  ;;  %v7146_v51 = vsel %vm6452_vm6, %v6204_v59, -inf  ;;  %12020 = vmatprep.subr.mxu1 %v8558_v14  ;;  %v18249_v35 = vld [vmem:[%s20054_s2] ss:$0 sm:$0xff]  ;;  %v8083_v14 = vld [vmem:[#allocation3 + $0xd0] sm:$0xff] }
 0x472   : > { %v7165_v4 = vrot.slane %v7164_v8, 1  ;;  %v7178_v24 = vmax.f32 %v7176_v11, %v7177_v12  ;;  %v7159_v55 = vmax.f32 %v7157_v31, %v7158_v39  ;;  %v7134_v50 = vmax.f32 %v7132_v19, %v7133_v7  ;;  %12021 = vmatpush3.msra.mxu1 %v8542_v47 }
 0x473   : > { %v7172_v21 = vrot.slane %v7171_v28, 1  ;;  %v7128_v10 = vrot.slane %v7127_v54, 2  ;;  %v7141_v61 = vmax.f32 %v7139_v23, %v7140_v25  ;;  %v7147_v2 = vrot.slane %v7146_v51, 4  ;;  %12022 = vmatprep.subr.mxu1 %v8557_v9 }
 0x474   : > { %v7166_v41 = vmax.f32 %v7164_v8, %v7165_v4  ;;  %v7179_v45 = vrot.slane %v7178_v24, 1  ;;  %v7455_v6 = vadd.f32 %v17910_v29, %v7159_v55  ;;  %v7135_v37 = vrot.slane %v7134_v50, 2  ;;  %12023 = vmatpush3.msra.mxu1 %v8541_v33  ;;  %v18254_v8 = vld [vmem:[#allocation3 + $0x8] sm:$0xff] }
 0x475   : > { %v7173_v49 = vmax.f32 %v7171_v28, %v7172_v21  ;;  %v7129_v27 = vmax.f32 %v7127_v54, %v7128_v10  ;;  %v7142_v32 = vrot.slane %v7141_v61, 2  ;;  %v7148_v17 = vmax.f32 %v7146_v51, %v7147_v2  ;;  %v21208_v51 = vld [vmem:[#allocation113_spill] sm:$0xff] }
 0x476   : > { %v7180_v42 = vmax.f32 %v7178_v24, %v7179_v45  ;;  %v7456_v43 = vadd.f32 %v18249_v35, %v7166_v41  ;;  %v7583_v11 = vmax.f32 %v7455_v6, 0.0  ;;  %v7136_v59 = vmax.f32 %v7134_v50, %v7135_v37  ;;  %v5537_v41 = vpop.f32.mrf.mxu0  ;;  %v8081_v6 = vld [vmem:[#allocation3 + $0xc0] sm:$0xff] }
 0x477   : > { %v7457_v29 = vadd.f32 %v18249_v35, %v7173_v49  ;;  %v7130_v44 = vrot.slane %v7129_v27, 1  ;;  %v7143_v18 = vmax.f32 %v7141_v61, %v7142_v32  ;;  %v8229_v12 = vrot.slane %v18254_v8, 1  ;;  %v21209_v61 = vld [vmem:[#allocation114_spill] sm:$0xff]  ;;  %v21210_v32 = vld [vmem:[#allocation115_spill] sm:$0xff] }
 0x478   : > { %v7458_v52 = vadd.f32 %v18249_v35, %v7180_v42  ;;  %v7584_v31 = vmax.f32 %v7456_v43, 0.0  ;;  %v7137_v19 = vrot.slane %v7136_v59, 1  ;;  %v7149_v0 = vrot.slane %v7148_v17, 2 }
 0x479   : > { %v7585_v57 = vmax.f32 %v7457_v29, 0.0  ;;  %v7974_v28 = vrot.slane %v7583_v11, 4  ;;  %v7131_v7 = vmax.f32 %v7129_v27, %v7130_v44  ;;  %v7144_v23 = vrot.slane %v7143_v18, 1 }
 0x47a   : > { %v7586_v39 = vmax.f32 %v7458_v52, 0.0  ;;  %v7976_v4 = vrot.slane %v7584_v31, 3  ;;  %v7138_v54 = vmax.f32 %v7136_v59, %v7137_v19  ;;  %v7150_v25 = vmax.f32 %v7148_v17, %v7149_v0 }
 0x47b   : > { %v18257_v24 = vrot.slane %v7585_v57, 2  ;;  %v7145_v55 = vmax.f32 %v7143_v18, %v7144_v23  ;;  %v7451_v21 = vadd.f32 %v18249_v35, %v7131_v7  ;;  %v5733_v50 = vsel %vm5651_vm5, %v18168_v46, -inf }
 0x47c   : > { %v5638_v47 = vadd.f32 %v5527_v3, %v21208_v51  ;;  %v7151_v45 = vrot.slane %v7150_v25, 1  ;;  %v7452_v10 = vadd.f32 %v18249_v35, %v7138_v54  ;;  %v5641_v9 = vadd.f32 %v13341_v26, %v21209_v61 }
 0x47d   : > { %v8305_v49 = vrot.slane %v8082_v16, 1  ;;  %v7453_v37 = vadd.f32 %v18249_v35, %v7145_v55  ;;  %v7579_v2 = vmax.f32 %v7451_v21, 0.0  ;;  %v8306_v42 = vrot.slane %v8083_v14, 1 }
 0x47e   : > { %v5730_v33 = vsel %vm5651_vm5, %v5638_v47, -inf  ;;  %v7152_v43 = vmax.f32 %v7150_v25, %v7151_v45  ;;  %v7580_v27 = vmax.f32 %v7452_v10, 0.0  ;;  %v5734_v46 = vsel %vm5651_vm5, %v5641_v9, -inf }
 0x47f   : > { %v5640_v3 = vadd.f32 %v5537_v41, %v21210_v32  ;;  %v7581_v29 = vmax.f32 %v7453_v37, 0.0  ;;  %v5735_v11 = vmax.f32 %v5733_v50, %v5734_v46  ;;  %v18270_v59 = vsel %vm2079_vm4, %v8305_v49, %v8306_v42 }
 0x480   : > { %v8297_v17 = vrot.slane %v8081_v6, 7  ;;  %v7454_v52 = vadd.f32 %v18249_v35, %v7152_v43  ;;  %v7968_v31 = vrot.slane %v7580_v27, 7  ;;  %13379 = vmatprep.mubr.msk.f32.mxu0 %vm5651_vm5, %v18270_v59  ;;  %v8298_v18 = vrot.slane %v8082_v16, 7 }
 0x481   : > { %v5731_v44 = vsel %vm5651_vm5, %v5640_v3, -inf  ;;  %v7970_v26 = vrot.slane %v7581_v29, 6  ;;  %v6239_v57 = vcombine.high %v5735_v11, %v5735_v11  ;;  %v6246_v19 = vrot.slane %v5735_v11, %v17050_v1 }
 0x482   : > { %v5732_v0 = vmax.f32 %v5730_v33, %v5731_v44  ;;  %v7980_v7 = vrot.slane %v7586_v39, 1  ;;  %v7582_v23 = vmax.f32 %v7454_v52, 0.0  ;;  %v7969_v54 = vsel %vm7794_vm7, %v7968_v31, %v7579_v2 }
 0x483   : > { %v18279_v25 = vsel %vm850_vm3, %v8297_v17, %v8298_v18  ;;  %v7971_v14 = vsel %vm7797_vm8, %v7970_v26, %v7969_v54  ;;  %v6253_v55 = vrot.slane %v6239_v57, %v17050_v1  ;;  %v6254_v21 = vcombine.high %v6246_v19, %v6246_v19 }
 0x484   : > { %v7209_v50 = vsel %vm6452_vm6, %v6246_v19, -inf  ;;  %v7972_v16 = vrot.slane %v7582_v23, 5  ;;  %v6222_v47 = vcombine.high %v5732_v0, %v5732_v0  ;;  %v6229_v41 = vrot.slane %v5732_v0, %v17050_v1 }
 0x485   : > { %v7210_v51 = vrot.slane %v7209_v50, 4  ;;  %v6255_v45 = vcombine.high %v6253_v55, %v6253_v55  ;;  %v7216_v39 = vsel %vm6452_vm6, %v6254_v21, -inf  ;;  %v7223_v10 = vsel %vm6452_vm6, %v6253_v55, -inf }
 0x486   : > { %v13506_v61 = vpack.i.bf16 %v18115_v5, %v18279_v25  ;;  %v7973_v9 = vsel %vm7800_vm9, %v7972_v16, %v7971_v14  ;;  %v7217_v6 = vrot.slane %v7216_v39, 4  ;;  %v7224_v37 = vrot.slane %v7223_v10, 4  ;;  %v8604_v14 = vld [vmem:[%s20055_s3 + $0x1f8] sm:$0xff] }
 0x487   : > { %v7211_v49 = vmax.f32 %v7209_v50, %v7210_v51  ;;  %v7975_v2 = vsel %vm7803_vm10, %v7974_v28, %v7973_v9  ;;  %v7230_v33 = vsel %vm6452_vm6, %v6255_v45, -inf  ;;  %v6236_v42 = vrot.slane %v6222_v47, %v17050_v1  ;;  %v13344_v28 = vpop.f32.mrf.mxu0  ;;  %12072 = vmatprep.subr.mxu1 %v8604_v14 }
 0x488   : > { %v6237_v43 = vcombine.high %v6229_v41, %v6229_v41  ;;  %13507 = vrot.lane.b32.xlu1 %v13506_v61, %s13713_s13  ;;  %v7977_v27 = vsel %vm7806_vm11, %v7976_v4, %v7975_v2  ;;  %v7218_v32 = vmax.f32 %v7216_v39, %v7217_v6  ;;  %v7225_v3 = vmax.f32 %v7223_v10, %v7224_v37 }
 0x489   : > { %v7212_v46 = vrot.slane %v7211_v49, 2  ;;  %v7979_v5 = vsel %vm7809_vm12, %v18257_v24, %v7977_v27  ;;  %v7231_v29 = vrot.slane %v7230_v33, 4  ;;  %v6238_v11 = vcombine.high %v6236_v42, %v6236_v42  ;;  %v5547_v16 = vpop.f32.mrf.mxu0 }
 0x48a   : > { %v7181_v17 = vsel %vm6452_vm6, %v6229_v41, -inf  ;;  %v7981_v52 = vsel %vm7812_vm13, %v7980_v7, %v7979_v5  ;;  %v7219_v44 = vrot.slane %v7218_v32, 2  ;;  %v7226_v18 = vrot.slane %v7225_v3, 2 }
 0x48b   : > { %v7213_v31 = vmax.f32 %v7211_v49, %v7212_v46  ;;  %8053 = vst.msk [vmem:[#allocation3 + $0x170] sm:$0xff] %vm5651_vm5, %v7981_v52  ;;  %v7232_v26 = vmax.f32 %v7230_v33, %v7231_v29  ;;  %v7182_v4 = vrot.slane %v7181_v17, 4  ;;  %v7188_v57 = vsel %vm6452_vm6, %v6237_v43, -inf  ;;  %v13347_v46 = vpop.f32.mrf.mxu0 }
 0x48c   : > { %v7195_v19 = vsel %vm6452_vm6, %v6236_v42, -inf  ;;  %v7220_v24 = vmax.f32 %v7218_v32, %v7219_v44  ;;  %v7227_v23 = vmax.f32 %v7225_v3, %v7226_v18  ;;  %v7189_v54 = vrot.slane %v7188_v57, 4 }
 0x48d   : > { %v7214_v0 = vrot.slane %v7213_v31, 1  ;;  %v7233_v7 = vrot.slane %v7232_v26, 2  ;;  %v7183_v55 = vmax.f32 %v7181_v17, %v7182_v4  ;;  %v7196_v21 = vrot.slane %v7195_v19, 4  ;;  %v21211_v4 = vld [vmem:[#allocation116_spill] sm:$0xff] }
 0x48e   : > { %v7202_v50 = vsel %vm6452_vm6, %v6238_v11, -inf  ;;  %v7221_v47 = vrot.slane %v7220_v24, 1  ;;  %v7228_v41 = vrot.slane %v7227_v23, 1  ;;  %v7190_v45 = vmax.f32 %v7188_v57, %v7189_v54  ;;  %v5557_v54 = vpop.f32.mrf.mxu0 }
 0x48f   : > { %v7215_v51 = vmax.f32 %v7213_v31, %v7214_v0  ;;  %v7234_v39 = vmax.f32 %v7232_v26, %v7233_v7  ;;  %v7184_v10 = vrot.slane %v7183_v55, 2  ;;  %v7197_v61 = vmax.f32 %v7195_v19, %v7196_v21 }
 0x490   : > { %v7203_v9 = vrot.slane %v7202_v50, 4  ;;  %v7222_v49 = vmax.f32 %v7220_v24, %v7221_v47  ;;  %v7229_v6 = vmax.f32 %v7227_v23, %v7228_v41  ;;  %v7191_v2 = vrot.slane %v7190_v45, 2 }
 0x491   : > { %v7463_v37 = vadd.f32 %v18249_v35, %v7215_v51  ;;  %v7235_v33 = vrot.slane %v7234_v39, 1  ;;  %v7185_v42 = vmax.f32 %v7183_v55, %v7184_v10  ;;  %v7198_v43 = vrot.slane %v7197_v61, 2 }
 0x492   : > { %v7204_v27 = vmax.f32 %v7202_v50, %v7203_v9  ;;  %v7464_v32 = vadd.f32 %v18249_v35, %v7222_v49  ;;  %v7465_v3 = vadd.f32 %v18249_v35, %v7229_v6  ;;  %v7192_v29 = vmax.f32 %v7190_v45, %v7191_v2  ;;  %v21214_v9 = vld [vmem:[#allocation27_spill] sm:$0xff] }
 0x493   : > { %v7591_v5 = vmax.f32 %v7463_v37, 0.0  ;;  %v7236_v11 = vmax.f32 %v7234_v39, %v7235_v33  ;;  %v7186_v17 = vrot.slane %v7185_v42, 1  ;;  %v7199_v52 = vmax.f32 %v7197_v61, %v7198_v43  ;;  %v21212_v39 = vld [vmem:[#allocation26_spill] sm:$0xff]  ;;  %v18318_v43 = vld [vmem:[#allocation3 + $0x110] sm:$0xff] }
 0x494   : > { %v7205_v31 = vrot.slane %v7204_v27, 2  ;;  %v7592_v44 = vmax.f32 %v7464_v32, 0.0  ;;  %v7593_v18 = vmax.f32 %v7465_v3, 0.0  ;;  %v7193_v26 = vrot.slane %v7192_v29, 1 }
 0x495   : > { %v5643_v57 = vadd.f32 %v13344_v28, %v21211_v4  ;;  %v7466_v19 = vadd.f32 %v18249_v35, %v7236_v11  ;;  %v7187_v0 = vmax.f32 %v7185_v42, %v7186_v17  ;;  %v7200_v24 = vrot.slane %v7199_v52, 1  ;;  %v21213_v28 = vld [vmem:[#allocation117_spill] sm:$0xff]  ;;  %v8090_v42 = vld [vmem:[#allocation3 + $0x108] sm:$0xff] }
 0x496   : > { %v7206_v23 = vmax.f32 %v7204_v27, %v7205_v31  ;;  %v7988_v14 = vrot.slane %v7591_v5, 4  ;;  %v7990_v7 = vrot.slane %v7592_v44, 3  ;;  %v7992_v55 = vrot.slane %v7593_v18, 2 }
 0x497   : > { %v7194_v21 = vmax.f32 %v7192_v29, %v7193_v26  ;;  %v7594_v50 = vmax.f32 %v7466_v19, 0.0  ;;  %v7201_v51 = vmax.f32 %v7199_v52, %v7200_v24  ;;  %v7459_v41 = vadd.f32 %v18249_v35, %v7187_v0 }
 0x498   : > { %v7207_v47 = vrot.slane %v7206_v23, 1  ;;  %v5642_v10 = vadd.f32 %v5547_v16, %v21212_v39  ;;  %v5645_v61 = vadd.f32 %v13347_v46, %v21213_v28  ;;  %v5644_v49 = vadd.f32 %v5557_v54, %v21214_v9 }
 0x499   : > { %v7460_v45 = vadd.f32 %v18249_v35, %v7194_v21  ;;  %v7994_v6 = vrot.slane %v7594_v50, 1  ;;  %v7461_v2 = vadd.f32 %v18249_v35, %v7201_v51  ;;  %v5739_v33 = vsel %vm5651_vm5, %v5643_v57, -inf }
 0x49a   : > { %v7208_v37 = vmax.f32 %v7206_v23, %v7207_v47  ;;  %v5736_v32 = vsel %vm5651_vm5, %v5642_v10, -inf  ;;  %v5740_v3 = vsel %vm5651_vm5, %v5645_v61, -inf  ;;  %v5737_v16 = vsel %vm5651_vm5, %v5644_v49, -inf }
 0x49b   : > { %v7588_v27 = vmax.f32 %v7460_v45, 0.0  ;;  %v7589_v5 = vmax.f32 %v7461_v2, 0.0  ;;  %v5741_v29 = vmax.f32 %v5739_v33, %v5740_v3  ;;  %v5738_v11 = vmax.f32 %v5736_v32, %v5737_v16 }
 0x49c   : > { %v7462_v46 = vadd.f32 %v18249_v35, %v7208_v37  ;;  %v7587_v17 = vmax.f32 %v7459_v41, 0.0  ;;  %v8176_v31 = vrot.slane %v8090_v42, 7  ;;  %v8177_v44 = vrot.slane %v18318_v43, 7 }
 0x49d   : > { %v7982_v52 = vrot.slane %v7588_v27, 7  ;;  %v7984_v26 = vrot.slane %v7589_v5, 6  ;;  %v6273_v4 = vcombine.high %v5741_v29, %v5741_v29  ;;  %v6280_v57 = vrot.slane %v5741_v29, %v17050_v1 }
 0x49e   : > { %v7590_v18 = vmax.f32 %v7462_v46, 0.0  ;;  %v6256_v0 = vcombine.high %v5738_v11, %v5738_v11  ;;  %v6263_v24 = vrot.slane %v5738_v11, %v17050_v1  ;;  %v18329_v23 = vsel %vm850_vm3, %v8176_v31, %v8177_v44 }
 0x49f   : > { %v7983_v19 = vsel %vm7794_vm7, %v7982_v52, %v7587_v17  ;;  %v6287_v50 = vrot.slane %v6273_v4, %v17050_v1  ;;  %v6288_v51 = vcombine.high %v6280_v57, %v6280_v57  ;;  %v7265_v47 = vsel %vm6452_vm6, %v6280_v57, -inf }
 0x4a0   : > { %v7985_v54 = vsel %vm7797_vm8, %v7984_v26, %v7983_v19  ;;  %v7986_v21 = vrot.slane %v7590_v18, 5  ;;  %v6270_v41 = vrot.slane %v6256_v0, %v17050_v1  ;;  %v6271_v45 = vcombine.high %v6263_v24, %v6263_v24 }
 0x4a1   : > { %v7237_v39 = vsel %vm6452_vm6, %v6263_v24, -inf  ;;  %v6289_v28 = vcombine.high %v6287_v50, %v6287_v50  ;;  %v7266_v61 = vrot.slane %v7265_v47, 4  ;;  %v7272_v9 = vsel %vm6452_vm6, %v6288_v51, -inf }
 0x4a2   : > { %v7987_v10 = vsel %vm7800_vm9, %v7986_v21, %v7985_v54  ;;  %v7273_v37 = vrot.slane %v7272_v9, 4  ;;  %v7279_v2 = vsel %vm6452_vm6, %v6287_v50, -inf  ;;  %v6272_v33 = vcombine.high %v6270_v41, %v6270_v41 }
 0x4a3   : > { %v7989_v49 = vsel %vm7803_vm10, %v7988_v14, %v7987_v10  ;;  %v7267_v27 = vmax.f32 %v7265_v47, %v7266_v61  ;;  %v7280_v32 = vrot.slane %v7279_v2, 4  ;;  %v7286_v3 = vsel %vm6452_vm6, %v6289_v28, -inf }
 0x4a4   : > { %v7991_v42 = vsel %vm7806_vm11, %v7990_v7, %v7989_v49  ;;  %v7274_v46 = vmax.f32 %v7272_v9, %v7273_v37  ;;  %v7287_v5 = vrot.slane %v7286_v3, 4  ;;  %v7238_v29 = vrot.slane %v7237_v39, 4 }
 0x4a5   : > { %v7993_v16 = vsel %vm7809_vm12, %v7992_v55, %v7991_v42  ;;  %v7268_v17 = vrot.slane %v7267_v27, 2  ;;  %v7281_v52 = vmax.f32 %v7279_v2, %v7280_v32  ;;  %v7244_v14 = vsel %vm6452_vm6, %v6271_v45, -inf }
 0x4a6   : > { %v7995_v11 = vsel %vm7812_vm13, %v7994_v6, %v7993_v16  ;;  %v7275_v31 = vrot.slane %v7274_v46, 2  ;;  %v7288_v44 = vmax.f32 %v7286_v3, %v7287_v5  ;;  %v7239_v7 = vmax.f32 %v7237_v39, %v7238_v29  ;;  %v13350_v39 = vpop.f32.mrf.mxu0 }
 0x4a7   : > { %8054 = vst.msk [vmem:[#allocation3 + $0x188] sm:$0xff] %vm5651_vm5, %v7995_v11  ;;  %v7245_v18 = vrot.slane %v7244_v14, 4  ;;  %v7269_v26 = vmax.f32 %v7267_v27, %v7268_v17  ;;  %v7282_v4 = vrot.slane %v7281_v52, 2  ;;  %v7251_v57 = vsel %vm6452_vm6, %v6270_v41, -inf }
 0x4a8   : > { %v7258_v55 = vsel %vm6452_vm6, %v6272_v33, -inf  ;;  %v7276_v19 = vmax.f32 %v7274_v46, %v7275_v31  ;;  %v7289_v0 = vrot.slane %v7288_v44, 2  ;;  %v7240_v24 = vrot.slane %v7239_v7, 2  ;;  %v5567_v17 = vpop.f32.mrf.mxu0 }
 0x4a9   : > { %v7246_v6 = vmax.f32 %v7244_v14, %v7245_v18  ;;  %v7270_v54 = vrot.slane %v7269_v26, 1  ;;  %v7283_v21 = vmax.f32 %v7281_v52, %v7282_v4  ;;  %v7252_v50 = vrot.slane %v7251_v57, 4 }
 0x4aa   : > { %v7259_v51 = vrot.slane %v7258_v55, 4  ;;  %v7277_v47 = vrot.slane %v7276_v19, 1  ;;  %v7290_v45 = vmax.f32 %v7288_v44, %v7289_v0  ;;  %v7241_v10 = vmax.f32 %v7239_v7, %v7240_v24 }
 0x4ab   : > { %v7247_v28 = vrot.slane %v7246_v6, 2  ;;  %v7271_v61 = vmax.f32 %v7269_v26, %v7270_v54  ;;  %v7284_v9 = vrot.slane %v7283_v21, 1  ;;  %v7253_v49 = vmax.f32 %v7251_v57, %v7252_v50  ;;  %v18353_v57 = vld [vmem:[#allocation3 + $0xf8] sm:$0xff] }
 0x4ac   : > { %v7260_v37 = vmax.f32 %v7258_v55, %v7259_v51  ;;  %v7278_v41 = vmax.f32 %v7276_v19, %v7277_v47  ;;  %v7291_v2 = vrot.slane %v7290_v45, 1  ;;  %v7242_v33 = vrot.slane %v7241_v10, 1  ;;  %v13353_v51 = vpop.f32.mrf.mxu0 }
 0x4ad   : > { %v7248_v42 = vmax.f32 %v7246_v6, %v7247_v28  ;;  %v7285_v27 = vmax.f32 %v7283_v21, %v7284_v9  ;;  %v7471_v32 = vadd.f32 %v18249_v35, %v7271_v61  ;;  %v7254_v3 = vrot.slane %v7253_v49, 2  ;;  %v8086_v61 = vld [vmem:[#allocation3 + $0xe8] sm:$0xff] }
 0x4ae   : > { %v7261_v16 = vrot.slane %v7260_v37, 2  ;;  %v7292_v46 = vmax.f32 %v7290_v45, %v7291_v2  ;;  %v7472_v5 = vadd.f32 %v18249_v35, %v7278_v41  ;;  %v7243_v29 = vmax.f32 %v7241_v10, %v7242_v33  ;;  %v21216_v2 = vld [vmem:[#allocation31_spill] sm:$0xff] }
 0x4af   : > { %v7249_v11 = vrot.slane %v7248_v42, 1  ;;  %v7473_v52 = vadd.f32 %v18249_v35, %v7285_v27  ;;  %v7599_v14 = vmax.f32 %v7471_v32, 0.0  ;;  %v7255_v31 = vmax.f32 %v7253_v49, %v7254_v3  ;;  %v18362_v27 = vld [vmem:[#allocation3 + $0x128] sm:$0xff] }
 0x4b0   : > { %v7262_v44 = vmax.f32 %v7260_v37, %v7261_v16  ;;  %v7474_v7 = vadd.f32 %v18249_v35, %v7292_v46  ;;  %v7600_v18 = vmax.f32 %v7472_v5, 0.0  ;;  %v7467_v4 = vadd.f32 %v18249_v35, %v7243_v29  ;;  %v21215_v37 = vld [vmem:[#allocation30_spill] sm:$0xff]  ;;  %v8095_v29 = vld [vmem:[#allocation3 + $0x130] sm:$0xff] }
 0x4b1   : > { %v7250_v26 = vmax.f32 %v7248_v42, %v7249_v11  ;;  %v7601_v55 = vmax.f32 %v7473_v52, 0.0  ;;  %v8002_v19 = vrot.slane %v7599_v14, 4  ;;  %v7256_v0 = vrot.slane %v7255_v31, 1  ;;  %v18360_v42 = vld [vmem:[#allocation3 + $0xe0] sm:$0xff]  ;;  %v5577_v14 = vpop.f32.mrf.mxu0 }
 0x4b2   : > { %v7263_v24 = vrot.slane %v7262_v44, 1  ;;  %v7602_v6 = vmax.f32 %v7474_v7, 0.0  ;;  %v8004_v54 = vrot.slane %v7600_v18, 3  ;;  %v7595_v50 = vmax.f32 %v7467_v4, 0.0  ;;  %v21217_v16 = vld [vmem:[#allocation34_spill] sm:$0xff] }
 0x4b3   : > { %v7468_v21 = vadd.f32 %v18249_v35, %v7250_v26  ;;  %v8006_v47 = vrot.slane %v7601_v55, 2  ;;  %v7257_v45 = vmax.f32 %v7255_v31, %v7256_v0  ;;  %v13511_v28 = vpack.i.bf16 %v18353_v57, %v18329_v23  ;;  %v8093_v31 = vld [vmem:[#allocation3 + $0x120] sm:$0xff] }
 0x4b4   : > { %v7264_v10 = vmax.f32 %v7262_v44, %v7263_v24  ;;  %v8008_v9 = vrot.slane %v7602_v6, 1  ;;  %v5647_v41 = vadd.f32 %v13350_v39, %v21215_v37  ;;  %v5646_v33 = vadd.f32 %v5567_v17, %v21216_v2  ;;  %v18375_v6 = vld [vmem:[#allocation3 + $0x140] sm:$0xff] }
 0x4b5   : > { %v7596_v49 = vmax.f32 %v7468_v21, 0.0  ;;  %v7469_v32 = vadd.f32 %v18249_v35, %v7257_v45  ;;  %13512 = vrot.lane.b32.xlu0 %v13511_v28, %s13713_s13  ;;  %v5649_v46 = vadd.f32 %v13353_v51, %v21217_v16  ;;  %v8327_v5 = vrot.slane %v18360_v42, 1  ;;  %v18377_v21 = vld [vmem:[#allocation3 + $0x148] sm:$0xff] }
 0x4b6   : > { %v7470_v3 = vadd.f32 %v18249_v35, %v7264_v10  ;;  %v5745_v39 = vsel %vm5651_vm5, %v5647_v41, -inf  ;;  %v5742_v17 = vsel %vm5651_vm5, %v5646_v33, -inf  ;;  %v8328_v52 = vrot.slane %v8086_v61, 1  ;;  %v21218_v10 = vld [vmem:[#allocation37_spill] sm:$0xff] }
 0x4b7   : > { %v7996_v11 = vrot.slane %v7596_v49, 7  ;;  %v7597_v44 = vmax.f32 %v7469_v32, 0.0  ;;  %v5746_v18 = vsel %vm5651_vm5, %v5649_v46, -inf  ;;  %v8259_v26 = vrot.slane %v18362_v27, 1 }
 0x4b8   : > { %v7598_v7 = vmax.f32 %v7470_v3, 0.0  ;;  %v5747_v55 = vmax.f32 %v5745_v39, %v5746_v18  ;;  %v8329_v0 = vsel %vm2079_vm4, %v8327_v5, %v8328_v52  ;;  %v8260_v24 = vrot.slane %v8095_v29, 1 }
 0x4b9   : > { %v7997_v4 = vsel %vm7794_vm7, %v7996_v11, %v7595_v50  ;;  %v7998_v51 = vrot.slane %v7597_v44, 6  ;;  %13380 = vmatmul.mubr.msk.f32.gmra.mxu0 %vm5651_vm5, %v8329_v0  ;;  %v5648_v28 = vadd.f32 %v5577_v14, %v21218_v10  ;;  %v8179_v61 = vrot.slane %v8093_v31, 7 }
 0x4ba   : > { %v8000_v45 = vrot.slane %v7598_v7, 5  ;;  %v6307_v49 = vcombine.high %v5747_v55, %v5747_v55  ;;  %v6314_v37 = vrot.slane %v5747_v55, %v17050_v1  ;;  %v18383_v50 = vsel %vm2079_vm4, %v8259_v26, %v8260_v24 }
 0x4bb   : > { %v8180_v41 = vrot.slane %v18362_v27, 7  ;;  %v7999_v2 = vsel %vm7797_vm8, %v7998_v51, %v7997_v4  ;;  %13382 = vmatprep.mubr.msk.f32.mxu0 %vm5651_vm5, %v18383_v50  ;;  %v5743_v33 = vsel %vm5651_vm5, %v5648_v28, -inf  ;;  %v8262_v32 = vrot.slane %v18375_v6, 1 }
 0x4bc   : > { %v8263_v3 = vrot.slane %v18377_v21, 1  ;;  %v8001_v16 = vsel %vm7800_vm9, %v8000_v45, %v7999_v2  ;;  %v6321_v46 = vrot.slane %v6307_v49, %v17050_v1  ;;  %v6322_v5 = vcombine.high %v6314_v37, %v6314_v37 }
 0x4bd   : > { %v7321_v29 = vsel %vm6452_vm6, %v6314_v37, -inf  ;;  %v8003_v11 = vsel %vm7803_vm10, %v8002_v19, %v8001_v16  ;;  %v5744_v52 = vmax.f32 %v5742_v17, %v5743_v33  ;;  %v18397_v14 = vsel %vm850_vm3, %v8179_v61, %v8180_v41 }
 0x4be   : > { %v7322_v39 = vrot.slane %v7321_v29, 4  ;;  %v8005_v31 = vsel %vm7806_vm11, %v8004_v54, %v8003_v11  ;;  %v6323_v44 = vcombine.high %v6321_v46, %v6321_v46  ;;  %v7328_v7 = vsel %vm6452_vm6, %v6322_v5, -inf }
 0x4bf   : > { %v7335_v18 = vsel %vm6452_vm6, %v6321_v46, -inf  ;;  %v8007_v26 = vsel %vm7809_vm12, %v8006_v47, %v8005_v31  ;;  %v7329_v55 = vrot.slane %v7328_v7, 4  ;;  %v6290_v17 = vcombine.high %v5744_v52, %v5744_v52 }
 0x4c0   : > { %v7323_v4 = vmax.f32 %v7321_v29, %v7322_v39  ;;  %v7336_v0 = vrot.slane %v7335_v18, 4  ;;  %v8009_v24 = vsel %vm7812_vm13, %v8008_v9, %v8007_v26  ;;  %v7342_v19 = vsel %vm6452_vm6, %v6323_v44, -inf }
 0x4c1   : > { %v6297_v51 = vrot.slane %v5744_v52, %v17050_v1  ;;  %8055 = vst.msk [vmem:[#allocation3 + $0x1a0] sm:$0xff] %vm5651_vm5, %v8009_v24  ;;  %v7330_v45 = vmax.f32 %v7328_v7, %v7329_v55  ;;  %v7343_v28 = vrot.slane %v7342_v19, 4  ;;  %v6304_v61 = vrot.slane %v6290_v17, %v17050_v1 }
 0x4c2   : > { %v7324_v54 = vrot.slane %v7323_v4, 2  ;;  %v7337_v10 = vmax.f32 %v7335_v18, %v7336_v0  ;;  %v13516_v37 = vpack.i.bf16 %v18318_v43, %v18397_v14  ;;  %v8183_v21 = vrot.slane %v18375_v6, 7 }
 0x4c3   : > { %v6305_v49 = vcombine.high %v6297_v51, %v6297_v51  ;;  %v7293_v47 = vsel %vm6452_vm6, %v6297_v51, -inf  ;;  %v7331_v41 = vrot.slane %v7330_v45, 2  ;;  %v7344_v33 = vmax.f32 %v7342_v19, %v7343_v28 }
 0x4c4   : > { %v7325_v9 = vmax.f32 %v7323_v4, %v7324_v54  ;;  %v7338_v2 = vrot.slane %v7337_v10, 2  ;;  %v6306_v16 = vcombine.high %v6304_v61, %v6304_v61  ;;  %v7294_v46 = vrot.slane %v7293_v47, 4  ;;  %13517 = vrot.lane.b32.xlu1 %v13516_v37, %s13713_s13 }
 0x4c5   : > { %v7300_v5 = vsel %vm6452_vm6, %v6305_v49, -inf  ;;  %v7307_v29 = vsel %vm6452_vm6, %v6304_v61, -inf  ;;  %v7332_v39 = vmax.f32 %v7330_v45, %v7331_v41  ;;  %v7345_v31 = vrot.slane %v7344_v33, 2 }
 0x4c6   : > { %v7326_v11 = vrot.slane %v7325_v9, 1  ;;  %v7339_v52 = vmax.f32 %v7337_v10, %v7338_v2  ;;  %v7295_v44 = vmax.f32 %v7293_v47, %v7294_v46  ;;  %v7301_v7 = vrot.slane %v7300_v5, 4 }
 0x4c7   : > { %v7308_v18 = vrot.slane %v7307_v29, 4  ;;  %v7314_v26 = vsel %vm6452_vm6, %v6306_v16, -inf  ;;  %v7333_v55 = vrot.slane %v7332_v39, 1  ;;  %v7346_v24 = vmax.f32 %v7344_v33, %v7345_v31 }
 0x4c8   : > { %v7327_v4 = vmax.f32 %v7325_v9, %v7326_v11  ;;  %v7340_v0 = vrot.slane %v7339_v52, 1  ;;  %v7296_v19 = vrot.slane %v7295_v44, 2  ;;  %v7302_v17 = vmax.f32 %v7300_v5, %v7301_v7 }
 0x4c9   : > { %v7309_v51 = vmax.f32 %v7307_v29, %v7308_v18  ;;  %v7315_v54 = vrot.slane %v7314_v26, 4  ;;  %v7334_v28 = vmax.f32 %v7332_v39, %v7333_v55  ;;  %v7347_v49 = vrot.slane %v7346_v24, 1  ;;  %v8096_v55 = vld [vmem:[#allocation3 + $0x138] sm:$0xff] }
 0x4ca   : > { %v7341_v61 = vmax.f32 %v7339_v52, %v7340_v0  ;;  %v7479_v45 = vadd.f32 %v18249_v35, %v7327_v4  ;;  %v7297_v10 = vmax.f32 %v7295_v44, %v7296_v19  ;;  %v7303_v37 = vrot.slane %v7302_v17, 2  ;;  %v18421_v0 = vld [vmem:[#allocation3 + $0x158] sm:$0xff] }
 0x4cb   : > { %v7310_v47 = vrot.slane %v7309_v51, 2  ;;  %v7316_v41 = vmax.f32 %v7314_v26, %v7315_v54  ;;  %v7348_v2 = vmax.f32 %v7346_v24, %v7347_v49  ;;  %v7480_v16 = vadd.f32 %v18249_v35, %v7334_v28 }
 0x4cc   : > { %v7481_v9 = vadd.f32 %v18249_v35, %v7341_v61  ;;  %v7607_v46 = vmax.f32 %v7479_v45, 0.0  ;;  %v7298_v33 = vrot.slane %v7297_v10, 1  ;;  %v7304_v11 = vmax.f32 %v7302_v17, %v7303_v37  ;;  %v8101_v45 = vld [vmem:[#allocation3 + $0x160] sm:$0xff] }
 0x4cd   : > { %v7311_v5 = vmax.f32 %v7309_v51, %v7310_v47  ;;  %v7317_v29 = vrot.slane %v7316_v41, 2  ;;  %v7482_v39 = vadd.f32 %v18249_v35, %v7348_v2  ;;  %v7608_v52 = vmax.f32 %v7480_v16, 0.0 }
 0x4ce   : > { %v7609_v31 = vmax.f32 %v7481_v9, 0.0  ;;  %v18419_v7 = vrot.slane %v7607_v46, 4  ;;  %v7299_v44 = vmax.f32 %v7297_v10, %v7298_v33  ;;  %v7305_v18 = vrot.slane %v7304_v11, 1  ;;  %v8099_v10 = vld [vmem:[#allocation3 + $0x150] sm:$0xff]  ;;  %v8104_v46 = vld [vmem:[#allocation3 + $0x178] sm:$0xff] }
 0x4cf   : > { %v7312_v4 = vrot.slane %v7311_v5, 1  ;;  %v7318_v26 = vmax.f32 %v7316_v41, %v7317_v29  ;;  %v7610_v24 = vmax.f32 %v7482_v39, 0.0  ;;  %v18423_v19 = vrot.slane %v7608_v52, 3  ;;  %v18443_v9 = vld [vmem:[#allocation3 + $0x170] sm:$0xff] }
 0x4d0   : > { %v18425_v54 = vrot.slane %v7609_v31, 2  ;;  %v18432_v17 = vsel %vm2079_vm4, %v8262_v32, %v8263_v3  ;;  %v7306_v51 = vmax.f32 %v7304_v11, %v7305_v18  ;;  %v7475_v49 = vadd.f32 %v18249_v35, %v7299_v44  ;;  %v8102_v18 = vld [vmem:[#allocation3 + $0x168] sm:$0xff] }
 0x4d1   : > { %v7313_v28 = vmax.f32 %v7311_v5, %v7312_v4  ;;  %v7319_v61 = vrot.slane %v7318_v26, 1  ;;  %13383 = vmatmul.mubr.msk.f32.gmra.mxu0 %vm5651_vm5, %v18432_v17  ;;  %v18437_v37 = vrot.slane %v7610_v24, 1  ;;  %v8182_v47 = vrot.slane %v8096_v55, 7  ;;  %v18452_v4 = vld [vmem:[#allocation3 + $0x188] sm:$0xff] }
 0x4d2   : > { %v8265_v41 = vrot.slane %v18421_v0, 1  ;;  %v7476_v32 = vadd.f32 %v18249_v35, %v7306_v51  ;;  %v7603_v16 = vmax.f32 %v7475_v49, 0.0  ;;  %v8266_v11 = vrot.slane %v8101_v45, 1 }
 0x4d3   : > { %v7320_v2 = vmax.f32 %v7318_v26, %v7319_v61  ;;  %v7477_v3 = vadd.f32 %v18249_v35, %v7313_v28  ;;  %v18446_v33 = vsel %vm850_vm3, %v8182_v47, %v8183_v21  ;;  %v8185_v5 = vrot.slane %v8099_v10, 7  ;;  %v8107_v28 = vld [vmem:[#allocation3 + $0x190] sm:$0xff]  ;;  %v8105_v61 = vld [vmem:[#allocation3 + $0x180] sm:$0xff] }
 0x4d4   : > { %v8186_v29 = vrot.slane %v18421_v0, 7  ;;  %v7604_v52 = vmax.f32 %v7476_v32, 0.0  ;;  %v13521_v44 = vpack.i.bf16 %v18362_v27, %v18446_v33  ;;  %v18455_v26 = vsel %vm2079_vm4, %v8265_v41, %v8266_v11  ;;  %v18466_v47 = vld [vmem:[#allocation3 + $0x1a0] sm:$0xff] }
 0x4d5   : > { %v7478_v39 = vadd.f32 %v18249_v35, %v7320_v2  ;;  %v7605_v31 = vmax.f32 %v7477_v3, 0.0  ;;  %v8268_v24 = vrot.slane %v18443_v9, 1  ;;  %v8269_v51 = vrot.slane %v8104_v46, 1  ;;  %13385 = vmatprep.mubr.msk.f32.mxu0 %vm5651_vm5, %v18455_v26  ;;  %v8110_v3 = vld [vmem:[#allocation3 + $0x1a8] sm:$0xff] }
 0x4d6   : > { %v18458_v55 = vsel %vm850_vm3, %v8185_v5, %v8186_v29  ;;  %v8010_v49 = vrot.slane %v7604_v52, 7  ;;  %13522 = vrot.lane.b32.xlu0 %v13521_v44, %s13713_s13  ;;  %v8188_v41 = vrot.slane %v8102_v18, 7  ;;  %v8189_v2 = vrot.slane %v18443_v9, 7 }
 0x4d7   : > { %v7606_v35 = vmax.f32 %v7478_v39, 0.0  ;;  %v8012_v45 = vrot.slane %v7605_v31, 6  ;;  %v13526_v10 = vpack.i.bf16 %v18375_v6, %v18458_v55  ;;  %v18469_v21 = vsel %vm2079_vm4, %v8268_v24, %v8269_v51  ;;  %v8108_v39 = vld [vmem:[#allocation3 + $0x198] sm:$0xff]  ;;  %v8057_v24 = vld [vmem:[#allocation3] sm:$0xff] }
 0x4d8   : > { %v8271_v32 = vrot.slane %v18452_v4, 1  ;;  %v8011_v46 = vsel %vm7794_vm7, %v8010_v49, %v7603_v16  ;;  %13386 = vmatmul.mubr.msk.f32.gmra.mxu0 %vm5651_vm5, %v18469_v21  ;;  %v8272_v5 = vrot.slane %v8107_v28, 1  ;;  %v8191_v29 = vrot.slane %v8105_v61, 7  ;;  %v13473_v16 = vpop.permute.xlu0 %13472 }
 0x4d9   : > { %v8014_v11 = vrot.slane %v7606_v35, 5  ;;  %13527 = vrot.lane.b32.xlu1 %v13526_v10, %s13713_s13  ;;  %v8013_v52 = vsel %vm7797_vm8, %v8012_v45, %v8011_v46  ;;  %v18479_v31 = vsel %vm850_vm3, %v8188_v41, %v8189_v2  ;;  %v8192_v44 = vrot.slane %v18452_v4, 7  ;;  %v8062_v46 = vld [vmem:[#allocation3 + $0x28] sm:$0xff] }
 0x4da   : > { %v8274_v18 = vrot.slane %v18466_v47, 1  ;;  %v13531_v35 = vpack.i.bf16 %v18421_v0, %v18479_v31  ;;  %v18487_v28 = vsel %vm2079_vm4, %v8271_v32, %v8272_v5  ;;  %v8275_v61 = vrot.slane %v8110_v3, 1 }
 0x4db   : > { %v8015_v51 = vsel %vm7800_vm9, %v8014_v11, %v8013_v52  ;;  %13388 = vmatprep.mubr.msk.f32.mxu0 %vm5651_vm5, %v18487_v28  ;;  %v18494_v45 = vsel %vm850_vm3, %v8191_v29, %v8192_v44  ;;  %v8194_v10 = vrot.slane %v8108_v39, 7  ;;  %v8195_v41 = vrot.slane %v18466_v47, 7  ;;  %v8059_v11 = vld [vmem:[#allocation3 + $0x10] sm:$0xff] }
 0x4dc   : > { %v8017_v49 = vsel %vm7803_vm10, %v18419_v7, %v8015_v51  ;;  %13532 = vrot.lane.b32.xlu0 %v13531_v35, %s13713_s13  ;;  %v13536_v32 = vpack.i.bf16 %v18443_v9, %v18494_v45  ;;  %v18503_v3 = vsel %vm2079_vm4, %v8274_v18, %v8275_v61  ;;  %v8149_v7 = vrot.slane %v8057_v24, 7  ;;  %v13478_v52 = vpop.permute.xlu0 %13477  ;;  %v18520_v24 = vld [vmem:[#allocation3 + $0x20] sm:$0xff]  ;;  %v13483_v61 = vpop.permute.xlu1 %13482 }
 0x4dd   : > { %v8019_v2 = vsel %vm7806_vm11, %v18423_v19, %v8017_v49  ;;  %13389 = vmatmul.mubr.msk.f32.gmra.mxu0 %vm5651_vm5, %v18503_v3  ;;  %v18510_v29 = vsel %vm850_vm3, %v8194_v10, %v8195_v41  ;;  %v13475_v19 = vunpack.i.h.bf16 %v13473_v16  ;;  %v13474_v39 = vunpack.i.l.bf16 %v13473_v16 }
 0x4de   : > { %v8021_v5 = vsel %vm7809_vm12, %v18425_v54, %v8019_v2  ;;  %13537 = vrot.lane.b32.xlu1 %v13536_v32, %s13713_s13  ;;  %v13541_v18 = vpack.i.bf16 %v18452_v4, %v18510_v29  ;;  %v8151_v54 = vsel %vm850_vm3, %v8149_v7, %v8150_v15  ;;  %v8232_v51 = vrot.slane %v18520_v24, 1  ;;  %v8113_v2 = vld [vmem:[#allocation3 + $0x1c0] sm:$0xff]  ;;  %v8111_v32 = vld [vmem:[#allocation3 + $0x1b0] sm:$0xff] }
 0x4df   : > { %v8023_v44 = vsel %vm7812_vm13, %v18437_v37, %v8021_v5  ;;  %v8233_v16 = vrot.slane %v8062_v46, 1  ;;  %v8230_v35 = vrot.slane %v8059_v11, 1  ;;  %v13479_v37 = vunpack.i.l.bf16 %v13478_v52  ;;  %v8588_v11 = vld [vmem:[%s20055_s3 + $0x178] sm:$0xff]  ;;  %v8603_v5 = vld [vmem:[%s20055_s3 + $0x1f0] sm:$0xff] }
 0x4e0   : > { %8056 = vst.msk [vmem:[#allocation3 + $0x1b8] sm:$0xff] %vm5651_vm5, %v8023_v44  ;;  %13542 = vrot.lane.b32.xlu0 %v13541_v18, %s13713_s13  ;;  %v8489_v49 = vsel %vm5651_vm5, %v8151_v54, %v13475_v19  ;;  %v13480_v15 = vunpack.i.h.bf16 %v13478_v52  ;;  %v13484_v46 = vunpack.i.l.bf16 %v13483_v61  ;;  %v13488_v8 = vpop.permute.xlu1 %13487  ;;  %v8309_v19 = vrot.slane %v8113_v2, 1  ;;  %v8601_v2 = vld [vmem:[%s20055_s3 + $0x1e0] sm:$0xff] }
 0x4e1   : > { %v8234_v10 = vsel %vm2079_vm4, %v8232_v51, %v8233_v16  ;;  %v8231_v20 = vsel %vm2079_vm4, %v8229_v12, %v8230_v35  ;;  %v8587_v12 = vld [vmem:[%s20055_s3 + $0x170] sm:$0xff]  ;;  %v13485_v18 = vunpack.i.h.bf16 %v13483_v61  ;;  %v8602_v51 = vld [vmem:[%s20055_s3 + $0x1e8] sm:$0xff] }
 0x4e2   : > { %v8505_v41 = vsel %vm5651_vm5, %v8231_v20, %v13474_v39  ;;  %v8506_v7 = vsel %vm5651_vm5, %v8234_v10, %v13479_v37  ;;  %v8300_v39 = vrot.slane %v8111_v32, 7  ;;  %v8490_v52 = vsel %vm5651_vm5, %v17766_v60, %v13480_v15  ;;  %v13493_v60 = vpop.permute.xlu0 %13492  ;;  %v8586_v61 = vld [vmem:[%s20055_s3 + $0x168] sm:$0xff] }
 0x4e3   : > { %8709 = vmatprep.mubr.f32.mxu1 %v8505_v41  ;;  %v8507_v54 = vsel %vm5651_vm5, %v17786_v38, %v13484_v46  ;;  %v13489_v37 = vunpack.i.l.bf16 %v13488_v8  ;;  %v18570_v15 = vsel %vm5651_vm5, %v17800_v62, %v13485_v18  ;;  %v13490_v41 = vunpack.i.h.bf16 %v13488_v8  ;;  %v8585_v46 = vld [vmem:[%s20055_s3 + $0x160] sm:$0xff]  ;;  %v8092_v62 = vld [vmem:[#allocation3 + $0x118] sm:$0xff] }
 0x4e4   : > { %8429 = vrot.lane.b32.xlu0 %v8234_v10, %s13713_s13  ;;  %8710 = vmatmul.mubr.f32.vlgmr.msra.gmra.mxu1 %v8489_v49 }
 0x4e5   : > { %8714 = vmatprep.mubr.f32.mxu1 %v8506_v7  ;;  %12073 = vmatpush3.msra.mxu1 %v8588_v11  ;;  %v8508_v32 = vsel %vm5651_vm5, %v17847_v58, %v13489_v37  ;;  %v13494_v7 = vunpack.i.l.bf16 %v13493_v60  ;;  %v13498_v11 = vpop.permute.xlu1 %13497 }
 0x4e6   : > { %12074 = vmatprep.subr.mxu1 %v8603_v5  ;;  %v8600_v5 = vld [vmem:[%s20055_s3 + $0x1d8] sm:$0xff] }
 0x4e7   : > { %v18544_v44 = vld [vmem:[#allocation3 + $0x1b8] sm:$0xff]  ;;  %12075 = vmatpush3.msra.mxu1 %v8587_v12  ;;  %v18593_v12 = vsel %vm5651_vm5, %v17857_v48, %v13490_v41  ;;  %v8509_v18 = vsel %vm5651_vm5, %v17919_v40, %v13494_v7  ;;  %v13503_v48 = vpop.permute.xlu0 %13502 }
 0x4e8   : > { %v8308_v16 = vrot.slane %v18544_v44, 1  ;;  %v8301_v35 = vrot.slane %v18544_v44, 7  ;;  %8433 = vrot.lane.b32.xlu0 %v17847_v58, %s13713_s13  ;;  %8715 = vmatmul.mubr.f32.gmra.mxu1 %v8490_v52  ;;  %v18587_v58 = vld [vmem:[#allocation3 + $0xc8] sm:$0xff]  ;;  %v8257_v52 = vrot.slane %v8092_v62, 1  ;;  %v8581_v62 = vld [vmem:[%s20055_s3 + $0x140] sm:$0xff] }
 0x4e9   : > { %8719 = vmatprep.mubr.f32.mxu1 %v8507_v54  ;;  %12076 = vmatprep.subr.mxu1 %v8602_v51  ;;  %v13551_v8 = vpack.i.bf16 %v18150_v63, %v18587_v58  ;;  %v13499_v54 = vunpack.i.l.bf16 %v13498_v11  ;;  %v8584_v51 = vld [vmem:[%s20055_s3 + $0x158] sm:$0xff] }
 0x4ea   : > { %v18559_v49 = vsel %vm2079_vm4, %v8308_v16, %v8309_v19  ;;  %v18562_v10 = vsel %vm850_vm3, %v8300_v39, %v8301_v35  ;;  %12077 = vmatpush3.msra.mxu1 %v8586_v61  ;;  %v13495_v19 = vunpack.i.h.bf16 %v13493_v60  ;;  %v8256_v39 = vrot.slane %v18318_v43, 1  ;;  %v8599_v43 = vld [vmem:[%s20055_s3 + $0x1d0] sm:$0xff] }
 0x4eb   : > { %13391 = vmatprep.mubr.msk.f32.mxu0 %vm5651_vm5, %v18559_v49  ;;  %v13546_v20 = vpack.i.bf16 %v18466_v47, %v18562_v10  ;;  %12078 = vmatprep.subr.mxu1 %v8601_v2  ;;  %v13500_v35 = vunpack.i.h.bf16 %v13498_v11  ;;  %v13504_v60 = vunpack.i.l.bf16 %v13503_v48  ;;  %v8583_v61 = vld [vmem:[%s20055_s3 + $0x150] sm:$0xff]  ;;  %v13561_v11 = vpack.i.bf16 %v18503_v3, %v18544_v44 }
 0x4ec   : > { %8437 = vrot.lane.b32.xlu0 %v17994_v53, %s13713_s13  ;;  %8720 = vmatmul.mubr.f32.gmra.mxu1 %v18570_v15  ;;  %v18610_v16 = vsel %vm5651_vm5, %v17927_v13, %v13495_v19  ;;  %v18613_v37 = vsel %vm2079_vm4, %v8256_v39, %v8257_v52  ;;  %v8598_v13 = vld [vmem:[%s20055_s3 + $0x1c8] sm:$0xff]  ;;  %v8593_v52 = vld [vmem:[%s20055_s3 + $0x1a0] sm:$0xff] }
 0x4ed   : > { %13547 = vrot.lane.b32.xlu1 %v13546_v20, %s13713_s13  ;;  %8724 = vmatprep.mubr.f32.mxu1 %v8508_v32  ;;  %v13505_v20 = vunpack.i.h.bf16 %v13503_v48  ;;  %v8511_v41 = vsel %vm5651_vm5, %v18060_v22, %v13504_v60  ;;  %v13556_v32 = vpack.i.bf16 %v18270_v59, %v18360_v42  ;;  %v8594_v19 = vld [vmem:[%s20055_s3 + $0x1a8] sm:$0xff]  ;;  %v8576_v48 = vld [vmem:[%s20055_s3 + $0x118] sm:$0xff] }
 0x4ee   : > { %12079 = vmatpush3.msra.mxu1 %v8585_v46  ;;  %v8578_v39 = vld [vmem:[%s20055_s3 + $0x128] sm:$0xff] }
 0x4ef   : > { %12080 = vmatprep.subr.mxu1 %v8600_v5  ;;  %v18649_v7 = vsel %vm5651_vm5, %v18072_v36, %v13505_v20  ;;  %v8596_v36 = vld [vmem:[%s20055_s3 + $0x1b8] sm:$0xff]  ;;  %v8590_v60 = vld [vmem:[%s20055_s3 + $0x188] sm:$0xff]  ;;  %v8089_v20 = vld [vmem:[#allocation3 + $0x100] sm:$0xff] }
 0x4f0   : > { %13552 = vrot.lane.b32.xlu0 %v13551_v8, %s13713_s13  ;;  %8725 = vmatmul.mubr.f32.gmra.mxu1 %v18593_v12  ;;  %v8595_v8 = vld [vmem:[%s20055_s3 + $0x1b0] sm:$0xff] }
 0x4f1   : > { %8431 = vrot.lane.b32.xlu1 %v17786_v38, %s13713_s13  ;;  %8729 = vmatprep.mubr.f32.mxu1 %v8509_v18  ;;  %v8510_v38 = vsel %vm5651_vm5, %v17994_v53, %v13499_v54  ;;  %v18630_v53 = vsel %vm5651_vm5, %v18000_v56, %v13500_v35  ;;  %v8597_v56 = vld [vmem:[%s20055_s3 + $0x1c0] sm:$0xff]  ;;  %v8592_v54 = vld [vmem:[%s20055_s3 + $0x198] sm:$0xff]  ;;  %v8575_v35 = vld [vmem:[%s20055_s3 + $0x110] sm:$0xff] }
 0x4f2   : > { %12081 = vmatpush3.msra.mxu1 %v8584_v51  ;;  %v8577_v18 = vld [vmem:[%s20055_s3 + $0x120] sm:$0xff]  ;;  %v18699_v51 = vld [vmem:[#allocation3 + $0x1d0] sm:$0xff] }
 0x4f3   : > { %12082 = vmatprep.subr.mxu1 %v8599_v43  ;;  %v8591_v43 = vld [vmem:[%s20055_s3 + $0x190] sm:$0xff] }
 0x4f4   : > { %8445 = vrot.lane.b32.xlu0 %v18613_v37, %s13713_s13  ;;  %8730 = vmatmul.mubr.f32.gmra.mxu1 %v18610_v16 }
 0x4f5   : > { %8435 = vrot.lane.b32.xlu1 %v17919_v40, %s13713_s13  ;;  %8734 = vmatprep.mubr.f32.mxu1 %v8510_v38  ;;  %v8582_v40 = vld [vmem:[%s20055_s3 + $0x148] sm:$0xff]  ;;  %v13566_v38 = vpack.i.bf16 %v18559_v49, %v18699_v51  ;;  %v8573_v49 = vld [vmem:[%s20055_s3 + $0x100] sm:$0xff] }
 0x4f6   : > { %12083 = vmatpush3.msra.mxu1 %v8583_v61  ;;  %v8574_v61 = vld [vmem:[%s20055_s3 + $0x108] sm:$0xff] }
 0x4f7   : > { %12084 = vmatprep.subr.mxu1 %v8598_v13  ;;  %v8589_v13 = vld [vmem:[%s20055_s3 + $0x180] sm:$0xff] }
 0x4f8   : > { %8449 = vrot.lane.b32.xlu0 %v18432_v17, %s13713_s13  ;;  %8735 = vmatmul.mubr.f32.gmra.mxu1 %v18630_v53 }
 0x4f9   : > { %8439 = vrot.lane.b32.xlu1 %v18060_v22, %s13713_s13  ;;  %8739 = vmatprep.mubr.f32.mxu1 %v8511_v41  ;;  %v8087_v41 = vld [vmem:[#allocation3 + $0xf0] sm:$0xff] }
 0x4fa   : > { %v13508_v2 = vpop.permute.xlu1 %13507  ;;  %12085 = vmatpush3.msra.mxu1 %v8582_v40  ;;  %v8330_v40 = vrot.slane %v18699_v51, 1 }
 0x4fb   : > { %v13510_v46 = vunpack.i.h.bf16 %v13508_v2  ;;  %v13509_v22 = vunpack.i.l.bf16 %v13508_v2  ;;  %12086 = vmatprep.subr.mxu1 %v8597_v56  ;;  %v8174_v56 = vrot.slane %v18353_v57, 7  ;;  %v8253_v2 = vrot.slane %v18353_v57, 1 }
 0x4fc   : > { %8453 = vrot.lane.b32.xlu0 %v18469_v21, %s13713_s13  ;;  %8740 = vmatmul.mubr.f32.gmra.mxu1 %v18649_v7 }
 0x4fd   : > { %13557 = vrot.lane.b32.xlu1 %v13556_v32, %s13713_s13  ;;  %v8512_v59 = vsel %vm5651_vm5, %v18150_v63, %v13509_v22  ;;  %v18667_v5 = vsel %vm5651_vm5, %v18165_v30, %v13510_v46  ;;  %12087 = vmatpush3.msra.mxu1 %v8581_v62  ;;  %v8580_v63 = vld [vmem:[%s20055_s3 + $0x138] sm:$0xff]  ;;  %v8579_v30 = vld [vmem:[%s20055_s3 + $0x130] sm:$0xff]  ;;  %v8254_v32 = vrot.slane %v8089_v20, 1  ;;  %v8173_v46 = vrot.slane %v8087_v41, 7 }
 0x4fe   : > { %8744 = vmatprep.mubr.f32.mxu1 %v8512_v59  ;;  %12088 = vmatprep.subr.mxu1 %v8596_v36  ;;  %v8116_v22 = vld [vmem:[#allocation3 + $0x1d8] sm:$0xff] }
 0x4ff   : > { %12089 = vmatpush3.msra.mxu1 %v8580_v63  ;;  %v8331_v62 = vrot.slane %v8116_v22, 1  ;;  %v8175_v63 = vsel %vm850_vm3, %v8173_v46, %v8174_v56 }
 0x500   : > { %13562 = vrot.lane.b32.xlu0 %v13561_v11, %s13713_s13  ;;  %8745 = vmatmul.mubr.f32.gmra.mxu1 %v18667_v5  ;;  %v8255_v11 = vsel %vm2079_vm4, %v8253_v2, %v8254_v32 }
 0x501   : > { %8447 = vrot.lane.b32.xlu1 %v18383_v50, %s13713_s13  ;;  %12090 = vmatprep.subr.mxu1 %v8595_v8  ;;  %v8332_v59 = vsel %vm2079_vm4, %v8330_v40, %v8331_v62 }
 0x502   : > { %12091 = vmatpush3.msra.mxu1 %v8579_v30  ;;  %13392 = vmatmul.mubr.msk.f32.gmra.mxu0 %vm5651_vm5, %v8332_v59 }
 0x503   : > { %12092 = vmatprep.subr.mxu1 %v8594_v19 }
 0x504   : > { %12093 = vmatpush3.msra.mxu1 %v8578_v39 }
 0x505   : > { %8451 = vrot.lane.b32.xlu1 %v18455_v26, %s13713_s13  ;;  %12094 = vmatprep.subr.mxu1 %v8593_v52 }
 0x506   : > { %12095 = vmatpush3.msra.mxu1 %v8577_v18 }
 0x507   : > { %12096 = vmatprep.subr.mxu1 %v8592_v54 }
 0x508   : > { %12097 = vmatpush3.msra.mxu1 %v8576_v48 }
 0x509   : > { %8455 = vrot.lane.b32.xlu1 %v18487_v28, %s13713_s13  ;;  %12098 = vmatprep.subr.mxu1 %v8591_v43 }
 0x50a   : > { %12099 = vmatpush3.msra.mxu1 %v8575_v35 }
 0x50b   : > { %12100 = vmatprep.subr.mxu1 %v8590_v60 }
 0x50c   : > { %12101 = vmatpush3.msra.mxu1 %v8574_v61 }
 0x50d   : > { %13567 = vrot.lane.b32.xlu1 %v13566_v38, %s13713_s13  ;;  %12102 = vmatprep.subr.mxu1 %v8589_v13  ;;  %s10706_s13 = scalar_lea.sflag [#allocation5], %s380_s29 }
 0x50e   : > { %12103 = vmatpush3.msra.mxu1 %v8573_v49 }
 0x527   : > { %v13513_v36 = vpop.permute.xlu0 %13512 }
 0x528   : > { %v13515_v8 = vunpack.i.h.bf16 %v13513_v36  ;;  %v13514_v30 = vunpack.i.l.bf16 %v13513_v36 }
 0x52a   : > { %v8513_v19 = vsel %vm5651_vm5, %v8255_v11, %v13514_v30  ;;  %v8497_v39 = vsel %vm5651_vm5, %v8175_v63, %v13515_v8 }
 0x52b   : > { %8749 = vmatprep.mubr.f32.mxu1 %v8513_v19  ;;  %v13641_v19 = vld [vmem:[#allocation3 + $0x38] sm:$0xff] }
 0x52c   : > { %8750 = vmatmul.mubr.f32.gmra.mxu1 %v8497_v39  ;;  %v13642_v39 = vld [vmem:[#allocation3 + $0x50] sm:$0xff] }
 0x536   : > { %v13518_v57 = vpop.permute.xlu1 %13517 }
 0x537   : > { %v13520_v52 = vunpack.i.h.bf16 %v13518_v57  ;;  %v13519_v18 = vunpack.i.l.bf16 %v13518_v57 }
 0x539   : > { %v8514_v54 = vsel %vm5651_vm5, %v18613_v37, %v13519_v18  ;;  %v8498_v48 = vsel %vm5651_vm5, %v18329_v23, %v13520_v52 }
 0x53a   : > { %8754 = vmatprep.mubr.f32.mxu1 %v8514_v54  ;;  %v8084_v54 = vld [vmem:[#allocation3 + $0xd8] sm:$0xff] }
 0x53b   : > { %8755 = vmatmul.mubr.f32.gmra.mxu1 %v8498_v48  ;;  %v13644_v48 = vld [vmem:[#allocation3 + $0x80] sm:$0xff] }
 0x548   : > { %v13523_v43 = vpop.permute.xlu0 %13522 }
 0x549   : > { %v13525_v35 = vunpack.i.h.bf16 %v13523_v43  ;;  %v13524_v38 = vunpack.i.l.bf16 %v13523_v43 }
 0x54b   : > { %v13528_v60 = vpop.permute.xlu1 %13527  ;;  %v8515_v61 = vsel %vm5651_vm5, %v18383_v50, %v13524_v38  ;;  %v18744_v13 = vsel %vm5651_vm5, %v18397_v14, %v13525_v35  ;;  %v8315_v38 = vrot.slane %v8084_v54, 7 }
 0x54c   : > { %v13530_v49 = vunpack.i.h.bf16 %v13528_v60  ;;  %v13529_v20 = vunpack.i.l.bf16 %v13528_v60  ;;  %8759 = vmatprep.mubr.f32.mxu1 %v8515_v61  ;;  %v13645_v61 = vld [vmem:[#allocation3 + $0x98] sm:$0xff] }
 0x54d   : > { %8760 = vmatmul.mubr.f32.gmra.mxu1 %v18744_v13 }
 0x54e   : > { %v8516_v23 = vsel %vm5651_vm5, %v18432_v17, %v13529_v20  ;;  %v18751_v37 = vsel %vm5651_vm5, %v18446_v33, %v13530_v49  ;;  %v13533_v41 = vpop.permute.xlu0 %13532 }
 0x54f   : > { %8764 = vmatprep.mubr.f32.mxu1 %v8516_v23  ;;  %v13535_v40 = vunpack.i.h.bf16 %v13533_v41  ;;  %v13534_v50 = vunpack.i.l.bf16 %v13533_v41 }
 0x550   : > { %v13538_v56 = vpop.permute.xlu1 %13537 }
 0x551   : > { %8765 = vmatmul.mubr.f32.gmra.mxu1 %v18751_v37  ;;  %v8517_v14 = vsel %vm5651_vm5, %v18455_v26, %v13534_v50  ;;  %v13539_v2 = vunpack.i.l.bf16 %v13538_v56  ;;  %v18758_v32 = vsel %vm5651_vm5, %v18458_v55, %v13535_v40  ;;  %v13540_v17 = vunpack.i.h.bf16 %v13538_v56  ;;  %v13646_v40 = vld [vmem:[#allocation3 + $0xb0] sm:$0xff] }
 0x552   : > { %8769 = vmatprep.mubr.f32.mxu1 %v8517_v14  ;;  %v13543_v46 = vpop.permute.xlu0 %13542  ;;  %v13647_v14 = vld [vmem:[#allocation3 + $0x110] sm:$0xff] }
 0x553   : > { %v8518_v33 = vsel %vm5651_vm5, %v18469_v21, %v13539_v2  ;;  %v13544_v22 = vunpack.i.l.bf16 %v13543_v46  ;;  %v18765_v62 = vsel %vm5651_vm5, %v18479_v31, %v13540_v17  ;;  %v13545_v26 = vunpack.i.h.bf16 %v13543_v46 }
 0x555   : > { %8770 = vmatmul.mubr.f32.gmra.mxu1 %v18758_v32  ;;  %v8519_v59 = vsel %vm5651_vm5, %v18487_v28, %v13544_v22  ;;  %v18772_v55 = vsel %vm5651_vm5, %v18494_v45, %v13545_v26 }
 0x556   : > { %8774 = vmatprep.mubr.f32.mxu1 %v8518_v33  ;;  %v8430_v28 = vpop.permute.xlu0 %8429 }
 0x557   : > { %v8521_v45 = vsel %vm5651_vm5, %v18520_v24, %v8430_v28  ;;  %v13643_v24 = vld [vmem:[#allocation3 + $0x68] sm:$0xff] }
 0x559   : > { %8775 = vmatmul.mubr.f32.gmra.mxu1 %v18765_v62 }
 0x55a   : > { %8779 = vmatprep.mubr.f32.mxu1 %v8519_v59  ;;  %v8434_v30 = vpop.permute.xlu0 %8433 }
 0x55b   : > { %v8523_v57 = vsel %vm5651_vm5, %v13642_v39, %v8434_v30 }
 0x55d   : > { %8780 = vmatmul.mubr.f32.gmra.mxu1 %v18772_v55 }
 0x55e   : > { %v8438_v52 = vpop.permute.xlu0 %8437 }
 0x55f   : > { %v13548_v21 = vpop.permute.xlu1 %13547  ;;  %v8525_v43 = vsel %vm5651_vm5, %v13644_v48, %v8438_v52 }
 0x560   : > { %v13550_v36 = vunpack.i.h.bf16 %v13548_v21  ;;  %v13549_v11 = vunpack.i.l.bf16 %v13548_v21 }
 0x562   : > { %v8520_v31 = vsel %vm5651_vm5, %v18503_v3, %v13549_v11  ;;  %v18779_v63 = vsel %vm5651_vm5, %v18510_v29, %v13550_v36 }
 0x563   : > { %8784 = vmatprep.mubr.f32.mxu1 %v8520_v31  ;;  %v8432_v8 = vpop.permute.xlu1 %8431 }
 0x564   : > { %8785 = vmatmul.mubr.f32.gmra.mxu1 %v18779_v63  ;;  %v8522_v3 = vsel %vm5651_vm5, %v13641_v19, %v8432_v8 }
 0x565   : > { %8854 = vmatprep.mubr.f32.mxu1 %v18570_v15 }
 0x567   : > { %v8436_v29 = vpop.permute.xlu1 %8435 }
 0x568   : > { %8855 = vmatmul.mubr.f32.vlgmr.msra.gmra.mxu1 %v8521_v45  ;;  %v8524_v15 = vsel %vm5651_vm5, %v13643_v24, %v8436_v29 }
 0x569   : > { %8859 = vmatprep.mubr.f32.mxu1 %v18593_v12  ;;  %v13553_v12 = vpop.permute.xlu0 %13552 }
 0x56a   : > { %v13555_v60 = vunpack.i.h.bf16 %v13553_v12 }
 0x56b   : > { %v8440_v18 = vpop.permute.xlu1 %8439 }
 0x56c   : > { %8860 = vmatmul.mubr.f32.gmra.mxu1 %v8522_v3  ;;  %v8526_v49 = vsel %vm5651_vm5, %v13645_v61, %v8440_v18  ;;  %v8527_v50 = vsel %vm5651_vm5, %v13646_v40, %v13555_v60  ;;  %v9735_v60 = vld [vmem:[%s20057_s5 + $0xf8] sm:$0xff]  ;;  %v9716_v40 = vld [vmem:[%s20057_s5 + $0x60] sm:$0xff] }
 0x56d   : > { %8864 = vmatprep.mubr.f32.mxu1 %v18610_v16  ;;  %v13554_v16 = vunpack.i.l.bf16 %v13553_v12  ;;  %v9719_v61 = vld [vmem:[%s20057_s5 + $0x78] sm:$0xff]  ;;  %12176 = vmatprep.subr.mxu1 %v9735_v60  ;;  %v9706_v60 = vld [vmem:[%s20057_s5 + $0x10] sm:$0xff] }
 0x56e   : > { %12177 = vmatpush3.msra.mxu1 %v9719_v61  ;;  %v9757_v61 = vld [vmem:[%s20057_s5 + $0x1a8] sm:$0xff] }
 0x56f   : > { %v13558_v35 = vpop.permute.xlu1 %13557 }
 0x570   : > { %8865 = vmatmul.mubr.f32.gmra.mxu1 %v8523_v57  ;;  %v13559_v20 = vunpack.i.l.bf16 %v13558_v35  ;;  %v13560_v41 = vunpack.i.h.bf16 %v13558_v35 }
 0x571   : > { %8869 = vmatprep.mubr.f32.mxu1 %v18630_v53  ;;  %v8316_v53 = vrot.slane %v18360_v42, 7  ;;  %v8446_v42 = vpop.permute.xlu0 %8445 }
 0x572   : > { %v8528_v56 = vsel %vm5651_vm5, %v18587_v58, %v13560_v41  ;;  %v9732_v41 = vld [vmem:[%s20057_s5 + $0xe0] sm:$0xff] }
 0x573   : > { %v8317_v23 = vsel %vm850_vm3, %v8315_v38, %v8316_v53  ;;  %v8448_v2 = vpop.permute.xlu1 %8447 }
 0x574   : > { %8870 = vmatmul.mubr.f32.gmra.mxu1 %v8524_v15  ;;  %v8530_v46 = vsel %vm5651_vm5, %v18362_v27, %v8448_v2  ;;  %v8114_v27 = vld [vmem:[#allocation3 + $0x1c8] sm:$0xff] }
 0x575   : > { %8874 = vmatprep.mubr.f32.mxu1 %v18649_v7  ;;  %v8537_v7 = vsel %vm5651_vm5, %v18279_v25, %v13554_v16  ;;  %v8529_v25 = vsel %vm5651_vm5, %v13647_v14, %v8446_v42  ;;  %v8450_v17 = vpop.permute.xlu0 %8449  ;;  %v9730_v42 = vld [vmem:[%s20057_s5 + $0xd0] sm:$0xff]  ;;  %v9729_v14 = vld [vmem:[%s20057_s5 + $0xc8] sm:$0xff] }
 0x576   : > { %v8531_v58 = vsel %vm5651_vm5, %v18375_v6, %v8450_v17  ;;  %v8318_v6 = vrot.slane %v8114_v27, 7  ;;  %v9766_v27 = vld [vmem:[%s20057_s5 + $0x1f0] sm:$0xff] }
 0x577   : > { %v8452_v33 = vpop.permute.xlu1 %8451 }
 0x578   : > { %8875 = vmatmul.mubr.f32.gmra.mxu1 %v8525_v43 }
 0x579   : > { %8879 = vmatprep.mubr.f32.mxu1 %v18667_v5  ;;  %v8538_v5 = vsel %vm5651_vm5, %v8317_v23, %v13559_v20  ;;  %v8454_v22 = vpop.permute.xlu0 %8453  ;;  %v9718_v20 = vld [vmem:[%s20057_s5 + $0x70] sm:$0xff]  ;;  %v9717_v23 = vld [vmem:[%s20057_s5 + $0x68] sm:$0xff] }
 0x57a   : > { %v8533_v59 = vsel %vm5651_vm5, %v18443_v9, %v8454_v22  ;;  %v9727_v22 = vld [vmem:[%s20057_s5 + $0xb8] sm:$0xff] }
 0x57b   : > { %v8456_v26 = vpop.permute.xlu1 %8455 }
 0x57c   : > { %8880 = vmatmul.mubr.f32.gmra.mxu1 %v8526_v49  ;;  %v9734_v49 = vld [vmem:[%s20057_s5 + $0xf0] sm:$0xff] }
 0x57d   : > { %8884 = vmatprep.mubr.f32.mxu1 %v8537_v7  ;;  %v9733_v7 = vld [vmem:[%s20057_s5 + $0xe8] sm:$0xff]  ;;  %12178 = vmatprep.subr.mxu1 %v9734_v49 }
 0x57e   : > { %12179 = vmatpush3.msra.mxu1 %v9718_v20  ;;  %v9741_v49 = vld [vmem:[%s20057_s5 + $0x128] sm:$0xff]  ;;  %v9756_v20 = vld [vmem:[%s20057_s5 + $0x1a0] sm:$0xff] }
 0x57f   : > { %v13568_v21 = vpop.permute.xlu1 %13567  ;;  %12180 = vmatprep.subr.mxu1 %v9733_v7  ;;  %v9721_v7 = vld [vmem:[%s20057_s5 + $0x88] sm:$0xff] }
 0x580   : > { %8885 = vmatmul.mubr.f32.gmra.mxu1 %v8527_v50  ;;  %v13569_v11 = vunpack.i.l.bf16 %v13568_v21  ;;  %v13570_v31 = vunpack.i.h.bf16 %v13568_v21  ;;  %v9731_v50 = vld [vmem:[%s20057_s5 + $0xd8] sm:$0xff]  ;;  %v9710_v21 = vld [vmem:[%s20057_s5 + $0x30] sm:$0xff] }
 0x581   : > { %8889 = vmatprep.mubr.f32.mxu1 %v8538_v5  ;;  %12181 = vmatpush3.msra.mxu1 %v9717_v23  ;;  %v9715_v5 = vld [vmem:[%s20057_s5 + $0x58] sm:$0xff] }
 0x582   : > { %12182 = vmatprep.subr.mxu1 %v9732_v41  ;;  %v9740_v41 = vld [vmem:[%s20057_s5 + $0x120] sm:$0xff] }
 0x583   : > { %12183 = vmatpush3.msra.mxu1 %v9716_v40  ;;  %v9705_v40 = vld [vmem:[%s20057_s5 + $0x8] sm:$0xff] }
 0x584   : > { %8890 = vmatmul.mubr.f32.gmra.mxu1 %v8528_v56  ;;  %12184 = vmatprep.subr.mxu1 %v9731_v50  ;;  %v9714_v56 = vld [vmem:[%s20057_s5 + $0x50] sm:$0xff] }
 0x585   : > { %8894 = vmatprep.mubr.f32.mxu1 %v18744_v13  ;;  %v8532_v13 = vsel %vm5651_vm5, %v18421_v0, %v8452_v33  ;;  %v8534_v0 = vsel %vm5651_vm5, %v18452_v4, %v8456_v26  ;;  %12185 = vmatpush3.msra.mxu1 %v9715_v5  ;;  %v9728_v33 = vld [vmem:[%s20057_s5 + $0xc0] sm:$0xff]  ;;  %v9767_v26 = vld [vmem:[%s20057_s5 + $0x1f8] sm:$0xff] }
 0x586   : > { %12186 = vmatprep.subr.mxu1 %v9730_v42  ;;  %12211 = vmatprep.subr.mxu0 %v9767_v26  ;;  %v9755_v5 = vld [vmem:[%s20057_s5 + $0x198] sm:$0xff]  ;;  %v9720_v42 = vld [vmem:[%s20057_s5 + $0x80] sm:$0xff] }
 0x587   : > { %12187 = vmatpush3.msra.mxu1 %v9714_v56 }
 0x588   : > { %8895 = vmatmul.mubr.f32.gmra.mxu1 %v8529_v25  ;;  %v9713_v25 = vld [vmem:[%s20057_s5 + $0x48] sm:$0xff]  ;;  %12188 = vmatprep.subr.mxu1 %v9729_v14  ;;  %v9739_v14 = vld [vmem:[%s20057_s5 + $0x118] sm:$0xff] }
 0x589   : > { %8899 = vmatprep.mubr.f32.mxu1 %v18751_v37  ;;  %v13563_v37 = vpop.permute.xlu0 %13562  ;;  %12189 = vmatpush3.msra.mxu1 %v9713_v25  ;;  %v9704_v25 = vld [vmem:[%s20057_s5] sm:$0xff] }
 0x58a   : > { %v13565_v36 = vunpack.i.h.bf16 %v13563_v37  ;;  %12190 = vmatprep.subr.mxu1 %v9728_v33 }
 0x58c   : > { %8900 = vmatmul.mubr.f32.gmra.mxu1 %v8530_v46  ;;  %v8535_v28 = vsel %vm5651_vm5, %v18466_v47, %v13565_v36  ;;  %v9764_v36 = vld [vmem:[%s20057_s5 + $0x1e0] sm:$0xff] }
 0x58d   : > { %8904 = vmatprep.mubr.f32.mxu1 %v18758_v32  ;;  %v13564_v32 = vunpack.i.l.bf16 %v13563_v37  ;;  %v9751_v37 = vld [vmem:[%s20057_s5 + $0x178] sm:$0xff] }
 0x58e   : > { %12212 = vmatpush3.msra.mxu0 %v9751_v37  ;;  %v9737_v37 = vld [vmem:[%s20057_s5 + $0x108] sm:$0xff] }
 0x58f   : > { %12213 = vmatprep.subr.mxu0 %v9766_v27  ;;  %v9752_v27 = vld [vmem:[%s20057_s5 + $0x180] sm:$0xff] }
 0x590   : > { %8905 = vmatmul.mubr.f32.gmra.mxu1 %v8531_v58  ;;  %v9712_v58 = vld [vmem:[%s20057_s5 + $0x40] sm:$0xff] }
 0x591   : > { %8909 = vmatprep.mubr.f32.mxu1 %v18765_v62  ;;  %v8319_v62 = vrot.slane %v18699_v51, 7  ;;  %v8536_v51 = vsel %vm5651_vm5, %v18544_v44, %v13570_v31  ;;  %12191 = vmatpush3.msra.mxu1 %v9712_v58  ;;  %v9763_v31 = vld [vmem:[%s20057_s5 + $0x1d8] sm:$0xff]  ;;  %v9738_v58 = vld [vmem:[%s20057_s5 + $0x110] sm:$0xff] }
 0x592   : > { %12192 = vmatprep.subr.mxu1 %v9727_v22 }
 0x593   : > { %v8320_v9 = vsel %vm850_vm3, %v8318_v6, %v8319_v62  ;;  %v9765_v6 = vld [vmem:[%s20057_s5 + $0x1e8] sm:$0xff] }
 0x594   : > { %8910 = vmatmul.mubr.f32.gmra.mxu1 %v8532_v13  ;;  %v9711_v13 = vld [vmem:[%s20057_s5 + $0x38] sm:$0xff]  ;;  %v9749_v62 = vld [vmem:[%s20057_s5 + $0x168] sm:$0xff] }
 0x595   : > { %8914 = vmatprep.mubr.f32.mxu1 %v18772_v55  ;;  %v8539_v55 = vsel %vm5651_vm5, %v18562_v10, %v13564_v32  ;;  %12193 = vmatpush3.msra.mxu1 %v9711_v13  ;;  %v9750_v32 = vld [vmem:[%s20057_s5 + $0x170] sm:$0xff]  ;;  %v9753_v13 = vld [vmem:[%s20057_s5 + $0x188] sm:$0xff] }
 0x596   : > { %12214 = vmatpush3.msra.mxu0 %v9750_v32  ;;  %v9736_v32 = vld [vmem:[%s20057_s5 + $0x100] sm:$0xff] }
 0x597   : > { %12215 = vmatprep.subr.mxu0 %v9765_v6  ;;  %v9831_v6 = vld [vmem:[%s20057_s5 + $0x3f8] sm:$0xff] }
 0x598   : > { %8915 = vmatmul.mubr.f32.gmra.mxu1 %v8533_v59  ;;  %v9726_v59 = vld [vmem:[%s20057_s5 + $0xb0] sm:$0xff]  ;;  %12216 = vmatpush3.msra.mxu0 %v9749_v62 }
 0x599   : > { %8919 = vmatprep.mubr.f32.mxu1 %v18779_v63  ;;  %v8540_v63 = vsel %vm5651_vm5, %v8320_v9, %v13569_v11  ;;  %12194 = vmatprep.subr.mxu1 %v9726_v59  ;;  %v9709_v9 = vld [vmem:[%s20057_s5 + $0x28] sm:$0xff] }
 0x59a   : > { %12195 = vmatpush3.msra.mxu1 %v9710_v21  ;;  %12217 = vmatprep.subr.mxu0 %v9764_v36 }
 0x59c   : > { %8920 = vmatmul.mubr.f32.gmra.mxu1 %v8534_v0  ;;  %v9725_v0 = vld [vmem:[%s20057_s5 + $0xa8] sm:$0xff] }
 0x59d   : > { %8924 = vmatprep.mubr.f32.mxu1 %v8539_v55  ;;  %12196 = vmatprep.subr.mxu1 %v9725_v0  ;;  %v9748_v55 = vld [vmem:[%s20057_s5 + $0x160] sm:$0xff] }
 0x59e   : > { %12197 = vmatpush3.msra.mxu1 %v9709_v9  ;;  %12218 = vmatpush3.msra.mxu0 %v9748_v55 }
 0x59f   : > { %12219 = vmatprep.subr.mxu0 %v9763_v31 }
 0x5a0   : > { %8925 = vmatmul.mubr.f32.gmra.mxu1 %v8535_v28 }
 0x5a1   : > { %8929 = vmatprep.mubr.f32.mxu1 %v8540_v63  ;;  %v9747_v63 = vld [vmem:[%s20057_s5 + $0x158] sm:$0xff] }
 0x5a2   : > { %12220 = vmatpush3.msra.mxu0 %v9747_v63 }
 0x5a4   : > { %8930 = vmatmul.mubr.f32.gmra.mxu1 %v8536_v51  ;;  %v12024_v4 = vpop.f32.mrf.mxu1 }
 0x5a6   : > { %v12025_v45 = vpop.f32.mrf.mxu1 }
 0x5a7   : > { %v18829_v8 = vadd.f32 %v12025_v45, %v12024_v4  ;;  %v9762_v4 = vld [vmem:[%s20057_s5 + $0x1d0] sm:$0xff]  ;;  %v9724_v45 = vld [vmem:[%s20057_s5 + $0xa0] sm:$0xff] }
 0x5a8   : > { %v12027_v10 = vpop.f32.mrf.mxu1  ;;  %12198 = vmatprep.subr.mxu1 %v9724_v45  ;;  %12221 = vmatprep.subr.mxu0 %v9762_v4 }
 0x5aa   : > { %v12028_v30 = vpop.f32.mrf.mxu1 }
 0x5ab   : > { %v18831_v19 = vadd.f32 %v12028_v30, %v12027_v10  ;;  %v9746_v10 = vld [vmem:[%s20057_s5 + $0x150] sm:$0xff]  ;;  %v9708_v30 = vld [vmem:[%s20057_s5 + $0x20] sm:$0xff] }
 0x5ac   : > { %v12030_v3 = vpop.f32.mrf.mxu1  ;;  %12199 = vmatpush3.msra.mxu1 %v9708_v30  ;;  %12222 = vmatpush3.msra.mxu0 %v9746_v10 }
 0x5ae   : > { %v12031_v29 = vpop.f32.mrf.mxu1 }
 0x5af   : > { %v18833_v39 = vadd.f32 %v12031_v29, %v12030_v3  ;;  %v9761_v3 = vld [vmem:[%s20057_s5 + $0x1c8] sm:$0xff]  ;;  %v9723_v29 = vld [vmem:[%s20057_s5 + $0x98] sm:$0xff] }
 0x5b0   : > { %v12033_v47 = vpop.f32.mrf.mxu1  ;;  %12200 = vmatprep.subr.mxu1 %v9723_v29  ;;  %12223 = vmatprep.subr.mxu0 %v9761_v3  ;;  %v13372_v3 = vpop.f32.mrf.mxu0 }
 0x5b2   : > { %v12034_v57 = vpop.f32.mrf.mxu1 }
 0x5b3   : > { %v18835_v52 = vadd.f32 %v12034_v57, %v12033_v47  ;;  %v9745_v47 = vld [vmem:[%s20057_s5 + $0x148] sm:$0xff]  ;;  %v9707_v57 = vld [vmem:[%s20057_s5 + $0x18] sm:$0xff] }
 0x5b4   : > { %v12036_v24 = vpop.f32.mrf.mxu1  ;;  %12201 = vmatpush3.msra.mxu1 %v9707_v57  ;;  %12224 = vmatpush3.msra.mxu0 %v9745_v47 }
 0x5b6   : > { %v12037_v15 = vpop.f32.mrf.mxu1 }
 0x5b7   : > { %v18837_v44 = vadd.f32 %v12037_v15, %v12036_v24  ;;  %v9760_v24 = vld [vmem:[%s20057_s5 + $0x1c0] sm:$0xff] }
 0x5b8   : > { %v12039_v18 = vpop.f32.mrf.mxu1  ;;  %v9744_v15 = vld [vmem:[%s20057_s5 + $0x140] sm:$0xff]  ;;  %12225 = vmatprep.subr.mxu0 %v9760_v24 }
 0x5b9   : > { %12226 = vmatpush3.msra.mxu0 %v9744_v15 }
 0x5ba   : > { %v12040_v12 = vpop.f32.mrf.mxu1 }
 0x5bb   : > { %v18839_v54 = vadd.f32 %v12040_v12, %v12039_v18  ;;  %v9759_v18 = vld [vmem:[%s20057_s5 + $0x1b8] sm:$0xff] }
 0x5bc   : > { %v12042_v48 = vpop.f32.mrf.mxu1  ;;  %v9743_v12 = vld [vmem:[%s20057_s5 + $0x138] sm:$0xff]  ;;  %12227 = vmatprep.subr.mxu0 %v9759_v18  ;;  %v9001_v18 = vpop.f32.mrf.mxu0 }
 0x5bd   : > { %12228 = vmatpush3.msra.mxu0 %v9743_v12 }
 0x5be   : > { %v12043_v43 = vpop.f32.mrf.mxu1 }
 0x5bf   : > { %v18841_v16 = vadd.f32 %v12043_v43, %v12042_v48  ;;  %v9758_v48 = vld [vmem:[%s20057_s5 + $0x1b0] sm:$0xff] }
 0x5c0   : > { %v12045_v35 = vpop.f32.mrf.mxu1  ;;  %v9722_v43 = vld [vmem:[%s20057_s5 + $0x90] sm:$0xff]  ;;  %12229 = vmatprep.subr.mxu0 %v9758_v48 }
 0x5c1   : > { %12202 = vmatprep.subr.mxu1 %v9722_v43 }
 0x5c2   : > { %v12046_v38 = vpop.f32.mrf.mxu1  ;;  %12203 = vmatpush3.msra.mxu1 %v9706_v60  ;;  %v13375_v60 = vpop.f32.mrf.mxu0 }
 0x5c3   : > { %v18843_v53 = vadd.f32 %v12046_v38, %v12045_v35  ;;  %v9742_v35 = vld [vmem:[%s20057_s5 + $0x130] sm:$0xff]  ;;  %12204 = vmatprep.subr.mxu1 %v9721_v7 }
 0x5c4   : > { %12230 = vmatpush3.msra.mxu0 %v9742_v35  ;;  %12205 = vmatpush3.msra.mxu1 %v9705_v40  ;;  %v9011_v40 = vpop.f32.mrf.mxu0 }
 0x5c5   : > { %12231 = vmatprep.subr.mxu0 %v9757_v61  ;;  %12206 = vmatprep.subr.mxu1 %v9720_v42 }
 0x5c6   : > { %12232 = vmatpush3.msra.mxu0 %v9741_v49  ;;  %12207 = vmatpush3.msra.mxu1 %v9704_v25 }
 0x5c7   : > { %12233 = vmatprep.subr.mxu0 %v9756_v20 }
 0x5c8   : > { %12234 = vmatpush3.msra.mxu0 %v9740_v41 }
 0x5c9   : > { %12235 = vmatprep.subr.mxu0 %v9755_v5 }
 0x5ca   : > { %12236 = vmatpush3.msra.mxu0 %v9739_v14 }
 0x5ec   : > { %v12048_v2 = vpop.f32.mrf.mxu1 }
 0x5ee   : > { %v12049_v17 = vpop.f32.mrf.mxu1 }
 0x5ef   : > { %v18887_v46 = vadd.f32 %v12049_v17, %v12048_v2  ;;  %v9754_v2 = vld [vmem:[%s20057_s5 + $0x190] sm:$0xff]  ;;  %v9799_v17 = vld [vmem:[%s20057_s5 + $0x2f8] sm:$0xff] }
 0x5f0   : > { %12246 = vmatprep.subr.mxu1 %v9799_v17  ;;  %12237 = vmatprep.subr.mxu0 %v9754_v2 }
 0x5f1   : > { %12238 = vmatpush3.msra.mxu0 %v9738_v58 }
 0x5f2   : > { %12239 = vmatprep.subr.mxu0 %v9753_v13 }
 0x5f3   : > { %12240 = vmatpush3.msra.mxu0 %v9737_v37 }
 0x5f4   : > { %12241 = vmatprep.subr.mxu0 %v9752_v27 }
 0x5f5   : > { %12242 = vmatpush3.msra.mxu0 %v9736_v32 }
 0x5f6   : > { %12281 = vmatprep.subr.mxu0 %v9831_v6 }
 0x5fb   : > { %v12051_v11 = vpop.f32.mrf.mxu1 }
 0x5fd   : > { %v12052_v28 = vpop.f32.mrf.mxu1 }
 0x5fe   : > { %v18943_v51 = vadd.f32 %v12052_v28, %v12051_v11 }
 0x60d   : > { %v12054_v38 = vpop.f32.mrf.mxu1 }
 0x60f   : > { %v12055_v23 = vpop.f32.mrf.mxu1 }
 0x610   : > { %v19011_v50 = vadd.f32 %v12055_v23, %v12054_v38 }
 0x611   : > { %v12057_v56 = vpop.f32.mrf.mxu1 }
 0x613   : > { %v12058_v33 = vpop.f32.mrf.mxu1 }
 0x614   : > { %v19034_v22 = vadd.f32 %v12058_v33, %v12057_v56 }
 0x615   : > { %v12060_v26 = vpop.f32.mrf.mxu1 }
 0x617   : > { %v12061_v59 = vpop.f32.mrf.mxu1 }
 0x618   : > { %v19048_v21 = vadd.f32 %v12061_v59, %v12060_v26 }
 0x619   : > { %v12063_v62 = vpop.f32.mrf.mxu1 }
 0x61b   : > { %v12064_v36 = vpop.f32.mrf.mxu1 }
 0x61c   : > { %v19053_v0 = vadd.f32 %v12064_v36, %v12063_v62  ;;  %v13378_v62 = vpop.f32.mrf.mxu0 }
 0x61d   : > { %v12066_v11 = vpop.f32.mrf.mxu1 }
 0x61f   : > { %v12067_v55 = vpop.f32.mrf.mxu1 }
 0x620   : > { %v19055_v9 = vadd.f32 %v12067_v55, %v12066_v11 }
 0x624   : > { %v12069_v31 = vpop.f32.mrf.mxu1 }
 0x626   : > { %v12070_v28 = vpop.f32.mrf.mxu1 }
 0x627   : > { %v19057_v63 = vadd.f32 %v12070_v28, %v12069_v31 }
 0x628   : > { %v12104_v4 = vpop.f32.mrf.mxu1 }
 0x62a   : > { %v12105_v45 = vpop.f32.mrf.mxu1 }
 0x62b   : > { %v12106_v10 = vadd.f32 %v12105_v45, %v12104_v4 }
 0x62c   : > { %v12107_v30 = vpop.f32.mrf.mxu1 }
 0x62d   : > { %v8857_v47 = vadd.f32 %v12106_v10, %v18829_v8 }
 0x62e   : > { %v12108_v29 = vpop.f32.mrf.mxu1 }
 0x62f   : > { %v12109_v57 = vadd.f32 %v12108_v29, %v12107_v30  ;;  %v9002_v48 = vadd.f32 %v9001_v18, %v8857_v47 }
 0x630   : > { %v12110_v24 = vpop.f32.mrf.mxu1 }
 0x631   : > { %v8862_v15 = vadd.f32 %v12109_v57, %v18831_v19 }
 0x632   : > { %v12111_v12 = vpop.f32.mrf.mxu1 }
 0x633   : > { %v9007_v43 = vadd.f32 %v13372_v3, %v8862_v15  ;;  %v12112_v35 = vadd.f32 %v12111_v12, %v12110_v24  ;;  %v9021_v12 = vpop.f32.mrf.mxu0 }
 0x634   : > { %v12113_v38 = vpop.f32.mrf.mxu1 }
 0x635   : > { %v9081_v61 = vmax.f32 %v9002_v48, %v9007_v43  ;;  %v8867_v49 = vadd.f32 %v12112_v35, %v18833_v39 }
 0x636   : > { %v12114_v20 = vpop.f32.mrf.mxu1 }
 0x637   : > { %v9097_v7 = vcombine.high %v9081_v61, %v9081_v61  ;;  %v9104_v23 = vrot.slane %v9081_v61, %v17050_v1  ;;  %v12115_v8 = vadd.f32 %v12114_v20, %v12113_v38  ;;  %v9012_v25 = vadd.f32 %v9011_v40, %v8867_v49 }
 0x638   : > { %v12116_v41 = vpop.f32.mrf.mxu1 }
 0x639   : > { %v9111_v19 = vrot.slane %v9097_v7, %v17050_v1  ;;  %v9112_v5 = vcombine.high %v9104_v23, %v9104_v23  ;;  %v9266_v42 = vsel %vm9265_vm15, %v9104_v23, -inf  ;;  %v8872_v56 = vadd.f32 %v12115_v8, %v18835_v52  ;;  %v13381_v7 = vpop.f32.mrf.mxu0 }
 0x63a   : > { %v9267_v14 = vrot.slane %v9266_v42, 4  ;;  %v12117_v2 = vpop.f32.mrf.mxu1 }
 0x63b   : > { %v9113_v17 = vcombine.high %v9111_v19, %v9111_v19  ;;  %v9273_v39 = vsel %vm9265_vm15, %v9112_v5, -inf  ;;  %v9280_v33 = vsel %vm9265_vm15, %v9111_v19, -inf  ;;  %v9017_v58 = vadd.f32 %v13375_v60, %v8872_v56  ;;  %v19078_v19 = vld [vmem:[%s20056_s4] ss:$0 sm:$0xff] }
 0x63c   : > { %v9268_v13 = vmax.f32 %v9266_v42, %v9267_v14  ;;  %v9274_v26 = vrot.slane %v9273_v39, 4  ;;  %v9281_v37 = vrot.slane %v9280_v33, 4  ;;  %v12118_v27 = vadd.f32 %v12117_v2, %v12116_v41  ;;  %v12119_v59 = vpop.f32.mrf.mxu1 }
 0x63d   : > { %v9287_v32 = vsel %vm9265_vm15, %v9113_v17, -inf  ;;  %v9082_v6 = vmax.f32 %v9012_v25, %v9017_v58 }
 0x63e   : > { %v9269_v36 = vrot.slane %v9268_v13, 2  ;;  %v9275_v52 = vmax.f32 %v9273_v39, %v9274_v26  ;;  %v9282_v11 = vmax.f32 %v9280_v33, %v9281_v37  ;;  %v9288_v55 = vrot.slane %v9287_v32, 4  ;;  %v12120_v31 = vpop.f32.mrf.mxu1 }
 0x63f   : > { %v9114_v28 = vcombine.high %v9082_v6, %v9082_v6  ;;  %v9121_v4 = vrot.slane %v9082_v6, %v17050_v1  ;;  %v8877_v45 = vadd.f32 %v12118_v27, %v18837_v44  ;;  %v12121_v18 = vadd.f32 %v12120_v31, %v12119_v59  ;;  %v9031_v27 = vpop.f32.mrf.mxu0 }
 0x640   : > { %v9270_v10 = vmax.f32 %v9268_v13, %v9269_v36  ;;  %v9276_v30 = vrot.slane %v9275_v52, 2  ;;  %v9283_v3 = vrot.slane %v9282_v11, 2  ;;  %v9289_v29 = vmax.f32 %v9287_v32, %v9288_v55  ;;  %v12122_v47 = vpop.f32.mrf.mxu1 }
 0x641   : > { %v9128_v57 = vrot.slane %v9114_v28, %v17050_v1  ;;  %v9129_v24 = vcombine.high %v9121_v4, %v9121_v4  ;;  %v9294_v15 = vsel %vm9265_vm15, %v9121_v4, -inf  ;;  %v9022_v39 = vadd.f32 %v9021_v12, %v8877_v45 }
 0x642   : > { %v9271_v48 = vrot.slane %v9270_v10, 1  ;;  %v9277_v43 = vmax.f32 %v9275_v52, %v9276_v30  ;;  %v9284_v35 = vmax.f32 %v9282_v11, %v9283_v3  ;;  %v9290_v38 = vrot.slane %v9289_v29, 2  ;;  %v12123_v60 = vpop.f32.mrf.mxu1 }
 0x643   : > { %v9130_v61 = vcombine.high %v9128_v57, %v9128_v57  ;;  %v9295_v49 = vrot.slane %v9294_v15, 4  ;;  %v9301_v44 = vsel %vm9265_vm15, %v9129_v24, -inf  ;;  %v9308_v20 = vsel %vm9265_vm15, %v9128_v57, -inf }
 0x644   : > { %v9272_v23 = vmax.f32 %v9270_v10, %v9271_v48  ;;  %v9278_v8 = vrot.slane %v9277_v43, 1  ;;  %v9285_v41 = vrot.slane %v9284_v35, 1  ;;  %v12125_v40 = vpop.f32.mrf.mxu1  ;;  %v9302_v42 = vrot.slane %v9301_v44, 4 }
 0x645   : > { %v9296_v5 = vmax.f32 %v9294_v15, %v9295_v49  ;;  %v9309_v56 = vrot.slane %v9308_v20, 4  ;;  %v9315_v14 = vsel %vm9265_vm15, %v9130_v61, -inf  ;;  %v9291_v2 = vmax.f32 %v9289_v29, %v9290_v38  ;;  %v19088_v15 = vpop.f32.mrf.mxu0 }
 0x646   : > { %v9279_v25 = vmax.f32 %v9277_v43, %v9278_v8  ;;  %v9316_v17 = vrot.slane %v9315_v14, 4  ;;  %v12126_v33 = vpop.f32.mrf.mxu1  ;;  %v9303_v13 = vmax.f32 %v9301_v44, %v9302_v42  ;;  %v8882_v37 = vadd.f32 %v12121_v18, %v18839_v54 }
 0x647   : > { %v9297_v58 = vrot.slane %v9296_v5, 2  ;;  %v9310_v26 = vmax.f32 %v9308_v20, %v9309_v56  ;;  %v19082_v59 = vmax.f32 %v9284_v35, %v9285_v41  ;;  %v19085_v32 = vadd.f32 %v19078_v19, %v9272_v23 }
 0x648   : > { %v9317_v6 = vmax.f32 %v9315_v14, %v9316_v17  ;;  %v12124_v36 = vadd.f32 %v12123_v60, %v12122_v47  ;;  %v12128_v52 = vpop.f32.mrf.mxu1  ;;  %v9304_v55 = vrot.slane %v9303_v13, 2  ;;  %v9027_v28 = vadd.f32 %v13378_v62, %v8882_v37 }
 0x649   : > { %v9298_v11 = vmax.f32 %v9296_v5, %v9297_v58  ;;  %v9311_v31 = vrot.slane %v9310_v26, 2  ;;  %v12127_v10 = vadd.f32 %v12126_v33, %v12125_v40  ;;  %v9292_v3 = vrot.slane %v9291_v2, 1  ;;  %v9041_v40 = vpop.f32.mrf.mxu0 }
 0x64a   : > { %v9318_v4 = vrot.slane %v9317_v6, 2  ;;  %v8887_v45 = vadd.f32 %v12124_v36, %v18841_v16  ;;  %v12129_v30 = vpop.f32.mrf.mxu1  ;;  %v9305_v29 = vmax.f32 %v9303_v13, %v9304_v55  ;;  %v9083_v24 = vmax.f32 %v9022_v39, %v9027_v28 }
 0x64b   : > { %v9299_v54 = vrot.slane %v9298_v11, 1  ;;  %v9312_v57 = vmax.f32 %v9310_v26, %v9311_v31  ;;  %v19091_v18 = vadd.f32 %v19078_v19, %v9279_v25  ;;  %v9528_v47 = vmax.f32 %v19085_v32, 0.0 }
 0x64c   : > { %v8892_v12 = vadd.f32 %v12127_v10, %v18843_v53  ;;  %v12130_v62 = vadd.f32 %v12129_v30, %v12128_v52  ;;  %v19095_v48 = vpop.f32.mrf.mxu1  ;;  %v9306_v43 = vrot.slane %v9305_v29, 1  ;;  %v9131_v38 = vcombine.high %v9083_v24, %v9083_v24 }
 0x64d   : > { %v9300_v16 = vmax.f32 %v9298_v11, %v9299_v54  ;;  %v9313_v35 = vrot.slane %v9312_v57, 1  ;;  %v9138_v60 = vrot.slane %v9083_v24, %v17050_v1  ;;  %v9032_v61 = vadd.f32 %v9031_v27, %v8887_v45 }
 0x64e   : > { %v9037_v49 = vadd.f32 %v13381_v7, %v8892_v12  ;;  %v8897_v44 = vadd.f32 %v12130_v62, %v18887_v46  ;;  %v19099_v20 = vpop.f32.mrf.mxu1  ;;  %v9307_v23 = vmax.f32 %v9305_v29, %v9306_v43  ;;  %v19101_v8 = vmax.f32 %v9317_v6, %v9318_v4 }
 0x64f   : > { %v9145_v53 = vrot.slane %v9131_v38, %v17050_v1  ;;  %v19104_v41 = vmax.f32 %v9291_v2, %v9292_v3  ;;  %v19106_v5 = vmax.f32 %v9312_v57, %v9313_v35  ;;  %v9146_v42 = vcombine.high %v9138_v60, %v9138_v60 }
 0x650   : > { %v9322_v56 = vsel %vm9265_vm15, %v9138_v60, -inf  ;;  %v9084_v14 = vmax.f32 %v9032_v61, %v9037_v49  ;;  %v19109_v25 = vpop.f32.mrf.mxu1  ;;  %v19112_v46 = vadd.f32 %v19078_v19, %v9300_v16  ;;  %v19114_v39 = vadd.f32 %v9041_v40, %v8897_v44 }
 0x651   : > { %v9147_v7 = vcombine.high %v9145_v53, %v9145_v53  ;;  %v9323_v17 = vrot.slane %v9322_v56, 4  ;;  %v9329_v33 = vsel %vm9265_vm15, %v9146_v42, -inf  ;;  %v9336_v2 = vsel %vm9265_vm15, %v9145_v53, -inf }
 0x652   : > { %v9148_v58 = vcombine.high %v9084_v14, %v9084_v14  ;;  %v9155_v13 = vrot.slane %v9084_v14, %v17050_v1  ;;  %v12135_v26 = vpop.f32.mrf.mxu1  ;;  %v9330_v27 = vrot.slane %v9329_v33, 4  ;;  %v9337_v6 = vrot.slane %v9336_v2, 4 }
 0x653   : > { %v9324_v37 = vmax.f32 %v9322_v56, %v9323_v17  ;;  %v9343_v36 = vsel %vm9265_vm15, %v9147_v7, -inf  ;;  %v19125_v35 = vadd.f32 %v19078_v19, %v9307_v23  ;;  %v13387_v56 = vpop.f32.mrf.mxu0 }
 0x654   : > { %v9344_v52 = vrot.slane %v9343_v36, 4  ;;  %v9162_v11 = vrot.slane %v9148_v58, %v17050_v1  ;;  %v9163_v55 = vcombine.high %v9155_v13, %v9155_v13  ;;  %v9350_v31 = vsel %vm9265_vm15, %v9155_v13, -inf  ;;  %v12137_v28 = vpop.f32.mrf.mxu1 }
 0x655   : > { %v9325_v4 = vrot.slane %v9324_v37, 2  ;;  %v9331_v45 = vmax.f32 %v9329_v33, %v9330_v27  ;;  %v9338_v10 = vmax.f32 %v9336_v2, %v9337_v6  ;;  %v9351_v30 = vrot.slane %v9350_v31, 4 }
 0x656   : > { %v9345_v3 = vmax.f32 %v9343_v36, %v9344_v52  ;;  %v9164_v54 = vcombine.high %v9162_v11, %v9162_v11  ;;  %v9357_v29 = vsel %vm9265_vm15, %v9163_v55, -inf  ;;  %v9364_v57 = vsel %vm9265_vm15, %v9162_v11, -inf  ;;  %v12138_v24 = vpop.f32.mrf.mxu1 }
 0x657   : > { %v9326_v12 = vmax.f32 %v9324_v37, %v9325_v4  ;;  %v9332_v62 = vrot.slane %v9331_v45, 2  ;;  %v9339_v16 = vrot.slane %v9338_v10, 2  ;;  %v9352_v43 = vmax.f32 %v9350_v31, %v9351_v30 }
 0x658   : > { %v9358_v38 = vrot.slane %v9357_v29, 4  ;;  %v9365_v60 = vrot.slane %v9364_v57, 4  ;;  %v9371_v61 = vsel %vm9265_vm15, %v9164_v54, -inf  ;;  %v12140_v49 = vpop.f32.mrf.mxu1  ;;  %v9346_v14 = vrot.slane %v9345_v3, 2 }
 0x659   : > { %v9327_v44 = vrot.slane %v9326_v12, 1  ;;  %v9333_v53 = vmax.f32 %v9331_v45, %v9332_v62  ;;  %v9340_v40 = vmax.f32 %v9338_v10, %v9339_v16  ;;  %v9353_v42 = vrot.slane %v9352_v43, 2  ;;  %v9051_v10 = vpop.f32.mrf.mxu0 }
 0x65a   : > { %v9359_v7 = vmax.f32 %v9357_v29, %v9358_v38  ;;  %v9366_v17 = vmax.f32 %v9364_v57, %v9365_v60  ;;  %v9372_v33 = vrot.slane %v9371_v61, 4  ;;  %v12141_v2 = vpop.f32.mrf.mxu1  ;;  %v12133_v52 = vadd.f32 %v19099_v20, %v19095_v48 }
 0x65b   : > { %v9328_v58 = vmax.f32 %v9326_v12, %v9327_v44  ;;  %v9334_v13 = vrot.slane %v9333_v53, 1  ;;  %v9341_v37 = vrot.slane %v9340_v40, 1  ;;  %v9354_v23 = vmax.f32 %v9352_v43, %v9353_v42  ;;  %v13390_v43 = vpop.f32.mrf.mxu0 }
 0x65c   : > { %v9360_v27 = vrot.slane %v9359_v7, 2  ;;  %v9367_v6 = vrot.slane %v9366_v17, 2  ;;  %v9373_v36 = vmax.f32 %v9371_v61, %v9372_v33  ;;  %v12143_v11 = vpop.f32.mrf.mxu1  ;;  %v9532_v55 = vmax.f32 %v19112_v46, 0.0  ;;  %v9795_v46 = vld [vmem:[%s20057_s5 + $0x2d8] sm:$0xff] }
 0x65d   : > { %v9335_v31 = vmax.f32 %v9333_v53, %v9334_v13  ;;  %v19132_v4 = vadd.f32 %v19078_v19, %v9328_v58  ;;  %v9355_v45 = vrot.slane %v9354_v23, 1  ;;  %v8902_v57 = vadd.f32 %v12133_v52, %v18943_v51 }
 0x65e   : > { %v9361_v30 = vmax.f32 %v9359_v7, %v9360_v27  ;;  %v9368_v54 = vmax.f32 %v9366_v17, %v9367_v6  ;;  %v9374_v29 = vrot.slane %v9373_v36, 2  ;;  %v12144_v12 = vpop.f32.mrf.mxu1  ;;  %v19135_v62 = vmax.f32 %v9340_v40, %v9341_v37  ;;  %v9061_v37 = vpop.f32.mrf.mxu0 }
 0x65f   : > { %v19137_v16 = vmax.f32 %v9345_v3, %v9346_v14  ;;  %v9356_v48 = vmax.f32 %v9354_v23, %v9355_v45  ;;  %v12136_v20 = vadd.f32 %v12135_v26, %v19109_v25  ;;  %v19141_v38 = vadd.f32 %v19078_v19, %v9335_v31 }
 0x660   : > { %v9362_v60 = vrot.slane %v9361_v30, 1  ;;  %v9369_v61 = vrot.slane %v9368_v54, 1  ;;  %v9047_v44 = vadd.f32 %v19088_v15, %v8902_v57  ;;  %v12146_v53 = vpop.f32.mrf.mxu1  ;;  %v9536_v42 = vmax.f32 %v19132_v4, 0.0 }
 0x661   : > { %v8907_v51 = vadd.f32 %v12136_v20, %v19011_v50  ;;  %v12139_v40 = vadd.f32 %v12138_v24, %v12137_v28  ;;  %v12142_v7 = vadd.f32 %v12141_v2, %v12140_v49  ;;  %v19146_v14 = vmax.f32 %v9373_v36, %v9374_v29 }
 0x662   : > { %v9363_v3 = vmax.f32 %v9361_v30, %v9362_v60  ;;  %v9085_v25 = vmax.f32 %v19114_v39, %v9047_v44  ;;  %v12145_v26 = vadd.f32 %v12144_v12, %v12143_v11  ;;  %v12147_v17 = vpop.f32.mrf.mxu1  ;;  %v19149_v33 = vmax.f32 %v9368_v54, %v9369_v61 }
 0x663   : > { %v19152_v58 = vadd.f32 %v19078_v19, %v9356_v48  ;;  %v8912_v15 = vadd.f32 %v12139_v40, %v19034_v22  ;;  %v8917_v13 = vadd.f32 %v12142_v7, %v19048_v21  ;;  %v9052_v24 = vadd.f32 %v9051_v10, %v8907_v51 }
 0x664   : > { %v9165_v50 = vcombine.high %v9085_v25, %v9085_v25  ;;  %v9172_v28 = vrot.slane %v9085_v25, %v17050_v1  ;;  %v8922_v49 = vadd.f32 %v12145_v26, %v19053_v0  ;;  %v12149_v2 = vpop.f32.mrf.mxu1  ;;  %v19159_v39 = vadd.f32 %v19078_v19, %v9363_v3 }
 0x665   : > { %v9057_v23 = vadd.f32 %v13387_v56, %v8912_v15  ;;  %v9062_v27 = vadd.f32 %v9061_v37, %v8917_v13  ;;  %v12148_v6 = vadd.f32 %v12147_v17, %v12146_v53  ;;  %v19167_v0 = vadd.f32 %v19078_v19, %v19082_v59 }
 0x666   : > { %v9179_v36 = vrot.slane %v9165_v50, %v17050_v1  ;;  %v9180_v52 = vcombine.high %v9172_v28, %v9172_v28  ;;  %v9378_v22 = vsel %vm9265_vm15, %v9172_v28, -inf  ;;  %v9067_v21 = vadd.f32 %v13390_v43, %v8922_v49  ;;  %v12150_v11 = vpop.f32.mrf.mxu1 }
 0x667   : > { %v9379_v31 = vrot.slane %v9378_v22, 4  ;;  %v9086_v45 = vmax.f32 %v9052_v24, %v9057_v23  ;;  %v19163_v30 = vadd.f32 %v12150_v11, %v12149_v2  ;;  %v8927_v44 = vadd.f32 %v12148_v6, %v19055_v9 }
 0x668   : > { %v9181_v10 = vcombine.high %v9179_v36, %v9179_v36  ;;  %v9385_v56 = vsel %vm9265_vm15, %v9180_v52, -inf  ;;  %v9392_v54 = vsel %vm9265_vm15, %v9179_v36, -inf  ;;  %v9087_v29 = vmax.f32 %v9062_v27, %v9067_v21 }
 0x669   : > { %v9380_v57 = vmax.f32 %v9378_v22, %v9379_v31  ;;  %v9386_v12 = vrot.slane %v9385_v56, 4  ;;  %v9393_v48 = vrot.slane %v9392_v54, 4  ;;  %v9182_v20 = vcombine.high %v9086_v45, %v9086_v45 }
 0x66a   : > { %v9399_v43 = vsel %vm9265_vm15, %v9181_v10, -inf  ;;  %v9189_v60 = vrot.slane %v9086_v45, %v17050_v1  ;;  %v9199_v61 = vcombine.high %v9087_v29, %v9087_v29  ;;  %v9206_v26 = vrot.slane %v9087_v29, %v17050_v1  ;;  %v13393_v10 = vpop.f32.mrf.mxu0 }
 0x66b   : > { %v9381_v53 = vrot.slane %v9380_v57, 2  ;;  %v9387_v59 = vmax.f32 %v9385_v56, %v9386_v12  ;;  %v9394_v51 = vmax.f32 %v9392_v54, %v9393_v48  ;;  %v9400_v40 = vrot.slane %v9399_v43, 4 }
 0x66c   : > { %v9196_v7 = vrot.slane %v9182_v20, %v17050_v1  ;;  %v9197_v3 = vcombine.high %v9189_v60, %v9189_v60  ;;  %v9406_v25 = vsel %vm9265_vm15, %v9189_v60, -inf  ;;  %v9213_v37 = vrot.slane %v9199_v61, %v17050_v1 }
 0x66d   : > { %v9382_v17 = vmax.f32 %v9380_v57, %v9381_v53  ;;  %v9388_v15 = vrot.slane %v9387_v59, 2  ;;  %v9395_v13 = vrot.slane %v9394_v51, 2  ;;  %v9407_v28 = vrot.slane %v9406_v25, 4 }
 0x66e   : > { %v9198_v50 = vcombine.high %v9196_v7, %v9196_v7  ;;  %v9413_v9 = vsel %vm9265_vm15, %v9197_v3, -inf  ;;  %v9420_v24 = vsel %vm9265_vm15, %v9196_v7, -inf  ;;  %v9401_v23 = vmax.f32 %v9399_v43, %v9400_v40 }
 0x66f   : > { %v9383_v49 = vrot.slane %v9382_v17, 1  ;;  %v9389_v2 = vmax.f32 %v9387_v59, %v9388_v15  ;;  %v9414_v27 = vrot.slane %v9413_v9, 4  ;;  %v9408_v6 = vmax.f32 %v9406_v25, %v9407_v28  ;;  %v9071_v25 = vpop.f32.mrf.mxu0 }
 0x670   : > { %v9421_v36 = vrot.slane %v9420_v24, 4  ;;  %v9427_v52 = vsel %vm9265_vm15, %v9198_v50, -inf  ;;  %v9214_v22 = vcombine.high %v9206_v26, %v9206_v26  ;;  %v9396_v11 = vmax.f32 %v9394_v51, %v9395_v13 }
 0x671   : > { %v9390_v21 = vrot.slane %v9389_v2, 1  ;;  %v9415_v31 = vmax.f32 %v9413_v9, %v9414_v27  ;;  %v9428_v45 = vrot.slane %v9427_v52, 4  ;;  %v9409_v56 = vrot.slane %v9408_v6, 2 }
 0x672   : > { %v9422_v54 = vmax.f32 %v9420_v24, %v9421_v36  ;;  %v9215_v29 = vcombine.high %v9213_v37, %v9213_v37  ;;  %v9434_v57 = vsel %vm9265_vm15, %v9206_v26, -inf  ;;  %v9384_v12 = vmax.f32 %v9382_v17, %v9383_v49 }
 0x673   : > { %v9391_v48 = vmax.f32 %v9389_v2, %v9390_v21  ;;  %v9416_v20 = vrot.slane %v9415_v31, 2  ;;  %v9435_v43 = vrot.slane %v9434_v57, 4  ;;  %v9410_v60 = vmax.f32 %v9408_v6, %v9409_v56 }
 0x674   : > { %v9423_v61 = vrot.slane %v9422_v54, 2  ;;  %v9441_v53 = vsel %vm9265_vm15, %v9214_v22, -inf  ;;  %v9448_v59 = vsel %vm9265_vm15, %v9213_v37, -inf  ;;  %v19184_v13 = vmax.f32 %v9427_v52, %v9428_v45 }
 0x675   : > { %v9417_v40 = vmax.f32 %v9415_v31, %v9416_v20  ;;  %v9436_v51 = vmax.f32 %v9434_v57, %v9435_v43  ;;  %v9442_v7 = vrot.slane %v9441_v53, 4  ;;  %v9449_v3 = vrot.slane %v9448_v59, 4 }
 0x676   : > { %v9411_v15 = vrot.slane %v9410_v60, 1  ;;  %v9455_v26 = vsel %vm9265_vm15, %v9215_v29, -inf  ;;  %v8932_v17 = vadd.f32 %v19163_v30, %v19057_v63  ;;  %v19189_v49 = vmax.f32 %v9422_v54, %v9423_v61 }
 0x677   : > { %v9418_v50 = vrot.slane %v9417_v40, 1  ;;  %v9437_v28 = vrot.slane %v9436_v51, 2  ;;  %v9443_v9 = vmax.f32 %v9441_v53, %v9442_v7  ;;  %v9450_v24 = vmax.f32 %v9448_v59, %v9449_v3 }
 0x678   : > { %v9456_v37 = vrot.slane %v9455_v26, 4  ;;  %v9072_v2 = vadd.f32 %v9071_v25, %v8927_v44  ;;  %v9077_v27 = vadd.f32 %v13393_v10, %v8932_v17  ;;  %v19191_v6 = vmax.f32 %v9410_v60, %v9411_v15 }
 0x679   : > { %v9438_v36 = vmax.f32 %v9436_v51, %v9437_v28  ;;  %v9444_v22 = vrot.slane %v9443_v9, 2  ;;  %v9451_v52 = vrot.slane %v9450_v24, 2  ;;  %v19193_v21 = vmax.f32 %v9417_v40, %v9418_v50 }
 0x67a   : > { %v9088_v31 = vmax.f32 %v9072_v2, %v9077_v27  ;;  %v9397_v45 = vrot.slane %v9396_v11, 1  ;;  %v9402_v56 = vrot.slane %v9401_v23, 2  ;;  %v19197_v57 = vmax.f32 %v9455_v26, %v9456_v37 }
 0x67b   : > { %v9439_v63 = vrot.slane %v9438_v36, 1  ;;  %v9445_v30 = vmax.f32 %v9443_v9, %v9444_v22  ;;  %v19195_v29 = vmax.f32 %v9450_v24, %v9451_v52  ;;  %v9499_v61 = vadd.f32 %v19078_v19, %v19104_v41 }
 0x67c   : > { %v9216_v54 = vcombine.high %v9088_v31, %v9088_v31  ;;  %v9223_v44 = vrot.slane %v9088_v31, %v17050_v1  ;;  %v9398_v10 = vmax.f32 %v9396_v11, %v9397_v45  ;;  %v9403_v20 = vmax.f32 %v9401_v23, %v9402_v56 }
 0x67d   : > { %v19200_v43 = vmax.f32 %v9438_v36, %v9439_v63  ;;  %v9446_v60 = vrot.slane %v9445_v30, 1  ;;  %v9512_v53 = vadd.f32 %v19078_v19, %v9384_v12  ;;  %v9513_v25 = vadd.f32 %v19078_v19, %v9391_v48 }
 0x67e   : > { %v9230_v59 = vrot.slane %v9216_v54, %v17050_v1  ;;  %v9231_v40 = vcombine.high %v9223_v44, %v9223_v44  ;;  %v9462_v51 = vsel %vm9265_vm15, %v9223_v44, -inf  ;;  %v9404_v7 = vrot.slane %v9403_v20, 1 }
 0x67f   : > { %v9463_v3 = vrot.slane %v9462_v51, 4  ;;  %v9514_v11 = vadd.f32 %v19078_v19, %v9398_v10  ;;  %v9529_v23 = vmax.f32 %v19091_v18, 0.0  ;;  %v9530_v28 = vmax.f32 %v19167_v0, 0.0 }
 0x680   : > { %v9232_v15 = vcombine.high %v9230_v59, %v9230_v59  ;;  %v9469_v26 = vsel %vm9265_vm15, %v9231_v40, -inf  ;;  %v9476_v41 = vsel %vm9265_vm15, %v9230_v59, -inf  ;;  %v9405_v17 = vmax.f32 %v9403_v20, %v9404_v7 }
 0x681   : > { %v9464_v12 = vmax.f32 %v9462_v51, %v9463_v3  ;;  %v9470_v50 = vrot.slane %v9469_v26, 4  ;;  %v9477_v1 = vrot.slane %v9476_v41, 4  ;;  %v9531_v48 = vmax.f32 %v9499_v61, 0.0 }
 0x682   : > { %v9483_v9 = vsel %vm9265_vm15, %v9232_v15, -inf  ;;  %v9515_v24 = vadd.f32 %v19078_v19, %v9405_v17  ;;  %v9544_v37 = vmax.f32 %v9512_v53, 0.0  ;;  %v9545_v22 = vmax.f32 %v9513_v25, 0.0 }
 0x683   : > { %v9465_v2 = vrot.slane %v9464_v12, 2  ;;  %v9471_v27 = vmax.f32 %v9469_v26, %v9470_v50  ;;  %v9478_v18 = vmax.f32 %v9476_v41, %v9477_v1  ;;  %v9484_v36 = vrot.slane %v9483_v9, 4 }
 0x684   : > { %v9546_v52 = vmax.f32 %v9514_v11, 0.0  ;;  %v9547_v31 = vmax.f32 %v9515_v24, 0.0  ;;  %v9592_v45 = vrot.slane %v9529_v23, 7  ;;  %v9594_v10 = vrot.slane %v9530_v28, 6 }
 0x685   : > { %v9466_v56 = vmax.f32 %v9464_v12, %v9465_v2  ;;  %v9472_v63 = vrot.slane %v9471_v27, 2  ;;  %v9479_v54 = vrot.slane %v9478_v18, 2  ;;  %v9485_v44 = vmax.f32 %v9483_v9, %v9484_v36 }
 0x686   : > { %v9593_v0 = vsel %vm7794_vm7, %v9592_v45, %v9528_v47  ;;  %v9596_v20 = vrot.slane %v9531_v48, 5  ;;  %v9616_v61 = vrot.slane %v9545_v22, 7  ;;  %v9618_v25 = vrot.slane %v9546_v52, 6 }
 0x687   : > { %v9467_v53 = vrot.slane %v9466_v56, 1  ;;  %v9473_v59 = vmax.f32 %v9471_v27, %v9472_v63  ;;  %v9480_v40 = vmax.f32 %v9478_v18, %v9479_v54  ;;  %v9486_v51 = vrot.slane %v9485_v44, 2  ;;  %v9783_v63 = vld [vmem:[%s20057_s5 + $0x278] sm:$0xff] }
 0x688   : > { %v9595_v7 = vsel %vm7797_vm8, %v9594_v10, %v9593_v0  ;;  %v9617_v3 = vsel %vm7794_vm7, %v9616_v61, %v9544_v37  ;;  %v9620_v11 = vrot.slane %v9547_v31, 5  ;;  %v19220_v23 = vmax.f32 %v9445_v30, %v9446_v60 }
 0x689   : > { %v9468_v15 = vmax.f32 %v9466_v56, %v9467_v53  ;;  %v9474_v26 = vrot.slane %v9473_v59, 1  ;;  %v9481_v32 = vrot.slane %v9480_v40, 1  ;;  %v19222_v41 = vmax.f32 %v9485_v44, %v9486_v51 }
 0x68a   : > { %v9597_v47 = vsel %vm7800_vm9, %v9596_v20, %v9595_v7  ;;  %v9619_v17 = vsel %vm7797_vm8, %v9618_v25, %v9617_v3  ;;  %v9320_v12 = vrot.slane %v19101_v8, 1  ;;  %v9425_v9 = vrot.slane %v19189_v49, 1  ;;  %v9815_v20 = vld [vmem:[%s20057_s5 + $0x378] sm:$0xff]  ;;  %v9797_v3 = vld [vmem:[%s20057_s5 + $0x2e8] sm:$0xff]  ;;  %v9814_v25 = vld [vmem:[%s20057_s5 + $0x370] sm:$0xff] }
 0x68b   : > { %v9475_v50 = vmax.f32 %v9473_v59, %v9474_v26  ;;  %v19227_v1 = vmax.f32 %v9480_v40, %v9481_v32  ;;  %v9621_v28 = vsel %vm7800_vm9, %v9620_v11, %v9619_v17  ;;  %v19232_v30 = vadd.f32 %v19078_v19, %v9468_v15  ;;  %v9782_v59 = vld [vmem:[%s20057_s5 + $0x270] sm:$0xff] }
 0x68c   : > { %v9649_v60 = vrot.slane %v9621_v28, 7  ;;  %v9651_v24 = vrot.slane %v9597_v47, 1  ;;  %v9656_v48 = vrot.slane %v9621_v28, 1  ;;  %v9648_v2 = vsel %vm850_vm3, %v9597_v47, 0.0  ;;  %v9830_v40 = vld [vmem:[%s20057_s5 + $0x3f0] sm:$0xff] }
 0x68d   : > { %v19235_v37 = vadd.f32 %v19078_v19, %v9475_v50  ;;  %v9658_v27 = vrot.slane %v9597_v47, 3  ;;  %v9660_v18 = vrot.slane %v9621_v28, 2  ;;  %v9654_v52 = vrot.slane %v9597_v47, 2  ;;  %v9813_v50 = vld [vmem:[%s20057_s5 + $0x368] sm:$0xff] }
 0x68e   : > { %v9652_v36 = vsel %vm850_vm3, %v9651_v24, 0.0  ;;  %v9650_v22 = vsel %vm7794_vm7, %v9649_v60, %v9648_v2  ;;  %v9321_v31 = vmax.f32 %v19101_v8, %v9320_v12  ;;  %v9426_v54 = vmax.f32 %v19189_v49, %v9425_v9  ;;  %v9798_v8 = vld [vmem:[%s20057_s5 + $0x2f0] sm:$0xff] }
 0x68f   : > { %v9653_v45 = vsel %vm7794_vm7, %v9621_v28, %v9652_v36  ;;  %v9659_v56 = vsel %vm850_vm3, %v9658_v27, 0.0  ;;  %v9430_v44 = vrot.slane %v19184_v13, 2  ;;  %v9655_v10 = vsel %vm850_vm3, %v9654_v52, 0.0 }
 0x690   : > { %10031 = vmatprep.mubr.f32.mxu1 %v9653_v45  ;;  %v9661_v0 = vsel %vm7794_vm7, %v9660_v18, %v9659_v56  ;;  %v9502_v61 = vadd.f32 %v19078_v19, %v19106_v5  ;;  %v9503_v49 = vadd.f32 %v19078_v19, %v9321_v31  ;;  %v9657_v53 = vsel %vm7794_vm7, %v9656_v48, %v9655_v10  ;;  %v9780_v48 = vld [vmem:[%s20057_s5 + $0x260] sm:$0xff] }
 0x691   : > { %10032 = vmatmul.mubr.f32.vlgmr.msra.gmra.mxu1 %v9650_v22  ;;  %10101 = vmatprep.mubr.f32.mxu0 %v9661_v0  ;;  %v9431_v51 = vmax.f32 %v19184_v13, %v9430_v44  ;;  %v9516_v7 = vadd.f32 %v19078_v19, %v19191_v6  ;;  %v9533_v5 = vmax.f32 %v19125_v35, 0.0  ;;  %v9517_v11 = vadd.f32 %v19078_v19, %v19193_v21  ;;  %v9781_v35 = vld [vmem:[%s20057_s5 + $0x268] sm:$0xff]  ;;  %v9796_v21 = vld [vmem:[%s20057_s5 + $0x2e0] sm:$0xff]  ;;  %v9827_v44 = vld [vmem:[%s20057_s5 + $0x3d8] sm:$0xff] }
 0x692   : > { %12247 = vmatpush3.msra.mxu1 %v9783_v63  ;;  %10102 = vmatmul.mubr.f32.vlgmr.msra.gmra.mxu0 %v9657_v53  ;;  %v9518_v13 = vadd.f32 %v19078_v19, %v9426_v54  ;;  %v9534_v15 = vmax.f32 %v9502_v61, 0.0  ;;  %v9535_v26 = vmax.f32 %v9503_v49, 0.0  ;;  %v9829_v6 = vld [vmem:[%s20057_s5 + $0x3e8] sm:$0xff]  ;;  %v9348_v12 = vrot.slane %v19137_v16, 1  ;;  %v9828_v18 = vld [vmem:[%s20057_s5 + $0x3e0] sm:$0xff]  ;;  %v9779_v54 = vld [vmem:[%s20057_s5 + $0x258] sm:$0xff] }
 0x693   : > { %12248 = vmatprep.subr.mxu1 %v9798_v8  ;;  %12282 = vmatpush3.msra.mxu0 %v9815_v20  ;;  %v9432_v32 = vrot.slane %v9431_v51, 1  ;;  %v9548_v47 = vmax.f32 %v9516_v7, 0.0  ;;  %v9598_v17 = vrot.slane %v9533_v5, 7  ;;  %v9549_v28 = vmax.f32 %v9517_v11, 0.0  ;;  %v9794_v49 = vld [vmem:[%s20057_s5 + $0x2d0] sm:$0xff]  ;;  %v9811_v53 = vld [vmem:[%s20057_s5 + $0x358] sm:$0xff] }
 0x694   : > { %12249 = vmatpush3.msra.mxu1 %v9782_v59  ;;  %12283 = vmatprep.subr.mxu0 %v9830_v40  ;;  %v9550_v9 = vmax.f32 %v9518_v13, 0.0  ;;  %v9600_v60 = vrot.slane %v9534_v15, 6  ;;  %v9602_v24 = vrot.slane %v9535_v26, 5  ;;  %v9349_v36 = vmax.f32 %v19137_v16, %v9348_v12  ;;  %v9793_v11 = vld [vmem:[%s20057_s5 + $0x2c8] sm:$0xff]  ;;  %v9810_v13 = vld [vmem:[%s20057_s5 + $0x350] sm:$0xff] }
 0x695   : > { %12250 = vmatprep.subr.mxu1 %v9797_v3  ;;  %12284 = vmatpush3.msra.mxu0 %v9814_v25  ;;  %v9433_v2 = vmax.f32 %v9431_v51, %v9432_v32  ;;  %v9599_v27 = vsel %vm7794_vm7, %v9598_v17, %v9532_v55  ;;  %v9453_v22 = vrot.slane %v19195_v29, 1  ;;  %v9622_v31 = vrot.slane %v9549_v28, 7  ;;  %v9812_v55 = vld [vmem:[%s20057_s5 + $0x360] sm:$0xff]  ;;  %v9826_v51 = vld [vmem:[%s20057_s5 + $0x3d0] sm:$0xff] }
 0x696   : > { %12251 = vmatpush3.msra.mxu1 %v9781_v35  ;;  %12285 = vmatprep.subr.mxu0 %v9829_v6  ;;  %v9601_v52 = vsel %vm7797_vm8, %v9600_v60, %v9599_v27  ;;  %v9624_v45 = vrot.slane %v9550_v9, 6  ;;  %v9458_v56 = vrot.slane %v19197_v57, 2  ;;  %v9537_v10 = vmax.f32 %v19141_v38, 0.0  ;;  %v9778_v38 = vld [vmem:[%s20057_s5 + $0x250] sm:$0xff]  ;;  %v9777_v35 = vld [vmem:[%s20057_s5 + $0x248] sm:$0xff]  ;;  %v9776_v60 = vld [vmem:[%s20057_s5 + $0x240] sm:$0xff] }
 0x697   : > { %12252 = vmatprep.subr.mxu1 %v9796_v21  ;;  %12286 = vmatpush3.msra.mxu0 %v9813_v50  ;;  %v9519_v16 = vadd.f32 %v19078_v19, %v9433_v2  ;;  %v9603_v63 = vsel %vm7800_vm9, %v9602_v24, %v9601_v52  ;;  %v9454_v0 = vmax.f32 %v19195_v29, %v9453_v22  ;;  %v9825_v6 = vld [vmem:[%s20057_s5 + $0x3c8] sm:$0xff]  ;;  %v9824_v22 = vld [vmem:[%s20057_s5 + $0x3c0] sm:$0xff]  ;;  %v9791_v52 = vld [vmem:[%s20057_s5 + $0x2b8] sm:$0xff] }
 0x698   : > { %12253 = vmatpush3.msra.mxu1 %v9780_v48  ;;  %v9623_v8 = vsel %vm7794_vm7, %v9622_v31, %v9548_v47  ;;  %v9665_v20 = vrot.slane %v9603_v63, 1  ;;  %12287 = vmatprep.subr.mxu0 %v9828_v18  ;;  %v9672_v61 = vrot.slane %v9603_v63, 3  ;;  %v9662_v59 = vsel %vm850_vm3, %v9603_v63, 0.0  ;;  %v9808_v31 = vld [vmem:[%s20057_s5 + $0x340] sm:$0xff] }
 0x699   : > { %v9551_v40 = vmax.f32 %v9519_v16, 0.0  ;;  %v9625_v29 = vsel %vm7797_vm8, %v9624_v45, %v9623_v8  ;;  %12254 = vmatprep.subr.mxu1 %v9795_v46  ;;  %12288 = vmatpush3.msra.mxu0 %v9812_v55  ;;  %v9668_v7 = vrot.slane %v9603_v63, 2  ;;  %v9459_v5 = vmax.f32 %v19197_v57, %v9458_v56  ;;  %v9775_v63 = vld [vmem:[%s20057_s5 + $0x238] sm:$0xff] }
 0x69a   : > { %v9666_v3 = vsel %vm850_vm3, %v9665_v20, 0.0  ;;  %12255 = vmatpush3.msra.mxu1 %v9779_v54  ;;  %12289 = vmatprep.subr.mxu0 %v9827_v44  ;;  %v9673_v25 = vsel %vm850_vm3, %v9672_v61, 0.0  ;;  %v9506_v15 = vadd.f32 %v19078_v19, %v19135_v62  ;;  %v9507_v26 = vadd.f32 %v19078_v19, %v9349_v36  ;;  %v9792_v62 = vld [vmem:[%s20057_s5 + $0x2c0] sm:$0xff]  ;;  %v9823_v54 = vld [vmem:[%s20057_s5 + $0x3b8] sm:$0xff] }
 0x69b   : > { %v9626_v57 = vrot.slane %v9551_v40, 5  ;;  %12256 = vmatprep.subr.mxu1 %v9794_v49  ;;  %12290 = vmatpush3.msra.mxu0 %v9811_v53  ;;  %v9669_v32 = vsel %vm850_vm3, %v9668_v7, 0.0  ;;  %v9460_v47 = vrot.slane %v9459_v5, 1  ;;  %v9520_v17 = vadd.f32 %v19078_v19, %v19200_v43  ;;  %v9809_v43 = vld [vmem:[%s20057_s5 + $0x348] sm:$0xff]  ;;  %v9774_v53 = vld [vmem:[%s20057_s5 + $0x230] sm:$0xff] }
 0x69c   : > { %12257 = vmatpush3.msra.mxu1 %v9778_v38  ;;  %12291 = vmatprep.subr.mxu0 %v9826_v51  ;;  %v9521_v12 = vadd.f32 %v19078_v19, %v19220_v23  ;;  %v9522_v21 = vadd.f32 %v19078_v19, %v9454_v0  ;;  %v9538_v50 = vmax.f32 %v9506_v15, 0.0  ;;  %v9539_v28 = vmax.f32 %v9507_v26, 0.0  ;;  %v9789_v7 = vld [vmem:[%s20057_s5 + $0x2a8] sm:$0xff] }
 0x69d   : > { %v9627_v9 = vsel %vm7800_vm9, %v9626_v57, %v9625_v29  ;;  %12258 = vmatprep.subr.mxu1 %v9793_v11  ;;  %12292 = vmatpush3.msra.mxu0 %v9810_v13  ;;  %v9461_v24 = vmax.f32 %v9459_v5, %v9460_v47  ;;  %v9552_v48 = vmax.f32 %v9520_v17, 0.0  ;;  %v9604_v2 = vrot.slane %v9537_v10, 7  ;;  %v9807_v10 = vld [vmem:[%s20057_s5 + $0x338] sm:$0xff]  ;;  %v9806_v5 = vld [vmem:[%s20057_s5 + $0x330] sm:$0xff]  ;;  %v9821_v15 = vld [vmem:[%s20057_s5 + $0x3a8] sm:$0xff] }
 0x69e   : > { %v9663_v23 = vrot.slane %v9627_v9, 7  ;;  %v9667_v27 = vsel %vm7794_vm7, %v9627_v9, %v9666_v3  ;;  %v9670_v18 = vrot.slane %v9627_v9, 1  ;;  %v9674_v36 = vrot.slane %v9627_v9, 2  ;;  %12259 = vmatpush3.msra.mxu1 %v9777_v35  ;;  %12293 = vmatprep.subr.mxu0 %v9825_v6 }
 0x69f   : > { %10171 = vmatprep.mubr.f32.mxu1 %v9667_v27  ;;  %12260 = vmatprep.subr.mxu1 %v9792_v62  ;;  %v9523_v45 = vadd.f32 %v19078_v19, %v9461_v24  ;;  %v9553_v46 = vmax.f32 %v9521_v12, 0.0  ;;  %v9554_v55 = vmax.f32 %v9522_v21, 0.0  ;;  %v9605_v56 = vsel %vm7794_vm7, %v9604_v2, %v9536_v42  ;;  %v9790_v42 = vld [vmem:[%s20057_s5 + $0x2b0] sm:$0xff]  ;;  %v9772_v12 = vld [vmem:[%s20057_s5 + $0x220] sm:$0xff]  ;;  %v9771_v27 = vld [vmem:[%s20057_s5 + $0x218] sm:$0xff] }
 0x6a0   : > { %v9675_v16 = vsel %vm7794_vm7, %v9674_v36, %v9673_v25  ;;  %12294 = vmatpush3.msra.mxu0 %v9809_v43  ;;  %12261 = vmatpush3.msra.mxu1 %v9776_v60  ;;  %v19392_v44 = vsel %vm7794_vm7, %v9663_v23, %v9662_v59  ;;  %v19395_v0 = vsel %vm7794_vm7, %v9670_v18, %v9669_v32  ;;  %v9606_v4 = vrot.slane %v9538_v50, 6  ;;  %v9822_v59 = vld [vmem:[%s20057_s5 + $0x3b0] sm:$0xff]  ;;  %v9820_v21 = vld [vmem:[%s20057_s5 + $0x3a0] sm:$0xff]  ;;  %v9819_v18 = vld [vmem:[%s20057_s5 + $0x398] sm:$0xff] }
 0x6a1   : > { %10241 = vmatprep.mubr.f32.mxu0 %v9675_v16  ;;  %12295 = vmatprep.subr.mxu0 %v9824_v22  ;;  %v9555_v8 = vmax.f32 %v9523_v45, 0.0  ;;  %v9608_v20 = vrot.slane %v9539_v28, 5  ;;  %v9628_v61 = vrot.slane %v9553_v46, 7  ;;  %v9630_v49 = vrot.slane %v9554_v55, 6  ;;  %v13648_v2 = vld [vmem:[%s20056_s4] ss:$0 sm:$0xff] }
 0x6a2   : > { %12262 = vmatprep.subr.mxu1 %v9791_v52  ;;  %12296 = vmatpush3.msra.mxu0 %v9808_v31  ;;  %v9607_v40 = vsel %vm7797_vm8, %v9606_v4, %v9605_v56  ;;  %v9376_v29 = vrot.slane %v19146_v14, 1  ;;  %v9488_v38 = vrot.slane %v19222_v41, 1  ;;  %v19414_v51 = vadd.f32 %v19078_v19, %v19149_v33  ;;  %v9773_v33 = vld [vmem:[%s20057_s5 + $0x228] sm:$0xff]  ;;  %v9786_v45 = vld [vmem:[%s20057_s5 + $0x290] sm:$0xff]  ;;  %v9803_v46 = vld [vmem:[%s20057_s5 + $0x318] sm:$0xff] }
 0x6a3   : > { %12263 = vmatpush3.msra.mxu1 %v9775_v63  ;;  %12297 = vmatprep.subr.mxu0 %v9823_v54  ;;  %v9609_v3 = vsel %vm7800_vm9, %v9608_v20, %v9607_v40  ;;  %v9629_v25 = vsel %vm7794_vm7, %v9628_v61, %v9552_v48  ;;  %v9632_v11 = vrot.slane %v9555_v8, 5  ;;  %v19426_v13 = vadd.f32 %v19078_v19, %v19227_v1  ;;  %v9788_v19 = vld [vmem:[%s20057_s5 + $0x2a0] sm:$0xff]  ;;  %v9805_v1 = vld [vmem:[%s20057_s5 + $0x328] sm:$0xff]  ;;  %v9770_v54 = vld [vmem:[%s20057_s5 + $0x210] sm:$0xff] }
 0x6a4   : > { %12264 = vmatprep.subr.mxu1 %v9790_v42  ;;  %12298 = vmatpush3.msra.mxu0 %v9807_v10  ;;  %v9631_v26 = vsel %vm7797_vm8, %v9630_v49, %v9629_v25  ;;  %v9679_v57 = vrot.slane %v9609_v3, 1  ;;  %v9686_v35 = vrot.slane %v9609_v3, 3  ;;  %v9676_v6 = vsel %vm850_vm3, %v9609_v3, 0.0  ;;  %v9818_v4 = vld [vmem:[%s20057_s5 + $0x390] sm:$0xff]  ;;  %v9768_v25 = vld [vmem:[%s20057_s5 + $0x200] sm:$0xff] }
 0x6a5   : > { %12265 = vmatpush3.msra.mxu1 %v9774_v53  ;;  %12299 = vmatprep.subr.mxu0 %v9822_v59  ;;  %v9633_v32 = vsel %vm7800_vm9, %v9632_v11, %v9631_v26  ;;  %v9682_v47 = vrot.slane %v9609_v3, 2  ;;  %v9377_v17 = vmax.f32 %v19146_v14, %v9376_v29  ;;  %v9489_v62 = vmax.f32 %v19222_v41, %v9488_v38  ;;  %v9787_v14 = vld [vmem:[%s20057_s5 + $0x298] sm:$0xff]  ;;  %v9804_v41 = vld [vmem:[%s20057_s5 + $0x320] sm:$0xff]  ;;  %v9769_v59 = vld [vmem:[%s20057_s5 + $0x208] sm:$0xff] }
 0x6a6   : > { %12266 = vmatprep.subr.mxu1 %v9789_v7  ;;  %12300 = vmatpush3.msra.mxu0 %v9806_v5  ;;  %v9677_v50 = vrot.slane %v9633_v32, 7  ;;  %v9680_v28 = vsel %vm850_vm3, %v9679_v57, 0.0  ;;  %v9684_v9 = vrot.slane %v9633_v32, 1  ;;  %v9687_v43 = vsel %vm850_vm3, %v9686_v35, 0.0  ;;  %v9801_v7 = vld [vmem:[%s20057_s5 + $0x308] sm:$0xff]  ;;  %v9816_v11 = vld [vmem:[%s20057_s5 + $0x380] sm:$0xff] }
 0x6a7   : > { %12267 = vmatpush3.msra.mxu1 %v9773_v33  ;;  %12301 = vmatprep.subr.mxu0 %v9821_v15  ;;  %v19460_v60 = vsel %vm7794_vm7, %v9633_v32, %v9680_v28  ;;  %v9688_v24 = vrot.slane %v9633_v32, 2  ;;  %v9683_v48 = vsel %vm850_vm3, %v9682_v47, 0.0  ;;  %v9511_v23 = vadd.f32 %v13648_v2, %v9377_v17  ;;  %v9800_v15 = vld [vmem:[%s20057_s5 + $0x300] sm:$0xff]  ;;  %v9847_v17 = vld [vmem:[%s20057_s5 + $0x478] sm:$0xff]  ;;  %v9862_v28 = vld [vmem:[%s20057_s5 + $0x4f0] sm:$0xff] }
 0x6a8   : > { %12268 = vmatprep.subr.mxu1 %v9788_v19  ;;  %12302 = vmatpush3.msra.mxu0 %v9805_v1  ;;  %v19473_v36 = vsel %vm7794_vm7, %v9677_v50, %v9676_v6  ;;  %v19476_v22 = vsel %vm7794_vm7, %v9684_v9, %v9683_v48  ;;  %v9527_v52 = vadd.f32 %v13648_v2, %v9489_v62  ;;  %v9541_v31 = vmax.f32 %v19159_v39, 0.0  ;;  %v9863_v6 = vld [vmem:[%s20057_s5 + $0x4f8] sm:$0xff]  ;;  %v9846_v48 = vld [vmem:[%s20057_s5 + $0x470] sm:$0xff] }
 0x6a9   : > { %12269 = vmatpush3.msra.mxu1 %v9772_v12  ;;  %12303 = vmatprep.subr.mxu0 %v9820_v21  ;;  %v19486_v55 = vsel %vm7794_vm7, %v9688_v24, %v9687_v43  ;;  %v9542_v56 = vmax.f32 %v19414_v51, 0.0  ;;  %v9543_v16 = vmax.f32 %v9511_v23, 0.0  ;;  %v9557_v63 = vmax.f32 %v19235_v37, 0.0  ;;  %v9802_v37 = vld [vmem:[%s20057_s5 + $0x310] sm:$0xff]  ;;  %v9784_v51 = vld [vmem:[%s20057_s5 + $0x280] sm:$0xff]  ;;  %v9895_v50 = vld [vmem:[%s20057_s5 + $0x5f8] sm:$0xff] }
 0x6aa   : > { %v9540_v39 = vmax.f32 %v19152_v58, 0.0  ;;  %12270 = vmatprep.subr.mxu1 %v9787_v14  ;;  %12304 = vmatpush3.msra.mxu0 %v9804_v41  ;;  %v9558_v42 = vmax.f32 %v19426_v13, 0.0  ;;  %v9559_v10 = vmax.f32 %v9527_v52, 0.0  ;;  %v9610_v8 = vrot.slane %v9541_v31, 7  ;;  %v9785_v58 = vld [vmem:[%s20057_s5 + $0x288] sm:$0xff]  ;;  %v9879_v41 = vld [vmem:[%s20057_s5 + $0x578] sm:$0xff] }
 0x6ab   : > { %v9556_v20 = vmax.f32 %v19232_v30, 0.0  ;;  %12271 = vmatpush3.msra.mxu1 %v9771_v27  ;;  %12305 = vmatprep.subr.mxu0 %v9819_v18  ;;  %v9612_v61 = vrot.slane %v9542_v56, 6  ;;  %v9614_v49 = vrot.slane %v9543_v16, 5  ;;  %v9634_v53 = vrot.slane %v9557_v63, 7  ;;  %v9817_v30 = vld [vmem:[%s20057_s5 + $0x388] sm:$0xff]  ;;  %v9894_v2 = vld [vmem:[%s20057_s5 + $0x5f0] sm:$0xff] }
 0x6ac   : > { %12272 = vmatprep.subr.mxu1 %v9786_v45  ;;  %12306 = vmatpush3.msra.mxu0 %v9803_v46  ;;  %v9611_v40 = vsel %vm7794_vm7, %v9610_v8, %v9540_v39  ;;  %v9636_v29 = vrot.slane %v9558_v42, 6  ;;  %v9638_v38 = vrot.slane %v9559_v10, 5  ;;  %v9878_v23 = vld [vmem:[%s20057_s5 + $0x570] sm:$0xff]  ;;  %v9893_v27 = vld [vmem:[%s20057_s5 + $0x5e8] sm:$0xff]  ;;  %v9860_v18 = vld [vmem:[%s20057_s5 + $0x4e0] sm:$0xff] }
 0x6ad   : > { %12273 = vmatpush3.msra.mxu1 %v9770_v54  ;;  %12307 = vmatprep.subr.mxu0 %v9818_v4  ;;  %v9613_v5 = vsel %vm7797_vm8, %v9612_v61, %v9611_v40  ;;  %v9635_v3 = vsel %vm7794_vm7, %v9634_v53, %v9556_v20  ;;  %v9877_v52 = vld [vmem:[%s20057_s5 + $0x568] sm:$0xff]  ;;  %v9844_v31 = vld [vmem:[%s20057_s5 + $0x460] sm:$0xff]  ;;  %v9859_v46 = vld [vmem:[%s20057_s5 + $0x4d8] sm:$0xff] }
 0x6ae   : > { %12274 = vmatprep.subr.mxu1 %v9785_v58  ;;  %12308 = vmatpush3.msra.mxu0 %v9802_v37  ;;  %v9615_v13 = vsel %vm7800_vm9, %v9614_v49, %v9613_v5  ;;  %v9637_v33 = vsel %vm7797_vm8, %v9636_v29, %v9635_v3  ;;  %v9892_v45 = vld [vmem:[%s20057_s5 + $0x5e0] sm:$0xff]  ;;  %v9843_v56 = vld [vmem:[%s20057_s5 + $0x458] sm:$0xff]  ;;  %v9858_v63 = vld [vmem:[%s20057_s5 + $0x4d0] sm:$0xff] }
 0x6af   : > { %12275 = vmatpush3.msra.mxu1 %v9769_v59  ;;  %12309 = vmatprep.subr.mxu0 %v9817_v30  ;;  %v9639_v26 = vsel %vm7800_vm9, %v9638_v38, %v9637_v33  ;;  %v9693_v57 = vrot.slane %v9615_v13, 1  ;;  %v9700_v35 = vrot.slane %v9615_v13, 3  ;;  %v9696_v47 = vrot.slane %v9615_v13, 2  ;;  %v9891_v16 = vld [vmem:[%s20057_s5 + $0x5d8] sm:$0xff]  ;;  %v9842_v54 = vld [vmem:[%s20057_s5 + $0x450] sm:$0xff]  ;;  %v9857_v42 = vld [vmem:[%s20057_s5 + $0x4c8] sm:$0xff] }
 0x6b0   : > { %12276 = vmatprep.subr.mxu1 %v9784_v51  ;;  %12310 = vmatpush3.msra.mxu0 %v9801_v7  ;;  %v9691_v19 = vrot.slane %v9639_v26, 7  ;;  %v9698_v1 = vrot.slane %v9639_v26, 1  ;;  %v9702_v32 = vrot.slane %v9639_v26, 2  ;;  %v9690_v21 = vsel %vm850_vm3, %v9615_v13, 0.0  ;;  %v9875_v39 = vld [vmem:[%s20057_s5 + $0x558] sm:$0xff]  ;;  %v9890_v4 = vld [vmem:[%s20057_s5 + $0x5d0] sm:$0xff] }
 0x6b1   : > { %12277 = vmatpush3.msra.mxu1 %v9768_v25  ;;  %12311 = vmatprep.subr.mxu0 %v9816_v11  ;;  %v9694_v62 = vsel %vm850_vm3, %v9693_v57, 0.0  ;;  %v9701_v12 = vsel %vm850_vm3, %v9700_v35, 0.0  ;;  %v9874_v10 = vld [vmem:[%s20057_s5 + $0x550] sm:$0xff]  ;;  %v9841_v8 = vld [vmem:[%s20057_s5 + $0x448] sm:$0xff]  ;;  %v9856_v58 = vld [vmem:[%s20057_s5 + $0x4c0] sm:$0xff] }
 0x6b2   : > { %10172 = vmatmul.mubr.f32.vlgmr.msra.gmra.mxu1 %v19392_v44  ;;  %12312 = vmatpush3.msra.mxu0 %v9800_v15  ;;  %v19549_v9 = vsel %vm7794_vm7, %v9639_v26, %v9694_v62  ;;  %v19552_v43 = vsel %vm7794_vm7, %v9702_v32, %v9701_v12  ;;  %v19555_v14 = vsel %vm7794_vm7, %v9691_v19, %v9690_v21  ;;  %v9697_v44 = vsel %vm850_vm3, %v9696_v47, 0.0  ;;  %v9889_v20 = vld [vmem:[%s20057_s5 + $0x5c8] sm:$0xff]  ;;  %v9840_v61 = vld [vmem:[%s20057_s5 + $0x440] sm:$0xff]  ;;  %v9855_v53 = vld [vmem:[%s20057_s5 + $0x4b8] sm:$0xff] }
 0x6b3   : > { %12316 = vmatprep.subr.mxu1 %v9863_v6  ;;  %10242 = vmatmul.mubr.f32.vlgmr.msra.gmra.mxu0 %v19395_v0  ;;  %v19563_v24 = vsel %vm7794_vm7, %v9698_v1, %v9697_v44  ;;  %v9861_v0 = vld [vmem:[%s20057_s5 + $0x4e8] sm:$0xff]  ;;  %v9888_v49 = vld [vmem:[%s20057_s5 + $0x5c0] sm:$0xff]  ;;  %v9839_v30 = vld [vmem:[%s20057_s5 + $0x438] sm:$0xff] }
 0x6b4   : > { %12317 = vmatpush3.msra.mxu1 %v9847_v17  ;;  %10311 = vmatprep.mubr.f32.mxu1 %v19460_v60  ;;  %v9845_v60 = vld [vmem:[%s20057_s5 + $0x468] sm:$0xff]  ;;  %v9872_v59 = vld [vmem:[%s20057_s5 + $0x540] sm:$0xff]  ;;  %v9887_v40 = vld [vmem:[%s20057_s5 + $0x5b8] sm:$0xff] }
 0x6b5   : > { %12351 = vmatprep.subr.mxu0 %v9895_v50  ;;  %12318 = vmatprep.subr.mxu1 %v9862_v28  ;;  %v9873_v37 = vld [vmem:[%s20057_s5 + $0x548] sm:$0xff]  ;;  %v9854_v29 = vld [vmem:[%s20057_s5 + $0x4b0] sm:$0xff]  ;;  %v9871_v38 = vld [vmem:[%s20057_s5 + $0x538] sm:$0xff] }
 0x6b6   : > { %12352 = vmatpush3.msra.mxu0 %v9879_v41  ;;  %10381 = vmatprep.mubr.f32.mxu0 %v19486_v55  ;;  %v9876_v55 = vld [vmem:[%s20057_s5 + $0x560] sm:$0xff]  ;;  %v9838_v51 = vld [vmem:[%s20057_s5 + $0x430] sm:$0xff]  ;;  %v9853_v5 = vld [vmem:[%s20057_s5 + $0x4a8] sm:$0xff] }
 0x6b7   : > { %12319 = vmatpush3.msra.mxu1 %v9846_v48  ;;  %12353 = vmatprep.subr.mxu0 %v9894_v2  ;;  %v9886_v7 = vld [vmem:[%s20057_s5 + $0x5b0] sm:$0xff]  ;;  %v9837_v25 = vld [vmem:[%s20057_s5 + $0x428] sm:$0xff]  ;;  %v9852_v13 = vld [vmem:[%s20057_s5 + $0x4a0] sm:$0xff] }
 0x6b8   : > { %12320 = vmatprep.subr.mxu1 %v9861_v0  ;;  %12354 = vmatpush3.msra.mxu0 %v9878_v23  ;;  %v9870_v3 = vld [vmem:[%s20057_s5 + $0x530] sm:$0xff]  ;;  %v9885_v11 = vld [vmem:[%s20057_s5 + $0x5a8] sm:$0xff]  ;;  %v9836_v15 = vld [vmem:[%s20057_s5 + $0x420] sm:$0xff] }
 0x6b9   : > { %12321 = vmatpush3.msra.mxu1 %v9845_v60  ;;  %12355 = vmatprep.subr.mxu0 %v9893_v27  ;;  %v9869_v33 = vld [vmem:[%s20057_s5 + $0x528] sm:$0xff]  ;;  %v9884_v26 = vld [vmem:[%s20057_s5 + $0x5a0] sm:$0xff]  ;;  %v9851_v57 = vld [vmem:[%s20057_s5 + $0x498] sm:$0xff] }
 0x6ba   : > { %12322 = vmatprep.subr.mxu1 %v9860_v18  ;;  %12356 = vmatpush3.msra.mxu0 %v9877_v52  ;;  %v9868_v35 = vld [vmem:[%s20057_s5 + $0x520] sm:$0xff]  ;;  %v9835_v6 = vld [vmem:[%s20057_s5 + $0x418] sm:$0xff]  ;;  %v9850_v1 = vld [vmem:[%s20057_s5 + $0x490] sm:$0xff] }
 0x6bb   : > { %12323 = vmatpush3.msra.mxu1 %v9844_v31  ;;  %12357 = vmatprep.subr.mxu0 %v9892_v45  ;;  %v9883_v19 = vld [vmem:[%s20057_s5 + $0x598] sm:$0xff]  ;;  %v9834_v47 = vld [vmem:[%s20057_s5 + $0x410] sm:$0xff]  ;;  %v9849_v62 = vld [vmem:[%s20057_s5 + $0x488] sm:$0xff] }
 0x6bc   : > { %12324 = vmatprep.subr.mxu1 %v9859_v46  ;;  %12358 = vmatpush3.msra.mxu0 %v9876_v55  ;;  %v9867_v32 = vld [vmem:[%s20057_s5 + $0x518] sm:$0xff]  ;;  %v9882_v17 = vld [vmem:[%s20057_s5 + $0x590] sm:$0xff]  ;;  %v9833_v21 = vld [vmem:[%s20057_s5 + $0x408] sm:$0xff] }
 0x6bd   : > { %12325 = vmatpush3.msra.mxu1 %v9843_v56  ;;  %12359 = vmatprep.subr.mxu0 %v9891_v16  ;;  %v9866_v12 = vld [vmem:[%s20057_s5 + $0x510] sm:$0xff]  ;;  %v9881_v50 = vld [vmem:[%s20057_s5 + $0x588] sm:$0xff]  ;;  %v9848_v28 = vld [vmem:[%s20057_s5 + $0x480] sm:$0xff] }
 0x6be   : > { %12326 = vmatprep.subr.mxu1 %v9858_v63  ;;  %12360 = vmatpush3.msra.mxu0 %v9875_v39  ;;  %v9865_v44 = vld [vmem:[%s20057_s5 + $0x508] sm:$0xff]  ;;  %v9832_v41 = vld [vmem:[%s20057_s5 + $0x400] sm:$0xff]  ;;  %v9927_v0 = vld [vmem:[%s20057_s5 + $0x6f8] sm:$0xff] }
 0x6bf   : > { %12327 = vmatpush3.msra.mxu1 %v9842_v54  ;;  %12361 = vmatprep.subr.mxu0 %v9890_v4  ;;  %v9880_v48 = vld [vmem:[%s20057_s5 + $0x580] sm:$0xff]  ;;  %v9911_v23 = vld [vmem:[%s20057_s5 + $0x678] sm:$0xff]  ;;  %v9926_v27 = vld [vmem:[%s20057_s5 + $0x6f0] sm:$0xff] }
 0x6c0   : > { %12328 = vmatprep.subr.mxu1 %v9857_v42  ;;  %12362 = vmatpush3.msra.mxu0 %v9874_v10  ;;  %v9864_v2 = vld [vmem:[%s20057_s5 + $0x500] sm:$0xff]  ;;  %v9959_v60 = vld [vmem:[%s20057_s5 + $0x7f8] sm:$0xff]  ;;  %v9958_v52 = vld [vmem:[%s20057_s5 + $0x7f0] sm:$0xff] }
 0x6c1   : > { %12329 = vmatpush3.msra.mxu1 %v9841_v8  ;;  %12363 = vmatprep.subr.mxu0 %v9889_v20  ;;  %v9943_v18 = vld [vmem:[%s20057_s5 + $0x778] sm:$0xff]  ;;  %v9942_v31 = vld [vmem:[%s20057_s5 + $0x770] sm:$0xff]  ;;  %v9957_v45 = vld [vmem:[%s20057_s5 + $0x7e8] sm:$0xff] }
 0x6c2   : > { %12330 = vmatprep.subr.mxu1 %v9856_v58  ;;  %12364 = vmatpush3.msra.mxu0 %v9873_v37  ;;  %v9924_v46 = vld [vmem:[%s20057_s5 + $0x6e0] sm:$0xff]  ;;  %v9941_v55 = vld [vmem:[%s20057_s5 + $0x768] sm:$0xff]  ;;  %v9923_v16 = vld [vmem:[%s20057_s5 + $0x6d8] sm:$0xff] }
 0x6c3   : > { %12331 = vmatpush3.msra.mxu1 %v9840_v61  ;;  %12365 = vmatprep.subr.mxu0 %v9888_v49  ;;  %v9956_v56 = vld [vmem:[%s20057_s5 + $0x7e0] sm:$0xff]  ;;  %v9907_v39 = vld [vmem:[%s20057_s5 + $0x658] sm:$0xff]  ;;  %v9922_v4 = vld [vmem:[%s20057_s5 + $0x6d0] sm:$0xff] }
 0x6c4   : > { %12332 = vmatprep.subr.mxu1 %v9855_v53  ;;  %12366 = vmatpush3.msra.mxu0 %v9872_v59  ;;  %v9940_v63 = vld [vmem:[%s20057_s5 + $0x760] sm:$0xff]  ;;  %v9955_v54 = vld [vmem:[%s20057_s5 + $0x7d8] sm:$0xff]  ;;  %v9906_v10 = vld [vmem:[%s20057_s5 + $0x650] sm:$0xff] }
 0x6c5   : > { %12333 = vmatpush3.msra.mxu1 %v9839_v30  ;;  %12367 = vmatprep.subr.mxu0 %v9887_v40  ;;  %v9939_v42 = vld [vmem:[%s20057_s5 + $0x758] sm:$0xff]  ;;  %v9954_v8 = vld [vmem:[%s20057_s5 + $0x7d0] sm:$0xff]  ;;  %v9921_v20 = vld [vmem:[%s20057_s5 + $0x6c8] sm:$0xff] }
 0x6c6   : > { %12334 = vmatprep.subr.mxu1 %v9854_v29  ;;  %12368 = vmatpush3.msra.mxu0 %v9871_v38  ;;  %v9938_v58 = vld [vmem:[%s20057_s5 + $0x750] sm:$0xff]  ;;  %v9905_v37 = vld [vmem:[%s20057_s5 + $0x648] sm:$0xff]  ;;  %v9920_v49 = vld [vmem:[%s20057_s5 + $0x6c0] sm:$0xff] }
 0x6c7   : > { %12335 = vmatpush3.msra.mxu1 %v9838_v51  ;;  %12369 = vmatprep.subr.mxu0 %v9886_v7  ;;  %v9953_v61 = vld [vmem:[%s20057_s5 + $0x7c8] sm:$0xff]  ;;  %v9904_v59 = vld [vmem:[%s20057_s5 + $0x640] sm:$0xff]  ;;  %v9919_v40 = vld [vmem:[%s20057_s5 + $0x6b8] sm:$0xff] }
 0x6c8   : > { %12336 = vmatprep.subr.mxu1 %v9853_v5  ;;  %12370 = vmatpush3.msra.mxu0 %v9870_v3  ;;  %v9937_v53 = vld [vmem:[%s20057_s5 + $0x748] sm:$0xff]  ;;  %v9952_v30 = vld [vmem:[%s20057_s5 + $0x7c0] sm:$0xff]  ;;  %v9903_v38 = vld [vmem:[%s20057_s5 + $0x638] sm:$0xff] }
 0x6c9   : > { %12337 = vmatpush3.msra.mxu1 %v9837_v25  ;;  %12371 = vmatprep.subr.mxu0 %v9885_v11  ;;  %v9936_v29 = vld [vmem:[%s20057_s5 + $0x740] sm:$0xff]  ;;  %v9951_v51 = vld [vmem:[%s20057_s5 + $0x7b8] sm:$0xff]  ;;  %v9918_v7 = vld [vmem:[%s20057_s5 + $0x6b0] sm:$0xff] }
 0x6ca   : > { %12338 = vmatprep.subr.mxu1 %v9852_v13  ;;  %12372 = vmatpush3.msra.mxu0 %v9869_v33  ;;  %v9935_v5 = vld [vmem:[%s20057_s5 + $0x738] sm:$0xff]  ;;  %v9902_v3 = vld [vmem:[%s20057_s5 + $0x630] sm:$0xff]  ;;  %v9917_v11 = vld [vmem:[%s20057_s5 + $0x6a8] sm:$0xff] }
 0x6cb   : > { %12339 = vmatpush3.msra.mxu1 %v9836_v15  ;;  %12373 = vmatprep.subr.mxu0 %v9884_v26  ;;  %v9950_v25 = vld [vmem:[%s20057_s5 + $0x7b0] sm:$0xff]  ;;  %v9901_v33 = vld [vmem:[%s20057_s5 + $0x628] sm:$0xff]  ;;  %v9916_v26 = vld [vmem:[%s20057_s5 + $0x6a0] sm:$0xff] }
 0x6cc   : > { %12340 = vmatprep.subr.mxu1 %v9851_v57  ;;  %12374 = vmatpush3.msra.mxu0 %v9868_v35  ;;  %v9934_v13 = vld [vmem:[%s20057_s5 + $0x730] sm:$0xff]  ;;  %v9949_v15 = vld [vmem:[%s20057_s5 + $0x7a8] sm:$0xff]  ;;  %v9900_v35 = vld [vmem:[%s20057_s5 + $0x620] sm:$0xff] }
 0x6cd   : > { %12341 = vmatpush3.msra.mxu1 %v9835_v6  ;;  %12375 = vmatprep.subr.mxu0 %v9883_v19  ;;  %v9933_v57 = vld [vmem:[%s20057_s5 + $0x728] sm:$0xff]  ;;  %v9948_v6 = vld [vmem:[%s20057_s5 + $0x7a0] sm:$0xff]  ;;  %v9915_v19 = vld [vmem:[%s20057_s5 + $0x698] sm:$0xff] }
 0x6ce   : > { %12342 = vmatprep.subr.mxu1 %v9850_v1  ;;  %12376 = vmatpush3.msra.mxu0 %v9867_v32  ;;  %v9932_v1 = vld [vmem:[%s20057_s5 + $0x720] sm:$0xff]  ;;  %v9899_v32 = vld [vmem:[%s20057_s5 + $0x618] sm:$0xff] }
 0x6cf   : > { %12343 = vmatpush3.msra.mxu1 %v9834_v47  ;;  %12377 = vmatprep.subr.mxu0 %v9882_v17  ;;  %v9947_v47 = vld [vmem:[%s20057_s5 + $0x798] sm:$0xff]  ;;  %v9914_v17 = vld [vmem:[%s20057_s5 + $0x690] sm:$0xff] }
 0x6d0   : > { %12344 = vmatprep.subr.mxu1 %v9849_v62  ;;  %12378 = vmatpush3.msra.mxu0 %v9866_v12  ;;  %v9931_v62 = vld [vmem:[%s20057_s5 + $0x718] sm:$0xff]  ;;  %v9898_v12 = vld [vmem:[%s20057_s5 + $0x610] sm:$0xff] }
 0x6d1   : > { %12345 = vmatpush3.msra.mxu1 %v9833_v21  ;;  %12379 = vmatprep.subr.mxu0 %v9881_v50  ;;  %v9946_v21 = vld [vmem:[%s20057_s5 + $0x790] sm:$0xff]  ;;  %v9913_v50 = vld [vmem:[%s20057_s5 + $0x688] sm:$0xff] }
 0x6d2   : > { %12346 = vmatprep.subr.mxu1 %v9848_v28  ;;  %12380 = vmatpush3.msra.mxu0 %v9865_v44  ;;  %v9930_v28 = vld [vmem:[%s20057_s5 + $0x710] sm:$0xff]  ;;  %v9897_v44 = vld [vmem:[%s20057_s5 + $0x608] sm:$0xff] }
 0x6d3   : > { %12347 = vmatpush3.msra.mxu1 %v9832_v41  ;;  %12381 = vmatprep.subr.mxu0 %v9880_v48  ;;  %v9945_v41 = vld [vmem:[%s20057_s5 + $0x788] sm:$0xff]  ;;  %v9912_v48 = vld [vmem:[%s20057_s5 + $0x680] sm:$0xff] }
 0x6d4   : > { %10312 = vmatmul.mubr.f32.vlgmr.msra.gmra.mxu1 %v19473_v36  ;;  %12382 = vmatpush3.msra.mxu0 %v9864_v2  ;;  %v9910_v36 = vld [vmem:[%s20057_s5 + $0x670] sm:$0xff]  ;;  %v9929_v2 = vld [vmem:[%s20057_s5 + $0x708] sm:$0xff] }
 0x6d5   : > { %12386 = vmatprep.subr.mxu1 %v9927_v0  ;;  %10382 = vmatmul.mubr.f32.vlgmr.msra.gmra.mxu0 %v19476_v22  ;;  %v9925_v22 = vld [vmem:[%s20057_s5 + $0x6e8] sm:$0xff]  ;;  %v9896_v0 = vld [vmem:[%s20057_s5 + $0x600] sm:$0xff] }
 0x6d6   : > { %12387 = vmatpush3.msra.mxu1 %v9911_v23  ;;  %10451 = vmatprep.mubr.f32.mxu1 %v19549_v9  ;;  %v9909_v9 = vld [vmem:[%s20057_s5 + $0x668] sm:$0xff]  ;;  %v9944_v23 = vld [vmem:[%s20057_s5 + $0x780] sm:$0xff] }
 0x6d7   : > { %12421 = vmatprep.subr.mxu0 %v9959_v60  ;;  %12388 = vmatprep.subr.mxu1 %v9926_v27  ;;  %v9928_v60 = vld [vmem:[%s20057_s5 + $0x700] sm:$0xff]  ;;  %v10535_v27 = vld [vmem:[%s20059_s7 + $0x38] sm:$0xff] }
 0x6d8   : > { %12422 = vmatpush3.msra.mxu0 %v9943_v18  ;;  %10521 = vmatprep.mubr.f32.mxu0 %v19552_v43  ;;  %v9908_v43 = vld [vmem:[%s20057_s5 + $0x660] sm:$0xff]  ;;  %v10534_v18 = vld [vmem:[%s20059_s7 + $0x30] sm:$0xff] }
 0x6d9   : > { %12389 = vmatpush3.msra.mxu1 %v9910_v36  ;;  %12423 = vmatprep.subr.mxu0 %v9958_v52  ;;  %v10531_v36 = vld [vmem:[%s20059_s7 + $0x18] sm:$0xff]  ;;  %v10530_v52 = vld [vmem:[%s20059_s7 + $0x10] sm:$0xff] }
 0x6da   : > { %12390 = vmatprep.subr.mxu1 %v9925_v22  ;;  %12424 = vmatpush3.msra.mxu0 %v9942_v31  ;;  %v10529_v22 = vld [vmem:[%s20059_s7 + $0x8] sm:$0xff]  ;;  %v10528_v31 = vld [vmem:[%s20059_s7] sm:$0xff] }
 0x6db   : > { %12391 = vmatpush3.msra.mxu1 %v9909_v9  ;;  %12425 = vmatprep.subr.mxu0 %v9957_v45 }
 0x6dc   : > { %12392 = vmatprep.subr.mxu1 %v9924_v46  ;;  %12426 = vmatpush3.msra.mxu0 %v9941_v55 }
 0x6dd   : > { %12393 = vmatpush3.msra.mxu1 %v9908_v43  ;;  %12427 = vmatprep.subr.mxu0 %v9956_v56  ;;  %v11397_v56 = vld [vmem:[%s20058_s6] ss:$0 sm:$0xff] }
 0x6de   : > { %12394 = vmatprep.subr.mxu1 %v9923_v16  ;;  %12428 = vmatpush3.msra.mxu0 %v9940_v63 }
 0x6df   : > { %12395 = vmatpush3.msra.mxu1 %v9907_v39  ;;  %12429 = vmatprep.subr.mxu0 %v9955_v54 }
 0x6e0   : > { %12396 = vmatprep.subr.mxu1 %v9922_v4  ;;  %12430 = vmatpush3.msra.mxu0 %v9939_v42 }
 0x6e1   : > { %12397 = vmatpush3.msra.mxu1 %v9906_v10  ;;  %12431 = vmatprep.subr.mxu0 %v9954_v8 }
 0x6e2   : > { %12398 = vmatprep.subr.mxu1 %v9921_v20  ;;  %12432 = vmatpush3.msra.mxu0 %v9938_v58 }
 0x6e3   : > { %12399 = vmatpush3.msra.mxu1 %v9905_v37  ;;  %12433 = vmatprep.subr.mxu0 %v9953_v61 }
 0x6e4   : > { %12400 = vmatprep.subr.mxu1 %v9920_v49  ;;  %12434 = vmatpush3.msra.mxu0 %v9937_v53 }
 0x6e5   : > { %12401 = vmatpush3.msra.mxu1 %v9904_v59  ;;  %12435 = vmatprep.subr.mxu0 %v9952_v30 }
 0x6e6   : > { %12402 = vmatprep.subr.mxu1 %v9919_v40  ;;  %12436 = vmatpush3.msra.mxu0 %v9936_v29 }
 0x6e7   : > { %12403 = vmatpush3.msra.mxu1 %v9903_v38  ;;  %12437 = vmatprep.subr.mxu0 %v9951_v51 }
 0x6e8   : > { %12404 = vmatprep.subr.mxu1 %v9918_v7  ;;  %12438 = vmatpush3.msra.mxu0 %v9935_v5 }
 0x6e9   : > { %12405 = vmatpush3.msra.mxu1 %v9902_v3  ;;  %12439 = vmatprep.subr.mxu0 %v9950_v25 }
 0x6ea   : > { %12406 = vmatprep.subr.mxu1 %v9917_v11  ;;  %12440 = vmatpush3.msra.mxu0 %v9934_v13 }
 0x6eb   : > { %12407 = vmatpush3.msra.mxu1 %v9901_v33  ;;  %12441 = vmatprep.subr.mxu0 %v9949_v15 }
 0x6ec   : > { %12408 = vmatprep.subr.mxu1 %v9916_v26  ;;  %12442 = vmatpush3.msra.mxu0 %v9933_v57  ;;  %v10622_v26 = vld [vmem:[%s20061_s9 + $0x28] sm:$0xff]  ;;  %v10621_v57 = vld [vmem:[%s20061_s9 + $0x20] sm:$0xff] }
 0x6ed   : > { %12409 = vmatpush3.msra.mxu1 %v9900_v35  ;;  %12443 = vmatprep.subr.mxu0 %v9948_v6  ;;  %v10620_v35 = vld [vmem:[%s20061_s9 + $0x18] sm:$0xff]  ;;  %v10619_v6 = vld [vmem:[%s20061_s9 + $0x10] sm:$0xff] }
 0x6ee   : > { %12410 = vmatprep.subr.mxu1 %v9915_v19  ;;  %12444 = vmatpush3.msra.mxu0 %v9932_v1  ;;  %v10618_v19 = vld [vmem:[%s20061_s9 + $0x8] sm:$0xff]  ;;  %v10617_v1 = vld [vmem:[%s20061_s9] sm:$0xff] }
 0x6ef   : > { %12411 = vmatpush3.msra.mxu1 %v9899_v32  ;;  %12445 = vmatprep.subr.mxu0 %v9947_v47  ;;  %v11398_v32 = vld [vmem:[%s20060_s8] ss:$0 sm:$0xff] }
 0x6f0   : > { %12412 = vmatprep.subr.mxu1 %v9914_v17  ;;  %12446 = vmatpush3.msra.mxu0 %v9931_v62 }
 0x6f1   : > { %12413 = vmatpush3.msra.mxu1 %v9898_v12  ;;  %12447 = vmatprep.subr.mxu0 %v9946_v21  ;;  %v11400_v21 = vld [vmem:[%s20062_s10] ss:$0 sm:$0xff] }
 0x6f2   : > { %12414 = vmatprep.subr.mxu1 %v9913_v50  ;;  %12448 = vmatpush3.msra.mxu0 %v9930_v28 }
 0x6f3   : > { %12415 = vmatpush3.msra.mxu1 %v9897_v44  ;;  %12449 = vmatprep.subr.mxu0 %v9945_v41 }
 0x6f4   : > { %12416 = vmatprep.subr.mxu1 %v9912_v48  ;;  %12450 = vmatpush3.msra.mxu0 %v9929_v2 }
 0x6f5   : > { %12417 = vmatpush3.msra.mxu1 %v9896_v0  ;;  %12451 = vmatprep.subr.mxu0 %v9944_v23 }
 0x6f6   : > { %10452 = vmatmul.mubr.f32.vlgmr.msra.gmra.mxu1 %v19555_v14  ;;  %12452 = vmatpush3.msra.mxu0 %v9928_v60  ;;  %v10533_v14 = vld [vmem:[%s20059_s7 + $0x28] sm:$0xff] }
 0x6f7   : > { %10522 = vmatmul.mubr.f32.vlgmr.msra.gmra.mxu0 %v19563_v24  ;;  %13394 = vmatprep.subr.mxu1 %v21195_v34  ;;  %v10532_v24 = vld [vmem:[%s20059_s7 + $0x20] sm:$0xff] }
 0x6f8   : > { %13395 = vmatpush3.msra.mxu1 %v10535_v27  ;;  %13410 = vmatprep.mubr.msk.f32.mxu1 %vm13714_vm0, %v21195_v34 }
 0x6f9   : > { %13396 = vmatprep.subr.mxu1 %v21195_v34 }
 0x6fa   : > { %13397 = vmatpush3.msra.mxu1 %v10534_v18 }
 0x6fb   : > { %13398 = vmatprep.subr.mxu1 %v21195_v34 }
 0x6fc   : > { %13399 = vmatpush3.msra.mxu1 %v10533_v14 }
 0x6fd   : > { %13400 = vmatprep.subr.mxu1 %v21195_v34 }
 0x6fe   : > { %13401 = vmatpush3.msra.mxu1 %v10532_v24 }
 0x6ff   : > { %13402 = vmatprep.subr.mxu1 %v21195_v34 }
 0x700   : > { %13403 = vmatpush3.msra.mxu1 %v10531_v36 }
 0x701   : > { %13404 = vmatprep.subr.mxu1 %v21195_v34 }
 0x702   : > { %13405 = vmatpush3.msra.mxu1 %v10530_v52 }
 0x703   : > { %13406 = vmatprep.subr.mxu1 %v21195_v34 }
 0x704   : > { %13407 = vmatpush3.msra.mxu1 %v10529_v22 }
 0x705   : > { %13408 = vmatprep.subr.mxu1 %v21195_v34 }
 0x706   : > { %13409 = vmatpush3.msra.mxu1 %v10528_v31 }
 0x707   : > { %13413 = vmatprep.subr.mxu1 %v21195_v34 }
 0x751   : > { %v12208_v9 = vpop.f32.mrf.mxu1 }
 0x752   : > { %v12243_v45 = vpop.f32.mrf.mxu0 }
 0x753   : > { %v12209_v46 = vpop.f32.mrf.mxu1 }
 0x754   : > { %v12210_v43 = vadd.f32 %v12209_v46, %v12208_v9  ;;  %v12244_v16 = vpop.f32.mrf.mxu0 }
 0x755   : > { %v12245_v4 = vadd.f32 %v12244_v16, %v12243_v45 }
 0x756   : > { %v10034_v54 = vadd.f32 %v12210_v43, %v11397_v56 }
 0x758   : > { %v10104_v20 = vadd.f32 %v12245_v4, %v10034_v54 }
 0x772   : > { %v12278_v55 = vpop.f32.mrf.mxu1 }
 0x773   : > { %v12313_v63 = vpop.f32.mrf.mxu0 }
 0x774   : > { %v12279_v39 = vpop.f32.mrf.mxu1 }
 0x775   : > { %v12280_v10 = vadd.f32 %v12279_v39, %v12278_v55  ;;  %v12314_v8 = vpop.f32.mrf.mxu0 }
 0x776   : > { %v12315_v49 = vadd.f32 %v12314_v8, %v12313_v63 }
 0x777   : > { %v10174_v61 = vadd.f32 %v12280_v10, %v10104_v20 }
 0x779   : > { %v10244_v30 = vadd.f32 %v12315_v49, %v10174_v61 }
 0x794   : > { %v12348_v42 = vpop.f32.mrf.mxu1 }
 0x795   : > { %v12383_v58 = vpop.f32.mrf.mxu0 }
 0x796   : > { %v12349_v37 = vpop.f32.mrf.mxu1 }
 0x797   : > { %v12350_v53 = vadd.f32 %v12349_v37, %v12348_v42  ;;  %v12384_v59 = vpop.f32.mrf.mxu0 }
 0x798   : > { %v12385_v29 = vadd.f32 %v12384_v59, %v12383_v58 }
 0x799   : > { %v10314_v40 = vadd.f32 %v12350_v53, %v10244_v30 }
 0x79b   : > { %v10384_v5 = vadd.f32 %v12385_v29, %v10314_v40 }
 0x7b6   : > { %v12418_v38 = vpop.f32.mrf.mxu1 }
 0x7b7   : > { %v12453_v51 = vpop.f32.mrf.mxu0 }
 0x7b8   : > { %v12419_v7 = vpop.f32.mrf.mxu1 }
 0x7b9   : > { %v12420_v3 = vadd.f32 %v12419_v7, %v12418_v38  ;;  %v12454_v25 = vpop.f32.mrf.mxu0 }
 0x7ba   : > { %v12455_v11 = vadd.f32 %v12454_v25, %v12453_v51 }
 0x7bb   : > { %v10454_v13 = vadd.f32 %v12420_v3, %v10384_v5 }
 0x7bd   : > { %v10524_v33 = vadd.f32 %v12455_v11, %v10454_v13 }
 0x7bf   : > { %v10527_v15 = vmax.f32 %v10524_v33, 0.0 }
 0x7c1   : > { %13411 = vmatmul.mubr.msk.f32.vlgmr.msra.gmra.mxu1 %vm5651_vm5, %v10527_v15 }
 0x7c2   : > { %13414 = vmatpush3.msra.mxu1 %v10622_v26  ;;  %13425 = vmatprep.mubr.msk.f32.mxu1 %vm13714_vm0, %v21195_v34 }
 0x7c3   : > { %13415 = vmatprep.subr.mxu1 %v21195_v34 }
 0x7c4   : > { %13416 = vmatpush3.msra.mxu1 %v10621_v57 }
 0x7c5   : > { %13417 = vmatprep.subr.mxu1 %v21195_v34 }
 0x7c6   : > { %13418 = vmatpush3.msra.mxu1 %v10620_v35 }
 0x7c7   : > { %13419 = vmatprep.subr.mxu1 %v21195_v34 }
 0x7c8   : > { %13420 = vmatpush3.msra.mxu1 %v10619_v6 }
 0x7c9   : > { %13421 = vmatprep.subr.mxu1 %v21195_v34 }
 0x7ca   : > { %13422 = vmatpush3.msra.mxu1 %v10618_v19 }
 0x7cb   : > { %13423 = vmatprep.subr.mxu1 %v21195_v34 }
 0x7cc   : > { %13424 = vmatpush3.msra.mxu1 %v10617_v1 }
 0x881   : > { %v10612_v47 = vpop.f32.mrf.mxu1 }
 0x882   : > { %v10613_v17 = vadd.f32 %v11398_v32, %v10612_v47 }
 0x883   : > { %v13412_v62 = vpop.f32.mrf.mxu1 }
 0x884   : > { %v10616_v12 = vmax.f32 %v10613_v17, 0.0 }
 0x886   : > { %13426 = vmatmul.mubr.msk.f32.vlgmr.msra.gmra.mxu1 %vm10630_vm1, %v10616_v12 }
 0x946   : > { %v10700_v34 = vpop.f32.mrf.mxu1 }
 0x947   : > { %v10701_v50 = vadd.f32 %v11400_v21, %v10700_v34 }
 0x948   : > { %v13427_v28 = vpop.f32.mrf.mxu1 }
 0x949   : > { %10704 = vst [vmem:[%s382_s15] sm:$0x3] %v10701_v50 }
 0x94a   : > { %13662 = shalt.err (!%p13659_p3)
}
 0x94b   : > { %s13663_s14 = scalar_lea.hbm %s20017_s25, 32  ;;  %s13667_s15 = scalar_lea.hbm %s20063_s11, 64 }
 0x94c   : > { %p13664_p4 = scmp.ne.s32.totalorder %s20017_s25, %s13663_s14  ;;  %p13668_p9 = scmp.lt.s32.totalorder %s20017_s25, %s20063_s11 }
 0x94d   : > { %p13669_p10 = scmp.lt.s32.totalorder %s13667_s15, %s13663_s14 }
 0x94e   : > { %p13665_p7 = pnand %p13664_p4, %p13814_p5 }
 0x94f   : > { %p13670_p11 = por %p13669_p10, %p13668_p9 }
 0x950   : > { %p13666_p8 = pneg %p13665_p7 }
 0x952   : > { %p13671_p12 = pnand %p13670_p11, %p13666_p8 }
 0x954   : > { %13674 = shalt.err (!%p13671_p12)
}
 0x955   : > { %13428 = dma.vmem_to_hbm [thread:$0]  (%p13814_p5), %s10720_s16, 32, %s20017_s25, %s10706_s13  }
 0x956 PF: > { %p13434_p13 = scmp.ge.s32.totalorder %s13709_s20, 2  ;;  %s10731_s1 = sand.u32 1, %s13697_s17  }
 0x957   : > { %s10732_s12 = scalar_lea.sflag [#allocation5], %s10731_s1 }
 0x958   : > { %p13431_p0 = pnand %p13434_p13, %p13818_p6 }
 0x95a   : > { %p13432_p1 = pneg %p13431_p0 }
 0x95c   : > { %13692 = dma.done.wait (%p13432_p1), %s10732_s12, 32  }
 0x95d   : > { %13694 = vsyncadd (%p13432_p1), %s10732_s12, 4294967264  ;;  %p21_p2 = scmp.ge.s32.totalorder %s13801_s23, 4   ;;  %s21219_s17 = smov %s13701_s18 }
 0x95e   : > { %s21220_s18 = smov %s13705_s19  ;;  %s21221_s19 = smov %s13812_s26 }
 0x95f   : > { %s21222_s20 = smov %s13801_s23  ;;  %23 = sbr.rel (!%p21_p2) target bundleno = 6 (0x6), region = 111 }
 0x964   :  { %10737 = vsyncpa [#allocation5], 1 }
 0x965   :  { %10739 = vsyncpa [#allocation5 + $0x1], 1 }

</bundles_post_ra>
